<compile_context>
chip_gen: v7x
topology: tpu7x:2x2x1
jax: 0.10.0
libtpu: 0.0.40
codegen_flags: <defaults>
</compile_context>

<pallas_src>
import functools

import jax
import jax.numpy as jnp
from jax import lax
from jax.experimental import pallas as pl
from jax.experimental.pallas import tpu as pltpu


def _encoder_kernel(x_ref, w1_ref, b1_ref, w2_ref, b2_ref,
                    wm1_ref, bm1_ref, wm2_ref, bm2_ref,
                    out_ref, *, h_dim, w_dim, out_lanes):
    C, N, P = x_ref.shape                 # channels, folded batch (2B), H*W
    H, W = h_dim, w_dim
    proj = wm2_ref.shape[1]

    # Per-channel lane-dense activation planes.
    x = [x_ref[c] for c in range(C)]      # C x (N, P) f32

    # Flat-position / column-index planes (W is a power of two -> cheap bit ops).
    pos = lax.broadcasted_iota(jnp.int32, (N, P), 1)
    col = jnp.bitwise_and(pos, W - 1)     # w coordinate of each lane

    def tap_mask(oy, ox):
        """Validity mask for tap offset (oy, ox) under zero padding=1 (None == all valid)."""
        def _and(a, b):
            return b if a is None else jnp.logical_and(a, b)
        m = None
        if oy == -1:
            m = _and(m, pos >= W)                 # h >= 1
        elif oy == 1:
            m = _and(m, pos < (H - 1) * W)        # h <= H-2
        if ox == -1:
            m = _and(m, col >= 1)                 # w >= 1
        elif ox == 1:
            m = _and(m, col <= W - 2)             # w <= W-2
        return m

    def conv3x3(slabs, w_ref, b_ref):
        """'Same' 3x3 cross-correlation on the VPU over per-channel (N, P) planes.

        Weights are a flat SMEM table with layout [(dy*3+dx)*C + ci]*C + co
        (i.e. a reshape(-1) of a (3, 3, Cin, Cout) tensor)."""
        accs = [jnp.zeros((N, P), jnp.float32) for _ in range(C)]
        for dy in range(3):
            for dx in range(3):
                oy, ox = dy - 1, dx - 1
                delta = oy * W + ox               # flat source offset of this tap
                mask = tap_mask(oy, ox)
                t = dy * 3 + dx
                for ci in range(C):
                    xs = slabs[ci] if delta == 0 else jnp.roll(slabs[ci], -delta, axis=1)
                    if mask is not None:
                        xs = jnp.where(mask, xs, 0.0)
                    base = (t * C + ci) * C
                    for co in range(C):
                        accs[co] = accs[co] + xs * w_ref[base + co]
        return [accs[co] + b_ref[co] for co in range(C)]

    # --- ResBlock ----------------------------------------------------------------
    y1 = [jnp.maximum(v, 0.0) for v in conv3x3(x, w1_ref, b1_ref)]
    y2 = conv3x3(y1, w2_ref, b2_ref)
    res = [x[c] + y2[c] for c in range(C)]

    # --- global average pool (fused lane reduction) -> h in R^{N x C} -------------
    inv_p = jnp.float32(1.0 / P)
    h = jnp.concatenate(
        [jnp.sum(res[c], axis=1, keepdims=True) for c in range(C)], axis=1) * inv_p

    # --- MLP head: Linear -> LeakyReLU(0.01) -> Linear (bf16 MXU, f32 accum) ------
    z = jnp.dot(h.astype(jnp.bfloat16), wm1_ref[...].astype(jnp.bfloat16),
                preferred_element_type=jnp.float32) + bm1_ref[...]
    z = jnp.where(z >= 0.0, z, 0.01 * z)          # PyTorch nn.LeakyReLU default slope
    mlp = jnp.dot(z.astype(jnp.bfloat16), wm2_ref[...].astype(jnp.bfloat16),
                  preferred_element_type=jnp.float32) + bm2_ref[...]

    # --- pack both heads into one lane-dense slab and store it once ----------------
    pad = out_lanes - (C + proj)
    out_ref[...] = jnp.concatenate(
        [h, mlp, jnp.zeros((N, pad), jnp.float32)], axis=1)


def resb_simclr_forward(x_i, x_j, params):
    """x_i, x_j: NCHW float32 arrays of identical shape (B, C, H, W)."""
    B, C, H, W = x_i.shape
    assert x_j.shape == x_i.shape
    # TODO(synk): non-power-of-two W needs an integer mod for the column mask.
    assert (W & (W - 1)) == 0, "kernel uses bit tricks for the column index"

    w1, b1, w2, b2, wm1, bm1, wm2, bm2 = params
    HID, PROJ = wm1.shape[1], wm2.shape[1]
    N, P = 2 * B, H * W
    OUT_LANES = 128
    assert C + PROJ <= OUT_LANES

    # Fold the two views into the batch dim and repack NCHW -> channel-major,
    # lane-dense (C, 2B, H*W) planes (layout plumbing only; compute is in-kernel).
    x = jnp.concatenate([x_i, x_j], axis=0)                  # (2B, C, H, W)
    x_planes = x.transpose(1, 0, 2, 3).reshape(C, N, P)      # (C, 2B, H*W)

    kernel = functools.partial(_encoder_kernel, h_dim=H, w_dim=W, out_lanes=OUT_LANES)

    vmem = pl.BlockSpec(memory_space=pltpu.MemorySpace.VMEM)
    smem = pl.BlockSpec(memory_space=pltpu.MemorySpace.SMEM)

    packed = pl.pallas_call(
        kernel,
        out_shape=jax.ShapeDtypeStruct((N, OUT_LANES), jnp.float32),
        in_specs=[vmem,                      # x planes
                  smem, smem, smem, smem,    # conv weight / bias scalar tables
                  vmem, vmem, vmem, vmem],   # MLP weights / biases
        out_specs=vmem,
    )(x_planes,
      w1.reshape(-1), b1, w2.reshape(-1), b2,
      wm1, bm1.reshape(1, HID), wm2, bm2.reshape(1, PROJ))

    h_all = packed[:, :C]                    # (2B, C)
    mlp_all = packed[:, C:C + PROJ]          # (2B, PROJ)
    return h_all[:B], h_all[B:], mlp_all[:B], mlp_all[B:]


def _reference_forward(x_i, x_j, params):
    """Pure-JAX/XLA reference of the same encoder (f32 HIGHEST precision)."""
    w1, b1, w2, b2, wm1, bm1, wm2, bm2 = params
    dn = ("NCHW", "HWIO", "NCHW")
    hi = lax.Precision.HIGHEST

    def conv(x, w, b):
        y = lax.conv_general_dilated(x, w, (1, 1), "SAME",
                                     dimension_numbers=dn, precision=hi)
        return y + b.reshape(1, -1, 1, 1)

    def encoder(x):
        y = jnp.maximum(conv(x, w1, b1), 0.0)
        y = conv(y, w2, b2)
        res = x + y
        h = res.mean(axis=(2, 3))
        z = jnp.dot(h, wm1, precision=hi) + bm1
        z = jnp.where(z >= 0.0, z, 0.01 * z)
        return h, jnp.dot(z, wm2, precision=hi) + bm2

    h_i, mlp_i = encoder(x_i)
    h_j, mlp_j = encoder(x_j)
    return h_i, h_j, mlp_i, mlp_j


def init_params(key, C, HID, PROJ):
    ks = jax.random.split(key, 8)
    # conv weights as (kh, kw, Cin, Cout); linear weights as (in, out)
    w1 = 0.1 * jax.random.normal(ks[0], (3, 3, C, C), jnp.float32)
    b1 = 0.01 * jax.random.normal(ks[1], (C,), jnp.float32)
    w2 = 0.1 * jax.random.normal(ks[2], (3, 3, C, C), jnp.float32)
    b2 = 0.01 * jax.random.normal(ks[3], (C,), jnp.float32)
    wm1 = 0.1 * jax.random.normal(ks[4], (C, HID), jnp.float32)
    bm1 = 0.01 * jax.random.normal(ks[5], (HID,), jnp.float32)
    wm2 = 0.1 * jax.random.normal(ks[6], (HID, PROJ), jnp.float32)
    bm2 = 0.01 * jax.random.normal(ks[7], (PROJ,), jnp.float32)
    return (w1, b1, w2, b2, wm1, bm1, wm2, bm2)


if __name__ == "__main__":
    B, C, H, W = 2, 4, 16, 16
    HID, PROJ = 32, 32

    key = jax.random.PRNGKey(0)
    k_params, k_xi, k_xj = jax.random.split(key, 3)
    params = init_params(k_params, C, HID, PROJ)

    # PyTorch-style NCHW inputs (the two augmented views)
    x_i = jax.random.normal(k_xi, (B, C, H, W), jnp.float32)
    x_j = jax.random.normal(k_xj, (B, C, H, W), jnp.float32)

    h_i, h_j, mlp_i, mlp_j = jax.jit(resb_simclr_forward)(x_i, x_j, params)
    jax.block_until_ready((h_i, h_j, mlp_i, mlp_j))

    assert h_i.shape == (B, C) and h_j.shape == (B, C)
    assert mlp_i.shape == (B, PROJ) and mlp_j.shape == (B, PROJ)

    # Cross-check against a pure-JAX reference of the same encoder.
    rh_i, rh_j, rm_i, rm_j = _reference_forward(x_i, x_j, params)
    assert jnp.allclose(h_i, rh_i, atol=1e-3, rtol=1e-3)
    assert jnp.allclose(h_j, rh_j, atol=1e-3, rtol=1e-3)
    # MLP head runs in bf16 on the MXU inside the kernel -> looser tolerance.
    assert jnp.allclose(mlp_i, rm_i, atol=5e-3, rtol=5e-2)
    assert jnp.allclose(mlp_j, rm_j, atol=5e-3, rtol=5e-2)

    print("KERNEL_OK")
</pallas_src>

<mosaic_0001>
module attributes {stable_mosaic.version = 11 : i64} {
  func.func @_encoder_kernel(%arg0: memref<4x4x256xf32, #tpu.memory_space<vmem>>, %arg1: memref<144xf32, #tpu.memory_space<smem>>, %arg2: memref<4xf32, #tpu.memory_space<smem>>, %arg3: memref<144xf32, #tpu.memory_space<smem>>, %arg4: memref<4xf32, #tpu.memory_space<smem>>, %arg5: memref<4x32xf32, #tpu.memory_space<vmem>>, %arg6: memref<1x32xf32, #tpu.memory_space<vmem>>, %arg7: memref<32x32xf32, #tpu.memory_space<vmem>>, %arg8: memref<1x32xf32, #tpu.memory_space<vmem>>, %arg9: memref<4x128xf32, #tpu.memory_space<vmem>>) attributes {dimension_semantics = [], scalar_prefetch = 0 : i64, scratch_operands = 0 : i64, tpu.core_type = #tpu.core_type<tc>} {
    %c0 = arith.constant 0 : index
    %c0_0 = arith.constant 0 : index
    %c0_1 = arith.constant 0 : index
    %0 = vector.load %arg0[%c0, %c0_0, %c0_1] : memref<4x4x256xf32, #tpu.memory_space<vmem>>, vector<1x4x256xf32>
    %1 = vector.shape_cast %0 : vector<1x4x256xf32> to vector<4x256xf32>
    %c1 = arith.constant 1 : index
    %c0_2 = arith.constant 0 : index
    %c0_3 = arith.constant 0 : index
    %2 = vector.load %arg0[%c1, %c0_2, %c0_3] : memref<4x4x256xf32, #tpu.memory_space<vmem>>, vector<1x4x256xf32>
    %3 = vector.shape_cast %2 : vector<1x4x256xf32> to vector<4x256xf32>
    %c2 = arith.constant 2 : index
    %c0_4 = arith.constant 0 : index
    %c0_5 = arith.constant 0 : index
    %4 = vector.load %arg0[%c2, %c0_4, %c0_5] : memref<4x4x256xf32, #tpu.memory_space<vmem>>, vector<1x4x256xf32>
    %5 = vector.shape_cast %4 : vector<1x4x256xf32> to vector<4x256xf32>
    %c3 = arith.constant 3 : index
    %c0_6 = arith.constant 0 : index
    %c0_7 = arith.constant 0 : index
    %6 = vector.load %arg0[%c3, %c0_6, %c0_7] : memref<4x4x256xf32, #tpu.memory_space<vmem>>, vector<1x4x256xf32>
    %7 = vector.shape_cast %6 : vector<1x4x256xf32> to vector<4x256xf32>
    %8 = tpu.iota {dimensions = array<i32: 1>} : vector<4x256xi32>
    %c15_i32 = arith.constant 15 : i32
    %9 = vector.broadcast %c15_i32 : i32 to vector<4x256xi32>
    %10 = arith.andi %8, %9 : vector<4x256xi32>
    %cst = arith.constant 0.000000e+00 : f32
    %11 = vector.broadcast %cst : f32 to vector<4x256xf32>
    %cst_8 = arith.constant 0.000000e+00 : f32
    %12 = vector.broadcast %cst_8 : f32 to vector<4x256xf32>
    %cst_9 = arith.constant 0.000000e+00 : f32
    %13 = vector.broadcast %cst_9 : f32 to vector<4x256xf32>
    %cst_10 = arith.constant 0.000000e+00 : f32
    %14 = vector.broadcast %cst_10 : f32 to vector<4x256xf32>
    %c16_i32 = arith.constant 16 : i32
    %15 = vector.broadcast %c16_i32 : i32 to vector<4x256xi32>
    %16 = arith.cmpi sge, %8, %15 : vector<4x256xi32>
    %c1_i32 = arith.constant 1 : i32
    %17 = vector.broadcast %c1_i32 : i32 to vector<4x256xi32>
    %18 = arith.cmpi sge, %10, %17 : vector<4x256xi32>
    %19 = arith.andi %16, %18 : vector<4x256xi1>
    %20 = vector.extract_strided_slice %1 {offsets = [0, 239], sizes = [4, 17], strides = [1, 1]} : vector<4x256xf32> to vector<4x17xf32>
    %21 = vector.extract_strided_slice %1 {offsets = [0, 0], sizes = [4, 239], strides = [1, 1]} : vector<4x256xf32> to vector<4x239xf32>
    %22 = tpu.concatenate %20, %21 in 1 : vector<4x17xf32>, vector<4x239xf32> -> vector<4x256xf32>
    %cst_11 = arith.constant 0.000000e+00 : f32
    %23 = vector.broadcast %cst_11 : f32 to vector<4x256xf32>
    %24 = arith.select %19, %22, %23 : vector<4x256xi1>, vector<4x256xf32>
    %c0_12 = arith.constant 0 : index
    %25 = memref.load %arg1[%c0_12] : memref<144xf32, #tpu.memory_space<smem>>
    %26 = vector.broadcast %25 : f32 to vector<4x256xf32>
    %27 = arith.mulf %24, %26 : vector<4x256xf32>
    %28 = arith.addf %11, %27 : vector<4x256xf32>
    %c1_13 = arith.constant 1 : index
    %29 = memref.load %arg1[%c1_13] : memref<144xf32, #tpu.memory_space<smem>>
    %30 = vector.broadcast %29 : f32 to vector<4x256xf32>
    %31 = arith.mulf %24, %30 : vector<4x256xf32>
    %32 = arith.addf %12, %31 : vector<4x256xf32>
    %c2_14 = arith.constant 2 : index
    %33 = memref.load %arg1[%c2_14] : memref<144xf32, #tpu.memory_space<smem>>
    %34 = vector.broadcast %33 : f32 to vector<4x256xf32>
    %35 = arith.mulf %24, %34 : vector<4x256xf32>
    %36 = arith.addf %13, %35 : vector<4x256xf32>
    %c3_15 = arith.constant 3 : index
    %37 = memref.load %arg1[%c3_15] : memref<144xf32, #tpu.memory_space<smem>>
    %38 = vector.broadcast %37 : f32 to vector<4x256xf32>
    %39 = arith.mulf %24, %38 : vector<4x256xf32>
    %40 = arith.addf %14, %39 : vector<4x256xf32>
    %41 = vector.extract_strided_slice %3 {offsets = [0, 239], sizes = [4, 17], strides = [1, 1]} : vector<4x256xf32> to vector<4x17xf32>
    %42 = vector.extract_strided_slice %3 {offsets = [0, 0], sizes = [4, 239], strides = [1, 1]} : vector<4x256xf32> to vector<4x239xf32>
    %43 = tpu.concatenate %41, %42 in 1 : vector<4x17xf32>, vector<4x239xf32> -> vector<4x256xf32>
    %cst_16 = arith.constant 0.000000e+00 : f32
    %44 = vector.broadcast %cst_16 : f32 to vector<4x256xf32>
    %45 = arith.select %19, %43, %44 : vector<4x256xi1>, vector<4x256xf32>
    %c4 = arith.constant 4 : index
    %46 = memref.load %arg1[%c4] : memref<144xf32, #tpu.memory_space<smem>>
    %47 = vector.broadcast %46 : f32 to vector<4x256xf32>
    %48 = arith.mulf %45, %47 : vector<4x256xf32>
    %49 = arith.addf %28, %48 : vector<4x256xf32>
    %c5 = arith.constant 5 : index
    %50 = memref.load %arg1[%c5] : memref<144xf32, #tpu.memory_space<smem>>
    %51 = vector.broadcast %50 : f32 to vector<4x256xf32>
    %52 = arith.mulf %45, %51 : vector<4x256xf32>
    %53 = arith.addf %32, %52 : vector<4x256xf32>
    %c6 = arith.constant 6 : index
    %54 = memref.load %arg1[%c6] : memref<144xf32, #tpu.memory_space<smem>>
    %55 = vector.broadcast %54 : f32 to vector<4x256xf32>
    %56 = arith.mulf %45, %55 : vector<4x256xf32>
    %57 = arith.addf %36, %56 : vector<4x256xf32>
    %c7 = arith.constant 7 : index
    %58 = memref.load %arg1[%c7] : memref<144xf32, #tpu.memory_space<smem>>
    %59 = vector.broadcast %58 : f32 to vector<4x256xf32>
    %60 = arith.mulf %45, %59 : vector<4x256xf32>
    %61 = arith.addf %40, %60 : vector<4x256xf32>
    %62 = vector.extract_strided_slice %5 {offsets = [0, 239], sizes = [4, 17], strides = [1, 1]} : vector<4x256xf32> to vector<4x17xf32>
    %63 = vector.extract_strided_slice %5 {offsets = [0, 0], sizes = [4, 239], strides = [1, 1]} : vector<4x256xf32> to vector<4x239xf32>
    %64 = tpu.concatenate %62, %63 in 1 : vector<4x17xf32>, vector<4x239xf32> -> vector<4x256xf32>
    %cst_17 = arith.constant 0.000000e+00 : f32
    %65 = vector.broadcast %cst_17 : f32 to vector<4x256xf32>
    %66 = arith.select %19, %64, %65 : vector<4x256xi1>, vector<4x256xf32>
    %c8 = arith.constant 8 : index
    %67 = memref.load %arg1[%c8] : memref<144xf32, #tpu.memory_space<smem>>
    %68 = vector.broadcast %67 : f32 to vector<4x256xf32>
    %69 = arith.mulf %66, %68 : vector<4x256xf32>
    %70 = arith.addf %49, %69 : vector<4x256xf32>
    %c9 = arith.constant 9 : index
    %71 = memref.load %arg1[%c9] : memref<144xf32, #tpu.memory_space<smem>>
    %72 = vector.broadcast %71 : f32 to vector<4x256xf32>
    %73 = arith.mulf %66, %72 : vector<4x256xf32>
    %74 = arith.addf %53, %73 : vector<4x256xf32>
    %c10 = arith.constant 10 : index
    %75 = memref.load %arg1[%c10] : memref<144xf32, #tpu.memory_space<smem>>
    %76 = vector.broadcast %75 : f32 to vector<4x256xf32>
    %77 = arith.mulf %66, %76 : vector<4x256xf32>
    %78 = arith.addf %57, %77 : vector<4x256xf32>
    %c11 = arith.constant 11 : index
    %79 = memref.load %arg1[%c11] : memref<144xf32, #tpu.memory_space<smem>>
    %80 = vector.broadcast %79 : f32 to vector<4x256xf32>
    %81 = arith.mulf %66, %80 : vector<4x256xf32>
    %82 = arith.addf %61, %81 : vector<4x256xf32>
    %83 = vector.extract_strided_slice %7 {offsets = [0, 239], sizes = [4, 17], strides = [1, 1]} : vector<4x256xf32> to vector<4x17xf32>
    %84 = vector.extract_strided_slice %7 {offsets = [0, 0], sizes = [4, 239], strides = [1, 1]} : vector<4x256xf32> to vector<4x239xf32>
    %85 = tpu.concatenate %83, %84 in 1 : vector<4x17xf32>, vector<4x239xf32> -> vector<4x256xf32>
    %cst_18 = arith.constant 0.000000e+00 : f32
    %86 = vector.broadcast %cst_18 : f32 to vector<4x256xf32>
    %87 = arith.select %19, %85, %86 : vector<4x256xi1>, vector<4x256xf32>
    %c12 = arith.constant 12 : index
    %88 = memref.load %arg1[%c12] : memref<144xf32, #tpu.memory_space<smem>>
    %89 = vector.broadcast %88 : f32 to vector<4x256xf32>
    %90 = arith.mulf %87, %89 : vector<4x256xf32>
    %91 = arith.addf %70, %90 : vector<4x256xf32>
    %c13 = arith.constant 13 : index
    %92 = memref.load %arg1[%c13] : memref<144xf32, #tpu.memory_space<smem>>
    %93 = vector.broadcast %92 : f32 to vector<4x256xf32>
    %94 = arith.mulf %87, %93 : vector<4x256xf32>
    %95 = arith.addf %74, %94 : vector<4x256xf32>
    %c14 = arith.constant 14 : index
    %96 = memref.load %arg1[%c14] : memref<144xf32, #tpu.memory_space<smem>>
    %97 = vector.broadcast %96 : f32 to vector<4x256xf32>
    %98 = arith.mulf %87, %97 : vector<4x256xf32>
    %99 = arith.addf %78, %98 : vector<4x256xf32>
    %c15 = arith.constant 15 : index
    %100 = memref.load %arg1[%c15] : memref<144xf32, #tpu.memory_space<smem>>
    %101 = vector.broadcast %100 : f32 to vector<4x256xf32>
    %102 = arith.mulf %87, %101 : vector<4x256xf32>
    %103 = arith.addf %82, %102 : vector<4x256xf32>
    %c16_i32_19 = arith.constant 16 : i32
    %104 = vector.broadcast %c16_i32_19 : i32 to vector<4x256xi32>
    %105 = arith.cmpi sge, %8, %104 : vector<4x256xi32>
    %106 = vector.extract_strided_slice %1 {offsets = [0, 240], sizes = [4, 16], strides = [1, 1]} : vector<4x256xf32> to vector<4x16xf32>
    %107 = vector.extract_strided_slice %1 {offsets = [0, 0], sizes = [4, 240], strides = [1, 1]} : vector<4x256xf32> to vector<4x240xf32>
    %108 = tpu.concatenate %106, %107 in 1 : vector<4x16xf32>, vector<4x240xf32> -> vector<4x256xf32>
    %cst_20 = arith.constant 0.000000e+00 : f32
    %109 = vector.broadcast %cst_20 : f32 to vector<4x256xf32>
    %110 = arith.select %105, %108, %109 : vector<4x256xi1>, vector<4x256xf32>
    %c16 = arith.constant 16 : index
    %111 = memref.load %arg1[%c16] : memref<144xf32, #tpu.memory_space<smem>>
    %112 = vector.broadcast %111 : f32 to vector<4x256xf32>
    %113 = arith.mulf %110, %112 : vector<4x256xf32>
    %114 = arith.addf %91, %113 : vector<4x256xf32>
    %c17 = arith.constant 17 : index
    %115 = memref.load %arg1[%c17] : memref<144xf32, #tpu.memory_space<smem>>
    %116 = vector.broadcast %115 : f32 to vector<4x256xf32>
    %117 = arith.mulf %110, %116 : vector<4x256xf32>
    %118 = arith.addf %95, %117 : vector<4x256xf32>
    %c18 = arith.constant 18 : index
    %119 = memref.load %arg1[%c18] : memref<144xf32, #tpu.memory_space<smem>>
    %120 = vector.broadcast %119 : f32 to vector<4x256xf32>
    %121 = arith.mulf %110, %120 : vector<4x256xf32>
    %122 = arith.addf %99, %121 : vector<4x256xf32>
    %c19 = arith.constant 19 : index
    %123 = memref.load %arg1[%c19] : memref<144xf32, #tpu.memory_space<smem>>
    %124 = vector.broadcast %123 : f32 to vector<4x256xf32>
    %125 = arith.mulf %110, %124 : vector<4x256xf32>
    %126 = arith.addf %103, %125 : vector<4x256xf32>
    %127 = vector.extract_strided_slice %3 {offsets = [0, 240], sizes = [4, 16], strides = [1, 1]} : vector<4x256xf32> to vector<4x16xf32>
    %128 = vector.extract_strided_slice %3 {offsets = [0, 0], sizes = [4, 240], strides = [1, 1]} : vector<4x256xf32> to vector<4x240xf32>
    %129 = tpu.concatenate %127, %128 in 1 : vector<4x16xf32>, vector<4x240xf32> -> vector<4x256xf32>
    %cst_21 = arith.constant 0.000000e+00 : f32
    %130 = vector.broadcast %cst_21 : f32 to vector<4x256xf32>
    %131 = arith.select %105, %129, %130 : vector<4x256xi1>, vector<4x256xf32>
    %c20 = arith.constant 20 : index
    %132 = memref.load %arg1[%c20] : memref<144xf32, #tpu.memory_space<smem>>
    %133 = vector.broadcast %132 : f32 to vector<4x256xf32>
    %134 = arith.mulf %131, %133 : vector<4x256xf32>
    %135 = arith.addf %114, %134 : vector<4x256xf32>
    %c21 = arith.constant 21 : index
    %136 = memref.load %arg1[%c21] : memref<144xf32, #tpu.memory_space<smem>>
    %137 = vector.broadcast %136 : f32 to vector<4x256xf32>
    %138 = arith.mulf %131, %137 : vector<4x256xf32>
    %139 = arith.addf %118, %138 : vector<4x256xf32>
    %c22 = arith.constant 22 : index
    %140 = memref.load %arg1[%c22] : memref<144xf32, #tpu.memory_space<smem>>
    %141 = vector.broadcast %140 : f32 to vector<4x256xf32>
    %142 = arith.mulf %131, %141 : vector<4x256xf32>
    %143 = arith.addf %122, %142 : vector<4x256xf32>
    %c23 = arith.constant 23 : index
    %144 = memref.load %arg1[%c23] : memref<144xf32, #tpu.memory_space<smem>>
    %145 = vector.broadcast %144 : f32 to vector<4x256xf32>
    %146 = arith.mulf %131, %145 : vector<4x256xf32>
    %147 = arith.addf %126, %146 : vector<4x256xf32>
    %148 = vector.extract_strided_slice %5 {offsets = [0, 240], sizes = [4, 16], strides = [1, 1]} : vector<4x256xf32> to vector<4x16xf32>
    %149 = vector.extract_strided_slice %5 {offsets = [0, 0], sizes = [4, 240], strides = [1, 1]} : vector<4x256xf32> to vector<4x240xf32>
    %150 = tpu.concatenate %148, %149 in 1 : vector<4x16xf32>, vector<4x240xf32> -> vector<4x256xf32>
    %cst_22 = arith.constant 0.000000e+00 : f32
    %151 = vector.broadcast %cst_22 : f32 to vector<4x256xf32>
    %152 = arith.select %105, %150, %151 : vector<4x256xi1>, vector<4x256xf32>
    %c24 = arith.constant 24 : index
    %153 = memref.load %arg1[%c24] : memref<144xf32, #tpu.memory_space<smem>>
    %154 = vector.broadcast %153 : f32 to vector<4x256xf32>
    %155 = arith.mulf %152, %154 : vector<4x256xf32>
    %156 = arith.addf %135, %155 : vector<4x256xf32>
    %c25 = arith.constant 25 : index
    %157 = memref.load %arg1[%c25] : memref<144xf32, #tpu.memory_space<smem>>
    %158 = vector.broadcast %157 : f32 to vector<4x256xf32>
    %159 = arith.mulf %152, %158 : vector<4x256xf32>
    %160 = arith.addf %139, %159 : vector<4x256xf32>
    %c26 = arith.constant 26 : index
    %161 = memref.load %arg1[%c26] : memref<144xf32, #tpu.memory_space<smem>>
    %162 = vector.broadcast %161 : f32 to vector<4x256xf32>
    %163 = arith.mulf %152, %162 : vector<4x256xf32>
    %164 = arith.addf %143, %163 : vector<4x256xf32>
    %c27 = arith.constant 27 : index
    %165 = memref.load %arg1[%c27] : memref<144xf32, #tpu.memory_space<smem>>
    %166 = vector.broadcast %165 : f32 to vector<4x256xf32>
    %167 = arith.mulf %152, %166 : vector<4x256xf32>
    %168 = arith.addf %147, %167 : vector<4x256xf32>
    %169 = vector.extract_strided_slice %7 {offsets = [0, 240], sizes = [4, 16], strides = [1, 1]} : vector<4x256xf32> to vector<4x16xf32>
    %170 = vector.extract_strided_slice %7 {offsets = [0, 0], sizes = [4, 240], strides = [1, 1]} : vector<4x256xf32> to vector<4x240xf32>
    %171 = tpu.concatenate %169, %170 in 1 : vector<4x16xf32>, vector<4x240xf32> -> vector<4x256xf32>
    %cst_23 = arith.constant 0.000000e+00 : f32
    %172 = vector.broadcast %cst_23 : f32 to vector<4x256xf32>
    %173 = arith.select %105, %171, %172 : vector<4x256xi1>, vector<4x256xf32>
    %c28 = arith.constant 28 : index
    %174 = memref.load %arg1[%c28] : memref<144xf32, #tpu.memory_space<smem>>
    %175 = vector.broadcast %174 : f32 to vector<4x256xf32>
    %176 = arith.mulf %173, %175 : vector<4x256xf32>
    %177 = arith.addf %156, %176 : vector<4x256xf32>
    %c29 = arith.constant 29 : index
    %178 = memref.load %arg1[%c29] : memref<144xf32, #tpu.memory_space<smem>>
    %179 = vector.broadcast %178 : f32 to vector<4x256xf32>
    %180 = arith.mulf %173, %179 : vector<4x256xf32>
    %181 = arith.addf %160, %180 : vector<4x256xf32>
    %c30 = arith.constant 30 : index
    %182 = memref.load %arg1[%c30] : memref<144xf32, #tpu.memory_space<smem>>
    %183 = vector.broadcast %182 : f32 to vector<4x256xf32>
    %184 = arith.mulf %173, %183 : vector<4x256xf32>
    %185 = arith.addf %164, %184 : vector<4x256xf32>
    %c31 = arith.constant 31 : index
    %186 = memref.load %arg1[%c31] : memref<144xf32, #tpu.memory_space<smem>>
    %187 = vector.broadcast %186 : f32 to vector<4x256xf32>
    %188 = arith.mulf %173, %187 : vector<4x256xf32>
    %189 = arith.addf %168, %188 : vector<4x256xf32>
    %c16_i32_24 = arith.constant 16 : i32
    %190 = vector.broadcast %c16_i32_24 : i32 to vector<4x256xi32>
    %191 = arith.cmpi sge, %8, %190 : vector<4x256xi32>
    %c14_i32 = arith.constant 14 : i32
    %192 = vector.broadcast %c14_i32 : i32 to vector<4x256xi32>
    %193 = arith.cmpi sle, %10, %192 : vector<4x256xi32>
    %194 = arith.andi %191, %193 : vector<4x256xi1>
    %195 = vector.extract_strided_slice %1 {offsets = [0, 241], sizes = [4, 15], strides = [1, 1]} : vector<4x256xf32> to vector<4x15xf32>
    %196 = vector.extract_strided_slice %1 {offsets = [0, 0], sizes = [4, 241], strides = [1, 1]} : vector<4x256xf32> to vector<4x241xf32>
    %197 = tpu.concatenate %195, %196 in 1 : vector<4x15xf32>, vector<4x241xf32> -> vector<4x256xf32>
    %cst_25 = arith.constant 0.000000e+00 : f32
    %198 = vector.broadcast %cst_25 : f32 to vector<4x256xf32>
    %199 = arith.select %194, %197, %198 : vector<4x256xi1>, vector<4x256xf32>
    %c32 = arith.constant 32 : index
    %200 = memref.load %arg1[%c32] : memref<144xf32, #tpu.memory_space<smem>>
    %201 = vector.broadcast %200 : f32 to vector<4x256xf32>
    %202 = arith.mulf %199, %201 : vector<4x256xf32>
    %203 = arith.addf %177, %202 : vector<4x256xf32>
    %c33 = arith.constant 33 : index
    %204 = memref.load %arg1[%c33] : memref<144xf32, #tpu.memory_space<smem>>
    %205 = vector.broadcast %204 : f32 to vector<4x256xf32>
    %206 = arith.mulf %199, %205 : vector<4x256xf32>
    %207 = arith.addf %181, %206 : vector<4x256xf32>
    %c34 = arith.constant 34 : index
    %208 = memref.load %arg1[%c34] : memref<144xf32, #tpu.memory_space<smem>>
    %209 = vector.broadcast %208 : f32 to vector<4x256xf32>
    %210 = arith.mulf %199, %209 : vector<4x256xf32>
    %211 = arith.addf %185, %210 : vector<4x256xf32>
    %c35 = arith.constant 35 : index
    %212 = memref.load %arg1[%c35] : memref<144xf32, #tpu.memory_space<smem>>
    %213 = vector.broadcast %212 : f32 to vector<4x256xf32>
    %214 = arith.mulf %199, %213 : vector<4x256xf32>
    %215 = arith.addf %189, %214 : vector<4x256xf32>
    %216 = vector.extract_strided_slice %3 {offsets = [0, 241], sizes = [4, 15], strides = [1, 1]} : vector<4x256xf32> to vector<4x15xf32>
    %217 = vector.extract_strided_slice %3 {offsets = [0, 0], sizes = [4, 241], strides = [1, 1]} : vector<4x256xf32> to vector<4x241xf32>
    %218 = tpu.concatenate %216, %217 in 1 : vector<4x15xf32>, vector<4x241xf32> -> vector<4x256xf32>
    %cst_26 = arith.constant 0.000000e+00 : f32
    %219 = vector.broadcast %cst_26 : f32 to vector<4x256xf32>
    %220 = arith.select %194, %218, %219 : vector<4x256xi1>, vector<4x256xf32>
    %c36 = arith.constant 36 : index
    %221 = memref.load %arg1[%c36] : memref<144xf32, #tpu.memory_space<smem>>
    %222 = vector.broadcast %221 : f32 to vector<4x256xf32>
    %223 = arith.mulf %220, %222 : vector<4x256xf32>
    %224 = arith.addf %203, %223 : vector<4x256xf32>
    %c37 = arith.constant 37 : index
    %225 = memref.load %arg1[%c37] : memref<144xf32, #tpu.memory_space<smem>>
    %226 = vector.broadcast %225 : f32 to vector<4x256xf32>
    %227 = arith.mulf %220, %226 : vector<4x256xf32>
    %228 = arith.addf %207, %227 : vector<4x256xf32>
    %c38 = arith.constant 38 : index
    %229 = memref.load %arg1[%c38] : memref<144xf32, #tpu.memory_space<smem>>
    %230 = vector.broadcast %229 : f32 to vector<4x256xf32>
    %231 = arith.mulf %220, %230 : vector<4x256xf32>
    %232 = arith.addf %211, %231 : vector<4x256xf32>
    %c39 = arith.constant 39 : index
    %233 = memref.load %arg1[%c39] : memref<144xf32, #tpu.memory_space<smem>>
    %234 = vector.broadcast %233 : f32 to vector<4x256xf32>
    %235 = arith.mulf %220, %234 : vector<4x256xf32>
    %236 = arith.addf %215, %235 : vector<4x256xf32>
    %237 = vector.extract_strided_slice %5 {offsets = [0, 241], sizes = [4, 15], strides = [1, 1]} : vector<4x256xf32> to vector<4x15xf32>
    %238 = vector.extract_strided_slice %5 {offsets = [0, 0], sizes = [4, 241], strides = [1, 1]} : vector<4x256xf32> to vector<4x241xf32>
    %239 = tpu.concatenate %237, %238 in 1 : vector<4x15xf32>, vector<4x241xf32> -> vector<4x256xf32>
    %cst_27 = arith.constant 0.000000e+00 : f32
    %240 = vector.broadcast %cst_27 : f32 to vector<4x256xf32>
    %241 = arith.select %194, %239, %240 : vector<4x256xi1>, vector<4x256xf32>
    %c40 = arith.constant 40 : index
    %242 = memref.load %arg1[%c40] : memref<144xf32, #tpu.memory_space<smem>>
    %243 = vector.broadcast %242 : f32 to vector<4x256xf32>
    %244 = arith.mulf %241, %243 : vector<4x256xf32>
    %245 = arith.addf %224, %244 : vector<4x256xf32>
    %c41 = arith.constant 41 : index
    %246 = memref.load %arg1[%c41] : memref<144xf32, #tpu.memory_space<smem>>
    %247 = vector.broadcast %246 : f32 to vector<4x256xf32>
    %248 = arith.mulf %241, %247 : vector<4x256xf32>
    %249 = arith.addf %228, %248 : vector<4x256xf32>
    %c42 = arith.constant 42 : index
    %250 = memref.load %arg1[%c42] : memref<144xf32, #tpu.memory_space<smem>>
    %251 = vector.broadcast %250 : f32 to vector<4x256xf32>
    %252 = arith.mulf %241, %251 : vector<4x256xf32>
    %253 = arith.addf %232, %252 : vector<4x256xf32>
    %c43 = arith.constant 43 : index
    %254 = memref.load %arg1[%c43] : memref<144xf32, #tpu.memory_space<smem>>
    %255 = vector.broadcast %254 : f32 to vector<4x256xf32>
    %256 = arith.mulf %241, %255 : vector<4x256xf32>
    %257 = arith.addf %236, %256 : vector<4x256xf32>
    %258 = vector.extract_strided_slice %7 {offsets = [0, 241], sizes = [4, 15], strides = [1, 1]} : vector<4x256xf32> to vector<4x15xf32>
    %259 = vector.extract_strided_slice %7 {offsets = [0, 0], sizes = [4, 241], strides = [1, 1]} : vector<4x256xf32> to vector<4x241xf32>
    %260 = tpu.concatenate %258, %259 in 1 : vector<4x15xf32>, vector<4x241xf32> -> vector<4x256xf32>
    %cst_28 = arith.constant 0.000000e+00 : f32
    %261 = vector.broadcast %cst_28 : f32 to vector<4x256xf32>
    %262 = arith.select %194, %260, %261 : vector<4x256xi1>, vector<4x256xf32>
    %c44 = arith.constant 44 : index
    %263 = memref.load %arg1[%c44] : memref<144xf32, #tpu.memory_space<smem>>
    %264 = vector.broadcast %263 : f32 to vector<4x256xf32>
    %265 = arith.mulf %262, %264 : vector<4x256xf32>
    %266 = arith.addf %245, %265 : vector<4x256xf32>
    %c45 = arith.constant 45 : index
    %267 = memref.load %arg1[%c45] : memref<144xf32, #tpu.memory_space<smem>>
    %268 = vector.broadcast %267 : f32 to vector<4x256xf32>
    %269 = arith.mulf %262, %268 : vector<4x256xf32>
    %270 = arith.addf %249, %269 : vector<4x256xf32>
    %c46 = arith.constant 46 : index
    %271 = memref.load %arg1[%c46] : memref<144xf32, #tpu.memory_space<smem>>
    %272 = vector.broadcast %271 : f32 to vector<4x256xf32>
    %273 = arith.mulf %262, %272 : vector<4x256xf32>
    %274 = arith.addf %253, %273 : vector<4x256xf32>
    %c47 = arith.constant 47 : index
    %275 = memref.load %arg1[%c47] : memref<144xf32, #tpu.memory_space<smem>>
    %276 = vector.broadcast %275 : f32 to vector<4x256xf32>
    %277 = arith.mulf %262, %276 : vector<4x256xf32>
    %278 = arith.addf %257, %277 : vector<4x256xf32>
    %c1_i32_29 = arith.constant 1 : i32
    %279 = vector.broadcast %c1_i32_29 : i32 to vector<4x256xi32>
    %280 = arith.cmpi sge, %10, %279 : vector<4x256xi32>
    %281 = vector.extract_strided_slice %1 {offsets = [0, 255], sizes = [4, 1], strides = [1, 1]} : vector<4x256xf32> to vector<4x1xf32>
    %282 = vector.extract_strided_slice %1 {offsets = [0, 0], sizes = [4, 255], strides = [1, 1]} : vector<4x256xf32> to vector<4x255xf32>
    %283 = tpu.concatenate %281, %282 in 1 : vector<4x1xf32>, vector<4x255xf32> -> vector<4x256xf32>
    %cst_30 = arith.constant 0.000000e+00 : f32
    %284 = vector.broadcast %cst_30 : f32 to vector<4x256xf32>
    %285 = arith.select %280, %283, %284 : vector<4x256xi1>, vector<4x256xf32>
    %c48 = arith.constant 48 : index
    %286 = memref.load %arg1[%c48] : memref<144xf32, #tpu.memory_space<smem>>
    %287 = vector.broadcast %286 : f32 to vector<4x256xf32>
    %288 = arith.mulf %285, %287 : vector<4x256xf32>
    %289 = arith.addf %266, %288 : vector<4x256xf32>
    %c49 = arith.constant 49 : index
    %290 = memref.load %arg1[%c49] : memref<144xf32, #tpu.memory_space<smem>>
    %291 = vector.broadcast %290 : f32 to vector<4x256xf32>
    %292 = arith.mulf %285, %291 : vector<4x256xf32>
    %293 = arith.addf %270, %292 : vector<4x256xf32>
    %c50 = arith.constant 50 : index
    %294 = memref.load %arg1[%c50] : memref<144xf32, #tpu.memory_space<smem>>
    %295 = vector.broadcast %294 : f32 to vector<4x256xf32>
    %296 = arith.mulf %285, %295 : vector<4x256xf32>
    %297 = arith.addf %274, %296 : vector<4x256xf32>
    %c51 = arith.constant 51 : index
    %298 = memref.load %arg1[%c51] : memref<144xf32, #tpu.memory_space<smem>>
    %299 = vector.broadcast %298 : f32 to vector<4x256xf32>
    %300 = arith.mulf %285, %299 : vector<4x256xf32>
    %301 = arith.addf %278, %300 : vector<4x256xf32>
    %302 = vector.extract_strided_slice %3 {offsets = [0, 255], sizes = [4, 1], strides = [1, 1]} : vector<4x256xf32> to vector<4x1xf32>
    %303 = vector.extract_strided_slice %3 {offsets = [0, 0], sizes = [4, 255], strides = [1, 1]} : vector<4x256xf32> to vector<4x255xf32>
    %304 = tpu.concatenate %302, %303 in 1 : vector<4x1xf32>, vector<4x255xf32> -> vector<4x256xf32>
    %cst_31 = arith.constant 0.000000e+00 : f32
    %305 = vector.broadcast %cst_31 : f32 to vector<4x256xf32>
    %306 = arith.select %280, %304, %305 : vector<4x256xi1>, vector<4x256xf32>
    %c52 = arith.constant 52 : index
    %307 = memref.load %arg1[%c52] : memref<144xf32, #tpu.memory_space<smem>>
    %308 = vector.broadcast %307 : f32 to vector<4x256xf32>
    %309 = arith.mulf %306, %308 : vector<4x256xf32>
    %310 = arith.addf %289, %309 : vector<4x256xf32>
    %c53 = arith.constant 53 : index
    %311 = memref.load %arg1[%c53] : memref<144xf32, #tpu.memory_space<smem>>
    %312 = vector.broadcast %311 : f32 to vector<4x256xf32>
    %313 = arith.mulf %306, %312 : vector<4x256xf32>
    %314 = arith.addf %293, %313 : vector<4x256xf32>
    %c54 = arith.constant 54 : index
    %315 = memref.load %arg1[%c54] : memref<144xf32, #tpu.memory_space<smem>>
    %316 = vector.broadcast %315 : f32 to vector<4x256xf32>
    %317 = arith.mulf %306, %316 : vector<4x256xf32>
    %318 = arith.addf %297, %317 : vector<4x256xf32>
    %c55 = arith.constant 55 : index
    %319 = memref.load %arg1[%c55] : memref<144xf32, #tpu.memory_space<smem>>
    %320 = vector.broadcast %319 : f32 to vector<4x256xf32>
    %321 = arith.mulf %306, %320 : vector<4x256xf32>
    %322 = arith.addf %301, %321 : vector<4x256xf32>
    %323 = vector.extract_strided_slice %5 {offsets = [0, 255], sizes = [4, 1], strides = [1, 1]} : vector<4x256xf32> to vector<4x1xf32>
    %324 = vector.extract_strided_slice %5 {offsets = [0, 0], sizes = [4, 255], strides = [1, 1]} : vector<4x256xf32> to vector<4x255xf32>
    %325 = tpu.concatenate %323, %324 in 1 : vector<4x1xf32>, vector<4x255xf32> -> vector<4x256xf32>
    %cst_32 = arith.constant 0.000000e+00 : f32
    %326 = vector.broadcast %cst_32 : f32 to vector<4x256xf32>
    %327 = arith.select %280, %325, %326 : vector<4x256xi1>, vector<4x256xf32>
    %c56 = arith.constant 56 : index
    %328 = memref.load %arg1[%c56] : memref<144xf32, #tpu.memory_space<smem>>
    %329 = vector.broadcast %328 : f32 to vector<4x256xf32>
    %330 = arith.mulf %327, %329 : vector<4x256xf32>
    %331 = arith.addf %310, %330 : vector<4x256xf32>
    %c57 = arith.constant 57 : index
    %332 = memref.load %arg1[%c57] : memref<144xf32, #tpu.memory_space<smem>>
    %333 = vector.broadcast %332 : f32 to vector<4x256xf32>
    %334 = arith.mulf %327, %333 : vector<4x256xf32>
    %335 = arith.addf %314, %334 : vector<4x256xf32>
    %c58 = arith.constant 58 : index
    %336 = memref.load %arg1[%c58] : memref<144xf32, #tpu.memory_space<smem>>
    %337 = vector.broadcast %336 : f32 to vector<4x256xf32>
    %338 = arith.mulf %327, %337 : vector<4x256xf32>
    %339 = arith.addf %318, %338 : vector<4x256xf32>
    %c59 = arith.constant 59 : index
    %340 = memref.load %arg1[%c59] : memref<144xf32, #tpu.memory_space<smem>>
    %341 = vector.broadcast %340 : f32 to vector<4x256xf32>
    %342 = arith.mulf %327, %341 : vector<4x256xf32>
    %343 = arith.addf %322, %342 : vector<4x256xf32>
    %344 = vector.extract_strided_slice %7 {offsets = [0, 255], sizes = [4, 1], strides = [1, 1]} : vector<4x256xf32> to vector<4x1xf32>
    %345 = vector.extract_strided_slice %7 {offsets = [0, 0], sizes = [4, 255], strides = [1, 1]} : vector<4x256xf32> to vector<4x255xf32>
    %346 = tpu.concatenate %344, %345 in 1 : vector<4x1xf32>, vector<4x255xf32> -> vector<4x256xf32>
    %cst_33 = arith.constant 0.000000e+00 : f32
    %347 = vector.broadcast %cst_33 : f32 to vector<4x256xf32>
    %348 = arith.select %280, %346, %347 : vector<4x256xi1>, vector<4x256xf32>
    %c60 = arith.constant 60 : index
    %349 = memref.load %arg1[%c60] : memref<144xf32, #tpu.memory_space<smem>>
    %350 = vector.broadcast %349 : f32 to vector<4x256xf32>
    %351 = arith.mulf %348, %350 : vector<4x256xf32>
    %352 = arith.addf %331, %351 : vector<4x256xf32>
    %c61 = arith.constant 61 : index
    %353 = memref.load %arg1[%c61] : memref<144xf32, #tpu.memory_space<smem>>
    %354 = vector.broadcast %353 : f32 to vector<4x256xf32>
    %355 = arith.mulf %348, %354 : vector<4x256xf32>
    %356 = arith.addf %335, %355 : vector<4x256xf32>
    %c62 = arith.constant 62 : index
    %357 = memref.load %arg1[%c62] : memref<144xf32, #tpu.memory_space<smem>>
    %358 = vector.broadcast %357 : f32 to vector<4x256xf32>
    %359 = arith.mulf %348, %358 : vector<4x256xf32>
    %360 = arith.addf %339, %359 : vector<4x256xf32>
    %c63 = arith.constant 63 : index
    %361 = memref.load %arg1[%c63] : memref<144xf32, #tpu.memory_space<smem>>
    %362 = vector.broadcast %361 : f32 to vector<4x256xf32>
    %363 = arith.mulf %348, %362 : vector<4x256xf32>
    %364 = arith.addf %343, %363 : vector<4x256xf32>
    %c64 = arith.constant 64 : index
    %365 = memref.load %arg1[%c64] : memref<144xf32, #tpu.memory_space<smem>>
    %366 = vector.broadcast %365 : f32 to vector<4x256xf32>
    %367 = arith.mulf %1, %366 : vector<4x256xf32>
    %368 = arith.addf %352, %367 : vector<4x256xf32>
    %c65 = arith.constant 65 : index
    %369 = memref.load %arg1[%c65] : memref<144xf32, #tpu.memory_space<smem>>
    %370 = vector.broadcast %369 : f32 to vector<4x256xf32>
    %371 = arith.mulf %1, %370 : vector<4x256xf32>
    %372 = arith.addf %356, %371 : vector<4x256xf32>
    %c66 = arith.constant 66 : index
    %373 = memref.load %arg1[%c66] : memref<144xf32, #tpu.memory_space<smem>>
    %374 = vector.broadcast %373 : f32 to vector<4x256xf32>
    %375 = arith.mulf %1, %374 : vector<4x256xf32>
    %376 = arith.addf %360, %375 : vector<4x256xf32>
    %c67 = arith.constant 67 : index
    %377 = memref.load %arg1[%c67] : memref<144xf32, #tpu.memory_space<smem>>
    %378 = vector.broadcast %377 : f32 to vector<4x256xf32>
    %379 = arith.mulf %1, %378 : vector<4x256xf32>
    %380 = arith.addf %364, %379 : vector<4x256xf32>
    %c68 = arith.constant 68 : index
    %381 = memref.load %arg1[%c68] : memref<144xf32, #tpu.memory_space<smem>>
    %382 = vector.broadcast %381 : f32 to vector<4x256xf32>
    %383 = arith.mulf %3, %382 : vector<4x256xf32>
    %384 = arith.addf %368, %383 : vector<4x256xf32>
    %c69 = arith.constant 69 : index
    %385 = memref.load %arg1[%c69] : memref<144xf32, #tpu.memory_space<smem>>
    %386 = vector.broadcast %385 : f32 to vector<4x256xf32>
    %387 = arith.mulf %3, %386 : vector<4x256xf32>
    %388 = arith.addf %372, %387 : vector<4x256xf32>
    %c70 = arith.constant 70 : index
    %389 = memref.load %arg1[%c70] : memref<144xf32, #tpu.memory_space<smem>>
    %390 = vector.broadcast %389 : f32 to vector<4x256xf32>
    %391 = arith.mulf %3, %390 : vector<4x256xf32>
    %392 = arith.addf %376, %391 : vector<4x256xf32>
    %c71 = arith.constant 71 : index
    %393 = memref.load %arg1[%c71] : memref<144xf32, #tpu.memory_space<smem>>
    %394 = vector.broadcast %393 : f32 to vector<4x256xf32>
    %395 = arith.mulf %3, %394 : vector<4x256xf32>
    %396 = arith.addf %380, %395 : vector<4x256xf32>
    %c72 = arith.constant 72 : index
    %397 = memref.load %arg1[%c72] : memref<144xf32, #tpu.memory_space<smem>>
    %398 = vector.broadcast %397 : f32 to vector<4x256xf32>
    %399 = arith.mulf %5, %398 : vector<4x256xf32>
    %400 = arith.addf %384, %399 : vector<4x256xf32>
    %c73 = arith.constant 73 : index
    %401 = memref.load %arg1[%c73] : memref<144xf32, #tpu.memory_space<smem>>
    %402 = vector.broadcast %401 : f32 to vector<4x256xf32>
    %403 = arith.mulf %5, %402 : vector<4x256xf32>
    %404 = arith.addf %388, %403 : vector<4x256xf32>
    %c74 = arith.constant 74 : index
    %405 = memref.load %arg1[%c74] : memref<144xf32, #tpu.memory_space<smem>>
    %406 = vector.broadcast %405 : f32 to vector<4x256xf32>
    %407 = arith.mulf %5, %406 : vector<4x256xf32>
    %408 = arith.addf %392, %407 : vector<4x256xf32>
    %c75 = arith.constant 75 : index
    %409 = memref.load %arg1[%c75] : memref<144xf32, #tpu.memory_space<smem>>
    %410 = vector.broadcast %409 : f32 to vector<4x256xf32>
    %411 = arith.mulf %5, %410 : vector<4x256xf32>
    %412 = arith.addf %396, %411 : vector<4x256xf32>
    %c76 = arith.constant 76 : index
    %413 = memref.load %arg1[%c76] : memref<144xf32, #tpu.memory_space<smem>>
    %414 = vector.broadcast %413 : f32 to vector<4x256xf32>
    %415 = arith.mulf %7, %414 : vector<4x256xf32>
    %416 = arith.addf %400, %415 : vector<4x256xf32>
    %c77 = arith.constant 77 : index
    %417 = memref.load %arg1[%c77] : memref<144xf32, #tpu.memory_space<smem>>
    %418 = vector.broadcast %417 : f32 to vector<4x256xf32>
    %419 = arith.mulf %7, %418 : vector<4x256xf32>
    %420 = arith.addf %404, %419 : vector<4x256xf32>
    %c78 = arith.constant 78 : index
    %421 = memref.load %arg1[%c78] : memref<144xf32, #tpu.memory_space<smem>>
    %422 = vector.broadcast %421 : f32 to vector<4x256xf32>
    %423 = arith.mulf %7, %422 : vector<4x256xf32>
    %424 = arith.addf %408, %423 : vector<4x256xf32>
    %c79 = arith.constant 79 : index
    %425 = memref.load %arg1[%c79] : memref<144xf32, #tpu.memory_space<smem>>
    %426 = vector.broadcast %425 : f32 to vector<4x256xf32>
    %427 = arith.mulf %7, %426 : vector<4x256xf32>
    %428 = arith.addf %412, %427 : vector<4x256xf32>
    %c14_i32_34 = arith.constant 14 : i32
    %429 = vector.broadcast %c14_i32_34 : i32 to vector<4x256xi32>
    %430 = arith.cmpi sle, %10, %429 : vector<4x256xi32>
    %431 = vector.extract_strided_slice %1 {offsets = [0, 1], sizes = [4, 255], strides = [1, 1]} : vector<4x256xf32> to vector<4x255xf32>
    %432 = vector.extract_strided_slice %1 {offsets = [0, 0], sizes = [4, 1], strides = [1, 1]} : vector<4x256xf32> to vector<4x1xf32>
    %433 = tpu.concatenate %431, %432 in 1 : vector<4x255xf32>, vector<4x1xf32> -> vector<4x256xf32>
    %cst_35 = arith.constant 0.000000e+00 : f32
    %434 = vector.broadcast %cst_35 : f32 to vector<4x256xf32>
    %435 = arith.select %430, %433, %434 : vector<4x256xi1>, vector<4x256xf32>
    %c80 = arith.constant 80 : index
    %436 = memref.load %arg1[%c80] : memref<144xf32, #tpu.memory_space<smem>>
    %437 = vector.broadcast %436 : f32 to vector<4x256xf32>
    %438 = arith.mulf %435, %437 : vector<4x256xf32>
    %439 = arith.addf %416, %438 : vector<4x256xf32>
    %c81 = arith.constant 81 : index
    %440 = memref.load %arg1[%c81] : memref<144xf32, #tpu.memory_space<smem>>
    %441 = vector.broadcast %440 : f32 to vector<4x256xf32>
    %442 = arith.mulf %435, %441 : vector<4x256xf32>
    %443 = arith.addf %420, %442 : vector<4x256xf32>
    %c82 = arith.constant 82 : index
    %444 = memref.load %arg1[%c82] : memref<144xf32, #tpu.memory_space<smem>>
    %445 = vector.broadcast %444 : f32 to vector<4x256xf32>
    %446 = arith.mulf %435, %445 : vector<4x256xf32>
    %447 = arith.addf %424, %446 : vector<4x256xf32>
    %c83 = arith.constant 83 : index
    %448 = memref.load %arg1[%c83] : memref<144xf32, #tpu.memory_space<smem>>
    %449 = vector.broadcast %448 : f32 to vector<4x256xf32>
    %450 = arith.mulf %435, %449 : vector<4x256xf32>
    %451 = arith.addf %428, %450 : vector<4x256xf32>
    %452 = vector.extract_strided_slice %3 {offsets = [0, 1], sizes = [4, 255], strides = [1, 1]} : vector<4x256xf32> to vector<4x255xf32>
    %453 = vector.extract_strided_slice %3 {offsets = [0, 0], sizes = [4, 1], strides = [1, 1]} : vector<4x256xf32> to vector<4x1xf32>
    %454 = tpu.concatenate %452, %453 in 1 : vector<4x255xf32>, vector<4x1xf32> -> vector<4x256xf32>
    %cst_36 = arith.constant 0.000000e+00 : f32
    %455 = vector.broadcast %cst_36 : f32 to vector<4x256xf32>
    %456 = arith.select %430, %454, %455 : vector<4x256xi1>, vector<4x256xf32>
    %c84 = arith.constant 84 : index
    %457 = memref.load %arg1[%c84] : memref<144xf32, #tpu.memory_space<smem>>
    %458 = vector.broadcast %457 : f32 to vector<4x256xf32>
    %459 = arith.mulf %456, %458 : vector<4x256xf32>
    %460 = arith.addf %439, %459 : vector<4x256xf32>
    %c85 = arith.constant 85 : index
    %461 = memref.load %arg1[%c85] : memref<144xf32, #tpu.memory_space<smem>>
    %462 = vector.broadcast %461 : f32 to vector<4x256xf32>
    %463 = arith.mulf %456, %462 : vector<4x256xf32>
    %464 = arith.addf %443, %463 : vector<4x256xf32>
    %c86 = arith.constant 86 : index
    %465 = memref.load %arg1[%c86] : memref<144xf32, #tpu.memory_space<smem>>
    %466 = vector.broadcast %465 : f32 to vector<4x256xf32>
    %467 = arith.mulf %456, %466 : vector<4x256xf32>
    %468 = arith.addf %447, %467 : vector<4x256xf32>
    %c87 = arith.constant 87 : index
    %469 = memref.load %arg1[%c87] : memref<144xf32, #tpu.memory_space<smem>>
    %470 = vector.broadcast %469 : f32 to vector<4x256xf32>
    %471 = arith.mulf %456, %470 : vector<4x256xf32>
    %472 = arith.addf %451, %471 : vector<4x256xf32>
    %473 = vector.extract_strided_slice %5 {offsets = [0, 1], sizes = [4, 255], strides = [1, 1]} : vector<4x256xf32> to vector<4x255xf32>
    %474 = vector.extract_strided_slice %5 {offsets = [0, 0], sizes = [4, 1], strides = [1, 1]} : vector<4x256xf32> to vector<4x1xf32>
    %475 = tpu.concatenate %473, %474 in 1 : vector<4x255xf32>, vector<4x1xf32> -> vector<4x256xf32>
    %cst_37 = arith.constant 0.000000e+00 : f32
    %476 = vector.broadcast %cst_37 : f32 to vector<4x256xf32>
    %477 = arith.select %430, %475, %476 : vector<4x256xi1>, vector<4x256xf32>
    %c88 = arith.constant 88 : index
    %478 = memref.load %arg1[%c88] : memref<144xf32, #tpu.memory_space<smem>>
    %479 = vector.broadcast %478 : f32 to vector<4x256xf32>
    %480 = arith.mulf %477, %479 : vector<4x256xf32>
    %481 = arith.addf %460, %480 : vector<4x256xf32>
    %c89 = arith.constant 89 : index
    %482 = memref.load %arg1[%c89] : memref<144xf32, #tpu.memory_space<smem>>
    %483 = vector.broadcast %482 : f32 to vector<4x256xf32>
    %484 = arith.mulf %477, %483 : vector<4x256xf32>
    %485 = arith.addf %464, %484 : vector<4x256xf32>
    %c90 = arith.constant 90 : index
    %486 = memref.load %arg1[%c90] : memref<144xf32, #tpu.memory_space<smem>>
    %487 = vector.broadcast %486 : f32 to vector<4x256xf32>
    %488 = arith.mulf %477, %487 : vector<4x256xf32>
    %489 = arith.addf %468, %488 : vector<4x256xf32>
    %c91 = arith.constant 91 : index
    %490 = memref.load %arg1[%c91] : memref<144xf32, #tpu.memory_space<smem>>
    %491 = vector.broadcast %490 : f32 to vector<4x256xf32>
    %492 = arith.mulf %477, %491 : vector<4x256xf32>
    %493 = arith.addf %472, %492 : vector<4x256xf32>
    %494 = vector.extract_strided_slice %7 {offsets = [0, 1], sizes = [4, 255], strides = [1, 1]} : vector<4x256xf32> to vector<4x255xf32>
    %495 = vector.extract_strided_slice %7 {offsets = [0, 0], sizes = [4, 1], strides = [1, 1]} : vector<4x256xf32> to vector<4x1xf32>
    %496 = tpu.concatenate %494, %495 in 1 : vector<4x255xf32>, vector<4x1xf32> -> vector<4x256xf32>
    %cst_38 = arith.constant 0.000000e+00 : f32
    %497 = vector.broadcast %cst_38 : f32 to vector<4x256xf32>
    %498 = arith.select %430, %496, %497 : vector<4x256xi1>, vector<4x256xf32>
    %c92 = arith.constant 92 : index
    %499 = memref.load %arg1[%c92] : memref<144xf32, #tpu.memory_space<smem>>
    %500 = vector.broadcast %499 : f32 to vector<4x256xf32>
    %501 = arith.mulf %498, %500 : vector<4x256xf32>
    %502 = arith.addf %481, %501 : vector<4x256xf32>
    %c93 = arith.constant 93 : index
    %503 = memref.load %arg1[%c93] : memref<144xf32, #tpu.memory_space<smem>>
    %504 = vector.broadcast %503 : f32 to vector<4x256xf32>
    %505 = arith.mulf %498, %504 : vector<4x256xf32>
    %506 = arith.addf %485, %505 : vector<4x256xf32>
    %c94 = arith.constant 94 : index
    %507 = memref.load %arg1[%c94] : memref<144xf32, #tpu.memory_space<smem>>
    %508 = vector.broadcast %507 : f32 to vector<4x256xf32>
    %509 = arith.mulf %498, %508 : vector<4x256xf32>
    %510 = arith.addf %489, %509 : vector<4x256xf32>
    %c95 = arith.constant 95 : index
    %511 = memref.load %arg1[%c95] : memref<144xf32, #tpu.memory_space<smem>>
    %512 = vector.broadcast %511 : f32 to vector<4x256xf32>
    %513 = arith.mulf %498, %512 : vector<4x256xf32>
    %514 = arith.addf %493, %513 : vector<4x256xf32>
    %c240_i32 = arith.constant 240 : i32
    %515 = vector.broadcast %c240_i32 : i32 to vector<4x256xi32>
    %516 = arith.cmpi slt, %8, %515 : vector<4x256xi32>
    %c1_i32_39 = arith.constant 1 : i32
    %517 = vector.broadcast %c1_i32_39 : i32 to vector<4x256xi32>
    %518 = arith.cmpi sge, %10, %517 : vector<4x256xi32>
    %519 = arith.andi %516, %518 : vector<4x256xi1>
    %520 = vector.extract_strided_slice %1 {offsets = [0, 15], sizes = [4, 241], strides = [1, 1]} : vector<4x256xf32> to vector<4x241xf32>
    %521 = vector.extract_strided_slice %1 {offsets = [0, 0], sizes = [4, 15], strides = [1, 1]} : vector<4x256xf32> to vector<4x15xf32>
    %522 = tpu.concatenate %520, %521 in 1 : vector<4x241xf32>, vector<4x15xf32> -> vector<4x256xf32>
    %cst_40 = arith.constant 0.000000e+00 : f32
    %523 = vector.broadcast %cst_40 : f32 to vector<4x256xf32>
    %524 = arith.select %519, %522, %523 : vector<4x256xi1>, vector<4x256xf32>
    %c96 = arith.constant 96 : index
    %525 = memref.load %arg1[%c96] : memref<144xf32, #tpu.memory_space<smem>>
    %526 = vector.broadcast %525 : f32 to vector<4x256xf32>
    %527 = arith.mulf %524, %526 : vector<4x256xf32>
    %528 = arith.addf %502, %527 : vector<4x256xf32>
    %c97 = arith.constant 97 : index
    %529 = memref.load %arg1[%c97] : memref<144xf32, #tpu.memory_space<smem>>
    %530 = vector.broadcast %529 : f32 to vector<4x256xf32>
    %531 = arith.mulf %524, %530 : vector<4x256xf32>
    %532 = arith.addf %506, %531 : vector<4x256xf32>
    %c98 = arith.constant 98 : index
    %533 = memref.load %arg1[%c98] : memref<144xf32, #tpu.memory_space<smem>>
    %534 = vector.broadcast %533 : f32 to vector<4x256xf32>
    %535 = arith.mulf %524, %534 : vector<4x256xf32>
    %536 = arith.addf %510, %535 : vector<4x256xf32>
    %c99 = arith.constant 99 : index
    %537 = memref.load %arg1[%c99] : memref<144xf32, #tpu.memory_space<smem>>
    %538 = vector.broadcast %537 : f32 to vector<4x256xf32>
    %539 = arith.mulf %524, %538 : vector<4x256xf32>
    %540 = arith.addf %514, %539 : vector<4x256xf32>
    %541 = vector.extract_strided_slice %3 {offsets = [0, 15], sizes = [4, 241], strides = [1, 1]} : vector<4x256xf32> to vector<4x241xf32>
    %542 = vector.extract_strided_slice %3 {offsets = [0, 0], sizes = [4, 15], strides = [1, 1]} : vector<4x256xf32> to vector<4x15xf32>
    %543 = tpu.concatenate %541, %542 in 1 : vector<4x241xf32>, vector<4x15xf32> -> vector<4x256xf32>
    %cst_41 = arith.constant 0.000000e+00 : f32
    %544 = vector.broadcast %cst_41 : f32 to vector<4x256xf32>
    %545 = arith.select %519, %543, %544 : vector<4x256xi1>, vector<4x256xf32>
    %c100 = arith.constant 100 : index
    %546 = memref.load %arg1[%c100] : memref<144xf32, #tpu.memory_space<smem>>
    %547 = vector.broadcast %546 : f32 to vector<4x256xf32>
    %548 = arith.mulf %545, %547 : vector<4x256xf32>
    %549 = arith.addf %528, %548 : vector<4x256xf32>
    %c101 = arith.constant 101 : index
    %550 = memref.load %arg1[%c101] : memref<144xf32, #tpu.memory_space<smem>>
    %551 = vector.broadcast %550 : f32 to vector<4x256xf32>
    %552 = arith.mulf %545, %551 : vector<4x256xf32>
    %553 = arith.addf %532, %552 : vector<4x256xf32>
    %c102 = arith.constant 102 : index
    %554 = memref.load %arg1[%c102] : memref<144xf32, #tpu.memory_space<smem>>
    %555 = vector.broadcast %554 : f32 to vector<4x256xf32>
    %556 = arith.mulf %545, %555 : vector<4x256xf32>
    %557 = arith.addf %536, %556 : vector<4x256xf32>
    %c103 = arith.constant 103 : index
    %558 = memref.load %arg1[%c103] : memref<144xf32, #tpu.memory_space<smem>>
    %559 = vector.broadcast %558 : f32 to vector<4x256xf32>
    %560 = arith.mulf %545, %559 : vector<4x256xf32>
    %561 = arith.addf %540, %560 : vector<4x256xf32>
    %562 = vector.extract_strided_slice %5 {offsets = [0, 15], sizes = [4, 241], strides = [1, 1]} : vector<4x256xf32> to vector<4x241xf32>
    %563 = vector.extract_strided_slice %5 {offsets = [0, 0], sizes = [4, 15], strides = [1, 1]} : vector<4x256xf32> to vector<4x15xf32>
    %564 = tpu.concatenate %562, %563 in 1 : vector<4x241xf32>, vector<4x15xf32> -> vector<4x256xf32>
    %cst_42 = arith.constant 0.000000e+00 : f32
    %565 = vector.broadcast %cst_42 : f32 to vector<4x256xf32>
    %566 = arith.select %519, %564, %565 : vector<4x256xi1>, vector<4x256xf32>
    %c104 = arith.constant 104 : index
    %567 = memref.load %arg1[%c104] : memref<144xf32, #tpu.memory_space<smem>>
    %568 = vector.broadcast %567 : f32 to vector<4x256xf32>
    %569 = arith.mulf %566, %568 : vector<4x256xf32>
    %570 = arith.addf %549, %569 : vector<4x256xf32>
    %c105 = arith.constant 105 : index
    %571 = memref.load %arg1[%c105] : memref<144xf32, #tpu.memory_space<smem>>
    %572 = vector.broadcast %571 : f32 to vector<4x256xf32>
    %573 = arith.mulf %566, %572 : vector<4x256xf32>
    %574 = arith.addf %553, %573 : vector<4x256xf32>
    %c106 = arith.constant 106 : index
    %575 = memref.load %arg1[%c106] : memref<144xf32, #tpu.memory_space<smem>>
    %576 = vector.broadcast %575 : f32 to vector<4x256xf32>
    %577 = arith.mulf %566, %576 : vector<4x256xf32>
    %578 = arith.addf %557, %577 : vector<4x256xf32>
    %c107 = arith.constant 107 : index
    %579 = memref.load %arg1[%c107] : memref<144xf32, #tpu.memory_space<smem>>
    %580 = vector.broadcast %579 : f32 to vector<4x256xf32>
    %581 = arith.mulf %566, %580 : vector<4x256xf32>
    %582 = arith.addf %561, %581 : vector<4x256xf32>
    %583 = vector.extract_strided_slice %7 {offsets = [0, 15], sizes = [4, 241], strides = [1, 1]} : vector<4x256xf32> to vector<4x241xf32>
    %584 = vector.extract_strided_slice %7 {offsets = [0, 0], sizes = [4, 15], strides = [1, 1]} : vector<4x256xf32> to vector<4x15xf32>
    %585 = tpu.concatenate %583, %584 in 1 : vector<4x241xf32>, vector<4x15xf32> -> vector<4x256xf32>
    %cst_43 = arith.constant 0.000000e+00 : f32
    %586 = vector.broadcast %cst_43 : f32 to vector<4x256xf32>
    %587 = arith.select %519, %585, %586 : vector<4x256xi1>, vector<4x256xf32>
    %c108 = arith.constant 108 : index
    %588 = memref.load %arg1[%c108] : memref<144xf32, #tpu.memory_space<smem>>
    %589 = vector.broadcast %588 : f32 to vector<4x256xf32>
    %590 = arith.mulf %587, %589 : vector<4x256xf32>
    %591 = arith.addf %570, %590 : vector<4x256xf32>
    %c109 = arith.constant 109 : index
    %592 = memref.load %arg1[%c109] : memref<144xf32, #tpu.memory_space<smem>>
    %593 = vector.broadcast %592 : f32 to vector<4x256xf32>
    %594 = arith.mulf %587, %593 : vector<4x256xf32>
    %595 = arith.addf %574, %594 : vector<4x256xf32>
    %c110 = arith.constant 110 : index
    %596 = memref.load %arg1[%c110] : memref<144xf32, #tpu.memory_space<smem>>
    %597 = vector.broadcast %596 : f32 to vector<4x256xf32>
    %598 = arith.mulf %587, %597 : vector<4x256xf32>
    %599 = arith.addf %578, %598 : vector<4x256xf32>
    %c111 = arith.constant 111 : index
    %600 = memref.load %arg1[%c111] : memref<144xf32, #tpu.memory_space<smem>>
    %601 = vector.broadcast %600 : f32 to vector<4x256xf32>
    %602 = arith.mulf %587, %601 : vector<4x256xf32>
    %603 = arith.addf %582, %602 : vector<4x256xf32>
    %c240_i32_44 = arith.constant 240 : i32
    %604 = vector.broadcast %c240_i32_44 : i32 to vector<4x256xi32>
    %605 = arith.cmpi slt, %8, %604 : vector<4x256xi32>
    %606 = vector.extract_strided_slice %1 {offsets = [0, 16], sizes = [4, 240], strides = [1, 1]} : vector<4x256xf32> to vector<4x240xf32>
    %607 = vector.extract_strided_slice %1 {offsets = [0, 0], sizes = [4, 16], strides = [1, 1]} : vector<4x256xf32> to vector<4x16xf32>
    %608 = tpu.concatenate %606, %607 in 1 : vector<4x240xf32>, vector<4x16xf32> -> vector<4x256xf32>
    %cst_45 = arith.constant 0.000000e+00 : f32
    %609 = vector.broadcast %cst_45 : f32 to vector<4x256xf32>
    %610 = arith.select %605, %608, %609 : vector<4x256xi1>, vector<4x256xf32>
    %c112 = arith.constant 112 : index
    %611 = memref.load %arg1[%c112] : memref<144xf32, #tpu.memory_space<smem>>
    %612 = vector.broadcast %611 : f32 to vector<4x256xf32>
    %613 = arith.mulf %610, %612 : vector<4x256xf32>
    %614 = arith.addf %591, %613 : vector<4x256xf32>
    %c113 = arith.constant 113 : index
    %615 = memref.load %arg1[%c113] : memref<144xf32, #tpu.memory_space<smem>>
    %616 = vector.broadcast %615 : f32 to vector<4x256xf32>
    %617 = arith.mulf %610, %616 : vector<4x256xf32>
    %618 = arith.addf %595, %617 : vector<4x256xf32>
    %c114 = arith.constant 114 : index
    %619 = memref.load %arg1[%c114] : memref<144xf32, #tpu.memory_space<smem>>
    %620 = vector.broadcast %619 : f32 to vector<4x256xf32>
    %621 = arith.mulf %610, %620 : vector<4x256xf32>
    %622 = arith.addf %599, %621 : vector<4x256xf32>
    %c115 = arith.constant 115 : index
    %623 = memref.load %arg1[%c115] : memref<144xf32, #tpu.memory_space<smem>>
    %624 = vector.broadcast %623 : f32 to vector<4x256xf32>
    %625 = arith.mulf %610, %624 : vector<4x256xf32>
    %626 = arith.addf %603, %625 : vector<4x256xf32>
    %627 = vector.extract_strided_slice %3 {offsets = [0, 16], sizes = [4, 240], strides = [1, 1]} : vector<4x256xf32> to vector<4x240xf32>
    %628 = vector.extract_strided_slice %3 {offsets = [0, 0], sizes = [4, 16], strides = [1, 1]} : vector<4x256xf32> to vector<4x16xf32>
    %629 = tpu.concatenate %627, %628 in 1 : vector<4x240xf32>, vector<4x16xf32> -> vector<4x256xf32>
    %cst_46 = arith.constant 0.000000e+00 : f32
    %630 = vector.broadcast %cst_46 : f32 to vector<4x256xf32>
    %631 = arith.select %605, %629, %630 : vector<4x256xi1>, vector<4x256xf32>
    %c116 = arith.constant 116 : index
    %632 = memref.load %arg1[%c116] : memref<144xf32, #tpu.memory_space<smem>>
    %633 = vector.broadcast %632 : f32 to vector<4x256xf32>
    %634 = arith.mulf %631, %633 : vector<4x256xf32>
    %635 = arith.addf %614, %634 : vector<4x256xf32>
    %c117 = arith.constant 117 : index
    %636 = memref.load %arg1[%c117] : memref<144xf32, #tpu.memory_space<smem>>
    %637 = vector.broadcast %636 : f32 to vector<4x256xf32>
    %638 = arith.mulf %631, %637 : vector<4x256xf32>
    %639 = arith.addf %618, %638 : vector<4x256xf32>
    %c118 = arith.constant 118 : index
    %640 = memref.load %arg1[%c118] : memref<144xf32, #tpu.memory_space<smem>>
    %641 = vector.broadcast %640 : f32 to vector<4x256xf32>
    %642 = arith.mulf %631, %641 : vector<4x256xf32>
    %643 = arith.addf %622, %642 : vector<4x256xf32>
    %c119 = arith.constant 119 : index
    %644 = memref.load %arg1[%c119] : memref<144xf32, #tpu.memory_space<smem>>
    %645 = vector.broadcast %644 : f32 to vector<4x256xf32>
    %646 = arith.mulf %631, %645 : vector<4x256xf32>
    %647 = arith.addf %626, %646 : vector<4x256xf32>
    %648 = vector.extract_strided_slice %5 {offsets = [0, 16], sizes = [4, 240], strides = [1, 1]} : vector<4x256xf32> to vector<4x240xf32>
    %649 = vector.extract_strided_slice %5 {offsets = [0, 0], sizes = [4, 16], strides = [1, 1]} : vector<4x256xf32> to vector<4x16xf32>
    %650 = tpu.concatenate %648, %649 in 1 : vector<4x240xf32>, vector<4x16xf32> -> vector<4x256xf32>
    %cst_47 = arith.constant 0.000000e+00 : f32
    %651 = vector.broadcast %cst_47 : f32 to vector<4x256xf32>
    %652 = arith.select %605, %650, %651 : vector<4x256xi1>, vector<4x256xf32>
    %c120 = arith.constant 120 : index
    %653 = memref.load %arg1[%c120] : memref<144xf32, #tpu.memory_space<smem>>
    %654 = vector.broadcast %653 : f32 to vector<4x256xf32>
    %655 = arith.mulf %652, %654 : vector<4x256xf32>
    %656 = arith.addf %635, %655 : vector<4x256xf32>
    %c121 = arith.constant 121 : index
    %657 = memref.load %arg1[%c121] : memref<144xf32, #tpu.memory_space<smem>>
    %658 = vector.broadcast %657 : f32 to vector<4x256xf32>
    %659 = arith.mulf %652, %658 : vector<4x256xf32>
    %660 = arith.addf %639, %659 : vector<4x256xf32>
    %c122 = arith.constant 122 : index
    %661 = memref.load %arg1[%c122] : memref<144xf32, #tpu.memory_space<smem>>
    %662 = vector.broadcast %661 : f32 to vector<4x256xf32>
    %663 = arith.mulf %652, %662 : vector<4x256xf32>
    %664 = arith.addf %643, %663 : vector<4x256xf32>
    %c123 = arith.constant 123 : index
    %665 = memref.load %arg1[%c123] : memref<144xf32, #tpu.memory_space<smem>>
    %666 = vector.broadcast %665 : f32 to vector<4x256xf32>
    %667 = arith.mulf %652, %666 : vector<4x256xf32>
    %668 = arith.addf %647, %667 : vector<4x256xf32>
    %669 = vector.extract_strided_slice %7 {offsets = [0, 16], sizes = [4, 240], strides = [1, 1]} : vector<4x256xf32> to vector<4x240xf32>
    %670 = vector.extract_strided_slice %7 {offsets = [0, 0], sizes = [4, 16], strides = [1, 1]} : vector<4x256xf32> to vector<4x16xf32>
    %671 = tpu.concatenate %669, %670 in 1 : vector<4x240xf32>, vector<4x16xf32> -> vector<4x256xf32>
    %cst_48 = arith.constant 0.000000e+00 : f32
    %672 = vector.broadcast %cst_48 : f32 to vector<4x256xf32>
    %673 = arith.select %605, %671, %672 : vector<4x256xi1>, vector<4x256xf32>
    %c124 = arith.constant 124 : index
    %674 = memref.load %arg1[%c124] : memref<144xf32, #tpu.memory_space<smem>>
    %675 = vector.broadcast %674 : f32 to vector<4x256xf32>
    %676 = arith.mulf %673, %675 : vector<4x256xf32>
    %677 = arith.addf %656, %676 : vector<4x256xf32>
    %c125 = arith.constant 125 : index
    %678 = memref.load %arg1[%c125] : memref<144xf32, #tpu.memory_space<smem>>
    %679 = vector.broadcast %678 : f32 to vector<4x256xf32>
    %680 = arith.mulf %673, %679 : vector<4x256xf32>
    %681 = arith.addf %660, %680 : vector<4x256xf32>
    %c126 = arith.constant 126 : index
    %682 = memref.load %arg1[%c126] : memref<144xf32, #tpu.memory_space<smem>>
    %683 = vector.broadcast %682 : f32 to vector<4x256xf32>
    %684 = arith.mulf %673, %683 : vector<4x256xf32>
    %685 = arith.addf %664, %684 : vector<4x256xf32>
    %c127 = arith.constant 127 : index
    %686 = memref.load %arg1[%c127] : memref<144xf32, #tpu.memory_space<smem>>
    %687 = vector.broadcast %686 : f32 to vector<4x256xf32>
    %688 = arith.mulf %673, %687 : vector<4x256xf32>
    %689 = arith.addf %668, %688 : vector<4x256xf32>
    %c240_i32_49 = arith.constant 240 : i32
    %690 = vector.broadcast %c240_i32_49 : i32 to vector<4x256xi32>
    %691 = arith.cmpi slt, %8, %690 : vector<4x256xi32>
    %c14_i32_50 = arith.constant 14 : i32
    %692 = vector.broadcast %c14_i32_50 : i32 to vector<4x256xi32>
    %693 = arith.cmpi sle, %10, %692 : vector<4x256xi32>
    %694 = arith.andi %691, %693 : vector<4x256xi1>
    %695 = vector.extract_strided_slice %1 {offsets = [0, 17], sizes = [4, 239], strides = [1, 1]} : vector<4x256xf32> to vector<4x239xf32>
    %696 = vector.extract_strided_slice %1 {offsets = [0, 0], sizes = [4, 17], strides = [1, 1]} : vector<4x256xf32> to vector<4x17xf32>
    %697 = tpu.concatenate %695, %696 in 1 : vector<4x239xf32>, vector<4x17xf32> -> vector<4x256xf32>
    %cst_51 = arith.constant 0.000000e+00 : f32
    %698 = vector.broadcast %cst_51 : f32 to vector<4x256xf32>
    %699 = arith.select %694, %697, %698 : vector<4x256xi1>, vector<4x256xf32>
    %c128 = arith.constant 128 : index
    %700 = memref.load %arg1[%c128] : memref<144xf32, #tpu.memory_space<smem>>
    %701 = vector.broadcast %700 : f32 to vector<4x256xf32>
    %702 = arith.mulf %699, %701 : vector<4x256xf32>
    %703 = arith.addf %677, %702 : vector<4x256xf32>
    %c129 = arith.constant 129 : index
    %704 = memref.load %arg1[%c129] : memref<144xf32, #tpu.memory_space<smem>>
    %705 = vector.broadcast %704 : f32 to vector<4x256xf32>
    %706 = arith.mulf %699, %705 : vector<4x256xf32>
    %707 = arith.addf %681, %706 : vector<4x256xf32>
    %c130 = arith.constant 130 : index
    %708 = memref.load %arg1[%c130] : memref<144xf32, #tpu.memory_space<smem>>
    %709 = vector.broadcast %708 : f32 to vector<4x256xf32>
    %710 = arith.mulf %699, %709 : vector<4x256xf32>
    %711 = arith.addf %685, %710 : vector<4x256xf32>
    %c131 = arith.constant 131 : index
    %712 = memref.load %arg1[%c131] : memref<144xf32, #tpu.memory_space<smem>>
    %713 = vector.broadcast %712 : f32 to vector<4x256xf32>
    %714 = arith.mulf %699, %713 : vector<4x256xf32>
    %715 = arith.addf %689, %714 : vector<4x256xf32>
    %716 = vector.extract_strided_slice %3 {offsets = [0, 17], sizes = [4, 239], strides = [1, 1]} : vector<4x256xf32> to vector<4x239xf32>
    %717 = vector.extract_strided_slice %3 {offsets = [0, 0], sizes = [4, 17], strides = [1, 1]} : vector<4x256xf32> to vector<4x17xf32>
    %718 = tpu.concatenate %716, %717 in 1 : vector<4x239xf32>, vector<4x17xf32> -> vector<4x256xf32>
    %cst_52 = arith.constant 0.000000e+00 : f32
    %719 = vector.broadcast %cst_52 : f32 to vector<4x256xf32>
    %720 = arith.select %694, %718, %719 : vector<4x256xi1>, vector<4x256xf32>
    %c132 = arith.constant 132 : index
    %721 = memref.load %arg1[%c132] : memref<144xf32, #tpu.memory_space<smem>>
    %722 = vector.broadcast %721 : f32 to vector<4x256xf32>
    %723 = arith.mulf %720, %722 : vector<4x256xf32>
    %724 = arith.addf %703, %723 : vector<4x256xf32>
    %c133 = arith.constant 133 : index
    %725 = memref.load %arg1[%c133] : memref<144xf32, #tpu.memory_space<smem>>
    %726 = vector.broadcast %725 : f32 to vector<4x256xf32>
    %727 = arith.mulf %720, %726 : vector<4x256xf32>
    %728 = arith.addf %707, %727 : vector<4x256xf32>
    %c134 = arith.constant 134 : index
    %729 = memref.load %arg1[%c134] : memref<144xf32, #tpu.memory_space<smem>>
    %730 = vector.broadcast %729 : f32 to vector<4x256xf32>
    %731 = arith.mulf %720, %730 : vector<4x256xf32>
    %732 = arith.addf %711, %731 : vector<4x256xf32>
    %c135 = arith.constant 135 : index
    %733 = memref.load %arg1[%c135] : memref<144xf32, #tpu.memory_space<smem>>
    %734 = vector.broadcast %733 : f32 to vector<4x256xf32>
    %735 = arith.mulf %720, %734 : vector<4x256xf32>
    %736 = arith.addf %715, %735 : vector<4x256xf32>
    %737 = vector.extract_strided_slice %5 {offsets = [0, 17], sizes = [4, 239], strides = [1, 1]} : vector<4x256xf32> to vector<4x239xf32>
    %738 = vector.extract_strided_slice %5 {offsets = [0, 0], sizes = [4, 17], strides = [1, 1]} : vector<4x256xf32> to vector<4x17xf32>
    %739 = tpu.concatenate %737, %738 in 1 : vector<4x239xf32>, vector<4x17xf32> -> vector<4x256xf32>
    %cst_53 = arith.constant 0.000000e+00 : f32
    %740 = vector.broadcast %cst_53 : f32 to vector<4x256xf32>
    %741 = arith.select %694, %739, %740 : vector<4x256xi1>, vector<4x256xf32>
    %c136 = arith.constant 136 : index
    %742 = memref.load %arg1[%c136] : memref<144xf32, #tpu.memory_space<smem>>
    %743 = vector.broadcast %742 : f32 to vector<4x256xf32>
    %744 = arith.mulf %741, %743 : vector<4x256xf32>
    %745 = arith.addf %724, %744 : vector<4x256xf32>
    %c137 = arith.constant 137 : index
    %746 = memref.load %arg1[%c137] : memref<144xf32, #tpu.memory_space<smem>>
    %747 = vector.broadcast %746 : f32 to vector<4x256xf32>
    %748 = arith.mulf %741, %747 : vector<4x256xf32>
    %749 = arith.addf %728, %748 : vector<4x256xf32>
    %c138 = arith.constant 138 : index
    %750 = memref.load %arg1[%c138] : memref<144xf32, #tpu.memory_space<smem>>
    %751 = vector.broadcast %750 : f32 to vector<4x256xf32>
    %752 = arith.mulf %741, %751 : vector<4x256xf32>
    %753 = arith.addf %732, %752 : vector<4x256xf32>
    %c139 = arith.constant 139 : index
    %754 = memref.load %arg1[%c139] : memref<144xf32, #tpu.memory_space<smem>>
    %755 = vector.broadcast %754 : f32 to vector<4x256xf32>
    %756 = arith.mulf %741, %755 : vector<4x256xf32>
    %757 = arith.addf %736, %756 : vector<4x256xf32>
    %758 = vector.extract_strided_slice %7 {offsets = [0, 17], sizes = [4, 239], strides = [1, 1]} : vector<4x256xf32> to vector<4x239xf32>
    %759 = vector.extract_strided_slice %7 {offsets = [0, 0], sizes = [4, 17], strides = [1, 1]} : vector<4x256xf32> to vector<4x17xf32>
    %760 = tpu.concatenate %758, %759 in 1 : vector<4x239xf32>, vector<4x17xf32> -> vector<4x256xf32>
    %cst_54 = arith.constant 0.000000e+00 : f32
    %761 = vector.broadcast %cst_54 : f32 to vector<4x256xf32>
    %762 = arith.select %694, %760, %761 : vector<4x256xi1>, vector<4x256xf32>
    %c140 = arith.constant 140 : index
    %763 = memref.load %arg1[%c140] : memref<144xf32, #tpu.memory_space<smem>>
    %764 = vector.broadcast %763 : f32 to vector<4x256xf32>
    %765 = arith.mulf %762, %764 : vector<4x256xf32>
    %766 = arith.addf %745, %765 : vector<4x256xf32>
    %c141 = arith.constant 141 : index
    %767 = memref.load %arg1[%c141] : memref<144xf32, #tpu.memory_space<smem>>
    %768 = vector.broadcast %767 : f32 to vector<4x256xf32>
    %769 = arith.mulf %762, %768 : vector<4x256xf32>
    %770 = arith.addf %749, %769 : vector<4x256xf32>
    %c142 = arith.constant 142 : index
    %771 = memref.load %arg1[%c142] : memref<144xf32, #tpu.memory_space<smem>>
    %772 = vector.broadcast %771 : f32 to vector<4x256xf32>
    %773 = arith.mulf %762, %772 : vector<4x256xf32>
    %774 = arith.addf %753, %773 : vector<4x256xf32>
    %c143 = arith.constant 143 : index
    %775 = memref.load %arg1[%c143] : memref<144xf32, #tpu.memory_space<smem>>
    %776 = vector.broadcast %775 : f32 to vector<4x256xf32>
    %777 = arith.mulf %762, %776 : vector<4x256xf32>
    %778 = arith.addf %757, %777 : vector<4x256xf32>
    %c0_55 = arith.constant 0 : index
    %779 = memref.load %arg2[%c0_55] : memref<4xf32, #tpu.memory_space<smem>>
    %780 = vector.broadcast %779 : f32 to vector<4x256xf32>
    %781 = arith.addf %766, %780 : vector<4x256xf32>
    %c1_56 = arith.constant 1 : index
    %782 = memref.load %arg2[%c1_56] : memref<4xf32, #tpu.memory_space<smem>>
    %783 = vector.broadcast %782 : f32 to vector<4x256xf32>
    %784 = arith.addf %770, %783 : vector<4x256xf32>
    %c2_57 = arith.constant 2 : index
    %785 = memref.load %arg2[%c2_57] : memref<4xf32, #tpu.memory_space<smem>>
    %786 = vector.broadcast %785 : f32 to vector<4x256xf32>
    %787 = arith.addf %774, %786 : vector<4x256xf32>
    %c3_58 = arith.constant 3 : index
    %788 = memref.load %arg2[%c3_58] : memref<4xf32, #tpu.memory_space<smem>>
    %789 = vector.broadcast %788 : f32 to vector<4x256xf32>
    %790 = arith.addf %778, %789 : vector<4x256xf32>
    %cst_59 = arith.constant 0.000000e+00 : f32
    %791 = vector.broadcast %cst_59 : f32 to vector<4x256xf32>
    %792 = arith.maximumf %781, %791 : vector<4x256xf32>
    %cst_60 = arith.constant 0.000000e+00 : f32
    %793 = vector.broadcast %cst_60 : f32 to vector<4x256xf32>
    %794 = arith.maximumf %784, %793 : vector<4x256xf32>
    %cst_61 = arith.constant 0.000000e+00 : f32
    %795 = vector.broadcast %cst_61 : f32 to vector<4x256xf32>
    %796 = arith.maximumf %787, %795 : vector<4x256xf32>
    %cst_62 = arith.constant 0.000000e+00 : f32
    %797 = vector.broadcast %cst_62 : f32 to vector<4x256xf32>
    %798 = arith.maximumf %790, %797 : vector<4x256xf32>
    %cst_63 = arith.constant 0.000000e+00 : f32
    %799 = vector.broadcast %cst_63 : f32 to vector<4x256xf32>
    %cst_64 = arith.constant 0.000000e+00 : f32
    %800 = vector.broadcast %cst_64 : f32 to vector<4x256xf32>
    %cst_65 = arith.constant 0.000000e+00 : f32
    %801 = vector.broadcast %cst_65 : f32 to vector<4x256xf32>
    %cst_66 = arith.constant 0.000000e+00 : f32
    %802 = vector.broadcast %cst_66 : f32 to vector<4x256xf32>
    %c16_i32_67 = arith.constant 16 : i32
    %803 = vector.broadcast %c16_i32_67 : i32 to vector<4x256xi32>
    %804 = arith.cmpi sge, %8, %803 : vector<4x256xi32>
    %c1_i32_68 = arith.constant 1 : i32
    %805 = vector.broadcast %c1_i32_68 : i32 to vector<4x256xi32>
    %806 = arith.cmpi sge, %10, %805 : vector<4x256xi32>
    %807 = arith.andi %804, %806 : vector<4x256xi1>
    %808 = vector.extract_strided_slice %792 {offsets = [0, 239], sizes = [4, 17], strides = [1, 1]} : vector<4x256xf32> to vector<4x17xf32>
    %809 = vector.extract_strided_slice %792 {offsets = [0, 0], sizes = [4, 239], strides = [1, 1]} : vector<4x256xf32> to vector<4x239xf32>
    %810 = tpu.concatenate %808, %809 in 1 : vector<4x17xf32>, vector<4x239xf32> -> vector<4x256xf32>
    %cst_69 = arith.constant 0.000000e+00 : f32
    %811 = vector.broadcast %cst_69 : f32 to vector<4x256xf32>
    %812 = arith.select %807, %810, %811 : vector<4x256xi1>, vector<4x256xf32>
    %c0_70 = arith.constant 0 : index
    %813 = memref.load %arg3[%c0_70] : memref<144xf32, #tpu.memory_space<smem>>
    %814 = vector.broadcast %813 : f32 to vector<4x256xf32>
    %815 = arith.mulf %812, %814 : vector<4x256xf32>
    %816 = arith.addf %799, %815 : vector<4x256xf32>
    %c1_71 = arith.constant 1 : index
    %817 = memref.load %arg3[%c1_71] : memref<144xf32, #tpu.memory_space<smem>>
    %818 = vector.broadcast %817 : f32 to vector<4x256xf32>
    %819 = arith.mulf %812, %818 : vector<4x256xf32>
    %820 = arith.addf %800, %819 : vector<4x256xf32>
    %c2_72 = arith.constant 2 : index
    %821 = memref.load %arg3[%c2_72] : memref<144xf32, #tpu.memory_space<smem>>
    %822 = vector.broadcast %821 : f32 to vector<4x256xf32>
    %823 = arith.mulf %812, %822 : vector<4x256xf32>
    %824 = arith.addf %801, %823 : vector<4x256xf32>
    %c3_73 = arith.constant 3 : index
    %825 = memref.load %arg3[%c3_73] : memref<144xf32, #tpu.memory_space<smem>>
    %826 = vector.broadcast %825 : f32 to vector<4x256xf32>
    %827 = arith.mulf %812, %826 : vector<4x256xf32>
    %828 = arith.addf %802, %827 : vector<4x256xf32>
    %829 = vector.extract_strided_slice %794 {offsets = [0, 239], sizes = [4, 17], strides = [1, 1]} : vector<4x256xf32> to vector<4x17xf32>
    %830 = vector.extract_strided_slice %794 {offsets = [0, 0], sizes = [4, 239], strides = [1, 1]} : vector<4x256xf32> to vector<4x239xf32>
    %831 = tpu.concatenate %829, %830 in 1 : vector<4x17xf32>, vector<4x239xf32> -> vector<4x256xf32>
    %cst_74 = arith.constant 0.000000e+00 : f32
    %832 = vector.broadcast %cst_74 : f32 to vector<4x256xf32>
    %833 = arith.select %807, %831, %832 : vector<4x256xi1>, vector<4x256xf32>
    %c4_75 = arith.constant 4 : index
    %834 = memref.load %arg3[%c4_75] : memref<144xf32, #tpu.memory_space<smem>>
    %835 = vector.broadcast %834 : f32 to vector<4x256xf32>
    %836 = arith.mulf %833, %835 : vector<4x256xf32>
    %837 = arith.addf %816, %836 : vector<4x256xf32>
    %c5_76 = arith.constant 5 : index
    %838 = memref.load %arg3[%c5_76] : memref<144xf32, #tpu.memory_space<smem>>
    %839 = vector.broadcast %838 : f32 to vector<4x256xf32>
    %840 = arith.mulf %833, %839 : vector<4x256xf32>
    %841 = arith.addf %820, %840 : vector<4x256xf32>
    %c6_77 = arith.constant 6 : index
    %842 = memref.load %arg3[%c6_77] : memref<144xf32, #tpu.memory_space<smem>>
    %843 = vector.broadcast %842 : f32 to vector<4x256xf32>
    %844 = arith.mulf %833, %843 : vector<4x256xf32>
    %845 = arith.addf %824, %844 : vector<4x256xf32>
    %c7_78 = arith.constant 7 : index
    %846 = memref.load %arg3[%c7_78] : memref<144xf32, #tpu.memory_space<smem>>
    %847 = vector.broadcast %846 : f32 to vector<4x256xf32>
    %848 = arith.mulf %833, %847 : vector<4x256xf32>
    %849 = arith.addf %828, %848 : vector<4x256xf32>
    %850 = vector.extract_strided_slice %796 {offsets = [0, 239], sizes = [4, 17], strides = [1, 1]} : vector<4x256xf32> to vector<4x17xf32>
    %851 = vector.extract_strided_slice %796 {offsets = [0, 0], sizes = [4, 239], strides = [1, 1]} : vector<4x256xf32> to vector<4x239xf32>
    %852 = tpu.concatenate %850, %851 in 1 : vector<4x17xf32>, vector<4x239xf32> -> vector<4x256xf32>
    %cst_79 = arith.constant 0.000000e+00 : f32
    %853 = vector.broadcast %cst_79 : f32 to vector<4x256xf32>
    %854 = arith.select %807, %852, %853 : vector<4x256xi1>, vector<4x256xf32>
    %c8_80 = arith.constant 8 : index
    %855 = memref.load %arg3[%c8_80] : memref<144xf32, #tpu.memory_space<smem>>
    %856 = vector.broadcast %855 : f32 to vector<4x256xf32>
    %857 = arith.mulf %854, %856 : vector<4x256xf32>
    %858 = arith.addf %837, %857 : vector<4x256xf32>
    %c9_81 = arith.constant 9 : index
    %859 = memref.load %arg3[%c9_81] : memref<144xf32, #tpu.memory_space<smem>>
    %860 = vector.broadcast %859 : f32 to vector<4x256xf32>
    %861 = arith.mulf %854, %860 : vector<4x256xf32>
    %862 = arith.addf %841, %861 : vector<4x256xf32>
    %c10_82 = arith.constant 10 : index
    %863 = memref.load %arg3[%c10_82] : memref<144xf32, #tpu.memory_space<smem>>
    %864 = vector.broadcast %863 : f32 to vector<4x256xf32>
    %865 = arith.mulf %854, %864 : vector<4x256xf32>
    %866 = arith.addf %845, %865 : vector<4x256xf32>
    %c11_83 = arith.constant 11 : index
    %867 = memref.load %arg3[%c11_83] : memref<144xf32, #tpu.memory_space<smem>>
    %868 = vector.broadcast %867 : f32 to vector<4x256xf32>
    %869 = arith.mulf %854, %868 : vector<4x256xf32>
    %870 = arith.addf %849, %869 : vector<4x256xf32>
    %871 = vector.extract_strided_slice %798 {offsets = [0, 239], sizes = [4, 17], strides = [1, 1]} : vector<4x256xf32> to vector<4x17xf32>
    %872 = vector.extract_strided_slice %798 {offsets = [0, 0], sizes = [4, 239], strides = [1, 1]} : vector<4x256xf32> to vector<4x239xf32>
    %873 = tpu.concatenate %871, %872 in 1 : vector<4x17xf32>, vector<4x239xf32> -> vector<4x256xf32>
    %cst_84 = arith.constant 0.000000e+00 : f32
    %874 = vector.broadcast %cst_84 : f32 to vector<4x256xf32>
    %875 = arith.select %807, %873, %874 : vector<4x256xi1>, vector<4x256xf32>
    %c12_85 = arith.constant 12 : index
    %876 = memref.load %arg3[%c12_85] : memref<144xf32, #tpu.memory_space<smem>>
    %877 = vector.broadcast %876 : f32 to vector<4x256xf32>
    %878 = arith.mulf %875, %877 : vector<4x256xf32>
    %879 = arith.addf %858, %878 : vector<4x256xf32>
    %c13_86 = arith.constant 13 : index
    %880 = memref.load %arg3[%c13_86] : memref<144xf32, #tpu.memory_space<smem>>
    %881 = vector.broadcast %880 : f32 to vector<4x256xf32>
    %882 = arith.mulf %875, %881 : vector<4x256xf32>
    %883 = arith.addf %862, %882 : vector<4x256xf32>
    %c14_87 = arith.constant 14 : index
    %884 = memref.load %arg3[%c14_87] : memref<144xf32, #tpu.memory_space<smem>>
    %885 = vector.broadcast %884 : f32 to vector<4x256xf32>
    %886 = arith.mulf %875, %885 : vector<4x256xf32>
    %887 = arith.addf %866, %886 : vector<4x256xf32>
    %c15_88 = arith.constant 15 : index
    %888 = memref.load %arg3[%c15_88] : memref<144xf32, #tpu.memory_space<smem>>
    %889 = vector.broadcast %888 : f32 to vector<4x256xf32>
    %890 = arith.mulf %875, %889 : vector<4x256xf32>
    %891 = arith.addf %870, %890 : vector<4x256xf32>
    %c16_i32_89 = arith.constant 16 : i32
    %892 = vector.broadcast %c16_i32_89 : i32 to vector<4x256xi32>
    %893 = arith.cmpi sge, %8, %892 : vector<4x256xi32>
    %894 = vector.extract_strided_slice %792 {offsets = [0, 240], sizes = [4, 16], strides = [1, 1]} : vector<4x256xf32> to vector<4x16xf32>
    %895 = vector.extract_strided_slice %792 {offsets = [0, 0], sizes = [4, 240], strides = [1, 1]} : vector<4x256xf32> to vector<4x240xf32>
    %896 = tpu.concatenate %894, %895 in 1 : vector<4x16xf32>, vector<4x240xf32> -> vector<4x256xf32>
    %cst_90 = arith.constant 0.000000e+00 : f32
    %897 = vector.broadcast %cst_90 : f32 to vector<4x256xf32>
    %898 = arith.select %893, %896, %897 : vector<4x256xi1>, vector<4x256xf32>
    %c16_91 = arith.constant 16 : index
    %899 = memref.load %arg3[%c16_91] : memref<144xf32, #tpu.memory_space<smem>>
    %900 = vector.broadcast %899 : f32 to vector<4x256xf32>
    %901 = arith.mulf %898, %900 : vector<4x256xf32>
    %902 = arith.addf %879, %901 : vector<4x256xf32>
    %c17_92 = arith.constant 17 : index
    %903 = memref.load %arg3[%c17_92] : memref<144xf32, #tpu.memory_space<smem>>
    %904 = vector.broadcast %903 : f32 to vector<4x256xf32>
    %905 = arith.mulf %898, %904 : vector<4x256xf32>
    %906 = arith.addf %883, %905 : vector<4x256xf32>
    %c18_93 = arith.constant 18 : index
    %907 = memref.load %arg3[%c18_93] : memref<144xf32, #tpu.memory_space<smem>>
    %908 = vector.broadcast %907 : f32 to vector<4x256xf32>
    %909 = arith.mulf %898, %908 : vector<4x256xf32>
    %910 = arith.addf %887, %909 : vector<4x256xf32>
    %c19_94 = arith.constant 19 : index
    %911 = memref.load %arg3[%c19_94] : memref<144xf32, #tpu.memory_space<smem>>
    %912 = vector.broadcast %911 : f32 to vector<4x256xf32>
    %913 = arith.mulf %898, %912 : vector<4x256xf32>
    %914 = arith.addf %891, %913 : vector<4x256xf32>
    %915 = vector.extract_strided_slice %794 {offsets = [0, 240], sizes = [4, 16], strides = [1, 1]} : vector<4x256xf32> to vector<4x16xf32>
    %916 = vector.extract_strided_slice %794 {offsets = [0, 0], sizes = [4, 240], strides = [1, 1]} : vector<4x256xf32> to vector<4x240xf32>
    %917 = tpu.concatenate %915, %916 in 1 : vector<4x16xf32>, vector<4x240xf32> -> vector<4x256xf32>
    %cst_95 = arith.constant 0.000000e+00 : f32
    %918 = vector.broadcast %cst_95 : f32 to vector<4x256xf32>
    %919 = arith.select %893, %917, %918 : vector<4x256xi1>, vector<4x256xf32>
    %c20_96 = arith.constant 20 : index
    %920 = memref.load %arg3[%c20_96] : memref<144xf32, #tpu.memory_space<smem>>
    %921 = vector.broadcast %920 : f32 to vector<4x256xf32>
    %922 = arith.mulf %919, %921 : vector<4x256xf32>
    %923 = arith.addf %902, %922 : vector<4x256xf32>
    %c21_97 = arith.constant 21 : index
    %924 = memref.load %arg3[%c21_97] : memref<144xf32, #tpu.memory_space<smem>>
    %925 = vector.broadcast %924 : f32 to vector<4x256xf32>
    %926 = arith.mulf %919, %925 : vector<4x256xf32>
    %927 = arith.addf %906, %926 : vector<4x256xf32>
    %c22_98 = arith.constant 22 : index
    %928 = memref.load %arg3[%c22_98] : memref<144xf32, #tpu.memory_space<smem>>
    %929 = vector.broadcast %928 : f32 to vector<4x256xf32>
    %930 = arith.mulf %919, %929 : vector<4x256xf32>
    %931 = arith.addf %910, %930 : vector<4x256xf32>
    %c23_99 = arith.constant 23 : index
    %932 = memref.load %arg3[%c23_99] : memref<144xf32, #tpu.memory_space<smem>>
    %933 = vector.broadcast %932 : f32 to vector<4x256xf32>
    %934 = arith.mulf %919, %933 : vector<4x256xf32>
    %935 = arith.addf %914, %934 : vector<4x256xf32>
    %936 = vector.extract_strided_slice %796 {offsets = [0, 240], sizes = [4, 16], strides = [1, 1]} : vector<4x256xf32> to vector<4x16xf32>
    %937 = vector.extract_strided_slice %796 {offsets = [0, 0], sizes = [4, 240], strides = [1, 1]} : vector<4x256xf32> to vector<4x240xf32>
    %938 = tpu.concatenate %936, %937 in 1 : vector<4x16xf32>, vector<4x240xf32> -> vector<4x256xf32>
    %cst_100 = arith.constant 0.000000e+00 : f32
    %939 = vector.broadcast %cst_100 : f32 to vector<4x256xf32>
    %940 = arith.select %893, %938, %939 : vector<4x256xi1>, vector<4x256xf32>
    %c24_101 = arith.constant 24 : index
    %941 = memref.load %arg3[%c24_101] : memref<144xf32, #tpu.memory_space<smem>>
    %942 = vector.broadcast %941 : f32 to vector<4x256xf32>
    %943 = arith.mulf %940, %942 : vector<4x256xf32>
    %944 = arith.addf %923, %943 : vector<4x256xf32>
    %c25_102 = arith.constant 25 : index
    %945 = memref.load %arg3[%c25_102] : memref<144xf32, #tpu.memory_space<smem>>
    %946 = vector.broadcast %945 : f32 to vector<4x256xf32>
    %947 = arith.mulf %940, %946 : vector<4x256xf32>
    %948 = arith.addf %927, %947 : vector<4x256xf32>
    %c26_103 = arith.constant 26 : index
    %949 = memref.load %arg3[%c26_103] : memref<144xf32, #tpu.memory_space<smem>>
    %950 = vector.broadcast %949 : f32 to vector<4x256xf32>
    %951 = arith.mulf %940, %950 : vector<4x256xf32>
    %952 = arith.addf %931, %951 : vector<4x256xf32>
    %c27_104 = arith.constant 27 : index
    %953 = memref.load %arg3[%c27_104] : memref<144xf32, #tpu.memory_space<smem>>
    %954 = vector.broadcast %953 : f32 to vector<4x256xf32>
    %955 = arith.mulf %940, %954 : vector<4x256xf32>
    %956 = arith.addf %935, %955 : vector<4x256xf32>
    %957 = vector.extract_strided_slice %798 {offsets = [0, 240], sizes = [4, 16], strides = [1, 1]} : vector<4x256xf32> to vector<4x16xf32>
    %958 = vector.extract_strided_slice %798 {offsets = [0, 0], sizes = [4, 240], strides = [1, 1]} : vector<4x256xf32> to vector<4x240xf32>
    %959 = tpu.concatenate %957, %958 in 1 : vector<4x16xf32>, vector<4x240xf32> -> vector<4x256xf32>
    %cst_105 = arith.constant 0.000000e+00 : f32
    %960 = vector.broadcast %cst_105 : f32 to vector<4x256xf32>
    %961 = arith.select %893, %959, %960 : vector<4x256xi1>, vector<4x256xf32>
    %c28_106 = arith.constant 28 : index
    %962 = memref.load %arg3[%c28_106] : memref<144xf32, #tpu.memory_space<smem>>
    %963 = vector.broadcast %962 : f32 to vector<4x256xf32>
    %964 = arith.mulf %961, %963 : vector<4x256xf32>
    %965 = arith.addf %944, %964 : vector<4x256xf32>
    %c29_107 = arith.constant 29 : index
    %966 = memref.load %arg3[%c29_107] : memref<144xf32, #tpu.memory_space<smem>>
    %967 = vector.broadcast %966 : f32 to vector<4x256xf32>
    %968 = arith.mulf %961, %967 : vector<4x256xf32>
    %969 = arith.addf %948, %968 : vector<4x256xf32>
    %c30_108 = arith.constant 30 : index
    %970 = memref.load %arg3[%c30_108] : memref<144xf32, #tpu.memory_space<smem>>
    %971 = vector.broadcast %970 : f32 to vector<4x256xf32>
    %972 = arith.mulf %961, %971 : vector<4x256xf32>
    %973 = arith.addf %952, %972 : vector<4x256xf32>
    %c31_109 = arith.constant 31 : index
    %974 = memref.load %arg3[%c31_109] : memref<144xf32, #tpu.memory_space<smem>>
    %975 = vector.broadcast %974 : f32 to vector<4x256xf32>
    %976 = arith.mulf %961, %975 : vector<4x256xf32>
    %977 = arith.addf %956, %976 : vector<4x256xf32>
    %c16_i32_110 = arith.constant 16 : i32
    %978 = vector.broadcast %c16_i32_110 : i32 to vector<4x256xi32>
    %979 = arith.cmpi sge, %8, %978 : vector<4x256xi32>
    %c14_i32_111 = arith.constant 14 : i32
    %980 = vector.broadcast %c14_i32_111 : i32 to vector<4x256xi32>
    %981 = arith.cmpi sle, %10, %980 : vector<4x256xi32>
    %982 = arith.andi %979, %981 : vector<4x256xi1>
    %983 = vector.extract_strided_slice %792 {offsets = [0, 241], sizes = [4, 15], strides = [1, 1]} : vector<4x256xf32> to vector<4x15xf32>
    %984 = vector.extract_strided_slice %792 {offsets = [0, 0], sizes = [4, 241], strides = [1, 1]} : vector<4x256xf32> to vector<4x241xf32>
    %985 = tpu.concatenate %983, %984 in 1 : vector<4x15xf32>, vector<4x241xf32> -> vector<4x256xf32>
    %cst_112 = arith.constant 0.000000e+00 : f32
    %986 = vector.broadcast %cst_112 : f32 to vector<4x256xf32>
    %987 = arith.select %982, %985, %986 : vector<4x256xi1>, vector<4x256xf32>
    %c32_113 = arith.constant 32 : index
    %988 = memref.load %arg3[%c32_113] : memref<144xf32, #tpu.memory_space<smem>>
    %989 = vector.broadcast %988 : f32 to vector<4x256xf32>
    %990 = arith.mulf %987, %989 : vector<4x256xf32>
    %991 = arith.addf %965, %990 : vector<4x256xf32>
    %c33_114 = arith.constant 33 : index
    %992 = memref.load %arg3[%c33_114] : memref<144xf32, #tpu.memory_space<smem>>
    %993 = vector.broadcast %992 : f32 to vector<4x256xf32>
    %994 = arith.mulf %987, %993 : vector<4x256xf32>
    %995 = arith.addf %969, %994 : vector<4x256xf32>
    %c34_115 = arith.constant 34 : index
    %996 = memref.load %arg3[%c34_115] : memref<144xf32, #tpu.memory_space<smem>>
    %997 = vector.broadcast %996 : f32 to vector<4x256xf32>
    %998 = arith.mulf %987, %997 : vector<4x256xf32>
    %999 = arith.addf %973, %998 : vector<4x256xf32>
    %c35_116 = arith.constant 35 : index
    %1000 = memref.load %arg3[%c35_116] : memref<144xf32, #tpu.memory_space<smem>>
    %1001 = vector.broadcast %1000 : f32 to vector<4x256xf32>
    %1002 = arith.mulf %987, %1001 : vector<4x256xf32>
    %1003 = arith.addf %977, %1002 : vector<4x256xf32>
    %1004 = vector.extract_strided_slice %794 {offsets = [0, 241], sizes = [4, 15], strides = [1, 1]} : vector<4x256xf32> to vector<4x15xf32>
    %1005 = vector.extract_strided_slice %794 {offsets = [0, 0], sizes = [4, 241], strides = [1, 1]} : vector<4x256xf32> to vector<4x241xf32>
    %1006 = tpu.concatenate %1004, %1005 in 1 : vector<4x15xf32>, vector<4x241xf32> -> vector<4x256xf32>
    %cst_117 = arith.constant 0.000000e+00 : f32
    %1007 = vector.broadcast %cst_117 : f32 to vector<4x256xf32>
    %1008 = arith.select %982, %1006, %1007 : vector<4x256xi1>, vector<4x256xf32>
    %c36_118 = arith.constant 36 : index
    %1009 = memref.load %arg3[%c36_118] : memref<144xf32, #tpu.memory_space<smem>>
    %1010 = vector.broadcast %1009 : f32 to vector<4x256xf32>
    %1011 = arith.mulf %1008, %1010 : vector<4x256xf32>
    %1012 = arith.addf %991, %1011 : vector<4x256xf32>
    %c37_119 = arith.constant 37 : index
    %1013 = memref.load %arg3[%c37_119] : memref<144xf32, #tpu.memory_space<smem>>
    %1014 = vector.broadcast %1013 : f32 to vector<4x256xf32>
    %1015 = arith.mulf %1008, %1014 : vector<4x256xf32>
    %1016 = arith.addf %995, %1015 : vector<4x256xf32>
    %c38_120 = arith.constant 38 : index
    %1017 = memref.load %arg3[%c38_120] : memref<144xf32, #tpu.memory_space<smem>>
    %1018 = vector.broadcast %1017 : f32 to vector<4x256xf32>
    %1019 = arith.mulf %1008, %1018 : vector<4x256xf32>
    %1020 = arith.addf %999, %1019 : vector<4x256xf32>
    %c39_121 = arith.constant 39 : index
    %1021 = memref.load %arg3[%c39_121] : memref<144xf32, #tpu.memory_space<smem>>
    %1022 = vector.broadcast %1021 : f32 to vector<4x256xf32>
    %1023 = arith.mulf %1008, %1022 : vector<4x256xf32>
    %1024 = arith.addf %1003, %1023 : vector<4x256xf32>
    %1025 = vector.extract_strided_slice %796 {offsets = [0, 241], sizes = [4, 15], strides = [1, 1]} : vector<4x256xf32> to vector<4x15xf32>
    %1026 = vector.extract_strided_slice %796 {offsets = [0, 0], sizes = [4, 241], strides = [1, 1]} : vector<4x256xf32> to vector<4x241xf32>
    %1027 = tpu.concatenate %1025, %1026 in 1 : vector<4x15xf32>, vector<4x241xf32> -> vector<4x256xf32>
    %cst_122 = arith.constant 0.000000e+00 : f32
    %1028 = vector.broadcast %cst_122 : f32 to vector<4x256xf32>
    %1029 = arith.select %982, %1027, %1028 : vector<4x256xi1>, vector<4x256xf32>
    %c40_123 = arith.constant 40 : index
    %1030 = memref.load %arg3[%c40_123] : memref<144xf32, #tpu.memory_space<smem>>
    %1031 = vector.broadcast %1030 : f32 to vector<4x256xf32>
    %1032 = arith.mulf %1029, %1031 : vector<4x256xf32>
    %1033 = arith.addf %1012, %1032 : vector<4x256xf32>
    %c41_124 = arith.constant 41 : index
    %1034 = memref.load %arg3[%c41_124] : memref<144xf32, #tpu.memory_space<smem>>
    %1035 = vector.broadcast %1034 : f32 to vector<4x256xf32>
    %1036 = arith.mulf %1029, %1035 : vector<4x256xf32>
    %1037 = arith.addf %1016, %1036 : vector<4x256xf32>
    %c42_125 = arith.constant 42 : index
    %1038 = memref.load %arg3[%c42_125] : memref<144xf32, #tpu.memory_space<smem>>
    %1039 = vector.broadcast %1038 : f32 to vector<4x256xf32>
    %1040 = arith.mulf %1029, %1039 : vector<4x256xf32>
    %1041 = arith.addf %1020, %1040 : vector<4x256xf32>
    %c43_126 = arith.constant 43 : index
    %1042 = memref.load %arg3[%c43_126] : memref<144xf32, #tpu.memory_space<smem>>
    %1043 = vector.broadcast %1042 : f32 to vector<4x256xf32>
    %1044 = arith.mulf %1029, %1043 : vector<4x256xf32>
    %1045 = arith.addf %1024, %1044 : vector<4x256xf32>
    %1046 = vector.extract_strided_slice %798 {offsets = [0, 241], sizes = [4, 15], strides = [1, 1]} : vector<4x256xf32> to vector<4x15xf32>
    %1047 = vector.extract_strided_slice %798 {offsets = [0, 0], sizes = [4, 241], strides = [1, 1]} : vector<4x256xf32> to vector<4x241xf32>
    %1048 = tpu.concatenate %1046, %1047 in 1 : vector<4x15xf32>, vector<4x241xf32> -> vector<4x256xf32>
    %cst_127 = arith.constant 0.000000e+00 : f32
    %1049 = vector.broadcast %cst_127 : f32 to vector<4x256xf32>
    %1050 = arith.select %982, %1048, %1049 : vector<4x256xi1>, vector<4x256xf32>
    %c44_128 = arith.constant 44 : index
    %1051 = memref.load %arg3[%c44_128] : memref<144xf32, #tpu.memory_space<smem>>
    %1052 = vector.broadcast %1051 : f32 to vector<4x256xf32>
    %1053 = arith.mulf %1050, %1052 : vector<4x256xf32>
    %1054 = arith.addf %1033, %1053 : vector<4x256xf32>
    %c45_129 = arith.constant 45 : index
    %1055 = memref.load %arg3[%c45_129] : memref<144xf32, #tpu.memory_space<smem>>
    %1056 = vector.broadcast %1055 : f32 to vector<4x256xf32>
    %1057 = arith.mulf %1050, %1056 : vector<4x256xf32>
    %1058 = arith.addf %1037, %1057 : vector<4x256xf32>
    %c46_130 = arith.constant 46 : index
    %1059 = memref.load %arg3[%c46_130] : memref<144xf32, #tpu.memory_space<smem>>
    %1060 = vector.broadcast %1059 : f32 to vector<4x256xf32>
    %1061 = arith.mulf %1050, %1060 : vector<4x256xf32>
    %1062 = arith.addf %1041, %1061 : vector<4x256xf32>
    %c47_131 = arith.constant 47 : index
    %1063 = memref.load %arg3[%c47_131] : memref<144xf32, #tpu.memory_space<smem>>
    %1064 = vector.broadcast %1063 : f32 to vector<4x256xf32>
    %1065 = arith.mulf %1050, %1064 : vector<4x256xf32>
    %1066 = arith.addf %1045, %1065 : vector<4x256xf32>
    %c1_i32_132 = arith.constant 1 : i32
    %1067 = vector.broadcast %c1_i32_132 : i32 to vector<4x256xi32>
    %1068 = arith.cmpi sge, %10, %1067 : vector<4x256xi32>
    %1069 = vector.extract_strided_slice %792 {offsets = [0, 255], sizes = [4, 1], strides = [1, 1]} : vector<4x256xf32> to vector<4x1xf32>
    %1070 = vector.extract_strided_slice %792 {offsets = [0, 0], sizes = [4, 255], strides = [1, 1]} : vector<4x256xf32> to vector<4x255xf32>
    %1071 = tpu.concatenate %1069, %1070 in 1 : vector<4x1xf32>, vector<4x255xf32> -> vector<4x256xf32>
    %cst_133 = arith.constant 0.000000e+00 : f32
    %1072 = vector.broadcast %cst_133 : f32 to vector<4x256xf32>
    %1073 = arith.select %1068, %1071, %1072 : vector<4x256xi1>, vector<4x256xf32>
    %c48_134 = arith.constant 48 : index
    %1074 = memref.load %arg3[%c48_134] : memref<144xf32, #tpu.memory_space<smem>>
    %1075 = vector.broadcast %1074 : f32 to vector<4x256xf32>
    %1076 = arith.mulf %1073, %1075 : vector<4x256xf32>
    %1077 = arith.addf %1054, %1076 : vector<4x256xf32>
    %c49_135 = arith.constant 49 : index
    %1078 = memref.load %arg3[%c49_135] : memref<144xf32, #tpu.memory_space<smem>>
    %1079 = vector.broadcast %1078 : f32 to vector<4x256xf32>
    %1080 = arith.mulf %1073, %1079 : vector<4x256xf32>
    %1081 = arith.addf %1058, %1080 : vector<4x256xf32>
    %c50_136 = arith.constant 50 : index
    %1082 = memref.load %arg3[%c50_136] : memref<144xf32, #tpu.memory_space<smem>>
    %1083 = vector.broadcast %1082 : f32 to vector<4x256xf32>
    %1084 = arith.mulf %1073, %1083 : vector<4x256xf32>
    %1085 = arith.addf %1062, %1084 : vector<4x256xf32>
    %c51_137 = arith.constant 51 : index
    %1086 = memref.load %arg3[%c51_137] : memref<144xf32, #tpu.memory_space<smem>>
    %1087 = vector.broadcast %1086 : f32 to vector<4x256xf32>
    %1088 = arith.mulf %1073, %1087 : vector<4x256xf32>
    %1089 = arith.addf %1066, %1088 : vector<4x256xf32>
    %1090 = vector.extract_strided_slice %794 {offsets = [0, 255], sizes = [4, 1], strides = [1, 1]} : vector<4x256xf32> to vector<4x1xf32>
    %1091 = vector.extract_strided_slice %794 {offsets = [0, 0], sizes = [4, 255], strides = [1, 1]} : vector<4x256xf32> to vector<4x255xf32>
    %1092 = tpu.concatenate %1090, %1091 in 1 : vector<4x1xf32>, vector<4x255xf32> -> vector<4x256xf32>
    %cst_138 = arith.constant 0.000000e+00 : f32
    %1093 = vector.broadcast %cst_138 : f32 to vector<4x256xf32>
    %1094 = arith.select %1068, %1092, %1093 : vector<4x256xi1>, vector<4x256xf32>
    %c52_139 = arith.constant 52 : index
    %1095 = memref.load %arg3[%c52_139] : memref<144xf32, #tpu.memory_space<smem>>
    %1096 = vector.broadcast %1095 : f32 to vector<4x256xf32>
    %1097 = arith.mulf %1094, %1096 : vector<4x256xf32>
    %1098 = arith.addf %1077, %1097 : vector<4x256xf32>
    %c53_140 = arith.constant 53 : index
    %1099 = memref.load %arg3[%c53_140] : memref<144xf32, #tpu.memory_space<smem>>
    %1100 = vector.broadcast %1099 : f32 to vector<4x256xf32>
    %1101 = arith.mulf %1094, %1100 : vector<4x256xf32>
    %1102 = arith.addf %1081, %1101 : vector<4x256xf32>
    %c54_141 = arith.constant 54 : index
    %1103 = memref.load %arg3[%c54_141] : memref<144xf32, #tpu.memory_space<smem>>
    %1104 = vector.broadcast %1103 : f32 to vector<4x256xf32>
    %1105 = arith.mulf %1094, %1104 : vector<4x256xf32>
    %1106 = arith.addf %1085, %1105 : vector<4x256xf32>
    %c55_142 = arith.constant 55 : index
    %1107 = memref.load %arg3[%c55_142] : memref<144xf32, #tpu.memory_space<smem>>
    %1108 = vector.broadcast %1107 : f32 to vector<4x256xf32>
    %1109 = arith.mulf %1094, %1108 : vector<4x256xf32>
    %1110 = arith.addf %1089, %1109 : vector<4x256xf32>
    %1111 = vector.extract_strided_slice %796 {offsets = [0, 255], sizes = [4, 1], strides = [1, 1]} : vector<4x256xf32> to vector<4x1xf32>
    %1112 = vector.extract_strided_slice %796 {offsets = [0, 0], sizes = [4, 255], strides = [1, 1]} : vector<4x256xf32> to vector<4x255xf32>
    %1113 = tpu.concatenate %1111, %1112 in 1 : vector<4x1xf32>, vector<4x255xf32> -> vector<4x256xf32>
    %cst_143 = arith.constant 0.000000e+00 : f32
    %1114 = vector.broadcast %cst_143 : f32 to vector<4x256xf32>
    %1115 = arith.select %1068, %1113, %1114 : vector<4x256xi1>, vector<4x256xf32>
    %c56_144 = arith.constant 56 : index
    %1116 = memref.load %arg3[%c56_144] : memref<144xf32, #tpu.memory_space<smem>>
    %1117 = vector.broadcast %1116 : f32 to vector<4x256xf32>
    %1118 = arith.mulf %1115, %1117 : vector<4x256xf32>
    %1119 = arith.addf %1098, %1118 : vector<4x256xf32>
    %c57_145 = arith.constant 57 : index
    %1120 = memref.load %arg3[%c57_145] : memref<144xf32, #tpu.memory_space<smem>>
    %1121 = vector.broadcast %1120 : f32 to vector<4x256xf32>
    %1122 = arith.mulf %1115, %1121 : vector<4x256xf32>
    %1123 = arith.addf %1102, %1122 : vector<4x256xf32>
    %c58_146 = arith.constant 58 : index
    %1124 = memref.load %arg3[%c58_146] : memref<144xf32, #tpu.memory_space<smem>>
    %1125 = vector.broadcast %1124 : f32 to vector<4x256xf32>
    %1126 = arith.mulf %1115, %1125 : vector<4x256xf32>
    %1127 = arith.addf %1106, %1126 : vector<4x256xf32>
    %c59_147 = arith.constant 59 : index
    %1128 = memref.load %arg3[%c59_147] : memref<144xf32, #tpu.memory_space<smem>>
    %1129 = vector.broadcast %1128 : f32 to vector<4x256xf32>
    %1130 = arith.mulf %1115, %1129 : vector<4x256xf32>
    %1131 = arith.addf %1110, %1130 : vector<4x256xf32>
    %1132 = vector.extract_strided_slice %798 {offsets = [0, 255], sizes = [4, 1], strides = [1, 1]} : vector<4x256xf32> to vector<4x1xf32>
    %1133 = vector.extract_strided_slice %798 {offsets = [0, 0], sizes = [4, 255], strides = [1, 1]} : vector<4x256xf32> to vector<4x255xf32>
    %1134 = tpu.concatenate %1132, %1133 in 1 : vector<4x1xf32>, vector<4x255xf32> -> vector<4x256xf32>
    %cst_148 = arith.constant 0.000000e+00 : f32
    %1135 = vector.broadcast %cst_148 : f32 to vector<4x256xf32>
    %1136 = arith.select %1068, %1134, %1135 : vector<4x256xi1>, vector<4x256xf32>
    %c60_149 = arith.constant 60 : index
    %1137 = memref.load %arg3[%c60_149] : memref<144xf32, #tpu.memory_space<smem>>
    %1138 = vector.broadcast %1137 : f32 to vector<4x256xf32>
    %1139 = arith.mulf %1136, %1138 : vector<4x256xf32>
    %1140 = arith.addf %1119, %1139 : vector<4x256xf32>
    %c61_150 = arith.constant 61 : index
    %1141 = memref.load %arg3[%c61_150] : memref<144xf32, #tpu.memory_space<smem>>
    %1142 = vector.broadcast %1141 : f32 to vector<4x256xf32>
    %1143 = arith.mulf %1136, %1142 : vector<4x256xf32>
    %1144 = arith.addf %1123, %1143 : vector<4x256xf32>
    %c62_151 = arith.constant 62 : index
    %1145 = memref.load %arg3[%c62_151] : memref<144xf32, #tpu.memory_space<smem>>
    %1146 = vector.broadcast %1145 : f32 to vector<4x256xf32>
    %1147 = arith.mulf %1136, %1146 : vector<4x256xf32>
    %1148 = arith.addf %1127, %1147 : vector<4x256xf32>
    %c63_152 = arith.constant 63 : index
    %1149 = memref.load %arg3[%c63_152] : memref<144xf32, #tpu.memory_space<smem>>
    %1150 = vector.broadcast %1149 : f32 to vector<4x256xf32>
    %1151 = arith.mulf %1136, %1150 : vector<4x256xf32>
    %1152 = arith.addf %1131, %1151 : vector<4x256xf32>
    %c64_153 = arith.constant 64 : index
    %1153 = memref.load %arg3[%c64_153] : memref<144xf32, #tpu.memory_space<smem>>
    %1154 = vector.broadcast %1153 : f32 to vector<4x256xf32>
    %1155 = arith.mulf %792, %1154 : vector<4x256xf32>
    %1156 = arith.addf %1140, %1155 : vector<4x256xf32>
    %c65_154 = arith.constant 65 : index
    %1157 = memref.load %arg3[%c65_154] : memref<144xf32, #tpu.memory_space<smem>>
    %1158 = vector.broadcast %1157 : f32 to vector<4x256xf32>
    %1159 = arith.mulf %792, %1158 : vector<4x256xf32>
    %1160 = arith.addf %1144, %1159 : vector<4x256xf32>
    %c66_155 = arith.constant 66 : index
    %1161 = memref.load %arg3[%c66_155] : memref<144xf32, #tpu.memory_space<smem>>
    %1162 = vector.broadcast %1161 : f32 to vector<4x256xf32>
    %1163 = arith.mulf %792, %1162 : vector<4x256xf32>
    %1164 = arith.addf %1148, %1163 : vector<4x256xf32>
    %c67_156 = arith.constant 67 : index
    %1165 = memref.load %arg3[%c67_156] : memref<144xf32, #tpu.memory_space<smem>>
    %1166 = vector.broadcast %1165 : f32 to vector<4x256xf32>
    %1167 = arith.mulf %792, %1166 : vector<4x256xf32>
    %1168 = arith.addf %1152, %1167 : vector<4x256xf32>
    %c68_157 = arith.constant 68 : index
    %1169 = memref.load %arg3[%c68_157] : memref<144xf32, #tpu.memory_space<smem>>
    %1170 = vector.broadcast %1169 : f32 to vector<4x256xf32>
    %1171 = arith.mulf %794, %1170 : vector<4x256xf32>
    %1172 = arith.addf %1156, %1171 : vector<4x256xf32>
    %c69_158 = arith.constant 69 : index
    %1173 = memref.load %arg3[%c69_158] : memref<144xf32, #tpu.memory_space<smem>>
    %1174 = vector.broadcast %1173 : f32 to vector<4x256xf32>
    %1175 = arith.mulf %794, %1174 : vector<4x256xf32>
    %1176 = arith.addf %1160, %1175 : vector<4x256xf32>
    %c70_159 = arith.constant 70 : index
    %1177 = memref.load %arg3[%c70_159] : memref<144xf32, #tpu.memory_space<smem>>
    %1178 = vector.broadcast %1177 : f32 to vector<4x256xf32>
    %1179 = arith.mulf %794, %1178 : vector<4x256xf32>
    %1180 = arith.addf %1164, %1179 : vector<4x256xf32>
    %c71_160 = arith.constant 71 : index
    %1181 = memref.load %arg3[%c71_160] : memref<144xf32, #tpu.memory_space<smem>>
    %1182 = vector.broadcast %1181 : f32 to vector<4x256xf32>
    %1183 = arith.mulf %794, %1182 : vector<4x256xf32>
    %1184 = arith.addf %1168, %1183 : vector<4x256xf32>
    %c72_161 = arith.constant 72 : index
    %1185 = memref.load %arg3[%c72_161] : memref<144xf32, #tpu.memory_space<smem>>
    %1186 = vector.broadcast %1185 : f32 to vector<4x256xf32>
    %1187 = arith.mulf %796, %1186 : vector<4x256xf32>
    %1188 = arith.addf %1172, %1187 : vector<4x256xf32>
    %c73_162 = arith.constant 73 : index
    %1189 = memref.load %arg3[%c73_162] : memref<144xf32, #tpu.memory_space<smem>>
    %1190 = vector.broadcast %1189 : f32 to vector<4x256xf32>
    %1191 = arith.mulf %796, %1190 : vector<4x256xf32>
    %1192 = arith.addf %1176, %1191 : vector<4x256xf32>
    %c74_163 = arith.constant 74 : index
    %1193 = memref.load %arg3[%c74_163] : memref<144xf32, #tpu.memory_space<smem>>
    %1194 = vector.broadcast %1193 : f32 to vector<4x256xf32>
    %1195 = arith.mulf %796, %1194 : vector<4x256xf32>
    %1196 = arith.addf %1180, %1195 : vector<4x256xf32>
    %c75_164 = arith.constant 75 : index
    %1197 = memref.load %arg3[%c75_164] : memref<144xf32, #tpu.memory_space<smem>>
    %1198 = vector.broadcast %1197 : f32 to vector<4x256xf32>
    %1199 = arith.mulf %796, %1198 : vector<4x256xf32>
    %1200 = arith.addf %1184, %1199 : vector<4x256xf32>
    %c76_165 = arith.constant 76 : index
    %1201 = memref.load %arg3[%c76_165] : memref<144xf32, #tpu.memory_space<smem>>
    %1202 = vector.broadcast %1201 : f32 to vector<4x256xf32>
    %1203 = arith.mulf %798, %1202 : vector<4x256xf32>
    %1204 = arith.addf %1188, %1203 : vector<4x256xf32>
    %c77_166 = arith.constant 77 : index
    %1205 = memref.load %arg3[%c77_166] : memref<144xf32, #tpu.memory_space<smem>>
    %1206 = vector.broadcast %1205 : f32 to vector<4x256xf32>
    %1207 = arith.mulf %798, %1206 : vector<4x256xf32>
    %1208 = arith.addf %1192, %1207 : vector<4x256xf32>
    %c78_167 = arith.constant 78 : index
    %1209 = memref.load %arg3[%c78_167] : memref<144xf32, #tpu.memory_space<smem>>
    %1210 = vector.broadcast %1209 : f32 to vector<4x256xf32>
    %1211 = arith.mulf %798, %1210 : vector<4x256xf32>
    %1212 = arith.addf %1196, %1211 : vector<4x256xf32>
    %c79_168 = arith.constant 79 : index
    %1213 = memref.load %arg3[%c79_168] : memref<144xf32, #tpu.memory_space<smem>>
    %1214 = vector.broadcast %1213 : f32 to vector<4x256xf32>
    %1215 = arith.mulf %798, %1214 : vector<4x256xf32>
    %1216 = arith.addf %1200, %1215 : vector<4x256xf32>
    %c14_i32_169 = arith.constant 14 : i32
    %1217 = vector.broadcast %c14_i32_169 : i32 to vector<4x256xi32>
    %1218 = arith.cmpi sle, %10, %1217 : vector<4x256xi32>
    %1219 = vector.extract_strided_slice %792 {offsets = [0, 1], sizes = [4, 255], strides = [1, 1]} : vector<4x256xf32> to vector<4x255xf32>
    %1220 = vector.extract_strided_slice %792 {offsets = [0, 0], sizes = [4, 1], strides = [1, 1]} : vector<4x256xf32> to vector<4x1xf32>
    %1221 = tpu.concatenate %1219, %1220 in 1 : vector<4x255xf32>, vector<4x1xf32> -> vector<4x256xf32>
    %cst_170 = arith.constant 0.000000e+00 : f32
    %1222 = vector.broadcast %cst_170 : f32 to vector<4x256xf32>
    %1223 = arith.select %1218, %1221, %1222 : vector<4x256xi1>, vector<4x256xf32>
    %c80_171 = arith.constant 80 : index
    %1224 = memref.load %arg3[%c80_171] : memref<144xf32, #tpu.memory_space<smem>>
    %1225 = vector.broadcast %1224 : f32 to vector<4x256xf32>
    %1226 = arith.mulf %1223, %1225 : vector<4x256xf32>
    %1227 = arith.addf %1204, %1226 : vector<4x256xf32>
    %c81_172 = arith.constant 81 : index
    %1228 = memref.load %arg3[%c81_172] : memref<144xf32, #tpu.memory_space<smem>>
    %1229 = vector.broadcast %1228 : f32 to vector<4x256xf32>
    %1230 = arith.mulf %1223, %1229 : vector<4x256xf32>
    %1231 = arith.addf %1208, %1230 : vector<4x256xf32>
    %c82_173 = arith.constant 82 : index
    %1232 = memref.load %arg3[%c82_173] : memref<144xf32, #tpu.memory_space<smem>>
    %1233 = vector.broadcast %1232 : f32 to vector<4x256xf32>
    %1234 = arith.mulf %1223, %1233 : vector<4x256xf32>
    %1235 = arith.addf %1212, %1234 : vector<4x256xf32>
    %c83_174 = arith.constant 83 : index
    %1236 = memref.load %arg3[%c83_174] : memref<144xf32, #tpu.memory_space<smem>>
    %1237 = vector.broadcast %1236 : f32 to vector<4x256xf32>
    %1238 = arith.mulf %1223, %1237 : vector<4x256xf32>
    %1239 = arith.addf %1216, %1238 : vector<4x256xf32>
    %1240 = vector.extract_strided_slice %794 {offsets = [0, 1], sizes = [4, 255], strides = [1, 1]} : vector<4x256xf32> to vector<4x255xf32>
    %1241 = vector.extract_strided_slice %794 {offsets = [0, 0], sizes = [4, 1], strides = [1, 1]} : vector<4x256xf32> to vector<4x1xf32>
    %1242 = tpu.concatenate %1240, %1241 in 1 : vector<4x255xf32>, vector<4x1xf32> -> vector<4x256xf32>
    %cst_175 = arith.constant 0.000000e+00 : f32
    %1243 = vector.broadcast %cst_175 : f32 to vector<4x256xf32>
    %1244 = arith.select %1218, %1242, %1243 : vector<4x256xi1>, vector<4x256xf32>
    %c84_176 = arith.constant 84 : index
    %1245 = memref.load %arg3[%c84_176] : memref<144xf32, #tpu.memory_space<smem>>
    %1246 = vector.broadcast %1245 : f32 to vector<4x256xf32>
    %1247 = arith.mulf %1244, %1246 : vector<4x256xf32>
    %1248 = arith.addf %1227, %1247 : vector<4x256xf32>
    %c85_177 = arith.constant 85 : index
    %1249 = memref.load %arg3[%c85_177] : memref<144xf32, #tpu.memory_space<smem>>
    %1250 = vector.broadcast %1249 : f32 to vector<4x256xf32>
    %1251 = arith.mulf %1244, %1250 : vector<4x256xf32>
    %1252 = arith.addf %1231, %1251 : vector<4x256xf32>
    %c86_178 = arith.constant 86 : index
    %1253 = memref.load %arg3[%c86_178] : memref<144xf32, #tpu.memory_space<smem>>
    %1254 = vector.broadcast %1253 : f32 to vector<4x256xf32>
    %1255 = arith.mulf %1244, %1254 : vector<4x256xf32>
    %1256 = arith.addf %1235, %1255 : vector<4x256xf32>
    %c87_179 = arith.constant 87 : index
    %1257 = memref.load %arg3[%c87_179] : memref<144xf32, #tpu.memory_space<smem>>
    %1258 = vector.broadcast %1257 : f32 to vector<4x256xf32>
    %1259 = arith.mulf %1244, %1258 : vector<4x256xf32>
    %1260 = arith.addf %1239, %1259 : vector<4x256xf32>
    %1261 = vector.extract_strided_slice %796 {offsets = [0, 1], sizes = [4, 255], strides = [1, 1]} : vector<4x256xf32> to vector<4x255xf32>
    %1262 = vector.extract_strided_slice %796 {offsets = [0, 0], sizes = [4, 1], strides = [1, 1]} : vector<4x256xf32> to vector<4x1xf32>
    %1263 = tpu.concatenate %1261, %1262 in 1 : vector<4x255xf32>, vector<4x1xf32> -> vector<4x256xf32>
    %cst_180 = arith.constant 0.000000e+00 : f32
    %1264 = vector.broadcast %cst_180 : f32 to vector<4x256xf32>
    %1265 = arith.select %1218, %1263, %1264 : vector<4x256xi1>, vector<4x256xf32>
    %c88_181 = arith.constant 88 : index
    %1266 = memref.load %arg3[%c88_181] : memref<144xf32, #tpu.memory_space<smem>>
    %1267 = vector.broadcast %1266 : f32 to vector<4x256xf32>
    %1268 = arith.mulf %1265, %1267 : vector<4x256xf32>
    %1269 = arith.addf %1248, %1268 : vector<4x256xf32>
    %c89_182 = arith.constant 89 : index
    %1270 = memref.load %arg3[%c89_182] : memref<144xf32, #tpu.memory_space<smem>>
    %1271 = vector.broadcast %1270 : f32 to vector<4x256xf32>
    %1272 = arith.mulf %1265, %1271 : vector<4x256xf32>
    %1273 = arith.addf %1252, %1272 : vector<4x256xf32>
    %c90_183 = arith.constant 90 : index
    %1274 = memref.load %arg3[%c90_183] : memref<144xf32, #tpu.memory_space<smem>>
    %1275 = vector.broadcast %1274 : f32 to vector<4x256xf32>
    %1276 = arith.mulf %1265, %1275 : vector<4x256xf32>
    %1277 = arith.addf %1256, %1276 : vector<4x256xf32>
    %c91_184 = arith.constant 91 : index
    %1278 = memref.load %arg3[%c91_184] : memref<144xf32, #tpu.memory_space<smem>>
    %1279 = vector.broadcast %1278 : f32 to vector<4x256xf32>
    %1280 = arith.mulf %1265, %1279 : vector<4x256xf32>
    %1281 = arith.addf %1260, %1280 : vector<4x256xf32>
    %1282 = vector.extract_strided_slice %798 {offsets = [0, 1], sizes = [4, 255], strides = [1, 1]} : vector<4x256xf32> to vector<4x255xf32>
    %1283 = vector.extract_strided_slice %798 {offsets = [0, 0], sizes = [4, 1], strides = [1, 1]} : vector<4x256xf32> to vector<4x1xf32>
    %1284 = tpu.concatenate %1282, %1283 in 1 : vector<4x255xf32>, vector<4x1xf32> -> vector<4x256xf32>
    %cst_185 = arith.constant 0.000000e+00 : f32
    %1285 = vector.broadcast %cst_185 : f32 to vector<4x256xf32>
    %1286 = arith.select %1218, %1284, %1285 : vector<4x256xi1>, vector<4x256xf32>
    %c92_186 = arith.constant 92 : index
    %1287 = memref.load %arg3[%c92_186] : memref<144xf32, #tpu.memory_space<smem>>
    %1288 = vector.broadcast %1287 : f32 to vector<4x256xf32>
    %1289 = arith.mulf %1286, %1288 : vector<4x256xf32>
    %1290 = arith.addf %1269, %1289 : vector<4x256xf32>
    %c93_187 = arith.constant 93 : index
    %1291 = memref.load %arg3[%c93_187] : memref<144xf32, #tpu.memory_space<smem>>
    %1292 = vector.broadcast %1291 : f32 to vector<4x256xf32>
    %1293 = arith.mulf %1286, %1292 : vector<4x256xf32>
    %1294 = arith.addf %1273, %1293 : vector<4x256xf32>
    %c94_188 = arith.constant 94 : index
    %1295 = memref.load %arg3[%c94_188] : memref<144xf32, #tpu.memory_space<smem>>
    %1296 = vector.broadcast %1295 : f32 to vector<4x256xf32>
    %1297 = arith.mulf %1286, %1296 : vector<4x256xf32>
    %1298 = arith.addf %1277, %1297 : vector<4x256xf32>
    %c95_189 = arith.constant 95 : index
    %1299 = memref.load %arg3[%c95_189] : memref<144xf32, #tpu.memory_space<smem>>
    %1300 = vector.broadcast %1299 : f32 to vector<4x256xf32>
    %1301 = arith.mulf %1286, %1300 : vector<4x256xf32>
    %1302 = arith.addf %1281, %1301 : vector<4x256xf32>
    %c240_i32_190 = arith.constant 240 : i32
    %1303 = vector.broadcast %c240_i32_190 : i32 to vector<4x256xi32>
    %1304 = arith.cmpi slt, %8, %1303 : vector<4x256xi32>
    %c1_i32_191 = arith.constant 1 : i32
    %1305 = vector.broadcast %c1_i32_191 : i32 to vector<4x256xi32>
    %1306 = arith.cmpi sge, %10, %1305 : vector<4x256xi32>
    %1307 = arith.andi %1304, %1306 : vector<4x256xi1>
    %1308 = vector.extract_strided_slice %792 {offsets = [0, 15], sizes = [4, 241], strides = [1, 1]} : vector<4x256xf32> to vector<4x241xf32>
    %1309 = vector.extract_strided_slice %792 {offsets = [0, 0], sizes = [4, 15], strides = [1, 1]} : vector<4x256xf32> to vector<4x15xf32>
    %1310 = tpu.concatenate %1308, %1309 in 1 : vector<4x241xf32>, vector<4x15xf32> -> vector<4x256xf32>
    %cst_192 = arith.constant 0.000000e+00 : f32
    %1311 = vector.broadcast %cst_192 : f32 to vector<4x256xf32>
    %1312 = arith.select %1307, %1310, %1311 : vector<4x256xi1>, vector<4x256xf32>
    %c96_193 = arith.constant 96 : index
    %1313 = memref.load %arg3[%c96_193] : memref<144xf32, #tpu.memory_space<smem>>
    %1314 = vector.broadcast %1313 : f32 to vector<4x256xf32>
    %1315 = arith.mulf %1312, %1314 : vector<4x256xf32>
    %1316 = arith.addf %1290, %1315 : vector<4x256xf32>
    %c97_194 = arith.constant 97 : index
    %1317 = memref.load %arg3[%c97_194] : memref<144xf32, #tpu.memory_space<smem>>
    %1318 = vector.broadcast %1317 : f32 to vector<4x256xf32>
    %1319 = arith.mulf %1312, %1318 : vector<4x256xf32>
    %1320 = arith.addf %1294, %1319 : vector<4x256xf32>
    %c98_195 = arith.constant 98 : index
    %1321 = memref.load %arg3[%c98_195] : memref<144xf32, #tpu.memory_space<smem>>
    %1322 = vector.broadcast %1321 : f32 to vector<4x256xf32>
    %1323 = arith.mulf %1312, %1322 : vector<4x256xf32>
    %1324 = arith.addf %1298, %1323 : vector<4x256xf32>
    %c99_196 = arith.constant 99 : index
    %1325 = memref.load %arg3[%c99_196] : memref<144xf32, #tpu.memory_space<smem>>
    %1326 = vector.broadcast %1325 : f32 to vector<4x256xf32>
    %1327 = arith.mulf %1312, %1326 : vector<4x256xf32>
    %1328 = arith.addf %1302, %1327 : vector<4x256xf32>
    %1329 = vector.extract_strided_slice %794 {offsets = [0, 15], sizes = [4, 241], strides = [1, 1]} : vector<4x256xf32> to vector<4x241xf32>
    %1330 = vector.extract_strided_slice %794 {offsets = [0, 0], sizes = [4, 15], strides = [1, 1]} : vector<4x256xf32> to vector<4x15xf32>
    %1331 = tpu.concatenate %1329, %1330 in 1 : vector<4x241xf32>, vector<4x15xf32> -> vector<4x256xf32>
    %cst_197 = arith.constant 0.000000e+00 : f32
    %1332 = vector.broadcast %cst_197 : f32 to vector<4x256xf32>
    %1333 = arith.select %1307, %1331, %1332 : vector<4x256xi1>, vector<4x256xf32>
    %c100_198 = arith.constant 100 : index
    %1334 = memref.load %arg3[%c100_198] : memref<144xf32, #tpu.memory_space<smem>>
    %1335 = vector.broadcast %1334 : f32 to vector<4x256xf32>
    %1336 = arith.mulf %1333, %1335 : vector<4x256xf32>
    %1337 = arith.addf %1316, %1336 : vector<4x256xf32>
    %c101_199 = arith.constant 101 : index
    %1338 = memref.load %arg3[%c101_199] : memref<144xf32, #tpu.memory_space<smem>>
    %1339 = vector.broadcast %1338 : f32 to vector<4x256xf32>
    %1340 = arith.mulf %1333, %1339 : vector<4x256xf32>
    %1341 = arith.addf %1320, %1340 : vector<4x256xf32>
    %c102_200 = arith.constant 102 : index
    %1342 = memref.load %arg3[%c102_200] : memref<144xf32, #tpu.memory_space<smem>>
    %1343 = vector.broadcast %1342 : f32 to vector<4x256xf32>
    %1344 = arith.mulf %1333, %1343 : vector<4x256xf32>
    %1345 = arith.addf %1324, %1344 : vector<4x256xf32>
    %c103_201 = arith.constant 103 : index
    %1346 = memref.load %arg3[%c103_201] : memref<144xf32, #tpu.memory_space<smem>>
    %1347 = vector.broadcast %1346 : f32 to vector<4x256xf32>
    %1348 = arith.mulf %1333, %1347 : vector<4x256xf32>
    %1349 = arith.addf %1328, %1348 : vector<4x256xf32>
    %1350 = vector.extract_strided_slice %796 {offsets = [0, 15], sizes = [4, 241], strides = [1, 1]} : vector<4x256xf32> to vector<4x241xf32>
    %1351 = vector.extract_strided_slice %796 {offsets = [0, 0], sizes = [4, 15], strides = [1, 1]} : vector<4x256xf32> to vector<4x15xf32>
    %1352 = tpu.concatenate %1350, %1351 in 1 : vector<4x241xf32>, vector<4x15xf32> -> vector<4x256xf32>
    %cst_202 = arith.constant 0.000000e+00 : f32
    %1353 = vector.broadcast %cst_202 : f32 to vector<4x256xf32>
    %1354 = arith.select %1307, %1352, %1353 : vector<4x256xi1>, vector<4x256xf32>
    %c104_203 = arith.constant 104 : index
    %1355 = memref.load %arg3[%c104_203] : memref<144xf32, #tpu.memory_space<smem>>
    %1356 = vector.broadcast %1355 : f32 to vector<4x256xf32>
    %1357 = arith.mulf %1354, %1356 : vector<4x256xf32>
    %1358 = arith.addf %1337, %1357 : vector<4x256xf32>
    %c105_204 = arith.constant 105 : index
    %1359 = memref.load %arg3[%c105_204] : memref<144xf32, #tpu.memory_space<smem>>
    %1360 = vector.broadcast %1359 : f32 to vector<4x256xf32>
    %1361 = arith.mulf %1354, %1360 : vector<4x256xf32>
    %1362 = arith.addf %1341, %1361 : vector<4x256xf32>
    %c106_205 = arith.constant 106 : index
    %1363 = memref.load %arg3[%c106_205] : memref<144xf32, #tpu.memory_space<smem>>
    %1364 = vector.broadcast %1363 : f32 to vector<4x256xf32>
    %1365 = arith.mulf %1354, %1364 : vector<4x256xf32>
    %1366 = arith.addf %1345, %1365 : vector<4x256xf32>
    %c107_206 = arith.constant 107 : index
    %1367 = memref.load %arg3[%c107_206] : memref<144xf32, #tpu.memory_space<smem>>
    %1368 = vector.broadcast %1367 : f32 to vector<4x256xf32>
    %1369 = arith.mulf %1354, %1368 : vector<4x256xf32>
    %1370 = arith.addf %1349, %1369 : vector<4x256xf32>
    %1371 = vector.extract_strided_slice %798 {offsets = [0, 15], sizes = [4, 241], strides = [1, 1]} : vector<4x256xf32> to vector<4x241xf32>
    %1372 = vector.extract_strided_slice %798 {offsets = [0, 0], sizes = [4, 15], strides = [1, 1]} : vector<4x256xf32> to vector<4x15xf32>
    %1373 = tpu.concatenate %1371, %1372 in 1 : vector<4x241xf32>, vector<4x15xf32> -> vector<4x256xf32>
    %cst_207 = arith.constant 0.000000e+00 : f32
    %1374 = vector.broadcast %cst_207 : f32 to vector<4x256xf32>
    %1375 = arith.select %1307, %1373, %1374 : vector<4x256xi1>, vector<4x256xf32>
    %c108_208 = arith.constant 108 : index
    %1376 = memref.load %arg3[%c108_208] : memref<144xf32, #tpu.memory_space<smem>>
    %1377 = vector.broadcast %1376 : f32 to vector<4x256xf32>
    %1378 = arith.mulf %1375, %1377 : vector<4x256xf32>
    %1379 = arith.addf %1358, %1378 : vector<4x256xf32>
    %c109_209 = arith.constant 109 : index
    %1380 = memref.load %arg3[%c109_209] : memref<144xf32, #tpu.memory_space<smem>>
    %1381 = vector.broadcast %1380 : f32 to vector<4x256xf32>
    %1382 = arith.mulf %1375, %1381 : vector<4x256xf32>
    %1383 = arith.addf %1362, %1382 : vector<4x256xf32>
    %c110_210 = arith.constant 110 : index
    %1384 = memref.load %arg3[%c110_210] : memref<144xf32, #tpu.memory_space<smem>>
    %1385 = vector.broadcast %1384 : f32 to vector<4x256xf32>
    %1386 = arith.mulf %1375, %1385 : vector<4x256xf32>
    %1387 = arith.addf %1366, %1386 : vector<4x256xf32>
    %c111_211 = arith.constant 111 : index
    %1388 = memref.load %arg3[%c111_211] : memref<144xf32, #tpu.memory_space<smem>>
    %1389 = vector.broadcast %1388 : f32 to vector<4x256xf32>
    %1390 = arith.mulf %1375, %1389 : vector<4x256xf32>
    %1391 = arith.addf %1370, %1390 : vector<4x256xf32>
    %c240_i32_212 = arith.constant 240 : i32
    %1392 = vector.broadcast %c240_i32_212 : i32 to vector<4x256xi32>
    %1393 = arith.cmpi slt, %8, %1392 : vector<4x256xi32>
    %1394 = vector.extract_strided_slice %792 {offsets = [0, 16], sizes = [4, 240], strides = [1, 1]} : vector<4x256xf32> to vector<4x240xf32>
    %1395 = vector.extract_strided_slice %792 {offsets = [0, 0], sizes = [4, 16], strides = [1, 1]} : vector<4x256xf32> to vector<4x16xf32>
    %1396 = tpu.concatenate %1394, %1395 in 1 : vector<4x240xf32>, vector<4x16xf32> -> vector<4x256xf32>
    %cst_213 = arith.constant 0.000000e+00 : f32
    %1397 = vector.broadcast %cst_213 : f32 to vector<4x256xf32>
    %1398 = arith.select %1393, %1396, %1397 : vector<4x256xi1>, vector<4x256xf32>
    %c112_214 = arith.constant 112 : index
    %1399 = memref.load %arg3[%c112_214] : memref<144xf32, #tpu.memory_space<smem>>
    %1400 = vector.broadcast %1399 : f32 to vector<4x256xf32>
    %1401 = arith.mulf %1398, %1400 : vector<4x256xf32>
    %1402 = arith.addf %1379, %1401 : vector<4x256xf32>
    %c113_215 = arith.constant 113 : index
    %1403 = memref.load %arg3[%c113_215] : memref<144xf32, #tpu.memory_space<smem>>
    %1404 = vector.broadcast %1403 : f32 to vector<4x256xf32>
    %1405 = arith.mulf %1398, %1404 : vector<4x256xf32>
    %1406 = arith.addf %1383, %1405 : vector<4x256xf32>
    %c114_216 = arith.constant 114 : index
    %1407 = memref.load %arg3[%c114_216] : memref<144xf32, #tpu.memory_space<smem>>
    %1408 = vector.broadcast %1407 : f32 to vector<4x256xf32>
    %1409 = arith.mulf %1398, %1408 : vector<4x256xf32>
    %1410 = arith.addf %1387, %1409 : vector<4x256xf32>
    %c115_217 = arith.constant 115 : index
    %1411 = memref.load %arg3[%c115_217] : memref<144xf32, #tpu.memory_space<smem>>
    %1412 = vector.broadcast %1411 : f32 to vector<4x256xf32>
    %1413 = arith.mulf %1398, %1412 : vector<4x256xf32>
    %1414 = arith.addf %1391, %1413 : vector<4x256xf32>
    %1415 = vector.extract_strided_slice %794 {offsets = [0, 16], sizes = [4, 240], strides = [1, 1]} : vector<4x256xf32> to vector<4x240xf32>
    %1416 = vector.extract_strided_slice %794 {offsets = [0, 0], sizes = [4, 16], strides = [1, 1]} : vector<4x256xf32> to vector<4x16xf32>
    %1417 = tpu.concatenate %1415, %1416 in 1 : vector<4x240xf32>, vector<4x16xf32> -> vector<4x256xf32>
    %cst_218 = arith.constant 0.000000e+00 : f32
    %1418 = vector.broadcast %cst_218 : f32 to vector<4x256xf32>
    %1419 = arith.select %1393, %1417, %1418 : vector<4x256xi1>, vector<4x256xf32>
    %c116_219 = arith.constant 116 : index
    %1420 = memref.load %arg3[%c116_219] : memref<144xf32, #tpu.memory_space<smem>>
    %1421 = vector.broadcast %1420 : f32 to vector<4x256xf32>
    %1422 = arith.mulf %1419, %1421 : vector<4x256xf32>
    %1423 = arith.addf %1402, %1422 : vector<4x256xf32>
    %c117_220 = arith.constant 117 : index
    %1424 = memref.load %arg3[%c117_220] : memref<144xf32, #tpu.memory_space<smem>>
    %1425 = vector.broadcast %1424 : f32 to vector<4x256xf32>
    %1426 = arith.mulf %1419, %1425 : vector<4x256xf32>
    %1427 = arith.addf %1406, %1426 : vector<4x256xf32>
    %c118_221 = arith.constant 118 : index
    %1428 = memref.load %arg3[%c118_221] : memref<144xf32, #tpu.memory_space<smem>>
    %1429 = vector.broadcast %1428 : f32 to vector<4x256xf32>
    %1430 = arith.mulf %1419, %1429 : vector<4x256xf32>
    %1431 = arith.addf %1410, %1430 : vector<4x256xf32>
    %c119_222 = arith.constant 119 : index
    %1432 = memref.load %arg3[%c119_222] : memref<144xf32, #tpu.memory_space<smem>>
    %1433 = vector.broadcast %1432 : f32 to vector<4x256xf32>
    %1434 = arith.mulf %1419, %1433 : vector<4x256xf32>
    %1435 = arith.addf %1414, %1434 : vector<4x256xf32>
    %1436 = vector.extract_strided_slice %796 {offsets = [0, 16], sizes = [4, 240], strides = [1, 1]} : vector<4x256xf32> to vector<4x240xf32>
    %1437 = vector.extract_strided_slice %796 {offsets = [0, 0], sizes = [4, 16], strides = [1, 1]} : vector<4x256xf32> to vector<4x16xf32>
    %1438 = tpu.concatenate %1436, %1437 in 1 : vector<4x240xf32>, vector<4x16xf32> -> vector<4x256xf32>
    %cst_223 = arith.constant 0.000000e+00 : f32
    %1439 = vector.broadcast %cst_223 : f32 to vector<4x256xf32>
    %1440 = arith.select %1393, %1438, %1439 : vector<4x256xi1>, vector<4x256xf32>
    %c120_224 = arith.constant 120 : index
    %1441 = memref.load %arg3[%c120_224] : memref<144xf32, #tpu.memory_space<smem>>
    %1442 = vector.broadcast %1441 : f32 to vector<4x256xf32>
    %1443 = arith.mulf %1440, %1442 : vector<4x256xf32>
    %1444 = arith.addf %1423, %1443 : vector<4x256xf32>
    %c121_225 = arith.constant 121 : index
    %1445 = memref.load %arg3[%c121_225] : memref<144xf32, #tpu.memory_space<smem>>
    %1446 = vector.broadcast %1445 : f32 to vector<4x256xf32>
    %1447 = arith.mulf %1440, %1446 : vector<4x256xf32>
    %1448 = arith.addf %1427, %1447 : vector<4x256xf32>
    %c122_226 = arith.constant 122 : index
    %1449 = memref.load %arg3[%c122_226] : memref<144xf32, #tpu.memory_space<smem>>
    %1450 = vector.broadcast %1449 : f32 to vector<4x256xf32>
    %1451 = arith.mulf %1440, %1450 : vector<4x256xf32>
    %1452 = arith.addf %1431, %1451 : vector<4x256xf32>
    %c123_227 = arith.constant 123 : index
    %1453 = memref.load %arg3[%c123_227] : memref<144xf32, #tpu.memory_space<smem>>
    %1454 = vector.broadcast %1453 : f32 to vector<4x256xf32>
    %1455 = arith.mulf %1440, %1454 : vector<4x256xf32>
    %1456 = arith.addf %1435, %1455 : vector<4x256xf32>
    %1457 = vector.extract_strided_slice %798 {offsets = [0, 16], sizes = [4, 240], strides = [1, 1]} : vector<4x256xf32> to vector<4x240xf32>
    %1458 = vector.extract_strided_slice %798 {offsets = [0, 0], sizes = [4, 16], strides = [1, 1]} : vector<4x256xf32> to vector<4x16xf32>
    %1459 = tpu.concatenate %1457, %1458 in 1 : vector<4x240xf32>, vector<4x16xf32> -> vector<4x256xf32>
    %cst_228 = arith.constant 0.000000e+00 : f32
    %1460 = vector.broadcast %cst_228 : f32 to vector<4x256xf32>
    %1461 = arith.select %1393, %1459, %1460 : vector<4x256xi1>, vector<4x256xf32>
    %c124_229 = arith.constant 124 : index
    %1462 = memref.load %arg3[%c124_229] : memref<144xf32, #tpu.memory_space<smem>>
    %1463 = vector.broadcast %1462 : f32 to vector<4x256xf32>
    %1464 = arith.mulf %1461, %1463 : vector<4x256xf32>
    %1465 = arith.addf %1444, %1464 : vector<4x256xf32>
    %c125_230 = arith.constant 125 : index
    %1466 = memref.load %arg3[%c125_230] : memref<144xf32, #tpu.memory_space<smem>>
    %1467 = vector.broadcast %1466 : f32 to vector<4x256xf32>
    %1468 = arith.mulf %1461, %1467 : vector<4x256xf32>
    %1469 = arith.addf %1448, %1468 : vector<4x256xf32>
    %c126_231 = arith.constant 126 : index
    %1470 = memref.load %arg3[%c126_231] : memref<144xf32, #tpu.memory_space<smem>>
    %1471 = vector.broadcast %1470 : f32 to vector<4x256xf32>
    %1472 = arith.mulf %1461, %1471 : vector<4x256xf32>
    %1473 = arith.addf %1452, %1472 : vector<4x256xf32>
    %c127_232 = arith.constant 127 : index
    %1474 = memref.load %arg3[%c127_232] : memref<144xf32, #tpu.memory_space<smem>>
    %1475 = vector.broadcast %1474 : f32 to vector<4x256xf32>
    %1476 = arith.mulf %1461, %1475 : vector<4x256xf32>
    %1477 = arith.addf %1456, %1476 : vector<4x256xf32>
    %c240_i32_233 = arith.constant 240 : i32
    %1478 = vector.broadcast %c240_i32_233 : i32 to vector<4x256xi32>
    %1479 = arith.cmpi slt, %8, %1478 : vector<4x256xi32>
    %c14_i32_234 = arith.constant 14 : i32
    %1480 = vector.broadcast %c14_i32_234 : i32 to vector<4x256xi32>
    %1481 = arith.cmpi sle, %10, %1480 : vector<4x256xi32>
    %1482 = arith.andi %1479, %1481 : vector<4x256xi1>
    %1483 = vector.extract_strided_slice %792 {offsets = [0, 17], sizes = [4, 239], strides = [1, 1]} : vector<4x256xf32> to vector<4x239xf32>
    %1484 = vector.extract_strided_slice %792 {offsets = [0, 0], sizes = [4, 17], strides = [1, 1]} : vector<4x256xf32> to vector<4x17xf32>
    %1485 = tpu.concatenate %1483, %1484 in 1 : vector<4x239xf32>, vector<4x17xf32> -> vector<4x256xf32>
    %cst_235 = arith.constant 0.000000e+00 : f32
    %1486 = vector.broadcast %cst_235 : f32 to vector<4x256xf32>
    %1487 = arith.select %1482, %1485, %1486 : vector<4x256xi1>, vector<4x256xf32>
    %c128_236 = arith.constant 128 : index
    %1488 = memref.load %arg3[%c128_236] : memref<144xf32, #tpu.memory_space<smem>>
    %1489 = vector.broadcast %1488 : f32 to vector<4x256xf32>
    %1490 = arith.mulf %1487, %1489 : vector<4x256xf32>
    %1491 = arith.addf %1465, %1490 : vector<4x256xf32>
    %c129_237 = arith.constant 129 : index
    %1492 = memref.load %arg3[%c129_237] : memref<144xf32, #tpu.memory_space<smem>>
    %1493 = vector.broadcast %1492 : f32 to vector<4x256xf32>
    %1494 = arith.mulf %1487, %1493 : vector<4x256xf32>
    %1495 = arith.addf %1469, %1494 : vector<4x256xf32>
    %c130_238 = arith.constant 130 : index
    %1496 = memref.load %arg3[%c130_238] : memref<144xf32, #tpu.memory_space<smem>>
    %1497 = vector.broadcast %1496 : f32 to vector<4x256xf32>
    %1498 = arith.mulf %1487, %1497 : vector<4x256xf32>
    %1499 = arith.addf %1473, %1498 : vector<4x256xf32>
    %c131_239 = arith.constant 131 : index
    %1500 = memref.load %arg3[%c131_239] : memref<144xf32, #tpu.memory_space<smem>>
    %1501 = vector.broadcast %1500 : f32 to vector<4x256xf32>
    %1502 = arith.mulf %1487, %1501 : vector<4x256xf32>
    %1503 = arith.addf %1477, %1502 : vector<4x256xf32>
    %1504 = vector.extract_strided_slice %794 {offsets = [0, 17], sizes = [4, 239], strides = [1, 1]} : vector<4x256xf32> to vector<4x239xf32>
    %1505 = vector.extract_strided_slice %794 {offsets = [0, 0], sizes = [4, 17], strides = [1, 1]} : vector<4x256xf32> to vector<4x17xf32>
    %1506 = tpu.concatenate %1504, %1505 in 1 : vector<4x239xf32>, vector<4x17xf32> -> vector<4x256xf32>
    %cst_240 = arith.constant 0.000000e+00 : f32
    %1507 = vector.broadcast %cst_240 : f32 to vector<4x256xf32>
    %1508 = arith.select %1482, %1506, %1507 : vector<4x256xi1>, vector<4x256xf32>
    %c132_241 = arith.constant 132 : index
    %1509 = memref.load %arg3[%c132_241] : memref<144xf32, #tpu.memory_space<smem>>
    %1510 = vector.broadcast %1509 : f32 to vector<4x256xf32>
    %1511 = arith.mulf %1508, %1510 : vector<4x256xf32>
    %1512 = arith.addf %1491, %1511 : vector<4x256xf32>
    %c133_242 = arith.constant 133 : index
    %1513 = memref.load %arg3[%c133_242] : memref<144xf32, #tpu.memory_space<smem>>
    %1514 = vector.broadcast %1513 : f32 to vector<4x256xf32>
    %1515 = arith.mulf %1508, %1514 : vector<4x256xf32>
    %1516 = arith.addf %1495, %1515 : vector<4x256xf32>
    %c134_243 = arith.constant 134 : index
    %1517 = memref.load %arg3[%c134_243] : memref<144xf32, #tpu.memory_space<smem>>
    %1518 = vector.broadcast %1517 : f32 to vector<4x256xf32>
    %1519 = arith.mulf %1508, %1518 : vector<4x256xf32>
    %1520 = arith.addf %1499, %1519 : vector<4x256xf32>
    %c135_244 = arith.constant 135 : index
    %1521 = memref.load %arg3[%c135_244] : memref<144xf32, #tpu.memory_space<smem>>
    %1522 = vector.broadcast %1521 : f32 to vector<4x256xf32>
    %1523 = arith.mulf %1508, %1522 : vector<4x256xf32>
    %1524 = arith.addf %1503, %1523 : vector<4x256xf32>
    %1525 = vector.extract_strided_slice %796 {offsets = [0, 17], sizes = [4, 239], strides = [1, 1]} : vector<4x256xf32> to vector<4x239xf32>
    %1526 = vector.extract_strided_slice %796 {offsets = [0, 0], sizes = [4, 17], strides = [1, 1]} : vector<4x256xf32> to vector<4x17xf32>
    %1527 = tpu.concatenate %1525, %1526 in 1 : vector<4x239xf32>, vector<4x17xf32> -> vector<4x256xf32>
    %cst_245 = arith.constant 0.000000e+00 : f32
    %1528 = vector.broadcast %cst_245 : f32 to vector<4x256xf32>
    %1529 = arith.select %1482, %1527, %1528 : vector<4x256xi1>, vector<4x256xf32>
    %c136_246 = arith.constant 136 : index
    %1530 = memref.load %arg3[%c136_246] : memref<144xf32, #tpu.memory_space<smem>>
    %1531 = vector.broadcast %1530 : f32 to vector<4x256xf32>
    %1532 = arith.mulf %1529, %1531 : vector<4x256xf32>
    %1533 = arith.addf %1512, %1532 : vector<4x256xf32>
    %c137_247 = arith.constant 137 : index
    %1534 = memref.load %arg3[%c137_247] : memref<144xf32, #tpu.memory_space<smem>>
    %1535 = vector.broadcast %1534 : f32 to vector<4x256xf32>
    %1536 = arith.mulf %1529, %1535 : vector<4x256xf32>
    %1537 = arith.addf %1516, %1536 : vector<4x256xf32>
    %c138_248 = arith.constant 138 : index
    %1538 = memref.load %arg3[%c138_248] : memref<144xf32, #tpu.memory_space<smem>>
    %1539 = vector.broadcast %1538 : f32 to vector<4x256xf32>
    %1540 = arith.mulf %1529, %1539 : vector<4x256xf32>
    %1541 = arith.addf %1520, %1540 : vector<4x256xf32>
    %c139_249 = arith.constant 139 : index
    %1542 = memref.load %arg3[%c139_249] : memref<144xf32, #tpu.memory_space<smem>>
    %1543 = vector.broadcast %1542 : f32 to vector<4x256xf32>
    %1544 = arith.mulf %1529, %1543 : vector<4x256xf32>
    %1545 = arith.addf %1524, %1544 : vector<4x256xf32>
    %1546 = vector.extract_strided_slice %798 {offsets = [0, 17], sizes = [4, 239], strides = [1, 1]} : vector<4x256xf32> to vector<4x239xf32>
    %1547 = vector.extract_strided_slice %798 {offsets = [0, 0], sizes = [4, 17], strides = [1, 1]} : vector<4x256xf32> to vector<4x17xf32>
    %1548 = tpu.concatenate %1546, %1547 in 1 : vector<4x239xf32>, vector<4x17xf32> -> vector<4x256xf32>
    %cst_250 = arith.constant 0.000000e+00 : f32
    %1549 = vector.broadcast %cst_250 : f32 to vector<4x256xf32>
    %1550 = arith.select %1482, %1548, %1549 : vector<4x256xi1>, vector<4x256xf32>
    %c140_251 = arith.constant 140 : index
    %1551 = memref.load %arg3[%c140_251] : memref<144xf32, #tpu.memory_space<smem>>
    %1552 = vector.broadcast %1551 : f32 to vector<4x256xf32>
    %1553 = arith.mulf %1550, %1552 : vector<4x256xf32>
    %1554 = arith.addf %1533, %1553 : vector<4x256xf32>
    %c141_252 = arith.constant 141 : index
    %1555 = memref.load %arg3[%c141_252] : memref<144xf32, #tpu.memory_space<smem>>
    %1556 = vector.broadcast %1555 : f32 to vector<4x256xf32>
    %1557 = arith.mulf %1550, %1556 : vector<4x256xf32>
    %1558 = arith.addf %1537, %1557 : vector<4x256xf32>
    %c142_253 = arith.constant 142 : index
    %1559 = memref.load %arg3[%c142_253] : memref<144xf32, #tpu.memory_space<smem>>
    %1560 = vector.broadcast %1559 : f32 to vector<4x256xf32>
    %1561 = arith.mulf %1550, %1560 : vector<4x256xf32>
    %1562 = arith.addf %1541, %1561 : vector<4x256xf32>
    %c143_254 = arith.constant 143 : index
    %1563 = memref.load %arg3[%c143_254] : memref<144xf32, #tpu.memory_space<smem>>
    %1564 = vector.broadcast %1563 : f32 to vector<4x256xf32>
    %1565 = arith.mulf %1550, %1564 : vector<4x256xf32>
    %1566 = arith.addf %1545, %1565 : vector<4x256xf32>
    %c0_255 = arith.constant 0 : index
    %1567 = memref.load %arg4[%c0_255] : memref<4xf32, #tpu.memory_space<smem>>
    %1568 = vector.broadcast %1567 : f32 to vector<4x256xf32>
    %1569 = arith.addf %1554, %1568 : vector<4x256xf32>
    %c1_256 = arith.constant 1 : index
    %1570 = memref.load %arg4[%c1_256] : memref<4xf32, #tpu.memory_space<smem>>
    %1571 = vector.broadcast %1570 : f32 to vector<4x256xf32>
    %1572 = arith.addf %1558, %1571 : vector<4x256xf32>
    %c2_257 = arith.constant 2 : index
    %1573 = memref.load %arg4[%c2_257] : memref<4xf32, #tpu.memory_space<smem>>
    %1574 = vector.broadcast %1573 : f32 to vector<4x256xf32>
    %1575 = arith.addf %1562, %1574 : vector<4x256xf32>
    %c3_258 = arith.constant 3 : index
    %1576 = memref.load %arg4[%c3_258] : memref<4xf32, #tpu.memory_space<smem>>
    %1577 = vector.broadcast %1576 : f32 to vector<4x256xf32>
    %1578 = arith.addf %1566, %1577 : vector<4x256xf32>
    %1579 = arith.addf %1, %1569 : vector<4x256xf32>
    %1580 = arith.addf %3, %1572 : vector<4x256xf32>
    %1581 = arith.addf %5, %1575 : vector<4x256xf32>
    %1582 = arith.addf %7, %1578 : vector<4x256xf32>
    %cst_259 = arith.constant dense<0.000000e+00> : vector<4xf32>
    %1583 = vector.multi_reduction <add>, %1579, %cst_259 [1] : vector<4x256xf32> to vector<4xf32>
    %1584 = vector.shape_cast %1583 : vector<4xf32> to vector<4x1xf32>
    %cst_260 = arith.constant dense<0.000000e+00> : vector<4xf32>
    %1585 = vector.multi_reduction <add>, %1580, %cst_260 [1] : vector<4x256xf32> to vector<4xf32>
    %1586 = vector.shape_cast %1585 : vector<4xf32> to vector<4x1xf32>
    %cst_261 = arith.constant dense<0.000000e+00> : vector<4xf32>
    %1587 = vector.multi_reduction <add>, %1581, %cst_261 [1] : vector<4x256xf32> to vector<4xf32>
    %1588 = vector.shape_cast %1587 : vector<4xf32> to vector<4x1xf32>
    %cst_262 = arith.constant dense<0.000000e+00> : vector<4xf32>
    %1589 = vector.multi_reduction <add>, %1582, %cst_262 [1] : vector<4x256xf32> to vector<4xf32>
    %1590 = vector.shape_cast %1589 : vector<4xf32> to vector<4x1xf32>
    %1591 = tpu.concatenate %1584, %1586, %1588, %1590 in 1 : vector<4x1xf32>, vector<4x1xf32>, vector<4x1xf32>, vector<4x1xf32> -> vector<4x4xf32>
    %cst_263 = arith.constant 3.906250e-03 : f32
    %1592 = vector.broadcast %cst_263 : f32 to vector<4x4xf32>
    %1593 = arith.mulf %1591, %1592 : vector<4x4xf32>
    %1594 = arith.truncf %1593 : vector<4x4xf32> to vector<4x4xbf16>
    %c0_264 = arith.constant 0 : index
    %c0_265 = arith.constant 0 : index
    %1595 = vector.load %arg5[%c0_264, %c0_265] : memref<4x32xf32, #tpu.memory_space<vmem>>, vector<4x32xf32>
    %1596 = arith.truncf %1595 : vector<4x32xf32> to vector<4x32xbf16>
    %cst_266 = arith.constant dense<0.000000e+00> : vector<4x32xf32>
    %1597 = tpu.matmul %1594, %1596, %cst_266 {dimension_numbers = #tpu.dot_dimension_numbers<[1], [0], [0], [1], [0, 0, 1, 1], [], []>} : vector<4x4xbf16>, vector<4x32xbf16>, vector<4x32xf32> -> vector<4x32xf32>
    %c0_267 = arith.constant 0 : index
    %c0_268 = arith.constant 0 : index
    %1598 = vector.load %arg6[%c0_267, %c0_268] : memref<1x32xf32, #tpu.memory_space<vmem>>, vector<1x32xf32>
    %1599 = vector.broadcast %1598 : vector<1x32xf32> to vector<4x32xf32>
    %1600 = arith.addf %1597, %1599 : vector<4x32xf32>
    %cst_269 = arith.constant 0.000000e+00 : f32
    %1601 = vector.broadcast %cst_269 : f32 to vector<4x32xf32>
    %1602 = arith.cmpf oge, %1600, %1601 : vector<4x32xf32>
    %cst_270 = arith.constant 0.00999999977 : f32
    %1603 = vector.broadcast %cst_270 : f32 to vector<4x32xf32>
    %1604 = arith.mulf %1603, %1600 : vector<4x32xf32>
    %1605 = arith.select %1602, %1600, %1604 : vector<4x32xi1>, vector<4x32xf32>
    %1606 = arith.truncf %1605 : vector<4x32xf32> to vector<4x32xbf16>
    %c0_271 = arith.constant 0 : index
    %c0_272 = arith.constant 0 : index
    %1607 = vector.load %arg7[%c0_271, %c0_272] : memref<32x32xf32, #tpu.memory_space<vmem>>, vector<32x32xf32>
    %1608 = arith.truncf %1607 : vector<32x32xf32> to vector<32x32xbf16>
    %cst_273 = arith.constant dense<0.000000e+00> : vector<4x32xf32>
    %1609 = tpu.matmul %1606, %1608, %cst_273 {dimension_numbers = #tpu.dot_dimension_numbers<[1], [0], [0], [1], [0, 0, 1, 1], [], []>} : vector<4x32xbf16>, vector<32x32xbf16>, vector<4x32xf32> -> vector<4x32xf32>
    %c0_274 = arith.constant 0 : index
    %c0_275 = arith.constant 0 : index
    %1610 = vector.load %arg8[%c0_274, %c0_275] : memref<1x32xf32, #tpu.memory_space<vmem>>, vector<1x32xf32>
    %1611 = vector.broadcast %1610 : vector<1x32xf32> to vector<4x32xf32>
    %1612 = arith.addf %1609, %1611 : vector<4x32xf32>
    %cst_276 = arith.constant 0.000000e+00 : f32
    %1613 = vector.broadcast %cst_276 : f32 to vector<4x92xf32>
    %1614 = tpu.concatenate %1593, %1612, %1613 in 1 : vector<4x4xf32>, vector<4x32xf32>, vector<4x92xf32> -> vector<4x128xf32>
    %c0_277 = arith.constant 0 : index
    %c0_278 = arith.constant 0 : index
    %1615 = vector.load %arg9[%c0_277, %c0_278] : memref<4x128xf32, #tpu.memory_space<vmem>>, vector<4x128xf32>
    tpu.vector_store %arg9[%c0_277, %c0_278], %1614 {strides = array<i32>} : memref<4x128xf32, #tpu.memory_space<vmem>>, vector<4x128xf32>,
    return
  }
}

</mosaic_0001>

<bundles_post_ra>
// kernel: resb_simclr_forward.1
= control target key start
LH: loop header
LB: loop body
LE: loop exit
PB: predicated region body
PF: predicated region fallthrough
CT: control target
= control target key end

     0   :  { %s6097_s0 = inlined_call_operand.vmem [shape: f32[4,4,256], index: 0, kind: input, shape index: {}]   ;;  %s6098_s1 = inlined_call_operand.vmem [shape: f32[144], index: 1, kind: input, shape index: {}]   ;;  %s6099_s2 = inlined_call_operand.vmem [shape: f32[4], index: 2, kind: input, shape index: {}]   ;;  %s6100_s3 = inlined_call_operand.vmem [shape: f32[144], index: 3, kind: input, shape index: {}]   ;;  %s6101_s4 = inlined_call_operand.vmem [shape: f32[4], index: 4, kind: input, shape index: {}]   ;;  %s6102_s5 = inlined_call_operand.vmem [shape: f32[4,32], index: 5, kind: input, shape index: {}]   ;;  %s6103_s6 = inlined_call_operand.vmem [shape: f32[1,32], index: 6, kind: input, shape index: {}]   ;;  %s6104_s7 = inlined_call_operand.vmem [shape: f32[32,32], index: 7, kind: input, shape index: {}]   ;;  %s6105_s8 = inlined_call_operand.vmem [shape: f32[1,32], index: 8, kind: input, shape index: {}]   ;;  %s6106_s9 = inlined_call_operand.vmem [shape: f32[4,128], index: 9, kind: output, shape index: {}]  }
   0x1   :  { %6387 = sst [smem:[#allocation113_spill]] %s6097_s0 }
   0x2   :  { %6388 = sst [smem:[#allocation114_spill]] %s6102_s5 }
   0x3   :  { %6389 = sst [smem:[#allocation115_spill]] %s6103_s6 }
   0x4   :  { %6390 = sst [smem:[#allocation116_spill]] %s6104_s7 }
   0x5   :  { %6391 = sst [smem:[#allocation117_spill]] %s6105_s8 }
   0x6   :  { %6392 = sst [smem:[#allocation118_spill]] %s6106_s9 }
   0x7   :  { %14 = vsyncpa [#allocation3], 0 }
   0x8   :  { %15 = vsyncpa [#allocation5], 0  ;;  %s35_s11 = sshll.u32 %s6099_s2, 4  ;;  %s36_s11 = int_to_ptr.vmem [resolvable:$true] %s35_s11 }
   0x9   :  { %16 = vsyncpa [#allocation8], 0  ;;  %s25_s14 = sshll.u32 %s6098_s1, 4  ;;  %s3171_s15 = scalar_lea.vmem %s36_s11, 16  ;;  %s26_s14 = int_to_ptr.vmem [resolvable:$true] %s25_s14 }
   0xa   :  { %p3172_p0 = scmp.ne.s32.totalorder %s36_s11, %s3171_s15  ;;  %p3176_p1 = scmp.lt.s32.totalorder %s36_s11, %s36_s11 }
   0xb   :  { %p3177_p2 = scmp.lt.s32.totalorder %s3171_s15, %s3171_s15 }
   0xd   :  { %p3178_p3 = por %p3177_p2, %p3176_p1 }
   0xf   :  { %p3179_p4 = pnand %p3178_p3, %p3172_p0 }
  0x11   :  { %3182 = shalt.err (!%p3179_p4)
}
  0x12   :  { %s3225_s16 = smov [#allocation4]   ;;  %s3183_s17 = scalar_lea.vmem %s26_s14, 32 }
  0x13   :  { %38 = dma.vmem_to_smem %s36_s11, 16, %s3225_s16, [#allocation5]  }
  0x14   :  { %p3184_p5 = scmp.ne.s32.totalorder %s26_s14, %s3183_s17  ;;  %p3188_p6 = scmp.lt.s32.totalorder %s26_s14, %s26_s14 }
  0x15   :  { %p3189_p7 = scmp.lt.s32.totalorder %s3183_s17, %s3183_s17 }
  0x17   :  { %p3190_p8 = por %p3189_p7, %p3188_p6 }
  0x19   :  { %p3191_p9 = pnand %p3190_p8, %p3184_p5 }
  0x1b   :  { %3194 = shalt.err (!%p3191_p9)
}
  0x1c   :  { %s3226_s2 = smov [#allocation2]   ;;  %s45_s19 = sshll.u32 %s6100_s3, 4  ;;  %s46_s19 = int_to_ptr.vmem [resolvable:$true] %s45_s19 }
  0x1d   :  { %28 = dma.vmem_to_smem %s26_s14, 32, %s3226_s2, [#allocation3]  }
  0x1e   :  { %s55_s22 = sshll.u32 %s6101_s4, 4  ;;  %s3195_s23 = scalar_lea.vmem %s46_s19, 32  ;;  %s56_s22 = int_to_ptr.vmem [resolvable:$true] %s55_s22 }
  0x1f   :  { %p3196_p10 = scmp.ne.s32.totalorder %s46_s19, %s3195_s23  ;;  %p3200_p11 = scmp.lt.s32.totalorder %s46_s19, %s46_s19 }
  0x20   :  { %p3201_p12 = scmp.lt.s32.totalorder %s3195_s23, %s3195_s23 }
  0x22   :  { %p3202_p13 = por %p3201_p12, %p3200_p11 }
  0x24   :  { %p3203_p0 = pnand %p3202_p13, %p3196_p10 }
  0x26   :  { %3206 = shalt.err (!%p3203_p0)
}
  0x27   :  { %s3227_s24 = smov [#allocation6]   ;;  %s3207_s25 = scalar_lea.vmem %s56_s22, 16 }
  0x28   :  { %48 = dma.vmem_to_smem %s46_s19, 32, %s3227_s24, [#allocation5]  }
  0x29   :  { %p3208_p1 = scmp.ne.s32.totalorder %s56_s22, %s3207_s25  ;;  %p3212_p2 = scmp.lt.s32.totalorder %s56_s22, %s56_s22 }
  0x2a   :  { %p3213_p3 = scmp.lt.s32.totalorder %s3207_s25, %s3207_s25 }
  0x2c   :  { %p3214_p4 = por %p3213_p3, %p3212_p2 }
  0x2e   :  { %p3215_p5 = pnand %p3214_p4, %p3208_p1 }
  0x30   :  { %3218 = shalt.err (!%p3215_p5)
}
  0x31   :  { %s3228_s3 = smov [#allocation7]  }
  0x32   :  { %58 = dma.vmem_to_smem %s56_s22, 16, %s3228_s3, [#allocation8]  }
  0x33   :  { %3219 = dma.done.wait [#allocation3], 32  }
  0x34   :  { %3220 = vsyncadd [#allocation3], 4294967264 }
  0x35   :  { %3221 = dma.done.wait [#allocation5], 48  }
  0x36   :  { %3222 = vsyncadd [#allocation5], 4294967248 }
  0x37   :  { %3223 = dma.done.wait [#allocation8], 16  }
  0x38   :  { %3224 = vsyncadd [#allocation8], 4294967280 }
  0x39   :  { %79 = sfence }
  0x3a   :  { %v3305_v0 = vld [vmem:[%s6097_s0 + $0x8] sm:$0xff]  ;;  %v3310_v1 = vld [vmem:[%s6097_s0] sm:$0xff]  ;;  %s6113_s29 = smov 17   ;;  %v3327_v4 = vld [vmem:[%s6097_s0 + $0x10] sm:$0xff]  ;;  %s6111_s13 = smov 16   ;;  %v88_v25 = vlaneseq  ;;  %vm106_vm2 = vcmask 138240  }
  0x3b   :  { %v3314_v2 = vcombine.high %v3305_v0, %v3305_v0  ;;  %v3318_v3 = vcombine.high %v3310_v1, %v3310_v1  ;;  %v3335_v5 = vcombine.high %v3327_v4, %v3327_v4  ;;  %v3340_v6 = vld [vmem:[%s6097_s0 + $0x18] sm:$0xff]  ;;  %s6109_s14 = smov 15   ;;  %s6107_s15 = smov 1   ;;  %vm253_vm5 = vcmask 130048  }
  0x3c   :  { %v3348_v7 = vcombine.high %v3340_v6, %v3340_v6  ;;  %s3402_s16 = sld [smem:[#allocation2 + $0x4]]  ;;  %s3404_s17 = sld [smem:[#allocation2 + $0x5]]  ;;  %v3593_v40 = vand.u32 127, %v88_v25  ;;  %vm398_vm6 = vcmask 121856   ;;  %vm539_vm10 = vcmask 7168  }
  0x3d   :  { %139 = vrot.lane.b32.xlu1 %v3314_v2, %s6113_s29  ;;  %101 = vrot.lane.b32.xlu0 %v3318_v3, %s6113_s29  ;;  %s3406_s2 = sld [smem:[#allocation2 + $0x6]]  ;;  %s3408_s1 = sld [smem:[#allocation2 + $0x7]]  ;;  %vm807_vm11 = vcmask 1039360   ;;  %vm6239_vm12 = vcmask 924672   ;;  %vm6240_vm15 = vcmask 916480  }
  0x3e   :  { %s3410_s18 = sld [smem:[#allocation2]]  ;;  %s3412_s19 = sld [smem:[#allocation2 + $0x1]]  ;;  %v3630_v55 = vadd.s32 128, %v3593_v40  ;;  %v6238_v56 = vand.u32 15, %v3593_v40  ;;  %vm93_vm0 = vcmp.ge.s32.totalorder %v3593_v40, 16 }
  0x3f   :  { %s3414_s20 = sld [smem:[#allocation2 + $0x2]]  ;;  %s3416_s21 = sld [smem:[#allocation2 + $0x3]] }
  0x40   :  { %s6128_s22 = smov 127   ;;  %s3422_s23 = sld [smem:[#allocation2 + $0x8]]  ;;  %6472 = vst [vmem:[#allocation69_spill] sm:$0xff] %v3630_v55  ;;  %v6237_v54 = vand.u32 15, %v3630_v55  ;;  %vm3730_vm1 = vcmp.ge.s32.totalorder %v6238_v56, 1  ;;  %vm945_vm13 = vcmp.lt.s32.totalorder %v3630_v55, 240 }
  0x41   :  { %142 = vrot.lane.b32.xlu1 %v3305_v0, %s6113_s29  ;;  %104 = vrot.lane.b32.xlu0 %v3310_v1, %s6113_s29  ;;  %s3424_s24 = sld [smem:[#allocation2 + $0x9]]  ;;  %s3426_s25 = sld [smem:[#allocation2 + $0xa]]  ;;  %vm3859_vm4 = vmand %vm93_vm0, %vm3730_vm1 }
  0x42   :  { %6393 = sst [smem:[#allocation12_spill]] %s3402_s16  ;;  %s3428_s3 = sld [smem:[#allocation2 + $0xb]]  ;;  %v151_v8 = vstv %s3402_s16  ;;  %v157_v9 = vstv %s3404_s17  ;;  %vm3782_vm3 = vcmp.ge.s32.totalorder %v6237_v54, 1 }
  0x43   :  { %6394 = sst [smem:[#allocation13_spill]] %s3404_s17  ;;  %s3430_s4 = sld [smem:[#allocation2 + $0xc]]  ;;  %v163_v10 = vstv %s3406_s2  ;;  %v169_v11 = vstv %s3408_s1  ;;  %vm4442_vm14 = vmand %vm945_vm13, %vm3782_vm3 }
  0x44   :  { %6395 = sst [smem:[#allocation14_spill]] %s3406_s2  ;;  %s3432_s26 = sld [smem:[#allocation2 + $0xd]]  ;;  %v114_v12 = vstv %s3410_s18  ;;  %v120_v13 = vstv %s3412_s19 }
  0x45   :  { %179 = vrot.lane.b32.xlu1 %v3327_v4, %s6113_s29  ;;  %176 = vrot.lane.b32.xlu0 %v3335_v5, %s6113_s29  ;;  %6396 = sst [smem:[#allocation15_spill]] %s3408_s1  ;;  %s3434_s27 = sld [smem:[#allocation2 + $0xe]]  ;;  %v126_v14 = vstv %s3414_s20  ;;  %v132_v15 = vstv %s3416_s21 }
  0x46   :  { %6397 = sst [smem:[#allocation16_spill]] %s3410_s18  ;;  %s3436_s28 = sld [smem:[#allocation2 + $0xf]]  ;;  %v188_v16 = vstv %s3422_s23 }
  0x47   :  { %6398 = sst [smem:[#allocation17_spill]] %s3412_s19  ;;  %s3442_s30 = sld [smem:[#allocation2 + $0x10]]  ;;  %v194_v17 = vstv %s3424_s24  ;;  %v200_v18 = vstv %s3426_s25 }
  0x48   :  { %6399 = sst [smem:[#allocation18_spill]] %s3414_s20  ;;  %s3444_s10 = sld [smem:[#allocation2 + $0x11]]  ;;  %v206_v19 = vstv %s3428_s3 }
  0x49   :  { %216 = vrot.lane.b32.xlu1 %v3340_v6, %s6113_s29  ;;  %213 = vrot.lane.b32.xlu0 %v3348_v7, %s6113_s29  ;;  %6400 = sst [smem:[#allocation19_spill]] %s3416_s21  ;;  %s3446_s11 = sld [smem:[#allocation2 + $0x12]]  ;;  %v225_v20 = vstv %s3430_s4 }
  0x4a   :  { %6401 = sst [smem:[#allocation20_spill]] %s3422_s23  ;;  %s3448_s12 = sld [smem:[#allocation2 + $0x13]]  ;;  %v231_v21 = vstv %s3432_s26 }
  0x4b   :  { %6402 = sst [smem:[#allocation21_spill]] %s3424_s24  ;;  %s3456_s29 = sld [smem:[#allocation2 + $0x17]]  ;;  %v237_v22 = vstv %s3434_s27 }
  0x4c   :  { %6403 = sst [smem:[#allocation22_spill]] %s3426_s25  ;;  %s3462_s9 = sld [smem:[#allocation2 + $0x18]]  ;;  %v243_v23 = vstv %s3436_s28 }
  0x4d   :  { %251 = vrot.lane.b32.xlu1 %v3310_v1, %s6111_s13  ;;  %248 = vrot.lane.b32.xlu0 %v3318_v3, %s6111_s13  ;;  %6404 = sst [smem:[#allocation23_spill]] %s3428_s3  ;;  %s3464_s8 = sld [smem:[#allocation2 + $0x19]]  ;;  %v261_v24 = vstv %s3442_s30 }
  0x4e   :  { %6405 = sst [smem:[#allocation24_spill]] %s3430_s4  ;;  %s3466_s6 = sld [smem:[#allocation2 + $0x1a]]  ;;  %v267_v26 = vstv %s3444_s10 }
  0x4f   :  { %6406 = sst [smem:[#allocation25_spill]] %s3432_s26  ;;  %s3468_s7 = sld [smem:[#allocation2 + $0x1b]]  ;;  %v273_v27 = vstv %s3446_s11 }
  0x50   :  { %6407 = sst [smem:[#allocation26_spill]] %s3434_s27  ;;  %s3470_s5 = sld [smem:[#allocation2 + $0x1c]]  ;;  %v279_v28 = vstv %s3448_s12 }
  0x51   :  { %287 = vrot.lane.b32.xlu1 %v3305_v0, %s6111_s13  ;;  %284 = vrot.lane.b32.xlu0 %v3314_v2, %s6111_s13  ;;  %6408 = sst [smem:[#allocation27_spill]] %s3436_s28  ;;  %s3472_s0 = sld [smem:[#allocation2 + $0x1d]] }
  0x52   :  { %6409 = sst [smem:[#allocation28_spill]] %s3442_s30  ;;  %s3529_s2 = sld [smem:[#allocation2 + $0x31]] }
  0x53   :  { %6410 = sst [smem:[#allocation29_spill]] %s3444_s10  ;;  %s3527_s17 = sld [smem:[#allocation2 + $0x30]] }
  0x54   :  { %6411 = sst [smem:[#allocation30_spill]] %s3446_s11  ;;  %s3543_s18 = sld [smem:[#allocation2 + $0x34]] }
  0x55   :  { %322 = vrot.lane.b32.xlu1 %v3327_v4, %s6111_s13  ;;  %319 = vrot.lane.b32.xlu0 %v3335_v5, %s6111_s13  ;;  %6412 = sst [smem:[#allocation31_spill]] %s3448_s12  ;;  %s3535_s16 = sld [smem:[#allocation2 + $0x32]] }
  0x56   :  { %6416 = sst [smem:[#allocation35_spill]] %s3456_s29  ;;  %s3545_s1 = sld [smem:[#allocation2 + $0x35]] }
  0x57   :  { %6417 = sst [smem:[#allocation36_spill]] %s3462_s9  ;;  %s3476_s29 = sld [smem:[#allocation2 + $0x1f]] }
  0x58   :  { %6418 = sst [smem:[#allocation37_spill]] %s3464_s8  ;;  %s3482_s9 = sld [smem:[#allocation2 + $0x20]] }
  0x59   :  { %357 = vrot.lane.b32.xlu1 %v3340_v6, %s6111_s13  ;;  %354 = vrot.lane.b32.xlu0 %v3348_v7, %s6111_s13  ;;  %s3454_s13 = sld [smem:[#allocation2 + $0x16]]  ;;  %6419 = sst [smem:[#allocation38_spill]] %s3466_s6 }
  0x5a   :  { %6420 = sst [smem:[#allocation39_spill]] %s3468_s7  ;;  %s3484_s8 = sld [smem:[#allocation2 + $0x21]] }
  0x5b   :  { %6421 = sst [smem:[#allocation40_spill]] %s3470_s5  ;;  %s3486_s7 = sld [smem:[#allocation2 + $0x22]] }
  0x5c   :  { %6422 = sst [smem:[#allocation41_spill]] %s3472_s0  ;;  %s3488_s5 = sld [smem:[#allocation2 + $0x23]] }
  0x5d   :  { %396 = vrot.lane.b32.xlu1 %v3310_v1, %s6109_s14  ;;  %393 = vrot.lane.b32.xlu0 %v3318_v3, %s6109_s14  ;;  %6424 = sst [smem:[#allocation43_spill]] %s3476_s29  ;;  %s3492_s29 = sld [smem:[#allocation2 + $0x25]] }
  0x5e   :  { %6425 = sst [smem:[#allocation44_spill]] %s3482_s9  ;;  %s3494_s0 = sld [smem:[#allocation2 + $0x26]] }
  0x5f   :  { %6415 = sst [smem:[#allocation34_spill]] %s3454_s13  ;;  %s3496_s6 = sld [smem:[#allocation2 + $0x27]] }
  0x60   :  { %s3474_s13 = sld [smem:[#allocation2 + $0x1e]]  ;;  %6441 = sst [smem:[#allocation59_spill]] %s3535_s16 }
  0x61   :  { %432 = vrot.lane.b32.xlu1 %v3305_v0, %s6109_s14  ;;  %429 = vrot.lane.b32.xlu0 %v3314_v2, %s6109_s14  ;;  %6426 = sst [smem:[#allocation45_spill]] %s3486_s7  ;;  %s3502_s7 = sld [smem:[#allocation2 + $0x28]] }
  0x62   :  { %6427 = sst [smem:[#allocation46_spill]] %s3488_s5  ;;  %s3504_s5 = sld [smem:[#allocation2 + $0x29]] }
  0x63   :  { %6429 = sst [smem:[#allocation48_spill]] %s3492_s29  ;;  %s3512_s29 = sld [smem:[#allocation2 + $0x2d]] }
  0x64   :  { %6430 = sst [smem:[#allocation49_spill]] %s3494_s0  ;;  %s3508_s0 = sld [smem:[#allocation2 + $0x2b]] }
  0x65   :  { %467 = vrot.lane.b32.xlu1 %v3327_v4, %s6109_s14  ;;  %464 = vrot.lane.b32.xlu0 %v3335_v5, %s6109_s14  ;;  %6431 = sst [smem:[#allocation50_spill]] %s3496_s6  ;;  %s3510_s6 = sld [smem:[#allocation2 + $0x2c]] }
  0x66   :  { %6423 = sst [smem:[#allocation42_spill]] %s3474_s13  ;;  %s3490_s13 = sld [smem:[#allocation2 + $0x24]] }
  0x67   :  { %6432 = sst [smem:[#allocation51_spill]] %s3502_s7  ;;  %s3551_s20 = sld [smem:[#allocation2 + $0x36]] }
  0x68   :  { %6433 = sst [smem:[#allocation52_spill]] %s3504_s5  ;;  %s3519_s5 = sld [smem:[#allocation2 + $0x2f]] }
  0x69   :  { %502 = vrot.lane.b32.xlu1 %v3340_v6, %s6109_s14  ;;  %499 = vrot.lane.b32.xlu0 %v3348_v7, %s6109_s14  ;;  %s3452_s14 = sld [smem:[#allocation2 + $0x15]]  ;;  %6437 = sst [smem:[#allocation56_spill]] %s3512_s29 }
  0x6a   :  { %6435 = sst [smem:[#allocation54_spill]] %s3508_s0  ;;  %s3553_s19 = sld [smem:[#allocation2 + $0x37]] }
  0x6b   :  { %6436 = sst [smem:[#allocation55_spill]] %s3510_s6  ;;  %s3561_s30 = sld [smem:[#allocation2 + $0x38]] }
  0x6c   :  { %6428 = sst [smem:[#allocation47_spill]] %s3490_s13  ;;  %s3506_s13 = sld [smem:[#allocation2 + $0x2a]] }
  0x6d   :  { %537 = vrot.lane.b32.xlu1 %v3310_v1, %s6107_s15  ;;  %534 = vrot.lane.b32.xlu0 %v3318_v3, %s6107_s15  ;;  %6443 = sst [smem:[#allocation61_spill]] %s3543_s18  ;;  %s3577_s11 = sld [smem:[#allocation2 + $0x3c]] }
  0x6e   :  { %6439 = sst [smem:[#allocation58_spill]] %s3519_s5  ;;  %s3537_s5 = sld [smem:[#allocation2 + $0x33]] }
  0x6f   :  { %6414 = sst [smem:[#allocation33_spill]] %s3452_s14  ;;  %s3563_s25 = sld [smem:[#allocation2 + $0x39]] }
  0x70   :  { %6444 = sst [smem:[#allocation62_spill]] %s3545_s1  ;;  %s3571_s1 = sld [smem:[#allocation2 + $0x3b]] }
  0x71   :  { %573 = vrot.lane.b32.xlu1 %v3305_v0, %s6107_s15  ;;  %570 = vrot.lane.b32.xlu0 %v3314_v2, %s6107_s15  ;;  %6447 = sst [smem:[#allocation63_spill]] %s3551_s20  ;;  %s3597_s27 = sld [smem:[#allocation2 + $0x42]] }
  0x72   :  { %6434 = sst [smem:[#allocation53_spill]] %s3506_s13  ;;  %s6440_s13 = smov 113  }
  0x73   :  { %6449 = sst [smem:[#allocation64_spill]] %s3553_s19  ;;  %s3569_s19 = sld [smem:[#allocation2 + $0x3a]] }
  0x74   :  { %6442 = sst [smem:[#allocation60_spill]] %s3537_s5  ;;  %s3599_s26 = sld [smem:[#allocation2 + $0x43]] }
  0x75   :  { %608 = vrot.lane.b32.xlu1 %v3327_v4, %s6107_s15  ;;  %605 = vrot.lane.b32.xlu0 %v3335_v5, %s6107_s15  ;;  %6454 = sst [smem:[#allocation65_spill]] %s3561_s30  ;;  %s3605_s4 = sld [smem:[#allocation2 + $0x44]] }
  0x76   :  { %6456 = sst [smem:[#allocation66_spill]] %s3563_s25  ;;  %s3579_s25 = sld [smem:[#allocation2 + $0x40]] }
  0x77   :  { %6459 = sst [smem:[#allocation68_spill]] %s3571_s1  ;;  %s3587_s1 = sld [smem:[#allocation2 + $0x41]]  ;;  %v692_v61 = vstv %s3597_s27 }
  0x78   :  { %s3607_s24 = sld [smem:[#allocation2 + $0x45]]  ;;  %s6469_s9 = sld [smem:[#allocation58_spill]]  ;;  %v3706_v50 = vmul.f32 %v692_v61, %v3310_v1 }
  0x79   :  { %643 = vrot.lane.b32.xlu1 %v3340_v6, %s6107_s15  ;;  %640 = vrot.lane.b32.xlu0 %v3348_v7, %s6107_s15  ;;  %s3450_s15 = sld [smem:[#allocation2 + $0x14]]  ;;  %6458 = sst [smem:[#allocation67_spill]] %s3569_s19 }
  0x7a   :  { %s3615_s18 = sld [smem:[#allocation2 + $0x47]]  ;;  %s3621_s14 = sld [smem:[#allocation2 + $0x48]]  ;;  %v700_v60 = vstv %s3599_s26 }
  0x7b   :  { %s3623_s23 = sld [smem:[#allocation2 + $0x49]]  ;;  %s6471_s3 = sld [smem:[#allocation62_spill]]  ;;  %v708_v58 = vstv %s3605_s4  ;;  %v3717_v46 = vmul.f32 %v700_v60, %v3310_v1 }
  0x7c   :  { %s6200_s7 = smov 112   ;;  %s6473_s0 = sld [smem:[#allocation63_spill]]  ;;  %v676_v57 = vstv %s3579_s25  ;;  %v3720_v45 = vmul.f32 %v3305_v0, %v708_v58 }
  0x7d   :  { %805 = vrot.lane.b32.xlu1 %v3318_v3, %s6128_s22  ;;  %803 = vrot.lane.b32.xlu0 %v3310_v1, %s6128_s22  ;;  %s3634_s20 = sld [smem:[#allocation2 + $0x4a]]  ;;  %s3636_s12 = sld [smem:[#allocation2 + $0x4b]]  ;;  %v3674_v63 = vmul.f32 %v676_v57, %v3310_v1  ;;  %v684_v62 = vstv %s3587_s1 }
  0x7e   :  { %s3642_s10 = sld [smem:[#allocation2 + $0x4c]]  ;;  %s3647_s29 = sld [smem:[#allocation2 + $0x3e]]  ;;  %v716_v53 = vstv %s3607_s24  ;;  %v3703_v59 = vmul.f32 %v684_v62, %v3310_v1 }
  0x7f   :  { %6413 = sst [smem:[#allocation32_spill]] %s3450_s15  ;;  %s3585_s15 = sld [smem:[#allocation2 + $0x3d]]  ;;  %v3735_v60 = vmul.f32 %v3305_v0, %v716_v53 }
  0x80   :  { %s3656_s16 = sld [smem:[#allocation2 + $0x3f]]  ;;  %s3658_s5 = sld [smem:[#allocation2 + $0x4e]]  ;;  %v732_v52 = vstv %s3615_s18  ;;  %v740_v57 = vstv %s3621_s14 }
  0x81   :  { %841 = vrot.lane.b32.xlu1 %v3314_v2, %s6128_s22  ;;  %839 = vrot.lane.b32.xlu0 %v3305_v0, %s6128_s22  ;;  %s6478_s21 = smov 112   ;;  %s3668_s25 = sld [smem:[#allocation2 + $0x4f]]  ;;  %v748_v51 = vstv %s3623_s23  ;;  %v3741_v47 = vmul.f32 %v3305_v0, %v732_v52  ;;  %v3749_v43 = vmul.f32 %v3327_v4, %v740_v57 }
  0x82   :  { %s3670_s28 = sld [smem:[#allocation2 + $0x50]]  ;;  %s3678_s30 = sld [smem:[#allocation2 + $0x51]]  ;;  %v3752_v42 = vmul.f32 %v3327_v4, %v748_v51 }
  0x83   :  { %s3680_s6 = sld [smem:[#allocation2 + $0x52]]  ;;  %s3688_s19 = sld [smem:[#allocation2 + $0x54]]  ;;  %v756_v49 = vstv %s3634_s20  ;;  %v764_v48 = vstv %s3636_s12 }
  0x84   :  { %6477 = sst [smem:[#allocation58_spill]] %s3647_s29  ;;  %s3694_s1 = sld [smem:[#allocation2 + $0x55]]  ;;  %v772_v62 = vstv %s3642_s10  ;;  %v3755_v53 = vmul.f32 %v3327_v4, %v756_v49 }
  0x85   :  { %876 = vrot.lane.b32.xlu1 %v3335_v5, %s6128_s22  ;;  %874 = vrot.lane.b32.xlu0 %v3327_v4, %s6128_s22  ;;  %s3696_s27 = sld [smem:[#allocation2 + $0x56]]  ;;  %s3712_s14 = sld [smem:[#allocation2 + $0x58]]  ;;  %v3774_v52 = vmul.f32 %v3340_v6, %v772_v62 }
  0x86   :  { %s3723_s18 = sld [smem:[#allocation2 + $0x59]]  ;;  %s3725_s23 = sld [smem:[#allocation2 + $0x5a]] }
  0x87   :  { %s3744_s20 = sld [smem:[#allocation2 + $0x5b]]  ;;  %s3746_s24 = sld [smem:[#allocation2 + $0x5c]]  ;;  %v796_v41 = vstv %s3668_s25 }
  0x88   :  { %s3760_s4 = sld [smem:[#allocation2 + $0x5d]]  ;;  %s3776_s26 = sld [smem:[#allocation2 + $0x5f]]  ;;  %v3828_v38 = vmul.f32 %v3340_v6, %v796_v41 }
  0x89   :  { %911 = vrot.lane.b32.xlu1 %v3348_v7, %s6128_s22  ;;  %909 = vrot.lane.b32.xlu0 %v3340_v6, %s6128_s22  ;;  %s6136_s22 = smov 113   ;;  %6479 = sst [smem:[#allocation62_spill]] %s3680_s6 }
  0x8a   :  { %s3778_s10 = sld [smem:[#allocation2 + $0x60]]  ;;  %s3793_s12 = sld [smem:[#allocation2 + $0x61]] }
  0x8b   :  { %s3807_s25 = sld [smem:[#allocation2 + $0x64]]  ;;  %s6217_s29 = smov 111  }
  0x8c   :  { %6480 = sst [smem:[#allocation63_spill]] %s3723_s18  ;;  %s6492_s6 = smov 111  }
  0x8d   :  { %950 = vrot.lane.b32.xlu1 %v3318_v3, %s6136_s22  ;;  %948 = vrot.lane.b32.xlu0 %v3310_v1, %s6136_s22  ;;  %s3517_s22 = sld [smem:[#allocation2 + $0x2e]]  ;;  %6481 = sst [smem:[#allocation70_spill]] %s3725_s23 }
  0x8e   :  { %6484 = sst [smem:[#allocation71_spill]] %s3746_s24  ;;  %s6530_s18 = sld [smem:[#allocation37_spill]] }
  0x8f   :  { %6485 = sst [smem:[#allocation72_spill]] %s3776_s26  ;;  %s6515_s26 = sld [smem:[#allocation32_spill]] }
  0x90   :  { %6488 = sst [smem:[#allocation73_spill]] %s3793_s12  ;;  %s6516_s12 = sld [smem:[#allocation33_spill]] }
  0x91   :  { %986 = vrot.lane.b32.xlu1 %v3314_v2, %s6440_s13  ;;  %984 = vrot.lane.b32.xlu0 %v3305_v0, %s6440_s13  ;;  %6491 = sst [smem:[#allocation76_spill]] %s3807_s25  ;;  %s6532_s23 = sld [smem:[#allocation38_spill]] }
  0x92   :  { %s6518_s25 = sld [smem:[#allocation35_spill]]  ;;  %s6534_s24 = sld [smem:[#allocation39_spill]] }
  0x93   :  { %6438 = sst [smem:[#allocation57_spill]] %s3517_s22 }
  0x94   :  { %s3650_s22 = sld [smem:[#allocation2 + $0x4d]] }
  0x95   :  { %1021 = vrot.lane.b32.xlu1 %v3335_v5, %s6440_s13  ;;  %1019 = vrot.lane.b32.xlu0 %v3327_v4, %s6440_s13 }
  0x99   :  { %1056 = vrot.lane.b32.xlu1 %v3348_v7, %s6440_s13  ;;  %1054 = vrot.lane.b32.xlu0 %v3340_v6, %s6440_s13  ;;  %s3613_s13 = sld [smem:[#allocation2 + $0x46]] }
  0x9a   :  { %v780_v44 = vstv %s3650_s22  ;;  %s3762_s22 = sld [smem:[#allocation2 + $0x5e]] }
  0x9b   :  { %v3789_v49 = vmul.f32 %v3340_v6, %v780_v44 }
  0x9d   :  { %1091 = vrot.lane.b32.xlu1 %v3318_v3, %s6200_s7  ;;  %1089 = vrot.lane.b32.xlu0 %v3310_v1, %s6200_s7  ;;  %s3686_s7 = sld [smem:[#allocation2 + $0x53]] }
  0x9f   :  { %v724_v25 = vstv %s3613_s13  ;;  %s3710_s13 = sld [smem:[#allocation2 + $0x57]] }
  0xa0   :  { %v3738_v58 = vmul.f32 %v3305_v0, %v724_v25  ;;  %v3758_v25 = vmul.f32 %v3327_v4, %v764_v48  ;;  %v788_v48 = vstv %s3658_s5  ;;  %s3805_s5 = sld [smem:[#allocation2 + $0x63]] }
  0xa1   :  { %1127 = vrot.lane.b32.xlu1 %v3314_v2, %s6478_s21  ;;  %1125 = vrot.lane.b32.xlu0 %v3305_v0, %s6478_s21  ;;  %v3825_v62 = vmul.f32 %v3340_v6, %v788_v48 }
  0xa5   :  { %1162 = vrot.lane.b32.xlu1 %v3335_v5, %s6478_s21  ;;  %1160 = vrot.lane.b32.xlu0 %v3327_v4, %s6478_s21 }
  0xa6   :  { %6490 = sst [smem:[#allocation75_spill]] %s3805_s5 }
  0xa7   :  { %s6517_s5 = sld [smem:[#allocation34_spill]] }
  0xa9   :  { %1197 = vrot.lane.b32.xlu1 %v3348_v7, %s6478_s21  ;;  %1195 = vrot.lane.b32.xlu0 %v3340_v6, %s6478_s21  ;;  %s3795_s21 = sld [smem:[#allocation2 + $0x62]] }
  0xad   :  { %1234 = vrot.lane.b32.xlu1 %v3318_v3, %s6217_s29  ;;  %1232 = vrot.lane.b32.xlu0 %v3310_v1, %s6217_s29  ;;  %s3835_s29 = sld [smem:[#allocation2 + $0x65]] }
  0xaf   :  { %6489 = sst [smem:[#allocation74_spill]] %s3795_s21  ;;  %v140_v51 = vpop.permute.xlu1 %139  ;;  %v102_v39 = vpop.permute.xlu0 %101  ;;  %s6529_s21 = sld [smem:[#allocation36_spill]] }
  0xb1   :  { %1270 = vrot.lane.b32.xlu1 %v3314_v2, %s6492_s6  ;;  %1268 = vrot.lane.b32.xlu0 %v3305_v0, %s6492_s6 }
  0xb3   :  { %v143_v36 = vpop.permute.xlu1 %142  ;;  %v105_v37 = vpop.permute.xlu0 %104 }
  0xb4   :  { %v144_v3 = vsel %vm106_vm2, %v143_v36, %v140_v51  ;;  %v147_v2 = vsel %vm106_vm2, %v140_v51, %v143_v36  ;;  %v107_v0 = vsel %vm106_vm2, %v105_v37, %v102_v39  ;;  %v110_v35 = vsel %vm106_vm2, %v102_v39, %v105_v37 }
  0xb5   :  { %v148_v48 = vsel %vm3859_vm4, %v147_v2, 0.0  ;;  %v149_v33 = vsel %vm3782_vm3, %v144_v3, 0.0  ;;  %v111_v41 = vsel %vm3859_vm4, %v110_v35, 0.0  ;;  %v112_v36 = vsel %vm3782_vm3, %v107_v0, 0.0  ;;  %1305 = vrot.lane.b32.xlu1 %v3335_v5, %s6492_s6  ;;  %1303 = vrot.lane.b32.xlu0 %v3327_v4, %s6492_s6 }
  0xb6   :  { %v152_v37 = vmul.f32 %v151_v8, %v148_v48  ;;  %v153_v39 = vmul.f32 %v151_v8, %v149_v33  ;;  %v158_v35 = vmul.f32 %v157_v9, %v148_v48  ;;  %v159_v3 = vmul.f32 %v157_v9, %v149_v33 }
  0xb7   :  { %v164_v2 = vmul.f32 %v163_v10, %v148_v48  ;;  %v165_v5 = vmul.f32 %v163_v10, %v149_v33  ;;  %v170_v0 = vmul.f32 %v169_v11, %v148_v48  ;;  %v180_v4 = vpop.permute.xlu1 %179  ;;  %v177_v34 = vpop.permute.xlu0 %176  ;;  %v115_v44 = vmul.f32 %v114_v12, %v111_v41 }
  0xb8   :  { %v116_v54 = vmul.f32 %v114_v12, %v112_v36  ;;  %v121_v8 = vmul.f32 %v120_v13, %v111_v41  ;;  %v122_v32 = vmul.f32 %v120_v13, %v112_v36  ;;  %v171_v51 = vmul.f32 %v169_v11, %v149_v33 }
  0xb9   :  { %v127_v9 = vmul.f32 %v126_v14, %v111_v41  ;;  %v128_v56 = vmul.f32 %v126_v14, %v112_v36  ;;  %v133_v10 = vmul.f32 %v132_v15, %v111_v41  ;;  %1340 = vrot.lane.b32.xlu1 %v3348_v7, %s6492_s6  ;;  %v134_v48 = vmul.f32 %v132_v15, %v112_v36 }
  0xba   :  { %v154_v31 = vadd.f32 %v152_v37, %v115_v44  ;;  %v155_v30 = vadd.f32 %v153_v39, %v116_v54  ;;  %v160_v12 = vadd.f32 %v158_v35, %v121_v8  ;;  %1338 = vrot.lane.b32.xlu0 %v3340_v6, %s6492_s6  ;;  %v161_v13 = vadd.f32 %v159_v3, %v122_v32  ;;  %s4848_s6 = sld [smem:[#allocation6 + $0xd]] }
  0xbb   :  { %v166_v11 = vadd.f32 %v164_v2, %v127_v9  ;;  %v167_v33 = vadd.f32 %v165_v5, %v128_v56  ;;  %v172_v14 = vadd.f32 %v170_v0, %v133_v10  ;;  %v217_v41 = vpop.permute.xlu1 %216  ;;  %v214_v7 = vpop.permute.xlu0 %213  ;;  %v181_v15 = vsel %vm106_vm2, %v180_v4, %v177_v34 }
  0xbc   :  { %v184_v54 = vsel %vm106_vm2, %v177_v34, %v180_v4  ;;  %v218_v6 = vsel %vm106_vm2, %v217_v41, %v214_v7  ;;  %v221_v32 = vsel %vm106_vm2, %v214_v7, %v217_v41  ;;  %v186_v44 = vsel %vm3782_vm3, %v181_v15, 0.0 }
  0xbd   :  { %v185_v56 = vsel %vm3859_vm4, %v184_v54, 0.0  ;;  %v222_v36 = vsel %vm3859_vm4, %v221_v32, 0.0  ;;  %v223_v37 = vsel %vm3782_vm3, %v218_v6, 0.0  ;;  %v190_v34 = vmul.f32 %v188_v16, %v186_v44 }
  0xbe   :  { %v189_v39 = vmul.f32 %v188_v16, %v185_v56  ;;  %v195_v35 = vmul.f32 %v194_v17, %v185_v56  ;;  %v196_v3 = vmul.f32 %v194_v17, %v186_v44  ;;  %v201_v2 = vmul.f32 %v200_v18, %v185_v56 }
  0xbf   :  { %v202_v5 = vmul.f32 %v200_v18, %v186_v44  ;;  %v207_v0 = vmul.f32 %v206_v19, %v185_v56  ;;  %v208_v4 = vmul.f32 %v206_v19, %v186_v44  ;;  %v252_v8 = vpop.permute.xlu1 %251  ;;  %v249_v16 = vpop.permute.xlu0 %248  ;;  %v173_v9 = vadd.f32 %v171_v51, %v134_v48 }
  0xc0   :  { %v191_v10 = vadd.f32 %v189_v39, %v154_v31  ;;  %v192_v41 = vadd.f32 %v190_v34, %v155_v30  ;;  %v197_v17 = vadd.f32 %v195_v35, %v160_v12  ;;  %v198_v7 = vadd.f32 %v196_v3, %v161_v13  ;;  %6750 = sst [smem:[#allocation35_spill]] %s4848_s6  ;;  %s5118_s6 = sld [smem:[#allocation6 + $0x58]] }
  0xc1   :  { %v203_v15 = vadd.f32 %v201_v2, %v166_v11  ;;  %v204_v54 = vadd.f32 %v202_v5, %v167_v33  ;;  %v209_v6 = vadd.f32 %v207_v0, %v172_v14  ;;  %v226_v18 = vmul.f32 %v225_v20, %v222_v36 }
  0xc2   :  { %v227_v32 = vmul.f32 %v225_v20, %v223_v37  ;;  %v232_v19 = vmul.f32 %v231_v21, %v222_v36  ;;  %v233_v56 = vmul.f32 %v231_v21, %v223_v37  ;;  %v210_v44 = vadd.f32 %v208_v4, %v173_v9 }
  0xc3   :  { %v238_v29 = vmul.f32 %v237_v22, %v222_v36  ;;  %v239_v31 = vmul.f32 %v237_v22, %v223_v37  ;;  %v244_v30 = vmul.f32 %v243_v23, %v222_v36  ;;  %v288_v51 = vpop.permute.xlu1 %287  ;;  %v285_v48 = vpop.permute.xlu0 %284  ;;  %v228_v12 = vadd.f32 %v226_v18, %v191_v10 }
  0xc4   :  { %v229_v13 = vadd.f32 %v227_v32, %v192_v41  ;;  %v234_v11 = vadd.f32 %v232_v19, %v197_v17  ;;  %v245_v20 = vmul.f32 %v243_v23, %v223_v37  ;;  %v235_v21 = vadd.f32 %v233_v56, %v198_v7 }
  0xc5   :  { %v240_v33 = vadd.f32 %v238_v29, %v203_v15  ;;  %v241_v14 = vadd.f32 %v239_v31, %v204_v54  ;;  %v246_v22 = vadd.f32 %v244_v30, %v209_v6  ;;  %v254_v36 = vsel %vm253_vm5, %v252_v8, %v249_v16 }
  0xc6   :  { %v257_v39 = vsel %vm253_vm5, %v249_v16, %v252_v8  ;;  %v289_v34 = vsel %vm253_vm5, %v288_v51, %v285_v48  ;;  %v292_v35 = vsel %vm253_vm5, %v285_v48, %v288_v51  ;;  %v263_v23 = vmul.f32 %v261_v24, %v254_v36  ;;  %6838 = sst [smem:[#allocation91_spill]] %s5118_s6  ;;  %s5256_s6 = sld [smem:[#allocation6 + $0x73]] }
  0xc7   :  { %v258_v3 = vsel %vm93_vm0, %v257_v39, 0.0  ;;  %v269_v37 = vmul.f32 %v267_v26, %v254_v36  ;;  %v275_v29 = vmul.f32 %v273_v27, %v254_v36  ;;  %v323_v2 = vpop.permute.xlu1 %322  ;;  %v320_v5 = vpop.permute.xlu0 %319  ;;  %v247_v9 = vadd.f32 %v245_v20, %v210_v44 }
  0xc8   :  { %v262_v0 = vmul.f32 %v261_v24, %v258_v3  ;;  %v268_v4 = vmul.f32 %v267_v26, %v258_v3  ;;  %v274_v8 = vmul.f32 %v273_v27, %v258_v3  ;;  %v280_v16 = vmul.f32 %v279_v28, %v258_v3 }
  0xc9   :  { %v265_v10 = vadd.f32 %v263_v23, %v229_v13  ;;  %v271_v41 = vadd.f32 %v269_v37, %v235_v21  ;;  %v281_v17 = vmul.f32 %v279_v28, %v254_v36  ;;  %v277_v54 = vadd.f32 %v275_v29, %v241_v14 }
  0xca   :  { %v264_v7 = vadd.f32 %v262_v0, %v228_v12  ;;  %v270_v15 = vadd.f32 %v268_v4, %v234_v11  ;;  %v276_v24 = vadd.f32 %v274_v8, %v240_v33  ;;  %v282_v26 = vadd.f32 %v280_v16, %v246_v22 }
  0xcb   :  { %v293_v27 = vsel %vm93_vm0, %v292_v35, 0.0  ;;  %v6519_v6 = vstv %s6515_s26  ;;  %v6520_v32 = vstv %s6516_s12  ;;  %v358_v56 = vpop.permute.xlu1 %357  ;;  %v355_v44 = vpop.permute.xlu0 %354  ;;  %v6523_v48 = vstv %s6517_s5  ;;  %s6545_s26 = sld [smem:[#allocation40_spill]]  ;;  %s6546_s12 = sld [smem:[#allocation41_spill]] }
  0xcc   :  { %v298_v18 = vmul.f32 %v6519_v6, %v289_v34  ;;  %v304_v19 = vmul.f32 %v6520_v32, %v289_v34  ;;  %v6521_v31 = vmov %v6519_v6  ;;  %v6522_v28 = vmov %v6520_v32  ;;  %s6547_s5 = sld [smem:[#allocation42_spill]] }
  0xcd   :  { %v297_v30 = vmul.f32 %v6521_v31, %v293_v27  ;;  %v303_v51 = vmul.f32 %v6522_v28, %v293_v27  ;;  %v309_v12 = vmul.f32 %v6523_v48, %v293_v27  ;;  %v6524_v13 = vmov %v6523_v48 }
  0xce   :  { %v310_v11 = vmul.f32 %v6524_v13, %v289_v34  ;;  %v6525_v20 = vand.u32 15, %v3593_v40  ;;  %v6526_v21 = vmov 0  ;;  %v283_v33 = vadd.f32 %v281_v17, %v247_v9 }
  0xcf   :  { %v300_v14 = vadd.f32 %v298_v18, %v265_v10  ;;  %v306_v22 = vadd.f32 %v304_v19, %v271_v41  ;;  %v6531_v36 = vstv %s6518_s25  ;;  %v299_v35 = vadd.f32 %v297_v30, %v264_v7  ;;  %v397_v41 = vpop.permute.xlu1 %396  ;;  %v394_v17 = vpop.permute.xlu0 %393  ;;  %s6548_s25 = sld [smem:[#allocation43_spill]] }
  0xd0   :  { %vm4006_vm7 = vcmp.le.s32.totalorder %v6525_v20, 14  ;;  %v315_v39 = vmul.f32 %v6531_v36, %v293_v27  ;;  %v305_v3 = vadd.f32 %v303_v51, %v270_v15  ;;  %v311_v23 = vadd.f32 %v309_v12, %v276_v24 }
  0xd1   :  { %v6527_v21 = vsel %vm4006_vm7, 4294967295, %v6526_v21  ;;  %v6533_v37 = vmov %v6531_v36  ;;  %v6535_v0 = vand.u32 15, %v3630_v55  ;;  %v312_v8 = vadd.f32 %v310_v11, %v277_v54  ;;  %vm4063_vm9 = vmand %vm93_vm0, %vm4006_vm7 }
  0xd2   :  { %6528 = vst [vmem:[#allocation77_spill] sm:$0xff] %v6527_v21  ;;  %v316_v29 = vmul.f32 %v6533_v37, %v289_v34  ;;  %v317_v16 = vadd.f32 %v315_v39, %v282_v26  ;;  %v324_v9 = vsel %vm253_vm5, %v323_v2, %v320_v5  ;;  %v327_v10 = vsel %vm253_vm5, %v320_v5, %v323_v2 }
  0xd3   :  { %vm4016_vm8 = vcmp.le.s32.totalorder %v6535_v0, 14  ;;  %v328_v7 = vsel %vm93_vm0, %v327_v10, 0.0  ;;  %v6538_v15 = vstv %s6529_s21  ;;  %v6539_v24 = vstv %s6530_s18  ;;  %v433_v37 = vpop.permute.xlu1 %432  ;;  %v430_v0 = vpop.permute.xlu0 %429  ;;  %s6557_s21 = sld [smem:[#allocation44_spill]]  ;;  %s6558_s18 = sld [smem:[#allocation45_spill]] }
  0xd4   :  { %v333_v34 = vmul.f32 %v6538_v15, %v324_v9  ;;  %v339_v27 = vmul.f32 %v6539_v24, %v324_v9  ;;  %v6540_v6 = vstv %s6532_s23  ;;  %v6541_v32 = vmov %v6538_v15  ;;  %s6561_s23 = sld [smem:[#allocation46_spill]] }
  0xd5   :  { %v345_v18 = vmul.f32 %v6540_v6, %v324_v9  ;;  %v332_v19 = vmul.f32 %v6541_v32, %v328_v7  ;;  %v6542_v54 = vmov %v6539_v24  ;;  %v6543_v31 = vmov %v6540_v6 }
  0xd6   :  { %v338_v26 = vmul.f32 %v6542_v54, %v328_v7  ;;  %v344_v30 = vmul.f32 %v6543_v31, %v328_v7  ;;  %v6544_v28 = vstv %s6534_s24  ;;  %v318_v5 = vadd.f32 %v316_v29, %v283_v33  ;;  %s6570_s24 = sld [smem:[#allocation47_spill]] }
  0xd7   :  { %v350_v2 = vmul.f32 %v6544_v28, %v328_v7  ;;  %v335_v51 = vadd.f32 %v333_v34, %v300_v14  ;;  %v341_v48 = vadd.f32 %v339_v27, %v306_v22  ;;  %v347_v12 = vadd.f32 %v345_v18, %v312_v8  ;;  %v468_v31 = vpop.permute.xlu1 %467 }
  0xd8   :  { %v334_v13 = vadd.f32 %v332_v19, %v299_v35  ;;  %v340_v11 = vadd.f32 %v338_v26, %v305_v3  ;;  %v346_v20 = vadd.f32 %v344_v30, %v311_v23  ;;  %v6549_v36 = vmov %v6544_v28  ;;  %v465_v30 = vpop.permute.xlu0 %464 }
  0xd9   :  { %v351_v39 = vmul.f32 %v6549_v36, %v324_v9  ;;  %v352_v10 = vadd.f32 %v350_v2, %v317_v16  ;;  %v359_v7 = vsel %vm253_vm5, %v358_v56, %v355_v44  ;;  %v362_v33 = vsel %vm253_vm5, %v355_v44, %v358_v56 }
  0xda   :  { %v399_v14 = vsel %vm398_vm6, %v397_v41, %v394_v17  ;;  %v363_v22 = vsel %vm93_vm0, %v362_v33, 0.0  ;;  %v6550_v29 = vstv %s6545_s26  ;;  %v6551_v8 = vstv %s6546_s12  ;;  %s6571_s26 = sld [smem:[#allocation48_spill]]  ;;  %s6572_s12 = sld [smem:[#allocation49_spill]] }
  0xdb   :  { %v368_v35 = vmul.f32 %v6550_v29, %v359_v7  ;;  %v374_v3 = vmul.f32 %v6551_v8, %v359_v7  ;;  %v6552_v15 = vstv %s6547_s5  ;;  %v6553_v9 = vmov %v6550_v29  ;;  %s6573_s5 = sld [smem:[#allocation50_spill]] }
  0xdc   :  { %v380_v23 = vmul.f32 %v6552_v15, %v359_v7  ;;  %v367_v34 = vmul.f32 %v6553_v9, %v363_v22  ;;  %v6554_v24 = vmov %v6551_v8  ;;  %v6555_v27 = vmov %v6552_v15 }
  0xdd   :  { %v373_v16 = vmul.f32 %v6554_v24, %v363_v22  ;;  %v379_v6 = vmul.f32 %v6555_v27, %v363_v22  ;;  %v6556_v18 = vstv %s6548_s25  ;;  %v353_v44 = vadd.f32 %v351_v39, %v318_v5  ;;  %v503_v27 = vpop.permute.xlu1 %502  ;;  %s6583_s25 = sld [smem:[#allocation52_spill]] }
  0xde   :  { %v385_v56 = vmul.f32 %v6556_v18, %v363_v22  ;;  %v370_v32 = vadd.f32 %v368_v35, %v335_v51  ;;  %v376_v19 = vadd.f32 %v374_v3, %v341_v48  ;;  %v382_v54 = vadd.f32 %v380_v23, %v347_v12 }
  0xdf   :  { %v369_v28 = vadd.f32 %v367_v34, %v334_v13  ;;  %v375_v2 = vadd.f32 %v373_v16, %v340_v11  ;;  %v381_v5 = vadd.f32 %v379_v6, %v346_v20  ;;  %v6562_v51 = vmov %v6556_v18  ;;  %v500_v6 = vpop.permute.xlu0 %499 }
  0xe0   :  { %v386_v48 = vmul.f32 %v6562_v51, %v359_v7  ;;  %v387_v12 = vadd.f32 %v385_v56, %v352_v10  ;;  %v402_v36 = vsel %vm398_vm6, %v394_v17, %v397_v41  ;;  %v404_v39 = vsel %vm4016_vm8, %v399_v14, 0.0 }
  0xe1   :  { %v434_v33 = vsel %vm398_vm6, %v433_v37, %v430_v0  ;;  %v403_v22 = vsel %vm4063_vm9, %v402_v36, 0.0  ;;  %v6563_v29 = vstv %s6557_s21  ;;  %v6564_v8 = vstv %s3484_s8  ;;  %s6582_s8 = sld [smem:[#allocation51_spill]]  ;;  %s6584_s21 = sld [smem:[#allocation53_spill]] }
  0xe2   :  { %v408_v35 = vmul.f32 %v6563_v29, %v404_v39  ;;  %v414_v13 = vmul.f32 %v6564_v8, %v404_v39  ;;  %v6565_v11 = vstv %s6558_s18  ;;  %v6566_v3 = vmov %v6563_v29  ;;  %s6585_s18 = sld [smem:[#allocation54_spill]] }
  0xe3   :  { %v420_v20 = vmul.f32 %v6565_v11, %v404_v39  ;;  %v407_v7 = vmul.f32 %v6566_v3, %v403_v22  ;;  %v6567_v10 = vmov %v6564_v8  ;;  %v6568_v41 = vmov %v6565_v11 }
  0xe4   :  { %v413_v15 = vmul.f32 %v6567_v10, %v403_v22  ;;  %v419_v17 = vmul.f32 %v6568_v41, %v403_v22  ;;  %v6569_v23 = vstv %s6561_s23  ;;  %v388_v9 = vadd.f32 %v386_v48, %v353_v44  ;;  %s6594_s23 = sld [smem:[#allocation55_spill]] }
  0xe5   :  { %v425_v14 = vmul.f32 %v6569_v23, %v403_v22  ;;  %v410_v34 = vadd.f32 %v408_v35, %v370_v32  ;;  %v416_v24 = vadd.f32 %v414_v13, %v376_v19  ;;  %v422_v16 = vadd.f32 %v420_v20, %v382_v54 }
  0xe6   :  { %v409_v18 = vadd.f32 %v407_v7, %v369_v28  ;;  %v415_v56 = vadd.f32 %v413_v15, %v375_v2  ;;  %v421_v51 = vadd.f32 %v419_v17, %v381_v5  ;;  %v6574_v36 = vmov %v6569_v23 }
  0xe7   :  { %v426_v29 = vmul.f32 %v6574_v36, %v404_v39  ;;  %v427_v22 = vadd.f32 %v425_v14, %v387_v12  ;;  %v437_v44 = vsel %vm398_vm6, %v430_v0, %v433_v37  ;;  %v439_v32 = vsel %vm4016_vm8, %v434_v33, 0.0 }
  0xe8   :  { %v469_v19 = vsel %vm398_vm6, %v468_v31, %v465_v30  ;;  %v438_v54 = vsel %vm4063_vm9, %v437_v44, 0.0  ;;  %v6575_v48 = vstv %s6570_s24  ;;  %v6576_v35 = vstv %s6571_s26  ;;  %v538_v44 = vpop.permute.xlu1 %537  ;;  %s6595_s24 = sld [smem:[#allocation56_spill]]  ;;  %s6596_s26 = sld [smem:[#allocation57_spill]] }
  0xe9   :  { %v443_v28 = vmul.f32 %v6575_v48, %v439_v32  ;;  %v449_v2 = vmul.f32 %v6576_v35, %v439_v32  ;;  %v6577_v5 = vstv %s6572_s12  ;;  %v6578_v39 = vmov %v6575_v48  ;;  %v535_v48 = vpop.permute.xlu0 %534  ;;  %s6605_s12 = sld [smem:[#allocation59_spill]] }
  0xea   :  { %v455_v8 = vmul.f32 %v6577_v5, %v439_v32  ;;  %v442_v13 = vmul.f32 %v6578_v39, %v438_v54  ;;  %v6579_v12 = vmov %v6576_v35  ;;  %v6580_v37 = vmov %v6577_v5 }
  0xeb   :  { %v448_v11 = vmul.f32 %v6579_v12, %v438_v54  ;;  %v454_v0 = vmul.f32 %v6580_v37, %v438_v54  ;;  %v6581_v20 = vstv %s6573_s5  ;;  %v428_v3 = vadd.f32 %v426_v29, %v388_v9  ;;  %s6606_s5 = sld [smem:[#allocation60_spill]] }
  0xec   :  { %v460_v33 = vmul.f32 %v6581_v20, %v438_v54  ;;  %v445_v7 = vadd.f32 %v443_v28, %v410_v34  ;;  %v451_v10 = vadd.f32 %v449_v2, %v416_v24  ;;  %v457_v15 = vadd.f32 %v455_v8, %v422_v16 }
  0xed   :  { %v444_v41 = vadd.f32 %v442_v13, %v409_v18  ;;  %v450_v17 = vadd.f32 %v448_v11, %v415_v56  ;;  %v456_v23 = vadd.f32 %v454_v0, %v421_v51  ;;  %v6586_v14 = vmov %v6581_v20 }
  0xee   :  { %v461_v36 = vmul.f32 %v6586_v14, %v439_v32  ;;  %v462_v35 = vadd.f32 %v460_v33, %v427_v22  ;;  %v472_v54 = vsel %vm398_vm6, %v465_v30, %v468_v31  ;;  %v474_v9 = vsel %vm4016_vm8, %v469_v19, 0.0 }
  0xef   :  { %v504_v34 = vsel %vm398_vm6, %v503_v27, %v500_v6  ;;  %v473_v24 = vsel %vm4063_vm9, %v472_v54, 0.0  ;;  %v6587_v16 = vstv %s6582_s8  ;;  %v6588_v56 = vstv %s6583_s25  ;;  %s6616_s8 = sld [smem:[#allocation64_spill]]  ;;  %s6627_s25 = sld [smem:[#allocation67_spill]] }
  0xf0   :  { %v478_v18 = vmul.f32 %v6587_v16, %v474_v9  ;;  %v484_v51 = vmul.f32 %v6588_v56, %v474_v9  ;;  %v6589_v29 = vstv %s6584_s21  ;;  %v6590_v28 = vmov %v6587_v16  ;;  %s6628_s21 = sld [smem:[#allocation68_spill]] }
  0xf1   :  { %v490_v32 = vmul.f32 %v6589_v29, %v474_v9  ;;  %v477_v2 = vmul.f32 %v6590_v28, %v473_v24  ;;  %v6591_v22 = vmov %v6588_v56  ;;  %v6592_v31 = vmov %v6589_v29 }
  0xf2   :  { %v483_v5 = vmul.f32 %v6591_v22, %v473_v24  ;;  %v489_v30 = vmul.f32 %v6592_v31, %v473_v24  ;;  %v6593_v8 = vstv %s6585_s18  ;;  %v463_v39 = vadd.f32 %v461_v36, %v428_v3  ;;  %v574_v36 = vpop.permute.xlu1 %573  ;;  %s4232_s18 = sld [smem:[#allocation2 + $0x67]] }
  0xf3   :  { %v495_v19 = vmul.f32 %v6593_v8, %v473_v24  ;;  %v480_v13 = vadd.f32 %v478_v18, %v445_v7  ;;  %v486_v12 = vadd.f32 %v484_v51, %v451_v10  ;;  %v492_v11 = vadd.f32 %v490_v32, %v457_v15  ;;  %v571_v10 = vpop.permute.xlu0 %570 }
  0xf4   :  { %v479_v37 = vadd.f32 %v477_v2, %v444_v41  ;;  %v485_v0 = vadd.f32 %v483_v5, %v450_v17  ;;  %v491_v20 = vadd.f32 %v489_v30, %v456_v23  ;;  %v6597_v33 = vmov %v6593_v8 }
  0xf5   :  { %v496_v14 = vmul.f32 %v6597_v33, %v474_v9  ;;  %v497_v54 = vadd.f32 %v495_v19, %v462_v35  ;;  %v507_v16 = vsel %vm398_vm6, %v500_v6, %v503_v27  ;;  %v509_v3 = vsel %vm4016_vm8, %v504_v34, 0.0 }
  0xf6   :  { %v540_v7 = vsel %vm539_vm10, %v538_v44, %v535_v48  ;;  %v508_v15 = vsel %vm4063_vm9, %v507_v16, 0.0  ;;  %v6598_v41 = vstv %s6594_s23  ;;  %v6599_v24 = vstv %s6595_s24  ;;  %s4234_s23 = sld [smem:[#allocation2 + $0x68]]  ;;  %s4244_s24 = sld [smem:[#allocation2 + $0x69]] }
  0xf7   :  { %v513_v17 = vmul.f32 %v6598_v41, %v509_v3  ;;  %v519_v23 = vmul.f32 %v6599_v24, %v509_v3  ;;  %v6600_v18 = vstv %s6596_s26  ;;  %v6601_v35 = vmov %v6598_v41  ;;  %s4246_s26 = sld [smem:[#allocation2 + $0x6a]] }
  0xf8   :  { %v525_v9 = vmul.f32 %v6600_v18, %v509_v3  ;;  %v512_v56 = vmul.f32 %v6601_v35, %v508_v15  ;;  %v6602_v27 = vmov %v6599_v24  ;;  %v6603_v51 = vmov %v6600_v18 }
  0xf9   :  { %v518_v6 = vmul.f32 %v6602_v27, %v508_v15  ;;  %v524_v34 = vmul.f32 %v6603_v51, %v508_v15  ;;  %v6604_v29 = vstv %s6469_s9  ;;  %v498_v28 = vadd.f32 %v496_v14, %v463_v39  ;;  %s6614_s9 = sld [smem:[#allocation61_spill]] }
  0xfa   :  { %v530_v32 = vmul.f32 %v6604_v29, %v508_v15  ;;  %v515_v2 = vadd.f32 %v513_v17, %v480_v13  ;;  %v521_v22 = vadd.f32 %v519_v23, %v486_v12  ;;  %v527_v5 = vadd.f32 %v525_v9, %v492_v11  ;;  %v609_v17 = vpop.permute.xlu1 %608 }
  0xfb   :  { %v514_v31 = vadd.f32 %v512_v56, %v479_v37  ;;  %v520_v30 = vadd.f32 %v518_v6, %v485_v0  ;;  %v526_v8 = vadd.f32 %v524_v34, %v491_v20  ;;  %v6607_v19 = vmov %v6604_v29 }
  0xfc   :  { %v531_v33 = vmul.f32 %v6607_v19, %v509_v3  ;;  %v532_v16 = vadd.f32 %v530_v32, %v497_v54  ;;  %v543_v41 = vsel %vm539_vm10, %v535_v48, %v538_v44  ;;  %v545_v15 = vsel %vm3782_vm3, %v540_v7, 0.0  ;;  %v606_v3 = vpop.permute.xlu0 %605 }
  0xfd   :  { %v575_v39 = vsel %vm539_vm10, %v574_v36, %v571_v10  ;;  %v544_v13 = vsel %vm3730_vm1, %v543_v41, 0.0  ;;  %v6608_v12 = vstv %s3527_s17  ;;  %v6609_v37 = vstv %s3529_s2  ;;  %s6625_s17 = sld [smem:[#allocation65_spill]]  ;;  %s6626_s2 = sld [smem:[#allocation66_spill]] }
  0xfe   :  { %v549_v11 = vmul.f32 %v6608_v12, %v545_v15  ;;  %v555_v0 = vmul.f32 %v6609_v37, %v545_v15  ;;  %v6610_v14 = vstv %s6605_s12  ;;  %v6611_v54 = vmov %v6608_v12  ;;  %s4256_s12 = sld [smem:[#allocation2 + $0x6b]] }
  0xff   :  { %v561_v20 = vmul.f32 %v6610_v14, %v545_v15  ;;  %v548_v24 = vmul.f32 %v6611_v54, %v544_v13  ;;  %v6612_v44 = vmov %v6609_v37  ;;  %v6613_v23 = vmov %v6610_v14  ;;  %v644_v14 = vpop.permute.xlu1 %643 }
 0x100   :  { %v554_v48 = vmul.f32 %v6612_v44, %v544_v13  ;;  %v560_v7 = vmul.f32 %v6613_v23, %v544_v13  ;;  %v6615_v18 = vstv %s6606_s5  ;;  %v533_v35 = vadd.f32 %v531_v33, %v498_v28  ;;  %s4258_s5 = sld [smem:[#allocation2 + $0x6c]] }
 0x101   :  { %v566_v9 = vmul.f32 %v6615_v18, %v544_v13  ;;  %v551_v56 = vadd.f32 %v549_v11, %v515_v2  ;;  %v557_v27 = vadd.f32 %v555_v0, %v521_v22  ;;  %v563_v6 = vadd.f32 %v561_v20, %v527_v5  ;;  %v641_v20 = vpop.permute.xlu0 %640 }
 0x102   :  { %v550_v51 = vadd.f32 %v548_v24, %v514_v31  ;;  %v556_v34 = vadd.f32 %v554_v48, %v520_v30  ;;  %v562_v29 = vadd.f32 %v560_v7, %v526_v8  ;;  %v6617_v32 = vmov %v6615_v18 }
 0x103   :  { %v567_v19 = vmul.f32 %v6617_v32, %v545_v15  ;;  %v568_v41 = vadd.f32 %v566_v9, %v532_v16  ;;  %v578_v12 = vsel %vm539_vm10, %v571_v10, %v574_v36  ;;  %v580_v13 = vsel %vm3782_vm3, %v575_v39, 0.0 }
 0x104   :  { %v610_v28 = vsel %vm539_vm10, %v609_v17, %v606_v3  ;;  %v579_v2 = vsel %vm3730_vm1, %v578_v12, 0.0  ;;  %v6618_v22 = vstv %s6614_s9  ;;  %v6619_v5 = vstv %s6471_s3  ;;  %s4223_s3 = sld [smem:[#allocation2 + $0x66]]  ;;  %s4262_s9 = sld [smem:[#allocation2 + $0x6d]] }
 0x105   :  { %v584_v33 = vmul.f32 %v6618_v22, %v580_v13  ;;  %v590_v31 = vmul.f32 %v6619_v5, %v580_v13  ;;  %v6620_v30 = vstv %s6473_s0  ;;  %v6621_v11 = vmov %v6618_v22  ;;  %s6638_s0 = sld [smem:[#allocation58_spill]] }
 0x106   :  { %v596_v8 = vmul.f32 %v6620_v30, %v580_v13  ;;  %v583_v15 = vmul.f32 %v6621_v11, %v579_v2  ;;  %v6622_v16 = vmov %v6619_v5  ;;  %v6623_v36 = vmov %v6620_v30 }
 0x107   :  { %v589_v37 = vmul.f32 %v6622_v16, %v579_v2  ;;  %v595_v10 = vmul.f32 %v6623_v36, %v579_v2  ;;  %v6624_v0 = vstv %s6616_s8  ;;  %v569_v54 = vadd.f32 %v567_v19, %v533_v35  ;;  %s4264_s8 = sld [smem:[#allocation2 + $0x6e]] }
 0x108   :  { %v601_v39 = vmul.f32 %v6624_v0, %v579_v2  ;;  %v586_v24 = vadd.f32 %v584_v33, %v551_v56  ;;  %v592_v44 = vadd.f32 %v590_v31, %v557_v27  ;;  %v598_v48 = vadd.f32 %v596_v8, %v563_v6 }
 0x109   :  { %v585_v23 = vadd.f32 %v583_v15, %v550_v51  ;;  %v591_v7 = vadd.f32 %v589_v37, %v556_v34  ;;  %v597_v18 = vadd.f32 %v595_v10, %v562_v29  ;;  %v6629_v9 = vmov %v6624_v0 }
 0x10a   :  { %v602_v32 = vmul.f32 %v6629_v9, %v580_v13  ;;  %v603_v12 = vadd.f32 %v601_v39, %v568_v41  ;;  %v613_v2 = vsel %vm539_vm10, %v606_v3, %v609_v17  ;;  %v615_v22 = vsel %vm3782_vm3, %v610_v28, 0.0 }
 0x10b   :  { %v645_v35 = vsel %vm539_vm10, %v644_v14, %v641_v20  ;;  %v614_v56 = vsel %vm3730_vm1, %v613_v2, 0.0  ;;  %v6630_v27 = vstv %s6625_s17  ;;  %v6631_v19 = vstv %s6626_s2  ;;  %s4285_s17 = sld [smem:[#allocation2 + $0x72]]  ;;  %s4297_s2 = sld [smem:[#allocation2 + $0x73]] }
 0x10c   :  { %v619_v6 = vmul.f32 %v6630_v27, %v615_v22  ;;  %v625_v51 = vmul.f32 %v6631_v19, %v615_v22  ;;  %v6632_v34 = vstv %s6627_s25  ;;  %v6633_v33 = vmov %v6630_v27  ;;  %s6659_s25 = sld [smem:[#allocation62_spill]] }
 0x10d   :  { %v631_v29 = vmul.f32 %v6632_v34, %v615_v22  ;;  %v618_v13 = vmul.f32 %v6633_v33, %v614_v56  ;;  %v6634_v5 = vmov %v6631_v19  ;;  %v6635_v31 = vmov %v6632_v34 }
 0x10e   :  { %v624_v41 = vmul.f32 %v6634_v5, %v614_v56  ;;  %v630_v17 = vmul.f32 %v6635_v31, %v614_v56  ;;  %v6636_v3 = vstv %s6628_s21  ;;  %v604_v28 = vadd.f32 %v602_v32, %v569_v54  ;;  %s4563_s21 = sld [smem:[#allocation2 + $0x79]] }
 0x10f   :  { %v636_v30 = vmul.f32 %v6636_v3, %v614_v56  ;;  %v621_v8 = vadd.f32 %v619_v6, %v586_v24  ;;  %v627_v11 = vadd.f32 %v625_v51, %v592_v44  ;;  %v6637_v15 = vmov %v6636_v3  ;;  %v4228_v44 = vpop.permute.xlu1 %805 }
 0x110   :  { %v637_v16 = vmul.f32 %v6637_v15, %v615_v22  ;;  %v620_v37 = vadd.f32 %v618_v13, %v585_v23  ;;  %v626_v36 = vadd.f32 %v624_v41, %v591_v7  ;;  %v632_v10 = vadd.f32 %v630_v17, %v597_v18  ;;  %v4230_v23 = vpop.permute.xlu0 %803 }
 0x111   :  { %v633_v0 = vadd.f32 %v631_v29, %v598_v48  ;;  %v638_v39 = vadd.f32 %v636_v30, %v603_v12  ;;  %v648_v54 = vsel %vm539_vm10, %v641_v20, %v644_v14  ;;  %v650_v24 = vsel %vm3782_vm3, %v645_v35, 0.0 }
 0x112   :  { %v639_v9 = vadd.f32 %v637_v16, %v604_v28  ;;  %v649_v48 = vsel %vm3730_vm1, %v648_v54, 0.0  ;;  %v6639_v7 = vstv %s3577_s11  ;;  %v6640_v32 = vstv %s3585_s15  ;;  %s4275_s15 = sld [smem:[#allocation2 + $0x6f]]  ;;  %s4283_s11 = sld [smem:[#allocation2 + $0x71]] }
 0x113   :  { %v654_v18 = vmul.f32 %v6639_v7, %v650_v24  ;;  %v660_v14 = vmul.f32 %v6640_v32, %v650_v24  ;;  %v6641_v20 = vstv %s6638_s0  ;;  %v6642_v2 = vmov %v6639_v7  ;;  %s4571_s0 = sld [smem:[#allocation2 + $0x7a]] }
 0x114   :  { %v666_v12 = vmul.f32 %v6641_v20, %v650_v24  ;;  %v653_v22 = vmul.f32 %v6642_v2, %v649_v48  ;;  %v6643_v35 = vmov %v6640_v32  ;;  %v6644_v27 = vmov %v6641_v20  ;;  %v840_v54 = vpop.permute.xlu0 %839 }
 0x115   :  { %v659_v56 = vmul.f32 %v6643_v35, %v649_v48  ;;  %v665_v6 = vmul.f32 %v6644_v27, %v649_v48  ;;  %v6645_v19 = vstv %s3656_s16  ;;  %v656_v34 = vadd.f32 %v654_v18, %v621_v8  ;;  %s4277_s16 = sld [smem:[#allocation2 + $0x70]] }
 0x116   :  { %v671_v51 = vmul.f32 %v6645_v19, %v649_v48  ;;  %v662_v29 = vadd.f32 %v660_v14, %v627_v11  ;;  %v668_v33 = vadd.f32 %v666_v12, %v633_v0  ;;  %v6646_v13 = vmov %v6645_v19 }
 0x117   :  { %v672_v5 = vmul.f32 %v6646_v13, %v650_v24  ;;  %v655_v41 = vadd.f32 %v653_v22, %v620_v37  ;;  %v661_v31 = vadd.f32 %v659_v56, %v626_v36  ;;  %v667_v17 = vadd.f32 %v665_v6, %v632_v10 }
 0x118   :  { %v673_v3 = vadd.f32 %v671_v51, %v638_v39  ;;  %v6647_v28 = vcombine.high %v3674_v63, %v3674_v63  ;;  %v6648_v8 = vcombine.high %v3703_v59, %v3703_v59  ;;  %v6649_v16 = vcombine.high %v3706_v50, %v3706_v50 }
 0x119   :  { %v674_v30 = vadd.f32 %v672_v5, %v639_v9  ;;  %v681_v37 = vadd.f32 %v3674_v63, %v655_v41  ;;  %v689_v36 = vadd.f32 %v3703_v59, %v661_v31  ;;  %v697_v10 = vadd.f32 %v3706_v50, %v667_v17  ;;  %v842_v9 = vpop.permute.xlu1 %841 }
 0x11a   :  { %v682_v15 = vadd.f32 %v6647_v28, %v656_v34  ;;  %v690_v11 = vadd.f32 %v6648_v8, %v662_v29  ;;  %v698_v0 = vadd.f32 %v6649_v16, %v668_v33  ;;  %v705_v39 = vadd.f32 %v3717_v46, %v673_v3 }
 0x11b   :  { %v6650_v24 = vcombine.high %v3717_v46, %v3717_v46  ;;  %v6651_v59 = vcombine.high %v3720_v45, %v3720_v45  ;;  %v6652_v48 = vcombine.high %v3735_v60, %v3735_v60  ;;  %v1008_v18 = vstv %s4223_s3  ;;  %s4578_s3 = sld [smem:[#allocation2 + $0x7b]] }
 0x11c   :  { %v713_v32 = vadd.f32 %v3720_v45, %v681_v37  ;;  %v721_v46 = vadd.f32 %v3735_v60, %v689_v36  ;;  %v6653_v14 = vcombine.high %v3738_v58, %v3738_v58  ;;  %v1014_v12 = vstv %s4232_s18  ;;  %s4587_s18 = sld [smem:[#allocation2 + $0x7c]] }
 0x11d   :  { %v706_v63 = vadd.f32 %v6650_v24, %v674_v30  ;;  %v714_v50 = vadd.f32 %v6651_v59, %v682_v15  ;;  %v722_v7 = vadd.f32 %v6652_v48, %v690_v11  ;;  %v729_v2 = vadd.f32 %v3738_v58, %v697_v10  ;;  %v877_v3 = vpop.permute.xlu1 %876  ;;  %v875_v30 = vpop.permute.xlu0 %874 }
 0x11e   :  { %v730_v20 = vadd.f32 %v6653_v14, %v698_v0  ;;  %v737_v22 = vadd.f32 %v3741_v47, %v705_v39  ;;  %v6654_v35 = vcombine.high %v3741_v47, %v3741_v47  ;;  %v1031_v27 = vstv %s4234_s23  ;;  %s4589_s23 = sld [smem:[#allocation2 + $0x7d]] }
 0x11f   :  { %v1037_v6 = vstv %s4244_s24  ;;  %v1043_v19 = vstv %s4246_s26  ;;  %v1049_v51 = vstv %s4256_s12  ;;  %v1066_v45 = vstv %s4258_s5  ;;  %s4592_s24 = sld [smem:[#allocation2 + $0x7e]]  ;;  %s4600_s26 = sld [smem:[#allocation2 + $0x7f]] }
 0x120   :  { %v738_v56 = vadd.f32 %v6654_v35, %v706_v63  ;;  %v6655_v60 = vcombine.high %v3749_v43, %v3749_v43  ;;  %v6656_v58 = vcombine.high %v3752_v42, %v3752_v42  ;;  %v1072_v33 = vstv %s4262_s9  ;;  %s4603_s12 = sld [smem:[#allocation2 + $0x80]]  ;;  %s4606_s5 = sld [smem:[#allocation2 + $0x81]] }
 0x121   :  { %v1078_v47 = vstv %s4264_s8  ;;  %v745_v13 = vadd.f32 %v3749_v43, %v713_v32  ;;  %v753_v5 = vadd.f32 %v3752_v42, %v721_v46  ;;  %v6657_v41 = vcombine.high %v3755_v53, %v3755_v53  ;;  %s4608_s9 = sld [smem:[#allocation2 + $0x82]]  ;;  %s4613_s8 = sld [smem:[#allocation2 + $0x83]] }
 0x122   :  { %v746_v34 = vadd.f32 %v6655_v60, %v714_v50  ;;  %v754_v29 = vadd.f32 %v6656_v58, %v722_v7  ;;  %v808_v17 = vsel %vm807_vm11, %v4230_v23, %v4228_v44  ;;  %v761_v28 = vadd.f32 %v3755_v53, %v729_v2  ;;  %v912_v60 = vpop.permute.xlu1 %911 }
 0x123   :  { %v762_v31 = vadd.f32 %v6657_v41, %v730_v20  ;;  %v769_v15 = vadd.f32 %v3758_v25, %v737_v22  ;;  %v6658_v43 = vcombine.high %v3758_v25, %v3758_v25  ;;  %v812_v42 = vsel %vm807_vm11, %v4228_v44, %v4230_v23 }
 0x124   :  { %v1084_v11 = vstv %s4275_s15  ;;  %v1102_v16 = vstv %s4277_s16  ;;  %v1108_v0 = vstv %s4283_s11  ;;  %v1114_v37 = vstv %s4285_s17  ;;  %s4627_s15 = sld [smem:[#allocation2 + $0x84]]  ;;  %s4631_s16 = sld [smem:[#allocation2 + $0x85]] }
 0x125   :  { %v770_v8 = vadd.f32 %v6658_v43, %v738_v56  ;;  %v6660_v53 = vcombine.high %v3774_v52, %v3774_v52  ;;  %v6661_v10 = vcombine.high %v3789_v49, %v3789_v49  ;;  %v813_v39 = vsel %vm4006_vm7, %v808_v17, 0.0  ;;  %s4633_s11 = sld [smem:[#allocation2 + $0x86]]  ;;  %s4642_s17 = sld [smem:[#allocation2 + $0x87]] }
 0x126   :  { %v1120_v44 = vstv %s4297_s2  ;;  %v777_v23 = vadd.f32 %v3774_v52, %v745_v13  ;;  %v785_v24 = vadd.f32 %v3789_v49, %v753_v5  ;;  %v6662_v63 = vcombine.high %v3825_v62, %v3825_v62  ;;  %s4645_s2 = sld [smem:[#allocation2 + $0x88]] }
 0x127   :  { %v778_v36 = vadd.f32 %v6660_v53, %v746_v34  ;;  %v786_v25 = vadd.f32 %v6661_v10, %v754_v29  ;;  %v814_v50 = vsel %vm4016_vm8, %v812_v42, 0.0  ;;  %v793_v48 = vadd.f32 %v3825_v62, %v761_v28  ;;  %v910_v34 = vpop.permute.xlu0 %909 }
 0x128   :  { %v794_v59 = vadd.f32 %v6662_v63, %v762_v31  ;;  %v801_v7 = vadd.f32 %v3828_v38, %v769_v15  ;;  %v6663_v32 = vcombine.high %v3828_v38, %v3828_v38  ;;  %v843_v46 = vsel %vm807_vm11, %v840_v54, %v842_v9 }
 0x129   :  { %v6664_v49 = vstv %s3670_s28  ;;  %v6665_v20 = vstv %s3678_s30  ;;  %v6666_v22 = vstv %s6659_s25  ;;  %v847_v56 = vsel %vm807_vm11, %v842_v9, %v840_v54  ;;  %s6680_s28 = sld [smem:[#allocation70_spill]]  ;;  %s6690_s30 = sld [smem:[#allocation72_spill]] }
 0x12a   :  { %v802_v52 = vadd.f32 %v6663_v32, %v770_v8  ;;  %v817_v14 = vmul.f32 %v6664_v49, %v813_v39  ;;  %v823_v2 = vmul.f32 %v6665_v20, %v813_v39  ;;  %v829_v35 = vmul.f32 %v6666_v22, %v813_v39  ;;  %s4647_s25 = sld [smem:[#allocation2 + $0x89]] }
 0x12b   :  { %v6667_v62 = vmov %v6664_v49  ;;  %v6668_v29 = vmov %v6665_v20  ;;  %v6669_v5 = vmov %v6666_v22  ;;  %v6670_v41 = vstv %s3686_s7  ;;  %s6679_s7 = sld [smem:[#allocation63_spill]] }
 0x12c   :  { %v818_v58 = vmul.f32 %v6667_v62, %v814_v50  ;;  %v824_v13 = vmul.f32 %v6668_v29, %v814_v50  ;;  %v830_v38 = vmul.f32 %v6669_v5, %v814_v50  ;;  %v835_v31 = vmul.f32 %v6670_v41, %v813_v39 }
 0x12d   :  { %v819_v17 = vadd.f32 %v817_v14, %v777_v23  ;;  %v825_v28 = vadd.f32 %v823_v2, %v785_v24  ;;  %v6671_v15 = vmov %v6670_v41  ;;  %v848_v9 = vsel %vm4006_vm7, %v843_v46, 0.0 }
 0x12e   :  { %v836_v43 = vmul.f32 %v6671_v15, %v814_v50  ;;  %v820_v54 = vadd.f32 %v818_v58, %v778_v36  ;;  %v826_v8 = vadd.f32 %v824_v13, %v786_v25  ;;  %v831_v42 = vadd.f32 %v829_v35, %v793_v48 }
 0x12f   :  { %v849_v53 = vsel %vm4016_vm8, %v847_v56, 0.0  ;;  %v832_v10 = vadd.f32 %v830_v38, %v794_v59  ;;  %v837_v39 = vadd.f32 %v835_v31, %v801_v7  ;;  %v878_v24 = vsel %vm807_vm11, %v875_v30, %v877_v3  ;;  %v949_v56 = vpop.permute.xlu0 %948 }
 0x130   :  { %v838_v23 = vadd.f32 %v836_v43, %v802_v52  ;;  %v6672_v63 = vstv %s3688_s19  ;;  %v6673_v32 = vstv %s3694_s1  ;;  %v6674_v49 = vstv %s3696_s27  ;;  %v951_v52 = vpop.permute.xlu1 %950  ;;  %s6686_s19 = sld [smem:[#allocation71_spill]]  ;;  %s6700_s1 = sld [smem:[#allocation73_spill]] }
 0x131   :  { %v852_v50 = vmul.f32 %v6672_v63, %v848_v9  ;;  %v858_v46 = vmul.f32 %v6673_v32, %v848_v9  ;;  %v864_v36 = vmul.f32 %v6674_v49, %v848_v9  ;;  %v882_v25 = vsel %vm807_vm11, %v877_v3, %v875_v30  ;;  %s6701_s27 = sld [smem:[#allocation74_spill]] }
 0x132   :  { %v6675_v48 = vmov %v6672_v63  ;;  %v6676_v20 = vmov %v6673_v32  ;;  %v6677_v22 = vmov %v6674_v49  ;;  %v6678_v59 = vstv %s3710_s13  ;;  %s6706_s13 = sld [smem:[#allocation75_spill]] }
 0x133   :  { %v853_v14 = vmul.f32 %v6675_v48, %v849_v53  ;;  %v859_v2 = vmul.f32 %v6676_v20, %v849_v53  ;;  %v865_v35 = vmul.f32 %v6677_v22, %v849_v53  ;;  %v870_v7 = vmul.f32 %v6678_v59, %v848_v9 }
 0x134   :  { %v854_v62 = vadd.f32 %v852_v50, %v819_v17  ;;  %v860_v58 = vadd.f32 %v858_v46, %v825_v28  ;;  %v6681_v29 = vmov %v6678_v59  ;;  %v883_v3 = vsel %vm4006_vm7, %v878_v24, 0.0  ;;  %v987_v48 = vpop.permute.xlu1 %986 }
 0x135   :  { %v871_v13 = vmul.f32 %v6681_v29, %v849_v53  ;;  %v855_v30 = vadd.f32 %v853_v14, %v820_v54  ;;  %v866_v5 = vadd.f32 %v864_v36, %v831_v42  ;;  %v884_v38 = vsel %vm4016_vm8, %v882_v25, 0.0  ;;  %v985_v14 = vpop.permute.xlu0 %984 }
 0x136   :  { %v913_v41 = vsel %vm807_vm11, %v910_v34, %v912_v60  ;;  %v861_v31 = vadd.f32 %v859_v2, %v826_v8  ;;  %v867_v15 = vadd.f32 %v865_v35, %v832_v10  ;;  %v872_v17 = vadd.f32 %v870_v7, %v837_v39 }
 0x137   :  { %v873_v43 = vadd.f32 %v871_v13, %v838_v23  ;;  %v6682_v28 = vstv %s3712_s14  ;;  %v6683_v63 = vstv %s6679_s7  ;;  %v6684_v50 = vstv %s6680_s28  ;;  %s6710_s14 = sld [smem:[#allocation76_spill]]  ;;  %s4651_s7 = sld [smem:[#allocation2 + $0x8a]] }
 0x138   :  { %v887_v9 = vmul.f32 %v6682_v28, %v883_v3  ;;  %v893_v53 = vmul.f32 %v6683_v63, %v883_v3  ;;  %v899_v32 = vmul.f32 %v6684_v50, %v883_v3  ;;  %v917_v54 = vsel %vm807_vm11, %v912_v60, %v910_v34  ;;  %s4656_s28 = sld [smem:[#allocation2 + $0x8b]] }
 0x139   :  { %v6685_v42 = vmov %v6682_v28  ;;  %v6687_v46 = vmov %v6683_v63  ;;  %v6688_v36 = vmov %v6684_v50  ;;  %v918_v10 = vsel %vm4006_vm7, %v913_v41, 0.0 }
 0x13a   :  { %v888_v24 = vmul.f32 %v6685_v42, %v884_v38  ;;  %v894_v49 = vmul.f32 %v6687_v46, %v884_v38  ;;  %v900_v8 = vmul.f32 %v6688_v36, %v884_v38  ;;  %v889_v39 = vadd.f32 %v887_v9, %v854_v62 }
 0x13b   :  { %v6689_v23 = vstv %s3744_s20  ;;  %v919_v60 = vsel %vm4016_vm8, %v917_v54, 0.0  ;;  %v953_v34 = vsel %vm6239_vm12, %v949_v56, %v951_v52  ;;  %v895_v2 = vadd.f32 %v893_v53, %v860_v58  ;;  %s4533_s20 = sld [smem:[#allocation2 + $0x75]] }
 0x13c   :  { %v905_v25 = vmul.f32 %v6689_v23, %v883_v3  ;;  %v890_v20 = vadd.f32 %v888_v24, %v855_v30  ;;  %v901_v22 = vadd.f32 %v899_v32, %v866_v5  ;;  %v6691_v35 = vmov %v6689_v23 }
 0x13d   :  { %v906_v59 = vmul.f32 %v6691_v35, %v884_v38  ;;  %v896_v7 = vadd.f32 %v894_v49, %v861_v31  ;;  %v6692_v62 = vstv %s6686_s19  ;;  %v6693_v13 = vstv %s3760_s4  ;;  %s4543_s4 = sld [smem:[#allocation2 + $0x76]]  ;;  %s4662_s19 = sld [smem:[#allocation2 + $0x8c]] }
 0x13e   :  { %v922_v29 = vmul.f32 %v6692_v62, %v918_v10  ;;  %v928_v3 = vmul.f32 %v6693_v13, %v918_v10  ;;  %v6694_v41 = vstv %s3762_s22  ;;  %v6695_v30 = vmov 0  ;;  %s4545_s22 = sld [smem:[#allocation2 + $0x77]] }
 0x13f   :  { %v934_v28 = vmul.f32 %v6694_v41, %v918_v10  ;;  %v6696_v30 = vsel %vm4442_vm14, 4294967295, %v6695_v30  ;;  %v6698_v58 = vmov %v6692_v62  ;;  %v6699_v9 = vmov %v6693_v13 }
 0x140   :  { %6697 = vst [vmem:[#allocation78_spill] sm:$0xff] %v6696_v30  ;;  %v923_v5 = vmul.f32 %v6698_v58, %v919_v60  ;;  %v929_v38 = vmul.f32 %v6699_v9, %v919_v60  ;;  %v957_v31 = vsel %vm6239_vm12, %v951_v52, %v949_v56  ;;  %v958_v63 = vsel %vm3730_vm1, %v953_v34, 0.0 }
 0x141   :  { %v902_v53 = vadd.f32 %v900_v8, %v867_v15  ;;  %v907_v50 = vadd.f32 %v905_v25, %v872_v17  ;;  %v908_v32 = vadd.f32 %v906_v59, %v873_v43  ;;  %v6702_v54 = vmov %v6694_v41  ;;  %v1022_v43 = vpop.permute.xlu1 %1021  ;;  %v1020_v25 = vpop.permute.xlu0 %1019 }
 0x142   :  { %v935_v42 = vmul.f32 %v6702_v54, %v919_v60  ;;  %v6703_v24 = vstv %s6690_s30  ;;  %v959_v23 = vsel %vm4442_vm14, %v957_v31, 0.0  ;;  %v988_v52 = vsel %vm6239_vm12, %v985_v14, %v987_v48  ;;  %s4664_s30 = sld [smem:[#allocation2 + $0x8d]] }
 0x143   :  { %v940_v46 = vmul.f32 %v6703_v24, %v918_v10  ;;  %v6704_v49 = vmov %v6703_v24  ;;  %v924_v56 = vadd.f32 %v922_v29, %v889_v39  ;;  %v930_v34 = vadd.f32 %v928_v3, %v895_v2 }
 0x144   :  { %v941_v36 = vmul.f32 %v6704_v49, %v919_v60  ;;  %v936_v15 = vadd.f32 %v934_v28, %v901_v22  ;;  %v6705_v17 = vstv %s3778_s10  ;;  %v925_v35 = vadd.f32 %v923_v5, %v890_v20  ;;  %s4561_s10 = sld [smem:[#allocation2 + $0x78]] }
 0x145   :  { %v962_v8 = vmul.f32 %v6705_v17, %v958_v63  ;;  %v931_v59 = vadd.f32 %v929_v38, %v896_v7  ;;  %v6707_v62 = vstv %s6700_s1  ;;  %v6708_v13 = vstv %s6701_s27  ;;  %s4670_s1 = sld [smem:[#allocation2 + $0x8e]]  ;;  %s4682_s27 = sld [smem:[#allocation2 + $0x8f]] }
 0x146   :  { %v968_v10 = vmul.f32 %v6707_v62, %v958_v63  ;;  %v974_v60 = vmul.f32 %v6708_v13, %v958_v63  ;;  %v6709_v41 = vmov %v6705_v17  ;;  %v6711_v9 = vmov %v6707_v62  ;;  %v1055_v17 = vpop.permute.xlu0 %1054 }
 0x147   :  { %v963_v58 = vmul.f32 %v6709_v41, %v959_v23  ;;  %v969_v39 = vmul.f32 %v6711_v9, %v959_v23  ;;  %v992_v2 = vsel %vm6239_vm12, %v987_v48, %v985_v14  ;;  %v993_v22 = vsel %vm3730_vm1, %v988_v52, 0.0 }
 0x148   :  { %v937_v29 = vadd.f32 %v935_v42, %v902_v53  ;;  %v942_v20 = vadd.f32 %v940_v46, %v907_v50  ;;  %v943_v7 = vadd.f32 %v941_v36, %v908_v32  ;;  %v6712_v3 = vmov %v6708_v13 }
 0x149   :  { %v975_v28 = vmul.f32 %v6712_v3, %v959_v23  ;;  %v964_v5 = vadd.f32 %v962_v8, %v924_v56  ;;  %v6713_v38 = vstv %s6706_s13  ;;  %v994_v54 = vsel %vm4442_vm14, %v992_v2, 0.0  ;;  %v1057_v56 = vpop.permute.xlu1 %1056  ;;  %s4684_s13 = sld [smem:[#allocation4]] }
 0x14a   :  { %v980_v31 = vmul.f32 %v6713_v38, %v958_v63  ;;  %v1023_v48 = vsel %vm6239_vm12, %v1020_v25, %v1022_v43  ;;  %v970_v14 = vadd.f32 %v968_v10, %v930_v34  ;;  %v976_v24 = vadd.f32 %v974_v60, %v936_v15 }
 0x14b   :  { %v6714_v49 = vmov %v6713_v38  ;;  %v6715_v53 = vstv %s6710_s14  ;;  %v965_v32 = vadd.f32 %v963_v58, %v925_v35  ;;  %v971_v42 = vadd.f32 %v969_v39, %v931_v59  ;;  %s4687_s14 = sld [smem:[#allocation4 + $0x1]] }
 0x14c   :  { %v981_v52 = vmul.f32 %v6714_v49, %v959_v23  ;;  %v997_v50 = vmul.f32 %v6715_v53, %v993_v22  ;;  %v6716_v46 = vstv %s3835_s29  ;;  %v1009_v63 = vmul.f32 %v1008_v18, %v993_v22  ;;  %s4531_s29 = sld [smem:[#allocation2 + $0x74]] }
 0x14d   :  { %v1003_v36 = vmul.f32 %v6716_v46, %v993_v22  ;;  %v6717_v8 = vmov %v6715_v53  ;;  %v6718_v15 = vmov %v6716_v46  ;;  %v1027_v23 = vsel %vm6239_vm12, %v1022_v43, %v1020_v25 }
 0x14e   :  { %v998_v34 = vmul.f32 %v6717_v8, %v994_v54  ;;  %v1004_v62 = vmul.f32 %v6718_v15, %v994_v54  ;;  %v1028_v35 = vsel %vm3730_vm1, %v1023_v48, 0.0  ;;  %v977_v59 = vadd.f32 %v975_v28, %v937_v29 }
 0x14f   :  { %v982_v10 = vadd.f32 %v980_v31, %v942_v20  ;;  %v1010_v13 = vmul.f32 %v1008_v18, %v994_v54  ;;  %v1015_v60 = vmul.f32 %v1014_v12, %v993_v22  ;;  %v983_v41 = vadd.f32 %v981_v52, %v943_v7 }
 0x150   :  { %v999_v58 = vadd.f32 %v997_v50, %v964_v5  ;;  %v1016_v9 = vmul.f32 %v1014_v12, %v994_v54  ;;  %v1058_v39 = vsel %vm6239_vm12, %v1055_v17, %v1057_v56  ;;  %v1005_v2 = vadd.f32 %v1003_v36, %v970_v14  ;;  %v1092_v14 = vpop.permute.xlu1 %1091 }
 0x151   :  { %v1029_v43 = vsel %vm4442_vm14, %v1027_v23, 0.0  ;;  %v1032_v25 = vmul.f32 %v1031_v27, %v1028_v35  ;;  %v1038_v29 = vmul.f32 %v1037_v6, %v1028_v35  ;;  %v1000_v20 = vadd.f32 %v998_v34, %v965_v32 }
 0x152   :  { %v1006_v18 = vadd.f32 %v1004_v62, %v971_v42  ;;  %v1011_v22 = vadd.f32 %v1009_v63, %v976_v24  ;;  %v1044_v7 = vmul.f32 %v1043_v19, %v1028_v35  ;;  %v1012_v12 = vadd.f32 %v1010_v13, %v977_v59  ;;  %v1090_v24 = vpop.permute.xlu0 %1089 }
 0x153   :  { %v1017_v3 = vadd.f32 %v1015_v60, %v982_v10  ;;  %v1062_v28 = vsel %vm6239_vm12, %v1057_v56, %v1055_v17  ;;  %v1063_v5 = vsel %vm3730_vm1, %v1058_v39, 0.0  ;;  %v1018_v38 = vadd.f32 %v1016_v9, %v983_v41 }
 0x154   :  { %v1033_v31 = vmul.f32 %v1031_v27, %v1029_v43  ;;  %v1039_v54 = vmul.f32 %v1037_v6, %v1029_v43  ;;  %v1064_v48 = vsel %vm4442_vm14, %v1062_v28, 0.0  ;;  %v1034_v49 = vadd.f32 %v1032_v25, %v999_v58  ;;  %v1128_v59 = vpop.permute.xlu1 %1127 }
 0x155   :  { %v1040_v52 = vadd.f32 %v1038_v29, %v1005_v2  ;;  %v1045_v53 = vmul.f32 %v1043_v19, %v1029_v43  ;;  %v1050_v50 = vmul.f32 %v1049_v51, %v1028_v35  ;;  %v1046_v32 = vadd.f32 %v1044_v7, %v1011_v22 }
 0x156   :  { %v1051_v27 = vmul.f32 %v1049_v51, %v1029_v43  ;;  %v1067_v42 = vmul.f32 %v1066_v45, %v1063_v5  ;;  %v1073_v6 = vmul.f32 %v1072_v33, %v1063_v5  ;;  %v1068_v46 = vmul.f32 %v1066_v45, %v1064_v48  ;;  %v1126_v10 = vpop.permute.xlu0 %1125 }
 0x157   :  { %v1074_v36 = vmul.f32 %v1072_v33, %v1064_v48  ;;  %v1079_v19 = vmul.f32 %v1078_v47, %v1063_v5  ;;  %v1080_v63 = vmul.f32 %v1078_v47, %v1064_v48  ;;  %v1035_v51 = vadd.f32 %v1033_v31, %v1000_v20 }
 0x158   :  { %v1041_v56 = vadd.f32 %v1039_v54, %v1006_v18  ;;  %v1085_v17 = vmul.f32 %v1084_v11, %v1063_v5  ;;  %v1098_v8 = vsel %vm6240_vm15, %v1092_v14, %v1090_v24  ;;  %v1047_v34 = vadd.f32 %v1045_v53, %v1012_v12 }
 0x159   :  { %v1052_v45 = vadd.f32 %v1050_v50, %v1017_v3  ;;  %v1086_v33 = vmul.f32 %v1084_v11, %v1064_v48  ;;  %v1094_v15 = vsel %vm6240_vm15, %v1090_v24, %v1092_v14  ;;  %v1053_v47 = vadd.f32 %v1051_v27, %v1018_v38  ;;  %v1163_v48 = vpop.permute.xlu1 %1162 }
 0x15a   :  { %v1069_v62 = vadd.f32 %v1067_v42, %v1034_v49  ;;  %v1075_v23 = vadd.f32 %v1073_v6, %v1040_v52  ;;  %v1100_v35 = vsel %vm945_vm13, %v1098_v8, 0.0  ;;  %v1070_v13 = vadd.f32 %v1068_v46, %v1035_v51 }
 0x15b   :  { %v1076_v60 = vadd.f32 %v1074_v36, %v1041_v56  ;;  %v1081_v41 = vadd.f32 %v1079_v19, %v1046_v32  ;;  %v1082_v58 = vadd.f32 %v1080_v63, %v1047_v34  ;;  %v1087_v11 = vadd.f32 %v1085_v17, %v1052_v45 }
 0x15c   :  { %v1103_v9 = vmul.f32 %v1102_v16, %v1094_v15  ;;  %v1109_v39 = vmul.f32 %v1108_v0, %v1094_v15  ;;  %v1115_v2 = vmul.f32 %v1114_v37, %v1094_v15  ;;  %v1088_v43 = vadd.f32 %v1086_v33, %v1053_v47 }
 0x15d   :  { %v1104_v25 = vmul.f32 %v1102_v16, %v1100_v35  ;;  %v1110_v29 = vmul.f32 %v1108_v0, %v1100_v35  ;;  %v1121_v20 = vmul.f32 %v1120_v44, %v1094_v15  ;;  %v1116_v18 = vmul.f32 %v1114_v37, %v1100_v35  ;;  %v1161_v37 = vpop.permute.xlu0 %1160 }
 0x15e   :  { %v1137_v22 = vstv %s4531_s29  ;;  %v1129_v7 = vsel %vm6240_vm15, %v1126_v10, %v1128_v59  ;;  %v1133_v12 = vsel %vm6240_vm15, %v1128_v59, %v1126_v10  ;;  %v1122_v3 = vmul.f32 %v1120_v44, %v1100_v35  ;;  %s4694_s29 = sld [smem:[#allocation4 + $0x2]] }
 0x15f   :  { %v1143_v28 = vstv %s4533_s20  ;;  %v1149_v5 = vstv %s4543_s4  ;;  %v1155_v16 = vstv %s4545_s22  ;;  %v1105_v38 = vadd.f32 %v1103_v9, %v1069_v62  ;;  %v1198_v62 = vpop.permute.xlu1 %1197  ;;  %s2978_s20 = sld [smem:[#allocation4 + $0x3]]  ;;  %s6722_s4 = smov 17  }
 0x160   :  { %v1111_v0 = vadd.f32 %v1109_v39, %v1075_v23  ;;  %v1117_v31 = vadd.f32 %v1115_v2, %v1081_v41  ;;  %v1135_v54 = vsel %vm945_vm13, %v1133_v12, 0.0  ;;  %v1106_v14 = vadd.f32 %v1104_v25, %v1070_v13  ;;  %s6723_s22 = smov 16  }
 0x161   :  { %v1112_v24 = vadd.f32 %v1110_v29, %v1076_v60  ;;  %v1123_v49 = vadd.f32 %v1121_v20, %v1087_v11  ;;  %v1138_v52 = vmul.f32 %v1137_v22, %v1129_v7  ;;  %v1118_v53 = vadd.f32 %v1116_v18, %v1082_v58  ;;  %v1196_v23 = vpop.permute.xlu0 %1195 }
 0x162   :  { %v1144_v50 = vmul.f32 %v1143_v28, %v1129_v7  ;;  %v1150_v44 = vmul.f32 %v1149_v5, %v1129_v7  ;;  %v1156_v32 = vmul.f32 %v1155_v16, %v1129_v7  ;;  %v1124_v27 = vadd.f32 %v1122_v3, %v1088_v43 }
 0x163   :  { %v1139_v42 = vmul.f32 %v1137_v22, %v1135_v54  ;;  %v1145_v6 = vmul.f32 %v1143_v28, %v1135_v54  ;;  %v1168_v46 = vsel %vm6240_vm15, %v1163_v48, %v1161_v37  ;;  %v1151_v36 = vmul.f32 %v1149_v5, %v1135_v54 }
 0x164   :  { %v1172_v19 = vstv %s4561_s10  ;;  %v1178_v63 = vstv %s4563_s21  ;;  %v1164_v51 = vsel %vm6240_vm15, %v1161_v37, %v1163_v48  ;;  %v1140_v56 = vadd.f32 %v1138_v52, %v1105_v38  ;;  %v1235_v38 = vpop.permute.xlu1 %1234  ;;  %s6724_s10 = smov 15   ;;  %s6725_s21 = smov 1  }
 0x165   :  { %v1157_v17 = vmul.f32 %v1155_v16, %v1135_v54  ;;  %v1184_v8 = vstv %s4571_s0  ;;  %v1170_v34 = vsel %vm945_vm13, %v1168_v46, 0.0  ;;  %v1146_v45 = vadd.f32 %v1144_v50, %v1111_v0  ;;  %v1233_v0 = vpop.permute.xlu0 %1232  ;;  %s4778_s0 = sld [smem:[#allocation6 + $0x40]] }
 0x166   :  { %v1152_v33 = vadd.f32 %v1150_v44, %v1117_v31  ;;  %v1158_v15 = vadd.f32 %v1156_v32, %v1123_v49  ;;  %v1190_v47 = vstv %s4578_s3  ;;  %v1141_v35 = vadd.f32 %v1139_v42, %v1106_v14  ;;  %s4780_s3 = sld [smem:[#allocation6 + $0x41]] }
 0x167   :  { %v1147_v59 = vadd.f32 %v1145_v6, %v1112_v24  ;;  %v1173_v10 = vmul.f32 %v1172_v19, %v1164_v51  ;;  %v1179_v13 = vmul.f32 %v1178_v63, %v1164_v51  ;;  %v1153_v60 = vadd.f32 %v1151_v36, %v1118_v53 }
 0x168   :  { %v1174_v41 = vmul.f32 %v1172_v19, %v1170_v34  ;;  %v1180_v58 = vmul.f32 %v1178_v63, %v1170_v34  ;;  %v1185_v11 = vmul.f32 %v1184_v8, %v1164_v51  ;;  %v1159_v9 = vadd.f32 %v1157_v17, %v1124_v27 }
 0x169   :  { %v1186_v39 = vmul.f32 %v1184_v8, %v1170_v34  ;;  %v1191_v2 = vmul.f32 %v1190_v47, %v1164_v51  ;;  %v1203_v43 = vsel %vm6240_vm15, %v1198_v62, %v1196_v23  ;;  %v1192_v25 = vmul.f32 %v1190_v47, %v1170_v34 }
 0x16a   :  { %v1207_v29 = vstv %s4587_s18  ;;  %v1213_v20 = vstv %s4589_s23  ;;  %v1199_v18 = vsel %vm6240_vm15, %v1196_v23, %v1198_v62  ;;  %v1175_v22 = vadd.f32 %v1173_v10, %v1140_v56  ;;  %vm4623_vm15 = vmand %vm945_vm13, %vm4016_vm8  ;;  %s4782_s18 = sld [smem:[#allocation6 + $0x42]]  ;;  %s4784_s23 = sld [smem:[#allocation6 + $0x43]] }
 0x16b   :  { %v1181_v7 = vadd.f32 %v1179_v13, %v1146_v45  ;;  %v1219_v12 = vstv %s4592_s24  ;;  %v1205_v3 = vsel %vm945_vm13, %v1203_v43, 0.0  ;;  %v1176_v28 = vadd.f32 %v1174_v41, %v1141_v35  ;;  %s4786_s24 = sld [smem:[#allocation6 + $0x44]] }
 0x16c   :  { %v1182_v5 = vadd.f32 %v1180_v58, %v1147_v59  ;;  %v1187_v16 = vadd.f32 %v1185_v11, %v1152_v33  ;;  %vm1236_vm12 = vcmask 908288   ;;  %v1188_v31 = vadd.f32 %v1186_v39, %v1153_v60  ;;  %v1271_v33 = vpop.permute.xlu1 %1270 }
 0x16d   :  { %v1225_v54 = vstv %s4600_s26  ;;  %v1208_v48 = vmul.f32 %v1207_v29, %v1199_v18  ;;  %v1214_v37 = vmul.f32 %v1213_v20, %v1199_v18  ;;  %v6719_v14 = vmov 0  ;;  %s4788_s26 = sld [smem:[#allocation6 + $0x45]] }
 0x16e   :  { %v6720_v14 = vsel %vm4623_vm15, 4294967295, %v6719_v14  ;;  %v1193_v24 = vadd.f32 %v1191_v2, %v1158_v15  ;;  %v1194_v49 = vadd.f32 %v1192_v25, %v1159_v9  ;;  %v1209_v52 = vmul.f32 %v1207_v29, %v1205_v3  ;;  %v1269_v15 = vpop.permute.xlu0 %1268 }
 0x16f   :  { %6721 = vst [vmem:[#allocation79_spill] sm:$0xff] %v6720_v14  ;;  %v1220_v53 = vmul.f32 %v1219_v12, %v1199_v18  ;;  %v1215_v50 = vmul.f32 %v1213_v20, %v1205_v3  ;;  %v1221_v44 = vmul.f32 %v1219_v12, %v1205_v3  ;;  %v1237_v32 = vsel %vm1236_vm12, %v1233_v0, %v1235_v38 }
 0x170   :  { %v1241_v27 = vsel %vm1236_vm12, %v1235_v38, %v1233_v0  ;;  %v1226_v42 = vmul.f32 %v1225_v54, %v1199_v18  ;;  %v1245_v6 = vstv %s4603_s12  ;;  %v1242_v46 = vsel %vm4006_vm7, %v1237_v32, 0.0  ;;  %s4794_s12 = sld [smem:[#allocation6 + $0x46]] }
 0x171   :  { %v1243_v36 = vsel %vm4623_vm15, %v1241_v27, 0.0  ;;  %v1210_v19 = vadd.f32 %v1208_v48, %v1175_v22  ;;  %v1216_v63 = vadd.f32 %v1214_v37, %v1181_v7  ;;  %v1251_v51 = vstv %s4606_s5  ;;  %s4796_s5 = sld [smem:[#allocation6 + $0x47]] }
 0x172   :  { %v1257_v56 = vstv %s4608_s9  ;;  %v1211_v17 = vadd.f32 %v1209_v52, %v1176_v28  ;;  %v1222_v8 = vadd.f32 %v1220_v53, %v1187_v16  ;;  %v1227_v34 = vmul.f32 %v1225_v54, %v1205_v3  ;;  %v1304_v16 = vpop.permute.xlu0 %1303  ;;  %s4798_s9 = sld [smem:[#allocation6 + $0x48]] }
 0x173   :  { %v1263_v45 = vstv %s4613_s8  ;;  %v1217_v47 = vadd.f32 %v1215_v50, %v1182_v5  ;;  %v1223_v62 = vadd.f32 %v1221_v44, %v1188_v31  ;;  %v1246_v23 = vmul.f32 %v1245_v6, %v1242_v46  ;;  %v1306_v5 = vpop.permute.xlu1 %1305  ;;  %s4800_s8 = sld [smem:[#allocation6 + $0x49]] }
 0x174   :  { %v1247_v35 = vmul.f32 %v1245_v6, %v1243_v36  ;;  %v1252_v59 = vmul.f32 %v1251_v51, %v1242_v46  ;;  %v1253_v10 = vmul.f32 %v1251_v51, %v1243_v36  ;;  %v1258_v13 = vmul.f32 %v1257_v56, %v1242_v46 }
 0x175   :  { %v1259_v60 = vmul.f32 %v1257_v56, %v1243_v36  ;;  %v1264_v41 = vmul.f32 %v1263_v45, %v1242_v46  ;;  %v1265_v58 = vmul.f32 %v1263_v45, %v1243_v36  ;;  %v1272_v11 = vsel %vm1236_vm12, %v1269_v15, %v1271_v33 }
 0x176   :  { %v1276_v9 = vsel %vm1236_vm12, %v1271_v33, %v1269_v15  ;;  %v1228_v39 = vadd.f32 %v1226_v42, %v1193_v24  ;;  %v1229_v2 = vadd.f32 %v1227_v34, %v1194_v49  ;;  %v1280_v43 = vstv %s4627_s15  ;;  %6726 = sst [smem:[#allocation12_spill]] %s4794_s12  ;;  %s4802_s15 = sld [smem:[#allocation6 + $0x4a]] }
 0x177   :  { %v1277_v25 = vsel %vm4006_vm7, %v1272_v11, 0.0  ;;  %v1248_v29 = vadd.f32 %v1246_v23, %v1210_v19  ;;  %v1286_v20 = vstv %s4631_s16  ;;  %v1292_v18 = vstv %s4633_s11  ;;  %6727 = sst [smem:[#allocation13_spill]] %s4796_s5  ;;  %s4804_s16 = sld [smem:[#allocation6 + $0x4b]] }
 0x178   :  { %v1278_v22 = vsel %vm4623_vm15, %v1276_v9, 0.0  ;;  %v1249_v7 = vadd.f32 %v1247_v35, %v1211_v17  ;;  %v1254_v12 = vadd.f32 %v1252_v59, %v1216_v63  ;;  %v1255_v3 = vadd.f32 %v1253_v10, %v1217_v47  ;;  %v1341_v47 = vpop.permute.xlu1 %1340  ;;  %6728 = sst [smem:[#allocation14_spill]] %s4798_s9  ;;  %s4806_s11 = sld [smem:[#allocation6 + $0x4c]] }
 0x179   :  { %v1260_v28 = vadd.f32 %v1258_v13, %v1222_v8  ;;  %v1261_v38 = vadd.f32 %v1259_v60, %v1223_v62  ;;  %v4666_v0 = vadd.f32 %v1264_v41, %v1228_v39  ;;  %v4668_v31 = vadd.f32 %v1265_v58, %v1229_v2  ;;  %v1339_v62 = vpop.permute.xlu0 %1338  ;;  %6729 = sst [smem:[#allocation15_spill]] %s4800_s8  ;;  %s4866_s8 = sld [smem:[#allocation6 + $0x14]] }
 0x17a   :  { %v1281_v54 = vmul.f32 %v1280_v43, %v1277_v25  ;;  %v1298_v48 = vstv %s4642_s17  ;;  %v1282_v37 = vmul.f32 %v1280_v43, %v1278_v22  ;;  %v1315_v24 = vstv %s4645_s2  ;;  %s4808_s17 = sld [smem:[#allocation6 + $0x4d]]  ;;  %s4814_s2 = sld [smem:[#allocation6 + $0x4e]] }
 0x17b   :  { %v1321_v49 = vstv %s4647_s25  ;;  %v1287_v52 = vmul.f32 %v1286_v20, %v1277_v25  ;;  %v1288_v53 = vmul.f32 %v1286_v20, %v1278_v22  ;;  %v1307_v50 = vsel %vm1236_vm12, %v1304_v16, %v1306_v5  ;;  %s4816_s25 = sld [smem:[#allocation6 + $0x4f]]  ;;  %s4868_s9 = sld [smem:[#allocation6 + $0x15]] }
 0x17c   :  { %v1311_v44 = vsel %vm1236_vm12, %v1306_v5, %v1304_v16  ;;  %v1293_v32 = vmul.f32 %v1292_v18, %v1277_v25  ;;  %v1294_v27 = vmul.f32 %v1292_v18, %v1278_v22  ;;  %v1312_v42 = vsel %vm4006_vm7, %v1307_v50, 0.0  ;;  %6730 = sst [smem:[#allocation16_spill]] %s4802_s15  ;;  %s4864_s15 = sld [smem:[#allocation6 + $0x13]] }
 0x17d   :  { %v1313_v6 = vsel %vm4623_vm15, %v1311_v44, 0.0  ;;  %v1283_v46 = vadd.f32 %v1281_v54, %v1248_v29  ;;  %v1299_v36 = vmul.f32 %v1298_v48, %v1277_v25  ;;  %v1300_v19 = vmul.f32 %v1298_v48, %v1278_v22  ;;  %6731 = sst [smem:[#allocation17_spill]] %s4804_s16  ;;  %s4862_s16 = sld [smem:[#allocation6 + $0x12]] }
 0x17e   :  { %v1327_v63 = vstv %s4651_s7  ;;  %v1284_v51 = vadd.f32 %v1282_v37, %v1249_v7  ;;  %v1333_v56 = vstv %s4656_s28  ;;  %v1316_v17 = vmul.f32 %v1315_v24, %v1312_v42  ;;  %6732 = sst [smem:[#allocation18_spill]] %s4806_s11  ;;  %s4818_s7 = sld [smem:[#allocation6]] }
 0x17f   :  { %v1317_v8 = vmul.f32 %v1315_v24, %v1313_v6  ;;  %v1289_v34 = vadd.f32 %v1287_v52, %v1254_v12  ;;  %v1290_v45 = vadd.f32 %v1288_v53, %v1255_v3  ;;  %v1322_v33 = vmul.f32 %v1321_v49, %v1312_v42  ;;  %s4820_s28 = sld [smem:[#allocation6 + $0x1]]  ;;  %6757 = sst [smem:[#allocation42_spill]] %s4866_s8 }
 0x180   :  { %v1323_v15 = vmul.f32 %v1321_v49, %v1313_v6  ;;  %v1295_v23 = vadd.f32 %v1293_v32, %v1260_v28  ;;  %v1296_v35 = vadd.f32 %v1294_v27, %v1261_v38  ;;  %v1350_v59 = vstv %s4662_s19  ;;  %6733 = sst [smem:[#allocation19_spill]] %s4808_s17  ;;  %s4822_s19 = sld [smem:[#allocation6 + $0x2]] }
 0x181   :  { %v1356_v10 = vstv %s4664_s30  ;;  %v1328_v13 = vmul.f32 %v1327_v63, %v1312_v42  ;;  %v1329_v60 = vmul.f32 %v1327_v63, %v1313_v6  ;;  %v1334_v41 = vmul.f32 %v1333_v56, %v1312_v42  ;;  %6734 = sst [smem:[#allocation20_spill]] %s4814_s2  ;;  %s4824_s30 = sld [smem:[#allocation6 + $0x3]] }
 0x182   :  { %v1362_v58 = vstv %s4670_s1  ;;  %v1318_v11 = vadd.f32 %v1316_v17, %v1283_v46  ;;  %v1319_v9 = vadd.f32 %v1317_v8, %v1284_v51  ;;  %v1342_v39 = vsel %vm1236_vm12, %v1339_v62, %v1341_v47  ;;  %6735 = sst [smem:[#allocation21_spill]] %s4816_s25  ;;  %s4826_s1 = sld [smem:[#allocation6 + $0x4]] }
 0x183   :  { %v1346_v2 = vsel %vm1236_vm12, %v1341_v47, %v1339_v62  ;;  %v1324_v43 = vadd.f32 %v1322_v33, %v1289_v34  ;;  %v1325_v25 = vadd.f32 %v1323_v15, %v1290_v45  ;;  %v1347_v29 = vsel %vm4006_vm7, %v1342_v39, 0.0  ;;  %s4854_s25 = sld [smem:[#allocation6 + $0xe]]  ;;  %s4856_s2 = sld [smem:[#allocation6 + $0xf]] }
 0x184   :  { %v1348_v20 = vsel %vm4623_vm15, %v1346_v2, 0.0  ;;  %v1351_v18 = vmul.f32 %v1350_v59, %v1347_v29  ;;  %v1357_v7 = vmul.f32 %v1356_v10, %v1347_v29  ;;  %v1368_v3 = vstv %s4682_s27  ;;  %6736 = sst [smem:[#allocation22_spill]] %s4818_s7  ;;  %s4828_s27 = sld [smem:[#allocation6 + $0x5]] }
 0x185   :  { %v1352_v22 = vmul.f32 %v1350_v59, %v1348_v20  ;;  %v1358_v12 = vmul.f32 %v1356_v10, %v1348_v20  ;;  %v1374_v28 = vstv %s4684_s13  ;;  %v1363_v5 = vmul.f32 %v1362_v58, %v1347_v29  ;;  %6737 = sst [smem:[#allocation23_spill]] %s4820_s28  ;;  %s6742_s13 = smov 127  }
 0x186   :  { %v1364_v16 = vmul.f32 %v1362_v58, %v1348_v20  ;;  %v1353_v38 = vadd.f32 %v1351_v18, %v1318_v11  ;;  %v1359_v48 = vadd.f32 %v1357_v7, %v1324_v43  ;;  %v1330_v24 = vadd.f32 %v1328_v13, %v1295_v23  ;;  %6738 = sst [smem:[#allocation24_spill]] %s4822_s19  ;;  %s4858_s17 = sld [smem:[#allocation6 + $0x10]] }
 0x187   :  { %v1354_v54 = vadd.f32 %v1352_v22, %v1319_v9  ;;  %v1360_v37 = vadd.f32 %v1358_v12, %v1325_v25  ;;  %v1331_v49 = vadd.f32 %v1329_v60, %v1296_v35  ;;  %v1335_v52 = vmul.f32 %v1333_v56, %v1313_v6  ;;  %6739 = sst [smem:[#allocation25_spill]] %s4824_s30  ;;  %s4860_s11 = sld [smem:[#allocation6 + $0x11]] }
 0x188   :  { %v1378_v53 = vstv %s4687_s14  ;;  %v1301_v50 = vadd.f32 %v1299_v36, %v4666_v0  ;;  %v1302_v44 = vadd.f32 %v1300_v19, %v4668_v31  ;;  %v1375_v32 = vadd.f32 %v1374_v28, %v1353_v38  ;;  %6740 = sst [smem:[#allocation26_spill]] %s4826_s1  ;;  %s4882_s8 = sld [smem:[#allocation6 + $0x1a]] }
 0x189   :  { %v1376_v27 = vadd.f32 %v1374_v28, %v1354_v54  ;;  %v1365_v42 = vadd.f32 %v1363_v5, %v1330_v24  ;;  %v1366_v46 = vadd.f32 %v1364_v16, %v1331_v49  ;;  %v1369_v63 = vmul.f32 %v1368_v3, %v1347_v29  ;;  %s4834_s14 = sld [smem:[#allocation6 + $0x6]]  ;;  %6751 = sst [smem:[#allocation36_spill]] %s4854_s25 }
 0x18a   :  { %v1370_v51 = vmul.f32 %v1368_v3, %v1348_v20  ;;  %v1379_v17 = vadd.f32 %v1378_v53, %v1359_v48  ;;  %v1380_v8 = vadd.f32 %v1378_v53, %v1360_v37  ;;  %v4705_v34 = vmax.f32 %v1375_v32, 0.0  ;;  %6741 = sst [smem:[#allocation27_spill]] %s4828_s27  ;;  %s4874_s5 = sld [smem:[#allocation6 + $0x16]] }
 0x18b   :  { %v4707_v45 = vmax.f32 %v1376_v27, 0.0  ;;  %v1336_v6 = vadd.f32 %v1334_v41, %v1301_v50  ;;  %v1337_v56 = vadd.f32 %v1335_v52, %v1302_v44  ;;  %v1382_v33 = vstv %s4694_s29  ;;  %s4836_s29 = sld [smem:[#allocation6 + $0x7]]  ;;  %6752 = sst [smem:[#allocation37_spill]] %s4856_s2 }
 0x18c   :  { %1402 = vrot.lane.b32.xlu1 %v4705_v34, %s6722_s4  ;;  %v1383_v36 = vadd.f32 %v1382_v33, %v1365_v42  ;;  %v1384_v19 = vadd.f32 %v1382_v33, %v1366_v46  ;;  %v4714_v15 = vmax.f32 %v1379_v17, 0.0  ;;  %v4716_v47 = vmax.f32 %v1380_v8, 0.0  ;;  %6753 = sst [smem:[#allocation38_spill]] %s4858_s17  ;;  %s4876_s17 = sld [smem:[#allocation6 + $0x17]] }
 0x18d   :  { %1398 = vrot.lane.b32.xlu0 %v4707_v45, %s6722_s4  ;;  %v1371_v0 = vadd.f32 %v1369_v63, %v1336_v6  ;;  %v1372_v31 = vadd.f32 %v1370_v51, %v1337_v56  ;;  %v1386_v62 = vstv %s2978_s20  ;;  %s4838_s20 = sld [smem:[#allocation6 + $0x8]]  ;;  %6754 = sst [smem:[#allocation39_spill]] %s4860_s11  ;;  %v1411_v41 = vstv %s4818_s7 }
 0x18e   :  { %v4722_v59 = vmax.f32 %v1383_v36, 0.0  ;;  %v4724_v10 = vmax.f32 %v1384_v19, 0.0  ;;  %6755 = sst [smem:[#allocation40_spill]] %s4862_s16  ;;  %s4878_s11 = sld [smem:[#allocation6 + $0x18]]  ;;  %v1417_v58 = vstv %s4820_s28  ;;  %v1423_v11 = vstv %s4822_s19 }
 0x18f   :  { %v1387_v23 = vadd.f32 %v1386_v62, %v1371_v0  ;;  %v1388_v35 = vadd.f32 %v1386_v62, %v1372_v31  ;;  %6743 = sst [smem:[#allocation28_spill]] %s4834_s14  ;;  %s4886_s16 = sld [smem:[#allocation6 + $0x1c]]  ;;  %v1966_v29 = vstv %s4778_s0  ;;  %v1972_v7 = vstv %s4780_s3 }
 0x190   :  { %1439 = vrot.lane.b32.xlu1 %v4714_v15, %s6722_s4  ;;  %6756 = sst [smem:[#allocation41_spill]] %s4864_s15  ;;  %s4880_s15 = sld [smem:[#allocation6 + $0x19]]  ;;  %v1978_v28 = vstv %s4782_s18  ;;  %v1984_v5 = vstv %s4784_s23  ;;  %v4957_v38 = vmul.f32 %v1966_v29, %v4707_v45  ;;  %v1990_v54 = vstv %s4786_s24 }
 0x191   :  { %1435 = vrot.lane.b32.xlu0 %v4716_v47, %s6722_s4  ;;  %v4730_v13 = vmax.f32 %v1387_v23, 0.0  ;;  %v4732_v60 = vmax.f32 %v1388_v35, 0.0  ;;  %6744 = sst [smem:[#allocation29_spill]] %s4836_s29  ;;  %s4888_s12 = sld [smem:[#allocation6 + $0x1d]]  ;;  %v4966_v37 = vmul.f32 %v1972_v7, %v4707_v45  ;;  %v1996_v24 = vstv %s4788_s26 }
 0x192   :  { %6758 = sst [smem:[#allocation43_spill]] %s4868_s9  ;;  %s4884_s9 = sld [smem:[#allocation6 + $0x1b]]  ;;  %v4970_v49 = vmul.f32 %v1966_v29, %v4705_v34  ;;  %v4978_v53 = vmul.f32 %v1978_v28, %v4707_v45  ;;  %v4981_v50 = vmul.f32 %v1984_v5, %v4707_v45  ;;  %v4990_v27 = vmul.f32 %v1990_v54, %v4714_v15 }
 0x193   :  { %6745 = sst [smem:[#allocation30_spill]] %s4838_s20  ;;  %s4919_s28 = sld [smem:[#allocation6 + $0x26]]  ;;  %v4993_v42 = vmul.f32 %v1990_v54, %v4716_v47  ;;  %v5006_v51 = vmul.f32 %v1996_v24, %v4714_v15  ;;  %v5009_v17 = vmul.f32 %v1996_v24, %v4716_v47  ;;  %v5036_v62 = vmul.f32 %v1972_v7, %v4705_v34 }
 0x194   :  { %1476 = vrot.lane.b32.xlu1 %v4722_v59, %s6722_s4  ;;  %6759 = sst [smem:[#allocation44_spill]] %s4874_s5  ;;  %s4921_s19 = sld [smem:[#allocation6 + $0x27]]  ;;  %v5043_v23 = vmul.f32 %v1978_v28, %v4705_v34  ;;  %v5046_v35 = vmul.f32 %v1984_v5, %v4705_v34 }
 0x195   :  { %1472 = vrot.lane.b32.xlu0 %v4724_v10, %s6722_s4  ;;  %6760 = sst [smem:[#allocation45_spill]] %s4876_s17  ;;  %s4896_s17 = sld [smem:[#allocation6 + $0x1f]] }
 0x196   :  { %6761 = sst [smem:[#allocation46_spill]] %s4878_s11  ;;  %s4894_s11 = sld [smem:[#allocation6 + $0x1e]] }
 0x197   :  { %6762 = sst [smem:[#allocation47_spill]] %s4880_s15  ;;  %s4926_s7 = sld [smem:[#allocation6 + $0x28]] }
 0x198   :  { %1513 = vrot.lane.b32.xlu1 %v4730_v13, %s6722_s4  ;;  %6763 = sst [smem:[#allocation48_spill]] %s4882_s8  ;;  %s4898_s8 = sld [smem:[#allocation6 + $0x20]] }
 0x199   :  { %1509 = vrot.lane.b32.xlu0 %v4732_v60, %s6722_s4  ;;  %s4840_s4 = sld [smem:[#allocation6 + $0x9]]  ;;  %6764 = sst [smem:[#allocation49_spill]] %s4884_s9 }
 0x19a   :  { %6765 = sst [smem:[#allocation50_spill]] %s4886_s16  ;;  %s4900_s9 = sld [smem:[#allocation6 + $0x21]] }
 0x19b   :  { %6766 = sst [smem:[#allocation51_spill]] %s4888_s12  ;;  %s4902_s12 = sld [smem:[#allocation6 + $0x22]] }
 0x19c   :  { %1548 = vrot.lane.b32.xlu1 %v4705_v34, %s6723_s22  ;;  %6767 = sst [smem:[#allocation52_spill]] %s4894_s11  ;;  %s4904_s16 = sld [smem:[#allocation6 + $0x23]] }
 0x19d   :  { %1545 = vrot.lane.b32.xlu0 %v4707_v45, %s6723_s22  ;;  %6768 = sst [smem:[#allocation53_spill]] %s4896_s17  ;;  %s4911_s17 = sld [smem:[#allocation6 + $0x25]] }
 0x19e   :  { %6769 = sst [smem:[#allocation54_spill]] %s4898_s8  ;;  %s6775_s8 = smov 113  }
 0x19f   :  { %6746 = sst [smem:[#allocation31_spill]] %s4840_s4  ;;  %s4934_s1 = sld [smem:[#allocation6 + $0x2a]] }
 0x1a0   :  { %1583 = vrot.lane.b32.xlu1 %v4714_v15, %s6723_s22  ;;  %6770 = sst [smem:[#allocation55_spill]] %s4900_s9  ;;  %s4941_s29 = sld [smem:[#allocation6 + $0x2c]] }
 0x1a1   :  { %1580 = vrot.lane.b32.xlu0 %v4716_v47, %s6723_s22  ;;  %6771 = sst [smem:[#allocation56_spill]] %s4902_s12  ;;  %s4936_s30 = sld [smem:[#allocation6 + $0x2b]] }
 0x1a2   :  { %6772 = sst [smem:[#allocation57_spill]] %s4904_s16  ;;  %s6784_s0 = sld [smem:[#allocation12_spill]] }
 0x1a3   :  { %6774 = sst [smem:[#allocation60_spill]] %s4911_s17  ;;  %s4928_s17 = sld [smem:[#allocation6 + $0x29]] }
 0x1a4   :  { %1618 = vrot.lane.b32.xlu1 %v4722_v59, %s6723_s22  ;;  %6776 = sst [smem:[#allocation61_spill]] %s4919_s28  ;;  %s4943_s14 = sld [smem:[#allocation6 + $0x2d]] }
 0x1a5   :  { %1615 = vrot.lane.b32.xlu0 %v4724_v10, %s6723_s22  ;;  %6777 = sst [smem:[#allocation64_spill]] %s4921_s19  ;;  %s4961_s18 = sld [smem:[#allocation6 + $0x30]] }
 0x1a6   :  { %6778 = sst [smem:[#allocation65_spill]] %s4926_s7  ;;  %s6789_s23 = sld [smem:[#allocation13_spill]] }
 0x1a7   :  { %6780 = sst [smem:[#allocation67_spill]] %s4934_s1  ;;  %s4973_s4 = sld [smem:[#allocation6 + $0x32]] }
 0x1a8   :  { %1653 = vrot.lane.b32.xlu1 %v4730_v13, %s6723_s22  ;;  %6781 = sst [smem:[#allocation68_spill]] %s4936_s30  ;;  %s4975_s20 = sld [smem:[#allocation6 + $0x33]]  ;;  %v2002_v44 = vstv %s6784_s0 }
 0x1a9   :  { %1650 = vrot.lane.b32.xlu0 %v4732_v60, %s6723_s22  ;;  %s4842_s22 = sld [smem:[#allocation6 + $0xa]]  ;;  %6779 = sst [smem:[#allocation66_spill]] %s4928_s17  ;;  %v5017_v6 = vmul.f32 %v2002_v44, %v4714_v15  ;;  %v5020_v56 = vmul.f32 %v2002_v44, %v4716_v47 }
 0x1aa   :  { %6782 = sst [smem:[#allocation58_spill]] %s4941_s29  ;;  %s6794_s24 = sld [smem:[#allocation14_spill]] }
 0x1ab   :  { %6783 = sst [smem:[#allocation62_spill]] %s4943_s14  ;;  %s4985_s25 = sld [smem:[#allocation6 + $0x34]] }
 0x1ac   :  { %1688 = vrot.lane.b32.xlu1 %v4705_v34, %s6724_s10  ;;  %6788 = sst [smem:[#allocation71_spill]] %s4961_s18  ;;  %s4987_s26 = sld [smem:[#allocation6 + $0x35]]  ;;  %v2008_v46 = vstv %s6789_s23 }
 0x1ad   :  { %1685 = vrot.lane.b32.xlu0 %v4707_v45, %s6724_s10  ;;  %6792 = sst [smem:[#allocation73_spill]] %s4973_s4  ;;  %s6797_s27 = sld [smem:[#allocation15_spill]]  ;;  %v5030_v36 = vmul.f32 %v2008_v46, %v4714_v15  ;;  %v5033_v19 = vmul.f32 %v2008_v46, %v4716_v47 }
 0x1ae   :  { %6793 = sst [smem:[#allocation74_spill]] %s4975_s20  ;;  %s6798_s2 = sld [smem:[#allocation16_spill]] }
 0x1af   :  { %6747 = sst [smem:[#allocation32_spill]] %s4842_s22  ;;  %s4952_s22 = sld [smem:[#allocation6 + $0x2e]] }
 0x1b0   :  { %1723 = vrot.lane.b32.xlu1 %v4714_v15, %s6724_s10  ;;  %s5001_s0 = sld [smem:[#allocation6 + $0x36]]  ;;  %s5003_s3 = sld [smem:[#allocation6 + $0x37]]  ;;  %v2014_v8 = vstv %s6794_s24 }
 0x1b1   :  { %1720 = vrot.lane.b32.xlu0 %v4716_v47, %s6724_s10  ;;  %6795 = sst [smem:[#allocation75_spill]] %s4985_s25  ;;  %s5014_s23 = sld [smem:[#allocation6 + $0x39]]  ;;  %v5049_v29 = vmul.f32 %v2014_v8, %v4722_v59  ;;  %v5052_v54 = vmul.f32 %v2014_v8, %v4724_v10 }
 0x1b2   :  { %6796 = sst [smem:[#allocation76_spill]] %s4987_s26  ;;  %s5012_s26 = sld [smem:[#allocation6 + $0x38]] }
 0x1b3   :  { %v2020_v33 = vstv %s6797_s27  ;;  %s5040_s27 = sld [smem:[#allocation6 + $0x3d]]  ;;  %s6819_s4 = sld [smem:[#allocation20_spill]] }
 0x1b4   :  { %1758 = vrot.lane.b32.xlu1 %v4722_v59, %s6724_s10  ;;  %v2026_v0 = vstv %s6798_s2  ;;  %s6811_s2 = sld [smem:[#allocation17_spill]]  ;;  %v5064_v28 = vmul.f32 %v2020_v33, %v4722_v59  ;;  %v5067_v5 = vmul.f32 %v2020_v33, %v4724_v10  ;;  %s5086_s18 = sld [smem:[#allocation6 + $0x52]] }
 0x1b5   :  { %1755 = vrot.lane.b32.xlu0 %v4724_v10, %s6724_s10  ;;  %6785 = sst [smem:[#allocation63_spill]] %s4952_s22  ;;  %v5070_v24 = vmul.f32 %v2026_v0, %v4722_v59  ;;  %v5075_v8 = vmul.f32 %v2026_v0, %v4724_v10  ;;  %s5094_s24 = sld [smem:[#allocation6 + $0x54]] }
 0x1b6   :  { %6800 = sst [smem:[#allocation12_spill]] %s5001_s0  ;;  %s5027_s0 = sld [smem:[#allocation6 + $0x3b]]  ;;  %6818 = vst [vmem:[#allocation83_spill] sm:$0xff] %v5064_v28 }
 0x1b7   :  { %6801 = sst [smem:[#allocation13_spill]] %s5003_s3  ;;  %s5025_s3 = sld [smem:[#allocation6 + $0x3a]]  ;;  %6820 = vst [vmem:[#allocation84_spill] sm:$0xff] %v5070_v24 }
 0x1b8   :  { %1793 = vrot.lane.b32.xlu1 %v4730_v13, %s6724_s10  ;;  %6802 = sst [smem:[#allocation14_spill]] %s5012_s26  ;;  %s5038_s26 = sld [smem:[#allocation6 + $0x3c]] }
 0x1b9   :  { %1790 = vrot.lane.b32.xlu0 %v4732_v60, %s6724_s10  ;;  %s4844_s10 = sld [smem:[#allocation6 + $0xb]]  ;;  %6810 = sst [smem:[#allocation82_spill]] %s5040_s27  ;;  %v2050_v44 = vstv %s6819_s4 }
 0x1ba   :  { %6803 = sst [smem:[#allocation15_spill]] %s5014_s23  ;;  %s6813_s27 = sld [smem:[#allocation18_spill]]  ;;  %v2032_v7 = vstv %s6811_s2  ;;  %v5229_v18 = vmul.f32 %v2050_v44, %v4730_v13  ;;  %v5234_v33 = vmul.f32 %v2050_v44, %v4732_v60 }
 0x1bb   :  { %6826 = sst [smem:[#allocation85_spill]] %s5086_s18  ;;  %s6833_s20 = smov 112   ;;  %v5105_v0 = vmul.f32 %v2032_v7, %v4722_v59  ;;  %v5108_v31 = vmul.f32 %v2032_v7, %v4724_v10 }
 0x1bc   :  { %1828 = vrot.lane.b32.xlu1 %v4705_v34, %s6725_s21  ;;  %6806 = sst [smem:[#allocation80_spill]] %s5027_s0  ;;  %s5059_s0 = sld [smem:[#allocation6 + $0x3e]]  ;;  %6880 = vst [vmem:[#allocation109_spill] sm:$0xff] %v5229_v18  ;;  %6881 = vst [vmem:[#allocation110_spill] sm:$0xff] %v5234_v33 }
 0x1bd   :  { %1825 = vrot.lane.b32.xlu0 %v4707_v45, %s6725_s21  ;;  %6805 = sst [smem:[#allocation16_spill]] %s5025_s3  ;;  %s5061_s3 = sld [smem:[#allocation6 + $0x3f]]  ;;  %6834 = vst [vmem:[#allocation88_spill] sm:$0xff] %v5105_v0  ;;  %6835 = vst [vmem:[#allocation89_spill] sm:$0xff] %v5108_v31 }
 0x1be   :  { %6809 = sst [smem:[#allocation81_spill]] %s5038_s26  ;;  %s6814_s26 = sld [smem:[#allocation19_spill]] }
 0x1bf   :  { %6748 = sst [smem:[#allocation33_spill]] %s4844_s10  ;;  %s4963_s10 = sld [smem:[#allocation6 + $0x31]] }
 0x1c0   :  { %1863 = vrot.lane.b32.xlu1 %v4714_v15, %s6725_s21  ;;  %v2038_v63 = vstv %s6813_s27  ;;  %s5088_s22 = sld [smem:[#allocation6 + $0x53]]  ;;  %s5110_s15 = sld [smem:[#allocation6 + $0x56]] }
 0x1c1   :  { %1860 = vrot.lane.b32.xlu0 %v4716_v47, %s6725_s21  ;;  %s5112_s25 = sld [smem:[#allocation6 + $0x57]]  ;;  %s5126_s5 = sld [smem:[#allocation6 + $0x5a]]  ;;  %v5145_v32 = vmul.f32 %v2038_v63, %v4730_v13  ;;  %v5148_v3 = vmul.f32 %v2038_v63, %v4732_v60 }
 0x1c2   :  { %6815 = sst [smem:[#allocation17_spill]] %s5059_s0  ;;  %s5120_s0 = sld [smem:[#allocation6 + $0x59]] }
 0x1c3   :  { %6816 = sst [smem:[#allocation18_spill]] %s5061_s3  ;;  %s5080_s3 = sld [smem:[#allocation6 + $0x51]]  ;;  %6847 = vst [vmem:[#allocation96_spill] sm:$0xff] %v5145_v32  ;;  %6849 = vst [vmem:[#allocation97_spill] sm:$0xff] %v5148_v3 }
 0x1c4   :  { %1898 = vrot.lane.b32.xlu1 %v4722_v59, %s6725_s21  ;;  %v2044_v52 = vstv %s6814_s26  ;;  %s5134_s2 = sld [smem:[#allocation6 + $0x5c]]  ;;  %s5136_s23 = sld [smem:[#allocation6 + $0x5d]] }
 0x1c5   :  { %1895 = vrot.lane.b32.xlu0 %v4724_v10, %s6725_s21  ;;  %6790 = sst [smem:[#allocation72_spill]] %s4963_s10  ;;  %s6821_s10 = sld [smem:[#allocation21_spill]]  ;;  %v5187_v46 = vmul.f32 %v2044_v52, %v4730_v13  ;;  %v5192_v12 = vmul.f32 %v2044_v52, %v4732_v60 }
 0x1c6   :  { %6828 = sst [smem:[#allocation86_spill]] %s5088_s22  ;;  %s5150_s27 = sld [smem:[#allocation6 + $0x5e]] }
 0x1c7   :  { %6837 = sst [smem:[#allocation90_spill]] %s5110_s15  ;;  %s5158_s7 = sld [smem:[#allocation6 + $0x60]]  ;;  %6866 = vst [vmem:[#allocation101_spill] sm:$0xff] %v5187_v46  ;;  %6868 = vst [vmem:[#allocation102_spill] sm:$0xff] %v5192_v12 }
 0x1c8   :  { %1933 = vrot.lane.b32.xlu1 %v4730_v13, %s6725_s21  ;;  %6839 = sst [smem:[#allocation92_spill]] %s5120_s0  ;;  %s5174_s1 = sld [smem:[#allocation6 + $0x64]] }
 0x1c9   :  { %1930 = vrot.lane.b32.xlu0 %v4732_v60, %s6725_s21  ;;  %s4846_s21 = sld [smem:[#allocation6 + $0xc]]  ;;  %6824 = sst [smem:[#allocation20_spill]] %s5080_s3 }
 0x1ca   :  { %6841 = sst [smem:[#allocation94_spill]] %s5134_s2  ;;  %s5152_s3 = sld [smem:[#allocation6 + $0x5f]] }
 0x1cb   :  { %v2056_v48 = vstv %s6821_s10  ;;  %s5128_s10 = sld [smem:[#allocation6 + $0x5b]]  ;;  %s5194_s28 = sld [smem:[#allocation6 + $0x66]] }
 0x1cc   :  { %2063 = vrot.lane.b32.xlu1 %v4707_v45, %s6742_s13  ;;  %6843 = sst [smem:[#allocation95_spill]] %s5136_s23  ;;  %s5160_s23 = sld [smem:[#allocation6 + $0x61]]  ;;  %v5269_v25 = vmul.f32 %v2056_v48, %v4730_v13  ;;  %v5274_v63 = vmul.f32 %v2056_v48, %v4732_v60 }
 0x1cd   :  { %2061 = vrot.lane.b32.xlu0 %v4705_v34, %s6742_s13  ;;  %6851 = sst [smem:[#allocation98_spill]] %s5150_s27  ;;  %s5166_s27 = sld [smem:[#allocation6 + $0x62]] }
 0x1ce   :  { %s5196_s19 = sld [smem:[#allocation6 + $0x67]]  ;;  %s5202_s2 = sld [smem:[#allocation6 + $0x68]]  ;;  %6891 = vst [vmem:[#allocation111_spill] sm:$0xff] %v5269_v25  ;;  %6892 = vst [vmem:[#allocation112_spill] sm:$0xff] %v5274_v63 }
 0x1cf   :  { %6749 = sst [smem:[#allocation34_spill]] %s4846_s21  ;;  %s4954_s21 = sld [smem:[#allocation6 + $0x2f]] }
 0x1d0   :  { %2098 = vrot.lane.b32.xlu1 %v4716_v47, %s6742_s13  ;;  %6853 = sst [smem:[#allocation99_spill]] %s5152_s3  ;;  %s6858_s3 = sld [smem:[#allocation14_spill]] }
 0x1d1   :  { %2096 = vrot.lane.b32.xlu0 %v4714_v15, %s6742_s13  ;;  %6840 = sst [smem:[#allocation93_spill]] %s5128_s10  ;;  %s5168_s10 = sld [smem:[#allocation6 + $0x63]] }
 0x1d2   :  { %6856 = sst [smem:[#allocation100_spill]] %s5160_s23  ;;  %s5176_s23 = sld [smem:[#allocation6 + $0x65]] }
 0x1d3   :  { %6870 = sst [smem:[#allocation14_spill]] %s5194_s28  ;;  %s5204_s17 = sld [smem:[#allocation6 + $0x69]] }
 0x1d4   :  { %2133 = vrot.lane.b32.xlu1 %v4724_v10, %s6742_s13  ;;  %6871 = sst [smem:[#allocation103_spill]] %s5196_s19  ;;  %s5210_s26 = sld [smem:[#allocation6 + $0x6a]] }
 0x1d5   :  { %2131 = vrot.lane.b32.xlu0 %v4722_v59, %s6742_s13  ;;  %6787 = sst [smem:[#allocation70_spill]] %s4954_s21  ;;  %s5212_s19 = sld [smem:[#allocation6 + $0x6b]] }
 0x1d6   :  { %6872 = sst [smem:[#allocation104_spill]] %s5202_s2  ;;  %s5218_s29 = sld [smem:[#allocation6 + $0x6c]] }
 0x1d7   :  { %s5220_s11 = sld [smem:[#allocation6 + $0x6d]]  ;;  %s6877_s16 = sld [smem:[#allocation93_spill]] }
 0x1d8   :  { %2168 = vrot.lane.b32.xlu1 %v4732_v60, %s6742_s13  ;;  %s6878_s12 = sld [smem:[#allocation94_spill]]  ;;  %s6879_s21 = sld [smem:[#allocation95_spill]] }
 0x1d9   :  { %2166 = vrot.lane.b32.xlu0 %v4730_v13, %s6742_s13  ;;  %s4909_s13 = sld [smem:[#allocation6 + $0x24]]  ;;  %s6883_s18 = sld [smem:[#allocation99_spill]] }
 0x1da   :  { %6873 = sst [smem:[#allocation105_spill]] %s5210_s26  ;;  %s6882_s22 = sld [smem:[#allocation98_spill]] }
 0x1db   :  { %6874 = sst [smem:[#allocation106_spill]] %s5212_s19  ;;  %s5240_s9 = sld [smem:[#allocation6 + $0x6f]] }
 0x1dc   :  { %2203 = vrot.lane.b32.xlu1 %v4707_v45, %s6775_s8  ;;  %6875 = sst [smem:[#allocation107_spill]] %s5218_s29  ;;  %s6885_s14 = sld [smem:[#allocation100_spill]] }
 0x1dd   :  { %2201 = vrot.lane.b32.xlu0 %v4705_v34, %s6775_s8  ;;  %6876 = sst [smem:[#allocation108_spill]] %s5220_s11  ;;  %s5246_s30 = sld [smem:[#allocation6 + $0x70]] }
 0x1de   :  { %s5248_s4 = sld [smem:[#allocation6 + $0x71]]  ;;  %s5254_s15 = sld [smem:[#allocation6 + $0x72]] }
 0x1df   :  { %6773 = sst [smem:[#allocation59_spill]] %s4909_s13  ;;  %s5238_s13 = sld [smem:[#allocation6 + $0x6e]] }
 0x1e0   :  { %2238 = vrot.lane.b32.xlu1 %v4716_v47, %s6775_s8  ;;  %s6890_s0 = smov 111   ;;  %s5290_s28 = sld [smem:[#allocation6 + $0x74]] }
 0x1e1   :  { %2236 = vrot.lane.b32.xlu0 %v4714_v15, %s6775_s8  ;;  %6884 = sst [smem:[#allocation93_spill]] %s5240_s9  ;;  %s5292_s2 = sld [smem:[#allocation6 + $0x75]] }
 0x1e2   :  { %s6896_s11 = sld [smem:[#allocation25_spill]]  ;;  %s6897_s29 = sld [smem:[#allocation26_spill]] }
 0x1e3   :  { %6887 = sst [smem:[#allocation94_spill]] %s5246_s30  ;;  %s6898_s26 = sld [smem:[#allocation27_spill]] }
 0x1e4   :  { %2273 = vrot.lane.b32.xlu1 %v4724_v10, %s6775_s8  ;;  %6888 = sst [smem:[#allocation95_spill]] %s5248_s4  ;;  %s5316_s30 = sld [smem:[#allocation6 + $0x76]] }
 0x1e5   :  { %2271 = vrot.lane.b32.xlu0 %v4722_v59, %s6775_s8  ;;  %s6899_s4 = sld [smem:[#allocation28_spill]]  ;;  %s5318_s9 = sld [smem:[#allocation6 + $0x77]] }
 0x1e6   :  { %s6912_s19 = sld [smem:[#allocation31_spill]] }
 0x1e8   :  { %2308 = vrot.lane.b32.xlu1 %v4732_v60, %s6775_s8  ;;  %v6901_v7 = vstv %s6896_s11  ;;  %s6911_s11 = sld [smem:[#allocation30_spill]] }
 0x1e9   :  { %2306 = vrot.lane.b32.xlu0 %v4730_v13, %s6775_s8  ;;  %s5078_s8 = sld [smem:[#allocation6 + $0x50]] }
 0x1ec   :  { %2343 = vrot.lane.b32.xlu1 %v4707_v45, %s6833_s20 }
 0x1ed   :  { %2341 = vrot.lane.b32.xlu0 %v4705_v34, %s6833_s20 }
 0x1ef   :  { %6822 = sst [smem:[#allocation19_spill]] %s5078_s8  ;;  %s5096_s8 = sld [smem:[#allocation6 + $0x55]] }
 0x1f0   :  { %2378 = vrot.lane.b32.xlu1 %v4716_v47, %s6833_s20 }
 0x1f1   :  { %2376 = vrot.lane.b32.xlu0 %v4714_v15, %s6833_s20 }
 0x1f4   :  { %2413 = vrot.lane.b32.xlu1 %v4724_v10, %s6833_s20 }
 0x1f5   :  { %6832 = sst [smem:[#allocation87_spill]] %s5096_s8  ;;  %2411 = vrot.lane.b32.xlu0 %v4722_v59, %s6833_s20 }
 0x1f6   :  { %s6914_s8 = sld [smem:[#allocation33_spill]] }
 0x1f8   :  { %2448 = vrot.lane.b32.xlu1 %v4732_v60, %s6833_s20 }
 0x1f9   :  { %2446 = vrot.lane.b32.xlu0 %v4730_v13, %s6833_s20  ;;  %s6900_s20 = sld [smem:[#allocation29_spill]] }
 0x1fc   :  { %2483 = vrot.lane.b32.xlu1 %v4707_v45, %s6890_s0 }
 0x1fd   :  { %2481 = vrot.lane.b32.xlu0 %v4705_v34, %s6890_s0 }
 0x1fe   :  { %v1403_v43 = vpop.permute.xlu1 %1402 }
 0x1ff   :  { %v1399_v34 = vpop.permute.xlu0 %1398 }
 0x200   :  { %v1404_v48 = vsel %vm106_vm2, %v1403_v43, %v1399_v34  ;;  %v1407_v20 = vsel %vm106_vm2, %v1399_v34, %v1403_v43  ;;  %2518 = vrot.lane.b32.xlu1 %v4716_v47, %s6890_s0  ;;  %v6902_v34 = vmov %v6901_v7 }
 0x201   :  { %v1408_v39 = vsel %vm3859_vm4, %v1407_v20, 0.0  ;;  %v1409_v9 = vsel %vm3782_vm3, %v1404_v48, 0.0  ;;  %2516 = vrot.lane.b32.xlu0 %v4714_v15, %s6890_s0 }
 0x202   :  { %v1412_v20 = vmul.f32 %v1411_v41, %v1408_v39  ;;  %v1413_v48 = vmul.f32 %v1411_v41, %v1409_v9  ;;  %v1418_v16 = vmul.f32 %v1417_v58, %v1408_v39  ;;  %v1419_v15 = vmul.f32 %v1417_v58, %v1409_v9  ;;  %v1440_v43 = vpop.permute.xlu1 %1439 }
 0x203   :  { %v1436_v47 = vpop.permute.xlu0 %1435  ;;  %v1424_v45 = vmul.f32 %v1423_v11, %v1408_v39  ;;  %v1425_v41 = vmul.f32 %v1423_v11, %v1409_v9  ;;  %v1430_v44 = vmul.f32 %v6901_v7, %v1408_v39  ;;  %v1431_v52 = vmul.f32 %v6902_v34, %v1409_v9 }
 0x204   :  { %v1441_v2 = vsel %vm106_vm2, %v1440_v43, %v1436_v47  ;;  %v1444_v58 = vsel %vm106_vm2, %v1436_v47, %v1440_v43  ;;  %2553 = vrot.lane.b32.xlu1 %v4724_v10, %s6890_s0  ;;  %v6903_v11 = vstv %s6897_s29  ;;  %v6905_v7 = vstv %s6898_s26  ;;  %s6913_s29 = sld [smem:[#allocation32_spill]]  ;;  %s6924_s26 = sld [smem:[#allocation34_spill]] }
 0x205   :  { %v1445_v22 = vsel %vm3859_vm4, %v1444_v58, 0.0  ;;  %v1446_v14 = vsel %vm3782_vm3, %v1441_v2, 0.0  ;;  %2551 = vrot.lane.b32.xlu0 %v4722_v59, %s6890_s0  ;;  %v6904_v47 = vmov %v6903_v11  ;;  %v6906_v34 = vmov %v6905_v7 }
 0x206   :  { %v1449_v43 = vmul.f32 %v6903_v11, %v1445_v22  ;;  %v1450_v39 = vmul.f32 %v6904_v47, %v1446_v14  ;;  %v1455_v9 = vmul.f32 %v6905_v7, %v1445_v22  ;;  %v1456_v55 = vmul.f32 %v6906_v34, %v1446_v14  ;;  %v1477_v32 = vpop.permute.xlu1 %1476 }
 0x207   :  { %v6907_v58 = vstv %s6899_s4  ;;  %v6909_v2 = vstv %s6900_s20  ;;  %v1473_v59 = vpop.permute.xlu0 %1472  ;;  %s6925_s4 = sld [smem:[#allocation35_spill]]  ;;  %s6926_s20 = sld [smem:[#allocation36_spill]] }
 0x208   :  { %v1461_v30 = vmul.f32 %v6907_v58, %v1445_v22  ;;  %v6908_v63 = vmov %v6907_v58  ;;  %v1467_v25 = vmul.f32 %v6909_v2, %v1445_v22  ;;  %v6910_v18 = vmov %v6909_v2  ;;  %2588 = vrot.lane.b32.xlu1 %v4732_v60, %s6890_s0 }
 0x209   :  { %v1462_v21 = vmul.f32 %v6908_v63, %v1446_v14  ;;  %v1468_v46 = vmul.f32 %v6910_v18, %v1446_v14  ;;  %v1451_v33 = vadd.f32 %v1449_v43, %v1412_v20  ;;  %v1452_v10 = vadd.f32 %v1450_v39, %v1413_v48  ;;  %2586 = vrot.lane.b32.xlu0 %v4730_v13, %s6890_s0  ;;  %s6923_s0 = sld [smem:[#allocation38_spill]] }
 0x20a   :  { %v1457_v47 = vadd.f32 %v1455_v9, %v1418_v16  ;;  %v1458_v7 = vadd.f32 %v1456_v55, %v1419_v15  ;;  %v1463_v34 = vadd.f32 %v1461_v30, %v1424_v45  ;;  %v1469_v14 = vadd.f32 %v1467_v25, %v1430_v44  ;;  %v1514_v13 = vpop.permute.xlu1 %1513 }
 0x20b   :  { %v1464_v58 = vadd.f32 %v1462_v21, %v1425_v41  ;;  %v1470_v18 = vadd.f32 %v1468_v46, %v1431_v52  ;;  %v1478_v22 = vsel %vm106_vm2, %v1477_v32, %v1473_v59  ;;  %v1481_v16 = vsel %vm106_vm2, %v1473_v59, %v1477_v32  ;;  %v1510_v30 = vpop.permute.xlu0 %1509 }
 0x20c   :  { %v1482_v55 = vsel %vm3859_vm4, %v1481_v16, 0.0  ;;  %v1483_v21 = vsel %vm3782_vm3, %v1478_v22, 0.0  ;;  %v6915_v46 = vstv %s6911_s11  ;;  %v6917_v20 = vstv %s6912_s19  ;;  %s6927_s11 = sld [smem:[#allocation37_spill]]  ;;  %s6935_s19 = sld [smem:[#allocation39_spill]] }
 0x20d   :  { %v1486_v52 = vmul.f32 %v6915_v46, %v1482_v55  ;;  %v6916_v44 = vmov %v6915_v46  ;;  %v1492_v48 = vmul.f32 %v6917_v20, %v1482_v55  ;;  %v6918_v32 = vmov %v6917_v20 }
 0x20e   :  { %v1487_v45 = vmul.f32 %v6916_v44, %v1483_v21  ;;  %v1493_v15 = vmul.f32 %v6918_v32, %v1483_v21  ;;  %v6919_v41 = vstv %s6913_s29  ;;  %v6921_v9 = vstv %s6914_s8  ;;  %s6938_s29 = sld [smem:[#allocation40_spill]]  ;;  %s6939_s8 = sld [smem:[#allocation41_spill]] }
 0x20f   :  { %v1498_v60 = vmul.f32 %v6919_v41, %v1482_v55  ;;  %v6920_v43 = vmov %v6919_v41  ;;  %v1504_v2 = vmul.f32 %v6921_v9, %v1482_v55  ;;  %v6922_v59 = vmov %v6921_v9  ;;  %v1549_v55 = vpop.permute.xlu1 %1548 }
 0x210   :  { %v1499_v39 = vmul.f32 %v6920_v43, %v1483_v21  ;;  %v1505_v22 = vmul.f32 %v6922_v59, %v1483_v21  ;;  %v1488_v16 = vadd.f32 %v1486_v52, %v1451_v33  ;;  %v1489_v11 = vadd.f32 %v1487_v45, %v1452_v10  ;;  %v1546_v43 = vpop.permute.xlu0 %1545 }
 0x211   :  { %v1494_v63 = vadd.f32 %v1492_v48, %v1457_v47  ;;  %v1495_v46 = vadd.f32 %v1493_v15, %v1458_v7  ;;  %v1500_v44 = vadd.f32 %v1498_v60, %v1463_v34  ;;  %v1506_v32 = vadd.f32 %v1504_v2, %v1469_v14 }
 0x212   :  { %v1501_v20 = vadd.f32 %v1499_v39, %v1464_v58  ;;  %v1507_v41 = vadd.f32 %v1505_v22, %v1470_v18  ;;  %v1515_v33 = vsel %vm106_vm2, %v1514_v13, %v1510_v30  ;;  %v1518_v10 = vsel %vm106_vm2, %v1510_v30, %v1514_v13 }
 0x213   :  { %v1550_v47 = vsel %vm253_vm5, %v1549_v55, %v1546_v43  ;;  %v1553_v7 = vsel %vm253_vm5, %v1546_v43, %v1549_v55  ;;  %v1519_v34 = vsel %vm3859_vm4, %v1518_v10, 0.0  ;;  %v1520_v58 = vsel %vm3782_vm3, %v1515_v33, 0.0 }
 0x214   :  { %v1554_v14 = vsel %vm93_vm0, %v1553_v7, 0.0  ;;  %v6928_v18 = vstv %s6923_s0  ;;  %v6929_v52 = vstv %s6924_s26  ;;  %v6931_v30 = vstv %s6925_s4  ;;  %v1581_v10 = vpop.permute.xlu0 %1580  ;;  %v1584_v7 = vpop.permute.xlu1 %1583  ;;  %s6944_s26 = sld [smem:[#allocation42_spill]]  ;;  %s6946_s4 = sld [smem:[#allocation43_spill]] }
 0x215   :  { %v1559_v21 = vmul.f32 %v6928_v18, %v1550_v47  ;;  %v1523_v45 = vmul.f32 %v6929_v52, %v1519_v34  ;;  %v6930_v48 = vmov %v6929_v52  ;;  %v1529_v13 = vmul.f32 %v6931_v30, %v1519_v34 }
 0x216   :  { %v1524_v15 = vmul.f32 %v6930_v48, %v1520_v58  ;;  %v6932_v60 = vmov %v6931_v30  ;;  %v6933_v9 = vstv %s6926_s20  ;;  %v6936_v22 = vstv %s6927_s11  ;;  %s6948_s20 = sld [smem:[#allocation44_spill]]  ;;  %s6950_s11 = sld [smem:[#allocation45_spill]] }
 0x217   :  { %v1530_v39 = vmul.f32 %v6932_v60, %v1520_v58  ;;  %v1535_v1 = vmul.f32 %v6933_v9, %v1519_v34  ;;  %v6934_v2 = vmov %v6933_v9  ;;  %v1541_v43 = vmul.f32 %v6936_v22, %v1519_v34 }
 0x218   :  { %v1536_v59 = vmul.f32 %v6934_v2, %v1520_v58  ;;  %v6937_v55 = vmov %v6936_v22  ;;  %v1525_v18 = vadd.f32 %v1523_v45, %v1488_v16  ;;  %v1526_v52 = vadd.f32 %v1524_v15, %v1489_v11 }
 0x219   :  { %v1542_v33 = vmul.f32 %v6937_v55, %v1520_v58  ;;  %v1531_v48 = vadd.f32 %v1529_v13, %v1494_v63  ;;  %v1532_v30 = vadd.f32 %v1530_v39, %v1495_v46  ;;  %v1537_v60 = vadd.f32 %v1535_v1, %v1500_v44 }
 0x21a   :  { %v1538_v9 = vadd.f32 %v1536_v59, %v1501_v20  ;;  %v1543_v25 = vadd.f32 %v1541_v43, %v1506_v32  ;;  %v6940_v2 = vstv %s6923_s0  ;;  %v1561_v31 = vadd.f32 %v1559_v21, %v1526_v52  ;;  %v1616_v20 = vpop.permute.xlu0 %1615  ;;  %v1619_v32 = vpop.permute.xlu1 %1618  ;;  %s6955_s0 = sld [smem:[#allocation46_spill]] }
 0x21b   :  { %v1544_v12 = vadd.f32 %v1542_v33, %v1507_v41  ;;  %v1558_v3 = vmul.f32 %v6940_v2, %v1554_v14  ;;  %v6941_v34 = vstv %s6935_s19  ;;  %v6943_v55 = vstv %s6938_s29  ;;  %s6957_s19 = sld [smem:[#allocation47_spill]]  ;;  %s6960_s29 = sld [smem:[#allocation48_spill]] }
 0x21c   :  { %v1564_v22 = vmul.f32 %v6941_v34, %v1554_v14  ;;  %v6942_v0 = vmov %v6941_v34  ;;  %v1570_v24 = vmul.f32 %v6943_v55, %v1554_v14  ;;  %v6945_v28 = vmov %v6943_v55 }
 0x21d   :  { %v1565_v58 = vmul.f32 %v6942_v0, %v1550_v47  ;;  %v1571_v16 = vmul.f32 %v6945_v28, %v1550_v47  ;;  %v6947_v11 = vstv %s6939_s8  ;;  %v1560_v41 = vadd.f32 %v1558_v3, %v1525_v18  ;;  %s6962_s8 = sld [smem:[#allocation49_spill]] }
 0x21e   :  { %v1576_v63 = vmul.f32 %v6947_v11, %v1554_v14  ;;  %v6949_v46 = vmov %v6947_v11  ;;  %v1566_v21 = vadd.f32 %v1564_v22, %v1531_v48  ;;  %v1585_v0 = vsel %vm253_vm5, %v1584_v7, %v1581_v10 }
 0x21f   :  { %v1577_v44 = vmul.f32 %v6949_v46, %v1550_v47  ;;  %v1567_v45 = vadd.f32 %v1565_v58, %v1532_v30  ;;  %v1572_v15 = vadd.f32 %v1570_v24, %v1537_v60  ;;  %v1573_v13 = vadd.f32 %v1571_v16, %v1538_v9 }
 0x220   :  { %v1578_v39 = vadd.f32 %v1576_v63, %v1543_v25  ;;  %v1588_v1 = vsel %vm253_vm5, %v1581_v10, %v1584_v7  ;;  %v6951_v14 = vstv %s6944_s26  ;;  %v6952_v59 = vstv %s6946_s4  ;;  %v1654_v10 = vpop.permute.xlu1 %1653  ;;  %s6966_s26 = sld [smem:[#allocation50_spill]]  ;;  %s6970_s4 = sld [smem:[#allocation51_spill]] }
 0x221   :  { %v1579_v28 = vadd.f32 %v1577_v44, %v1544_v12  ;;  %v1594_v47 = vmul.f32 %v6951_v14, %v1585_v0  ;;  %v1600_v43 = vmul.f32 %v6952_v59, %v1585_v0  ;;  %v6953_v33 = vstv %s6948_s20  ;;  %v1651_v12 = vpop.permute.xlu0 %1650  ;;  %s6971_s20 = sld [smem:[#allocation52_spill]] }
 0x222   :  { %v1606_v3 = vmul.f32 %v6953_v33, %v1585_v0  ;;  %v1589_v18 = vsel %vm93_vm0, %v1588_v1, 0.0  ;;  %v6954_v52 = vstv %s6950_s11  ;;  %v1620_v24 = vsel %vm253_vm5, %v1619_v32, %v1616_v20  ;;  %s6973_s11 = sld [smem:[#allocation53_spill]] }
 0x223   :  { %v1612_v48 = vmul.f32 %v6954_v52, %v1585_v0  ;;  %v1623_v25 = vsel %vm253_vm5, %v1616_v20, %v1619_v32  ;;  %v6956_v7 = vmov %v6951_v14  ;;  %v1596_v60 = vadd.f32 %v1594_v47, %v1561_v31 }
 0x224   :  { %v1593_v30 = vmul.f32 %v6956_v7, %v1589_v18  ;;  %v6958_v9 = vmov %v6952_v59  ;;  %v1602_v34 = vadd.f32 %v1600_v43, %v1567_v45  ;;  %v6959_v22 = vmov %v6953_v33  ;;  %v1689_v43 = vpop.permute.xlu1 %1688 }
 0x225   :  { %v1599_v2 = vmul.f32 %v6958_v9, %v1589_v18  ;;  %v1605_v58 = vmul.f32 %v6959_v22, %v1589_v18  ;;  %v1608_v55 = vadd.f32 %v1606_v3, %v1573_v13  ;;  %v6961_v16 = vmov %v6954_v52  ;;  %v1686_v13 = vpop.permute.xlu0 %1685 }
 0x226   :  { %v1611_v11 = vmul.f32 %v6961_v16, %v1589_v18  ;;  %v1614_v63 = vadd.f32 %v1612_v48, %v1579_v28  ;;  %v1595_v46 = vadd.f32 %v1593_v30, %v1560_v41  ;;  %v1624_v20 = vsel %vm93_vm0, %v1623_v25, 0.0 }
 0x227   :  { %v1601_v44 = vadd.f32 %v1599_v2, %v1566_v21  ;;  %v6963_v31 = vstv %s6955_s0  ;;  %v1607_v0 = vadd.f32 %v1605_v58, %v1572_v15  ;;  %v6965_v47 = vstv %s6957_s19  ;;  %s6982_s0 = sld [smem:[#allocation54_spill]]  ;;  %s6983_s19 = sld [smem:[#allocation55_spill]] }
 0x228   :  { %v1629_v32 = vmul.f32 %v6963_v31, %v1620_v24  ;;  %v1613_v45 = vadd.f32 %v1611_v11, %v1578_v39  ;;  %v6964_v1 = vmov %v6963_v31  ;;  %v1634_v59 = vmul.f32 %v6965_v47, %v1624_v20 }
 0x229   :  { %v1628_v14 = vmul.f32 %v6964_v1, %v1624_v20  ;;  %v6967_v28 = vmov %v6965_v47  ;;  %v6968_v3 = vstv %s6960_s29  ;;  %v6972_v15 = vstv %s6962_s8  ;;  %v1721_v31 = vpop.permute.xlu0 %1720  ;;  %s6985_s29 = sld [smem:[#allocation56_spill]]  ;;  %s6986_s8 = sld [smem:[#allocation57_spill]] }
 0x22a   :  { %v1631_v33 = vadd.f32 %v1629_v32, %v1596_v60  ;;  %v1635_v41 = vmul.f32 %v6967_v28, %v1620_v24  ;;  %v1640_v21 = vmul.f32 %v6968_v3, %v1624_v20  ;;  %v6969_v18 = vmov %v6968_v3  ;;  %v1724_v32 = vpop.permute.xlu1 %1723 }
 0x22b   :  { %v1641_v52 = vmul.f32 %v6969_v18, %v1620_v24  ;;  %v1630_v48 = vadd.f32 %v1628_v14, %v1595_v46  ;;  %v1636_v25 = vadd.f32 %v1634_v59, %v1601_v44  ;;  %v1646_v39 = vmul.f32 %v6972_v15, %v1624_v20 }
 0x22c   :  { %v6974_v7 = vmov %v6972_v15  ;;  %v1637_v9 = vadd.f32 %v1635_v41, %v1602_v34  ;;  %v1642_v2 = vadd.f32 %v1640_v21, %v1607_v0  ;;  %v1655_v22 = vsel %vm253_vm5, %v1654_v10, %v1651_v12 }
 0x22d   :  { %v1647_v30 = vmul.f32 %v6974_v7, %v1620_v24  ;;  %v1643_v60 = vadd.f32 %v1641_v52, %v1608_v55  ;;  %v1648_v58 = vadd.f32 %v1646_v39, %v1613_v45  ;;  %v1658_v11 = vsel %vm253_vm5, %v1651_v12, %v1654_v10  ;;  %v1756_v7 = vpop.permute.xlu0 %1755 }
 0x22e   :  { %v6975_v46 = vstv %s6966_s26  ;;  %v1659_v20 = vsel %vm93_vm0, %v1658_v11, 0.0  ;;  %v6976_v24 = vstv %s6970_s4  ;;  %v6977_v1 = vstv %s6971_s20  ;;  %s6994_s26 = sld [smem:[#allocation59_spill]]  ;;  %s6995_s4 = sld [smem:[#allocation60_spill]] }
 0x22f   :  { %v1649_v16 = vadd.f32 %v1647_v30, %v1614_v63  ;;  %v1664_v44 = vmul.f32 %v6975_v46, %v1655_v22  ;;  %v1670_v34 = vmul.f32 %v6976_v24, %v1655_v22  ;;  %v1676_v0 = vmul.f32 %v6977_v1, %v1655_v22  ;;  %v1759_v30 = vpop.permute.xlu1 %1758  ;;  %s6996_s20 = sld [smem:[#allocation61_spill]] }
 0x230   :  { %v6978_v14 = vstv %s6973_s11  ;;  %v6979_v47 = vmov %v6975_v46  ;;  %v6980_v28 = vmov %v6976_v24  ;;  %v6981_v41 = vmov %v6977_v1  ;;  %s6998_s11 = sld [smem:[#allocation64_spill]] }
 0x231   :  { %v1682_v55 = vmul.f32 %v6978_v14, %v1655_v22  ;;  %v1663_v59 = vmul.f32 %v6979_v47, %v1659_v20  ;;  %v1666_v45 = vadd.f32 %v1664_v44, %v1631_v33  ;;  %v1669_v63 = vmul.f32 %v6980_v28, %v1659_v20 }
 0x232   :  { %v1675_v12 = vmul.f32 %v6981_v41, %v1659_v20  ;;  %v1672_v10 = vadd.f32 %v1670_v34, %v1637_v9  ;;  %v1678_v3 = vadd.f32 %v1676_v0, %v1643_v60  ;;  %v6984_v21 = vmov %v6978_v14  ;;  %v1791_v41 = vpop.permute.xlu0 %1790 }
 0x233   :  { %v1681_v40 = vmul.f32 %v6984_v21, %v1659_v20  ;;  %v1684_v18 = vadd.f32 %v1682_v55, %v1649_v16  ;;  %v1665_v52 = vadd.f32 %v1663_v59, %v1630_v48  ;;  %v1671_v15 = vadd.f32 %v1669_v63, %v1636_v25 }
 0x234   :  { %v1677_v39 = vadd.f32 %v1675_v12, %v1642_v2  ;;  %v1690_v33 = vsel %vm398_vm6, %v1689_v43, %v1686_v13  ;;  %v1693_v9 = vsel %vm398_vm6, %v1686_v13, %v1689_v43  ;;  %v1725_v11 = vsel %vm398_vm6, %v1724_v32, %v1721_v31  ;;  %v1794_v12 = vpop.permute.xlu1 %1793 }
 0x235   :  { %v1683_v22 = vadd.f32 %v1681_v40, %v1648_v58  ;;  %v1695_v60 = vsel %vm4016_vm8, %v1690_v33, 0.0  ;;  %v1694_v48 = vsel %vm4063_vm9, %v1693_v9, 0.0  ;;  %v6987_v16 = vstv %s6982_s0  ;;  %s7006_s0 = sld [smem:[#allocation65_spill]] }
 0x236   :  { %v1699_v25 = vmul.f32 %v6987_v16, %v1695_v60  ;;  %v6988_v46 = vstv %s6983_s19  ;;  %v6989_v44 = vstv %s6985_s29  ;;  %v6990_v24 = vmov %v6987_v16  ;;  %s7007_s19 = sld [smem:[#allocation66_spill]]  ;;  %s7008_s29 = sld [smem:[#allocation67_spill]] }
 0x237   :  { %v1705_v2 = vmul.f32 %v6988_v46, %v1695_v60  ;;  %v1711_v20 = vmul.f32 %v6989_v44, %v1695_v60  ;;  %v1698_v34 = vmul.f32 %v6990_v24, %v1694_v48  ;;  %v6991_v1 = vmov %v6988_v46 }
 0x238   :  { %v1704_v58 = vmul.f32 %v6991_v1, %v1694_v48  ;;  %v6992_v0 = vmov %v6989_v44  ;;  %v6993_v43 = vstv %s6986_s8  ;;  %v1701_v55 = vadd.f32 %v1699_v25, %v1666_v45  ;;  %s7010_s8 = sld [smem:[#allocation68_spill]] }
 0x239   :  { %v1710_v13 = vmul.f32 %v6992_v0, %v1694_v48  ;;  %v1716_v14 = vmul.f32 %v6993_v43, %v1694_v48  ;;  %v1707_v47 = vadd.f32 %v1705_v2, %v1672_v10  ;;  %v1713_v59 = vadd.f32 %v1711_v20, %v1678_v3 }
 0x23a   :  { %v6997_v28 = vmov %v6993_v43  ;;  %v1700_v21 = vadd.f32 %v1698_v34, %v1665_v52  ;;  %v1706_v40 = vadd.f32 %v1704_v58, %v1671_v15  ;;  %v1728_v45 = vsel %vm398_vm6, %v1721_v31, %v1724_v32  ;;  %v1829_v43 = vpop.permute.xlu1 %1828 }
 0x23b   :  { %v1717_v63 = vmul.f32 %v6997_v28, %v1695_v60  ;;  %v1712_v33 = vadd.f32 %v1710_v13, %v1677_v39  ;;  %v1718_v9 = vadd.f32 %v1716_v14, %v1683_v22  ;;  %v1730_v10 = vsel %vm4016_vm8, %v1725_v11, 0.0  ;;  %v1826_v13 = vpop.permute.xlu0 %1825 }
 0x23c   :  { %v1760_v3 = vsel %vm398_vm6, %v1759_v30, %v1756_v7  ;;  %v1729_v60 = vsel %vm4063_vm9, %v1728_v45, 0.0  ;;  %v6999_v16 = vstv %s6994_s26  ;;  %v7000_v46 = vstv %s6995_s4  ;;  %s7018_s26 = sld [smem:[#allocation58_spill]]  ;;  %s7019_s4 = sld [smem:[#allocation62_spill]] }
 0x23d   :  { %v1719_v48 = vadd.f32 %v1717_v63, %v1684_v18  ;;  %v1734_v25 = vmul.f32 %v6999_v16, %v1730_v10  ;;  %v1740_v2 = vmul.f32 %v7000_v46, %v1730_v10  ;;  %v7001_v52 = vstv %s6996_s20  ;;  %s7020_s20 = sld [smem:[#allocation63_spill]] }
 0x23e   :  { %v1746_v15 = vmul.f32 %v7001_v52, %v1730_v10  ;;  %v7002_v39 = vmov %v6999_v16  ;;  %v7003_v44 = vmov %v7000_v46  ;;  %v7004_v20 = vmov %v7001_v52 }
 0x23f   :  { %v1733_v22 = vmul.f32 %v7002_v39, %v1729_v60  ;;  %v1739_v18 = vmul.f32 %v7003_v44, %v1729_v60  ;;  %v1745_v31 = vmul.f32 %v7004_v20, %v1729_v60  ;;  %v7005_v32 = vstv %s6998_s11  ;;  %s7022_s11 = sld [smem:[#allocation70_spill]] }
 0x240   :  { %v1751_v24 = vmul.f32 %v7005_v32, %v1729_v60  ;;  %v1736_v11 = vadd.f32 %v1734_v25, %v1701_v55  ;;  %v1742_v34 = vadd.f32 %v1740_v2, %v1707_v47  ;;  %v1748_v1 = vadd.f32 %v1746_v15, %v1713_v59 }
 0x241   :  { %v7009_v58 = vmov %v7005_v32  ;;  %v1735_v14 = vadd.f32 %v1733_v22, %v1700_v21  ;;  %v1741_v28 = vadd.f32 %v1739_v18, %v1706_v40  ;;  %v1747_v63 = vadd.f32 %v1745_v31, %v1712_v33 }
 0x242   :  { %v1752_v0 = vmul.f32 %v7009_v58, %v1730_v10  ;;  %v1753_v45 = vadd.f32 %v1751_v24, %v1718_v9  ;;  %v1763_v55 = vsel %vm398_vm6, %v1756_v7, %v1759_v30  ;;  %v1765_v47 = vsel %vm4016_vm8, %v1760_v3, 0.0 }
 0x243   :  { %v1795_v59 = vsel %vm398_vm6, %v1794_v12, %v1791_v41  ;;  %v1764_v10 = vsel %vm4063_vm9, %v1763_v55, 0.0  ;;  %v7011_v16 = vstv %s7006_s0  ;;  %v7012_v46 = vstv %s7007_s19  ;;  %v1864_v55 = vpop.permute.xlu1 %1863  ;;  %s7030_s0 = sld [smem:[#allocation71_spill]]  ;;  %s7031_s19 = sld [smem:[#allocation72_spill]] }
 0x244   :  { %v1754_v60 = vadd.f32 %v1752_v0, %v1719_v48  ;;  %v1769_v25 = vmul.f32 %v7011_v16, %v1765_v47  ;;  %v1775_v2 = vmul.f32 %v7012_v46, %v1765_v47  ;;  %v7013_v21 = vstv %s7008_s29  ;;  %v1861_v0 = vpop.permute.xlu0 %1860  ;;  %s7032_s29 = sld [smem:[#allocation73_spill]] }
 0x245   :  { %v1781_v40 = vmul.f32 %v7013_v21, %v1765_v47  ;;  %v7014_v33 = vmov %v7011_v16  ;;  %v7015_v52 = vmov %v7012_v46  ;;  %v7016_v15 = vmov %v7013_v21 }
 0x246   :  { %v1768_v9 = vmul.f32 %v7014_v33, %v1764_v10  ;;  %v1774_v48 = vmul.f32 %v7015_v52, %v1764_v10  ;;  %v1780_v7 = vmul.f32 %v7016_v15, %v1764_v10  ;;  %v7017_v30 = vstv %s7010_s8  ;;  %s7034_s8 = sld [smem:[#allocation74_spill]] }
 0x247   :  { %v1786_v39 = vmul.f32 %v7017_v30, %v1764_v10  ;;  %v1771_v3 = vadd.f32 %v1769_v25, %v1736_v11  ;;  %v1777_v22 = vadd.f32 %v1775_v2, %v1742_v34  ;;  %v1783_v44 = vadd.f32 %v1781_v40, %v1748_v1 }
 0x248   :  { %v7021_v18 = vmov %v7017_v30  ;;  %v1770_v31 = vadd.f32 %v1768_v9, %v1735_v14  ;;  %v1776_v32 = vadd.f32 %v1774_v48, %v1741_v28  ;;  %v1782_v24 = vadd.f32 %v1780_v7, %v1747_v63 }
 0x249   :  { %v1787_v20 = vmul.f32 %v7021_v18, %v1765_v47  ;;  %v1788_v58 = vadd.f32 %v1786_v39, %v1753_v45  ;;  %v1798_v11 = vsel %vm398_vm6, %v1791_v41, %v1794_v12  ;;  %v1800_v34 = vsel %vm4016_vm8, %v1795_v59, 0.0 }
 0x24a   :  { %v1830_v1 = vsel %vm539_vm10, %v1829_v43, %v1826_v13  ;;  %v1799_v47 = vsel %vm4063_vm9, %v1798_v11, 0.0  ;;  %v7023_v14 = vstv %s7018_s26  ;;  %v7024_v28 = vstv %s7019_s4  ;;  %v1899_v11 = vpop.permute.xlu1 %1898  ;;  %s7041_s26 = sld [smem:[#allocation75_spill]]  ;;  %s7043_s4 = sld [smem:[#allocation76_spill]] }
 0x24b   :  { %v1789_v10 = vadd.f32 %v1787_v20, %v1754_v60  ;;  %v1804_v16 = vmul.f32 %v7023_v14, %v1800_v34  ;;  %v1810_v25 = vmul.f32 %v7024_v28, %v1800_v34  ;;  %v7025_v63 = vstv %s7020_s20  ;;  %s7044_s20 = sld [smem:[#allocation12_spill]] }
 0x24c   :  { %v1816_v45 = vmul.f32 %v7025_v63, %v1800_v34  ;;  %v7026_v46 = vmov %v7023_v14  ;;  %v7027_v21 = vmov %v7024_v28  ;;  %v7028_v40 = vmov %v7025_v63 }
 0x24d   :  { %v1803_v2 = vmul.f32 %v7026_v46, %v1799_v47  ;;  %v1809_v60 = vmul.f32 %v7027_v21, %v1799_v47  ;;  %v1815_v41 = vmul.f32 %v7028_v40, %v1799_v47  ;;  %v7029_v12 = vstv %s7022_s11  ;;  %s7046_s11 = sld [smem:[#allocation13_spill]] }
 0x24e   :  { %v1821_v33 = vmul.f32 %v7029_v12, %v1799_v47  ;;  %v1806_v59 = vadd.f32 %v1804_v16, %v1771_v3  ;;  %v1812_v9 = vadd.f32 %v1810_v25, %v1777_v22  ;;  %v1818_v26 = vadd.f32 %v1816_v45, %v1783_v44  ;;  %v1896_v44 = vpop.permute.xlu0 %1895 }
 0x24f   :  { %v7033_v52 = vmov %v7029_v12  ;;  %v1805_v15 = vadd.f32 %v1803_v2, %v1770_v31  ;;  %v1811_v7 = vadd.f32 %v1809_v60, %v1776_v32  ;;  %v1817_v30 = vadd.f32 %v1815_v41, %v1782_v24 }
 0x250   :  { %v1822_v48 = vmul.f32 %v7033_v52, %v1800_v34  ;;  %v1823_v39 = vadd.f32 %v1821_v33, %v1788_v58  ;;  %v1833_v20 = vsel %vm539_vm10, %v1826_v13, %v1829_v43  ;;  %v1835_v3 = vsel %vm3782_vm3, %v1830_v1, 0.0 }
 0x251   :  { %v1865_v22 = vsel %vm539_vm10, %v1864_v55, %v1861_v0  ;;  %v1834_v34 = vsel %vm3730_vm1, %v1833_v20, 0.0  ;;  %v7035_v31 = vstv %s7030_s0  ;;  %v7036_v32 = vstv %s7031_s19  ;;  %s7054_s0 = sld [smem:[#allocation15_spill]]  ;;  %s7055_s19 = sld [smem:[#allocation16_spill]] }
 0x252   :  { %v1824_v18 = vadd.f32 %v1822_v48, %v1789_v10  ;;  %v1839_v47 = vmul.f32 %v7035_v31, %v1835_v3  ;;  %v1845_v14 = vmul.f32 %v7036_v32, %v1835_v3  ;;  %v7037_v24 = vstv %s7032_s29  ;;  %s7057_s29 = sld [smem:[#allocation80_spill]] }
 0x253   :  { %v1851_v58 = vmul.f32 %v7037_v24, %v1835_v3  ;;  %v7038_v10 = vmov %v7035_v31  ;;  %v7039_v13 = vmov %v7036_v32  ;;  %v7040_v28 = vmov %v7037_v24 }
 0x254   :  { %v1838_v16 = vmul.f32 %v7038_v10, %v1834_v34  ;;  %v1844_v43 = vmul.f32 %v7039_v13, %v1834_v34  ;;  %v1850_v1 = vmul.f32 %v7040_v28, %v1834_v34  ;;  %v7042_v25 = vstv %s7034_s8  ;;  %s7065_s8 = sld [smem:[#allocation81_spill]] }
 0x255   :  { %v1856_v63 = vmul.f32 %v7042_v25, %v1834_v34  ;;  %v1841_v45 = vadd.f32 %v1839_v47, %v1806_v59  ;;  %v1847_v46 = vadd.f32 %v1845_v14, %v1812_v9  ;;  %v1853_v2 = vadd.f32 %v1851_v58, %v1818_v26 }
 0x256   :  { %v7045_v21 = vmov %v7042_v25  ;;  %v1840_v40 = vadd.f32 %v1838_v16, %v1805_v15  ;;  %v1846_v41 = vadd.f32 %v1844_v43, %v1811_v7  ;;  %v1852_v12 = vadd.f32 %v1850_v1, %v1817_v30  ;;  %v1931_v30 = vpop.permute.xlu0 %1930 }
 0x257   :  { %v1857_v60 = vmul.f32 %v7045_v21, %v1835_v3  ;;  %v1858_v33 = vadd.f32 %v1856_v63, %v1823_v39  ;;  %v1868_v48 = vsel %vm539_vm10, %v1861_v0, %v1864_v55  ;;  %v1870_v20 = vsel %vm3782_vm3, %v1865_v22, 0.0  ;;  %v1934_v39 = vpop.permute.xlu1 %1933 }
 0x258   :  { %v1900_v59 = vsel %vm539_vm10, %v1899_v11, %v1896_v44  ;;  %v1869_v9 = vsel %vm3730_vm1, %v1868_v48, 0.0  ;;  %v7047_v26 = vstv %s7041_s26  ;;  %v7048_v15 = vstv %s7043_s4  ;;  %s7066_s26 = sld [smem:[#allocation82_spill]]  ;;  %s7067_s4 = sld [smem:[#allocation17_spill]] }
 0x259   :  { %v1859_v52 = vadd.f32 %v1857_v60, %v1824_v18  ;;  %v1874_v3 = vmul.f32 %v7047_v26, %v1870_v20  ;;  %v1880_v34 = vmul.f32 %v7048_v15, %v1870_v20  ;;  %v7049_v7 = vstv %s7044_s20  ;;  %s5673_s20 = sld [smem:[#allocation6 + $0x78]] }
 0x25a   :  { %v1886_v31 = vmul.f32 %v7049_v7, %v1870_v20  ;;  %v7050_v18 = vmov %v7047_v26  ;;  %v7051_v0 = vmov %v7048_v15  ;;  %v7052_v32 = vmov %v7049_v7 }
 0x25b   :  { %v1873_v47 = vmul.f32 %v7050_v18, %v1869_v9  ;;  %v1879_v55 = vmul.f32 %v7051_v0, %v1869_v9  ;;  %v1885_v22 = vmul.f32 %v7052_v32, %v1869_v9  ;;  %v7053_v14 = vstv %s7046_s11  ;;  %v5641_v7 = vpop.permute.xlu1 %2063  ;;  %s5675_s11 = sld [smem:[#allocation6 + $0x79]] }
 0x25c   :  { %v1891_v24 = vmul.f32 %v7053_v14, %v1869_v9  ;;  %v1876_v58 = vadd.f32 %v1874_v3, %v1841_v45  ;;  %v1882_v10 = vadd.f32 %v1880_v34, %v1847_v46  ;;  %v1888_v16 = vadd.f32 %v1886_v31, %v1853_v2 }
 0x25d   :  { %v7056_v13 = vmov %v7053_v14  ;;  %v1875_v28 = vadd.f32 %v1873_v47, %v1840_v40  ;;  %v1881_v1 = vadd.f32 %v1879_v55, %v1846_v41  ;;  %v1887_v25 = vadd.f32 %v1885_v22, %v1852_v12 }
 0x25e   :  { %v1892_v43 = vmul.f32 %v7056_v13, %v1870_v20  ;;  %v1893_v63 = vadd.f32 %v1891_v24, %v1858_v33  ;;  %v1903_v60 = vsel %vm539_vm10, %v1896_v44, %v1899_v11  ;;  %v1905_v48 = vsel %vm3782_vm3, %v1900_v59, 0.0  ;;  %v5639_v59 = vpop.permute.xlu0 %2061 }
 0x25f   :  { %v1935_v45 = vsel %vm539_vm10, %v1934_v39, %v1931_v30  ;;  %v1904_v46 = vsel %vm3730_vm1, %v1903_v60, 0.0  ;;  %v7058_v2 = vstv %s6858_s3  ;;  %v7059_v20 = vstv %s7054_s0  ;;  %s7069_s3 = sld [smem:[#allocation18_spill]]  ;;  %s7081_s0 = sld [smem:[#allocation19_spill]] }
 0x260   :  { %v1894_v21 = vadd.f32 %v1892_v43, %v1859_v52  ;;  %v1909_v9 = vmul.f32 %v7058_v2, %v1905_v48  ;;  %v1915_v26 = vmul.f32 %v7059_v20, %v1905_v48  ;;  %v7060_v40 = vstv %s7055_s19  ;;  %s7083_s19 = sld [smem:[#allocation20_spill]] }
 0x261   :  { %v1921_v41 = vmul.f32 %v7060_v40, %v1905_v48  ;;  %v7061_v12 = vmov %v7058_v2  ;;  %v7062_v52 = vmov %v7059_v20  ;;  %v7063_v44 = vmov %v7060_v40 }
 0x262   :  { %v1908_v33 = vmul.f32 %v7061_v12, %v1904_v46  ;;  %v1914_v3 = vmul.f32 %v7062_v52, %v1904_v46  ;;  %v1920_v11 = vmul.f32 %v7063_v44, %v1904_v46  ;;  %v7064_v15 = vstv %s7057_s29  ;;  %v5671_v52 = vpop.permute.xlu1 %2098  ;;  %s7085_s29 = sld [smem:[#allocation85_spill]] }
 0x263   :  { %v1926_v34 = vmul.f32 %v7064_v15, %v1904_v46  ;;  %v1911_v31 = vadd.f32 %v1909_v9, %v1876_v58  ;;  %v1917_v18 = vadd.f32 %v1915_v26, %v1882_v10  ;;  %v1923_v47 = vadd.f32 %v1921_v41, %v1888_v16 }
 0x264   :  { %v7068_v0 = vmov %v7064_v15  ;;  %v1910_v32 = vadd.f32 %v1908_v33, %v1875_v28  ;;  %v1916_v22 = vadd.f32 %v1914_v3, %v1881_v1  ;;  %v1922_v14 = vadd.f32 %v1920_v11, %v1887_v25  ;;  %v5669_v33 = vpop.permute.xlu0 %2096 }
 0x265   :  { %v1927_v55 = vmul.f32 %v7068_v0, %v1905_v48  ;;  %v1928_v24 = vadd.f32 %v1926_v34, %v1893_v63  ;;  %v1938_v43 = vsel %vm539_vm10, %v1931_v30, %v1934_v39  ;;  %v1940_v60 = vsel %vm3782_vm3, %v1935_v45, 0.0 }
 0x266   :  { %v2065_v58 = vsel %vm807_vm11, %v5639_v59, %v5641_v7  ;;  %v1939_v10 = vsel %vm3730_vm1, %v1938_v43, 0.0  ;;  %v7070_v16 = vstv %s7065_s8  ;;  %v7071_v28 = vstv %s7066_s26  ;;  %s7092_s8 = sld [smem:[#allocation86_spill]]  ;;  %s7100_s26 = sld [smem:[#allocation87_spill]] }
 0x267   :  { %v1929_v13 = vadd.f32 %v1927_v55, %v1894_v21  ;;  %v1944_v48 = vmul.f32 %v7070_v16, %v1940_v60  ;;  %v1950_v1 = vmul.f32 %v7071_v28, %v1940_v60  ;;  %v7072_v25 = vstv %s7067_s4  ;;  %s7103_s4 = sld [smem:[#allocation90_spill]] }
 0x268   :  { %v1956_v63 = vmul.f32 %v7072_v25, %v1940_v60  ;;  %v7073_v46 = vmov %v7070_v16  ;;  %v7074_v2 = vmov %v7071_v28  ;;  %v7075_v39 = vmov %v7072_v25  ;;  %v7080_v16 = vld [vmem:[#allocation88_spill] sm:$0xff]  ;;  %v7086_v28 = vld [vmem:[#allocation102_spill] sm:$0xff] }
 0x269   :  { %v1943_v21 = vmul.f32 %v7073_v46, %v1939_v10  ;;  %v1949_v30 = vmul.f32 %v7074_v2, %v1939_v10  ;;  %v1955_v57 = vmul.f32 %v7075_v39, %v1939_v10  ;;  %v7076_v45 = vstv %s7069_s3  ;;  %s7110_s3 = sld [smem:[#allocation91_spill]] }
 0x26a   :  { %v1961_v9 = vmul.f32 %v7076_v45, %v1939_v10  ;;  %v1946_v20 = vadd.f32 %v1944_v48, %v1911_v31  ;;  %v1952_v26 = vadd.f32 %v1950_v1, %v1917_v18  ;;  %v1958_v40 = vadd.f32 %v1956_v63, %v1923_v47  ;;  %v7084_v48 = vld [vmem:[#allocation97_spill] sm:$0xff]  ;;  %v7088_v63 = vld [vmem:[#allocation96_spill] sm:$0xff] }
 0x26b   :  { %v7077_v41 = vmov %v7076_v45  ;;  %v1945_v3 = vadd.f32 %v1943_v21, %v1910_v32  ;;  %v1951_v44 = vadd.f32 %v1949_v30, %v1916_v22  ;;  %v1957_v11 = vadd.f32 %v1955_v57, %v1922_v14  ;;  %v7089_v21 = vld [vmem:[#allocation101_spill] sm:$0xff]  ;;  %v7090_v30 = vld [vmem:[#allocation109_spill] sm:$0xff] }
 0x26c   :  { %v1962_v12 = vmul.f32 %v7077_v41, %v1940_v60  ;;  %v1963_v15 = vadd.f32 %v1961_v9, %v1928_v24  ;;  %v1970_v0 = vadd.f32 %v4957_v38, %v1946_v20  ;;  %v1976_v31 = vadd.f32 %v4966_v37, %v1952_v26  ;;  %v7078_v24 = vld [vmem:[#allocation83_spill] sm:$0xff]  ;;  %v7091_v57 = vld [vmem:[#allocation111_spill] sm:$0xff] }
 0x26d   :  { %v1982_v18 = vadd.f32 %v4978_v53, %v1958_v40  ;;  %v1969_v47 = vadd.f32 %v4970_v49, %v1945_v3  ;;  %v1975_v55 = vadd.f32 %v5036_v62, %v1951_v44  ;;  %v1981_v43 = vadd.f32 %v5043_v23, %v1957_v11  ;;  %v7094_v40 = vld [vmem:[#allocation112_spill] sm:$0xff] }
 0x26e   :  { %v1964_v34 = vadd.f32 %v1962_v12, %v1929_v13  ;;  %v1987_v60 = vadd.f32 %v5046_v35, %v1963_v15  ;;  %v1994_v22 = vadd.f32 %v4993_v42, %v1970_v0  ;;  %v2000_v14 = vadd.f32 %v5009_v17, %v1976_v31  ;;  %v2132_v35 = vpop.permute.xlu0 %2131 }
 0x26f   :  { %v2006_v38 = vadd.f32 %v5020_v56, %v1982_v18  ;;  %v1993_v37 = vadd.f32 %v4990_v27, %v1969_v47  ;;  %v1999_v53 = vadd.f32 %v5006_v51, %v1975_v55  ;;  %v2005_v49 = vadd.f32 %v5017_v6, %v1981_v43  ;;  %v2134_v56 = vpop.permute.xlu1 %2133  ;;  %v7079_v51 = vld [vmem:[#allocation84_spill] sm:$0xff] }
 0x270   :  { %v1988_v32 = vadd.f32 %v4981_v50, %v1964_v34  ;;  %v2011_v62 = vadd.f32 %v5030_v36, %v1987_v60  ;;  %v2018_v50 = vadd.f32 %v5052_v54, %v1994_v22  ;;  %v2024_v42 = vadd.f32 %v5067_v5, %v2000_v14  ;;  %v7082_v36 = vld [vmem:[#allocation89_spill] sm:$0xff] }
 0x271   :  { %v2030_v17 = vadd.f32 %v5075_v8, %v2006_v38  ;;  %v2017_v27 = vadd.f32 %v5049_v29, %v1993_v37  ;;  %v2023_v13 = vadd.f32 %v7078_v24, %v1999_v53  ;;  %v2029_v10 = vadd.f32 %v7079_v51, %v2005_v49  ;;  %v7087_v29 = vld [vmem:[#allocation110_spill] sm:$0xff] }
 0x272   :  { %v2012_v23 = vadd.f32 %v5033_v19, %v1988_v32  ;;  %v2035_v6 = vadd.f32 %v7080_v16, %v2011_v62  ;;  %v2042_v54 = vadd.f32 %v7084_v48, %v2018_v50  ;;  %v2423_v5 = vstv %s5673_s20  ;;  %s5980_s20 = sld [smem:[#allocation6 + $0x86]] }
 0x273   :  { %v2429_v8 = vstv %s5675_s11  ;;  %v2048_v1 = vadd.f32 %v7086_v28, %v2024_v42  ;;  %v2054_v25 = vadd.f32 %v7087_v29, %v2030_v17  ;;  %v2041_v46 = vadd.f32 %v7088_v63, %v2017_v27  ;;  %s5982_s11 = sld [smem:[#allocation6 + $0x87]] }
 0x274   :  { %v2036_v19 = vadd.f32 %v7082_v36, %v2012_v23  ;;  %v2047_v2 = vadd.f32 %v7089_v21, %v2023_v13  ;;  %v2053_v39 = vadd.f32 %v7090_v30, %v2029_v10  ;;  %v2059_v45 = vadd.f32 %v7091_v57, %v2035_v6 }
 0x275   :  { %v2069_v9 = vsel %vm807_vm11, %v5641_v7, %v5639_v59  ;;  %v2070_v26 = vsel %vm4006_vm7, %v2065_v58, 0.0  ;;  %v7095_v3 = vstv %s7081_s0  ;;  %v7096_v11 = vstv %s7083_s19  ;;  %v2167_v7 = vpop.permute.xlu0 %2166  ;;  %v2169_v58 = vpop.permute.xlu1 %2168  ;;  %s7112_s0 = sld [smem:[#allocation92_spill]] }
 0x276   :  { %v2060_v41 = vadd.f32 %v7094_v40, %v2036_v19  ;;  %v2071_v12 = vsel %vm4016_vm8, %v2069_v9, 0.0  ;;  %v2074_v44 = vmul.f32 %v7095_v3, %v2070_v26  ;;  %v2080_v15 = vmul.f32 %v7096_v11, %v2070_v26  ;;  %s5992_s19 = sld [smem:[#allocation6 + $0x88]] }
 0x277   :  { %v7097_v34 = vmov %v7095_v3  ;;  %v7098_v31 = vmov %v7096_v11  ;;  %v7099_v47 = vstv %s7085_s29  ;;  %v2100_v59 = vsel %vm807_vm11, %v5669_v33, %v5671_v52  ;;  %s5994_s29 = sld [smem:[#allocation6 + $0x89]] }
 0x278   :  { %v2075_v0 = vmul.f32 %v7097_v34, %v2071_v12  ;;  %v2081_v18 = vmul.f32 %v7098_v31, %v2071_v12  ;;  %v2086_v55 = vmul.f32 %v7099_v47, %v2070_v26  ;;  %v2076_v43 = vadd.f32 %v2074_v44, %v2041_v46 }
 0x279   :  { %v2082_v60 = vadd.f32 %v2080_v15, %v2047_v2  ;;  %v7101_v32 = vmov %v7099_v47  ;;  %v7102_v14 = vstv %s7092_s8  ;;  %v2104_v17 = vsel %vm807_vm11, %v5671_v52, %v5669_v33  ;;  %v2202_v2 = vpop.permute.xlu0 %2201  ;;  %v2204_v30 = vpop.permute.xlu1 %2203  ;;  %s5998_s8 = sld [smem:[#allocation6 + $0x8a]] }
 0x27a   :  { %v2087_v22 = vmul.f32 %v7101_v32, %v2071_v12  ;;  %v2092_v38 = vmul.f32 %v7102_v14, %v2070_v26  ;;  %v2077_v37 = vadd.f32 %v2075_v0, %v2042_v54  ;;  %v2083_v53 = vadd.f32 %v2081_v18, %v2048_v1 }
 0x27b   :  { %v2088_v49 = vadd.f32 %v2086_v55, %v2053_v39  ;;  %v7104_v62 = vmov %v7102_v14  ;;  %v2105_v27 = vsel %vm4006_vm7, %v2100_v59, 0.0  ;;  %v2106_v13 = vsel %vm4016_vm8, %v2104_v17, 0.0 }
 0x27c   :  { %v2093_v23 = vmul.f32 %v7104_v62, %v2071_v12  ;;  %v2089_v50 = vadd.f32 %v2087_v22, %v2054_v25  ;;  %v2094_v42 = vadd.f32 %v2092_v38, %v2059_v45  ;;  %v7105_v51 = vstv %s5094_s24  ;;  %s5966_s24 = sld [smem:[#allocation6 + $0x83]] }
 0x27d   :  { %v2109_v10 = vmul.f32 %v7105_v51, %v2105_v27  ;;  %v7106_v16 = vstv %s7100_s26  ;;  %v7107_v36 = vmov %v7105_v51  ;;  %v7109_v28 = vstv %s7103_s4  ;;  %v2239_v17 = vpop.permute.xlu1 %2238  ;;  %s6000_s26 = sld [smem:[#allocation6 + $0x8b]]  ;;  %s6010_s4 = sld [smem:[#allocation6 + $0x8c]] }
 0x27e   :  { %v2095_v24 = vadd.f32 %v2093_v23, %v2060_v41  ;;  %v2115_v6 = vmul.f32 %v7106_v16, %v2105_v27  ;;  %v2110_v19 = vmul.f32 %v7107_v36, %v2106_v13  ;;  %v7108_v48 = vmov %v7106_v16 }
 0x27f   :  { %v2116_v54 = vmul.f32 %v7108_v48, %v2106_v13  ;;  %v2121_v1 = vmul.f32 %v7109_v28, %v2105_v27  ;;  %v2135_v33 = vsel %vm807_vm11, %v2132_v35, %v2134_v56  ;;  %v2111_v52 = vadd.f32 %v2109_v10, %v2076_v43 }
 0x280   :  { %v2117_v29 = vadd.f32 %v2115_v6, %v2082_v60  ;;  %v7111_v25 = vmov %v7109_v28  ;;  %v7113_v46 = vstv %s5112_s25  ;;  %v2112_v39 = vadd.f32 %v2110_v19, %v2077_v37  ;;  %s7154_s25 = sld [smem:[#allocation105_spill]] }
 0x281   :  { %v2122_v63 = vmul.f32 %v7111_v25, %v2106_v13  ;;  %v2127_v21 = vmul.f32 %v7113_v46, %v2105_v27  ;;  %v2118_v57 = vadd.f32 %v2116_v54, %v2083_v53  ;;  %v2123_v45 = vadd.f32 %v2121_v1, %v2088_v49 }
 0x282   :  { %v7114_v9 = vmov %v7113_v46  ;;  %v2139_v12 = vsel %vm807_vm11, %v2134_v56, %v2132_v35  ;;  %v2140_v3 = vsel %vm4006_vm7, %v2135_v33, 0.0  ;;  %v7115_v15 = vstv %s7110_s3  ;;  %s6012_s3 = sld [smem:[#allocation6 + $0x8d]] }
 0x283   :  { %v2128_v26 = vmul.f32 %v7114_v9, %v2106_v13  ;;  %v2124_v40 = vadd.f32 %v2122_v63, %v2089_v50  ;;  %v2129_v41 = vadd.f32 %v2127_v21, %v2094_v42  ;;  %v2141_v11 = vsel %vm4016_vm8, %v2139_v12, 0.0  ;;  %v2237_v42 = vpop.permute.xlu0 %2236 }
 0x284   :  { %v2144_v34 = vmul.f32 %v7115_v15, %v2140_v3  ;;  %v7116_v0 = vstv %s7112_s0  ;;  %v7117_v18 = vmov %v7115_v15  ;;  %v7119_v43 = vstv %s5126_s5  ;;  %s7145_s5 = sld [smem:[#allocation103_spill]]  ;;  %s6016_s0 = sld [smem:[#allocation6 + $0x8e]] }
 0x285   :  { %v2130_v44 = vadd.f32 %v2128_v26, %v2095_v24  ;;  %v2150_v31 = vmul.f32 %v7116_v0, %v2140_v3  ;;  %v2145_v47 = vmul.f32 %v7117_v18, %v2141_v11  ;;  %v7118_v55 = vmov %v7116_v0 }
 0x286   :  { %v2151_v59 = vmul.f32 %v7118_v55, %v2141_v11  ;;  %v2156_v60 = vmul.f32 %v7119_v43, %v2140_v3  ;;  %v2170_v35 = vsel %vm807_vm11, %v2167_v7, %v2169_v58  ;;  %v2146_v56 = vadd.f32 %v2144_v34, %v2111_v52 }
 0x287   :  { %v2152_v32 = vadd.f32 %v2150_v31, %v2117_v29  ;;  %v7120_v22 = vmov %v7119_v43  ;;  %v7121_v38 = vstv %s6877_s16  ;;  %v2147_v53 = vadd.f32 %v2145_v47, %v2112_v39  ;;  %s7152_s16 = sld [smem:[#allocation104_spill]] }
 0x288   :  { %v2157_v14 = vmul.f32 %v7120_v22, %v2141_v11  ;;  %v2162_v37 = vmul.f32 %v7121_v38, %v2140_v3  ;;  %v2153_v49 = vadd.f32 %v2151_v59, %v2118_v57  ;;  %v2158_v62 = vadd.f32 %v2156_v60, %v2123_v45 }
 0x289   :  { %v7122_v23 = vmov %v7121_v38  ;;  %v2174_v13 = vsel %vm807_vm11, %v2169_v58, %v2167_v7  ;;  %v2175_v51 = vsel %vm4006_vm7, %v2170_v35, 0.0  ;;  %v7123_v16 = vstv %s6878_s12  ;;  %s7142_s12 = sld [smem:[#allocation14_spill]] }
 0x28a   :  { %v2163_v50 = vmul.f32 %v7122_v23, %v2141_v11  ;;  %v2159_v27 = vadd.f32 %v2157_v14, %v2124_v40  ;;  %v2164_v24 = vadd.f32 %v2162_v37, %v2129_v41  ;;  %v2176_v10 = vsel %vm4016_vm8, %v2174_v13, 0.0  ;;  %v2274_v11 = vpop.permute.xlu1 %2273 }
 0x28b   :  { %v2179_v6 = vmul.f32 %v7123_v16, %v2175_v51  ;;  %v7124_v36 = vstv %s6879_s21  ;;  %v7125_v48 = vstv %s6882_s22  ;;  %v7126_v28 = vmov %v7123_v16  ;;  %s7169_s22 = sld [smem:[#allocation93_spill]]  ;;  %s5898_s21 = sld [smem:[#allocation6 + $0x7a]] }
 0x28c   :  { %v2185_v19 = vmul.f32 %v7124_v36, %v2175_v51  ;;  %v2191_v54 = vmul.f32 %v7125_v48, %v2175_v51  ;;  %v2180_v1 = vmul.f32 %v7126_v28, %v2176_v10  ;;  %v7127_v33 = vmov %v7124_v36 }
 0x28d   :  { %v2186_v52 = vmul.f32 %v7127_v33, %v2176_v10  ;;  %v7128_v29 = vmov %v7125_v48  ;;  %vm7129_vm0 = vcmask 924672   ;;  %v2165_v58 = vadd.f32 %v2163_v50, %v2130_v44  ;;  %v2272_v44 = vpop.permute.xlu0 %2271 }
 0x28e   :  { %v2192_v25 = vmul.f32 %v7128_v29, %v2176_v10  ;;  %v2205_v7 = vsel %vm7129_vm0, %v2202_v2, %v2204_v30  ;;  %v2181_v4 = vadd.f32 %v2179_v6, %v2146_v56  ;;  %v2187_v63 = vadd.f32 %v2185_v19, %v2152_v32  ;;  %vm7132_vm2 = vmmov %vm7129_vm0  ;;  %v2309_v33 = vpop.permute.xlu1 %2308 }
 0x28f   :  { %v7130_v46 = vstv %s6883_s18  ;;  %v2182_v39 = vadd.f32 %v2180_v1, %v2147_v53  ;;  %v2188_v57 = vadd.f32 %v2186_v52, %v2153_v49  ;;  %v2193_v45 = vadd.f32 %v2191_v54, %v2158_v62  ;;  %vm7133_vm3 = vmmov %vm7129_vm0  ;;  %s5920_s18 = sld [smem:[#allocation6 + $0x7c]] }
 0x290   :  { %v2197_v21 = vmul.f32 %v7130_v46, %v2175_v51  ;;  %v7131_v9 = vmov %v7130_v46  ;;  %v2194_v40 = vadd.f32 %v2192_v25, %v2159_v27  ;;  %v2209_v41 = vsel %vm7132_vm2, %v2204_v30, %v2202_v2  ;;  %vm7144_vm4 = vmmov %vm7129_vm0 }
 0x291   :  { %v2198_v26 = vmul.f32 %v7131_v9, %v2176_v10  ;;  %v2210_v12 = vsel %vm3730_vm1, %v2205_v7, 0.0  ;;  %v2240_v3 = vsel %vm7133_vm3, %v2237_v42, %v2239_v17  ;;  %v2211_v34 = vsel %vm4442_vm14, %v2209_v41, 0.0  ;;  %v2307_v1 = vpop.permute.xlu0 %2306  ;;  %vm7153_vm5 = vmmov %vm7129_vm0 }
 0x292   :  { %v7135_v0 = vstv %s5158_s7  ;;  %v7136_v18 = vstv %s6885_s14  ;;  %v7137_v55 = vstv %s5166_s27  ;;  %v7141_v32 = vstv %s5168_s10  ;;  %s7156_s7 = sld [smem:[#allocation106_spill]]  ;;  %vm7158_vm6 = vmmov %vm7129_vm0  ;;  %s7168_s14 = sld [smem:[#allocation108_spill]] }
 0x293   :  { %v2214_v31 = vmul.f32 %v7135_v0, %v2210_v12  ;;  %v2220_v47 = vmul.f32 %v7136_v18, %v2210_v12  ;;  %v2226_v59 = vmul.f32 %v7137_v55, %v2210_v12  ;;  %v7138_v43 = vmov %v7135_v0  ;;  %vm7159_vm8 = vmmov %vm7129_vm0  ;;  %s7179_s10 = sld [smem:[#allocation95_spill]]  ;;  %s5976_s27 = sld [smem:[#allocation6 + $0x85]] }
 0x294   :  { %v2215_v60 = vmul.f32 %v7138_v43, %v2211_v34  ;;  %v7139_v2 = vmov %v7136_v18  ;;  %v7140_v35 = vmov %v7137_v55  ;;  %v2232_v22 = vmul.f32 %v7141_v32, %v2210_v12  ;;  %vm7171_vm9 = vmmov %vm7129_vm0 }
 0x295   :  { %v2221_v30 = vmul.f32 %v7139_v2, %v2211_v34  ;;  %v2227_v56 = vmul.f32 %v7140_v35, %v2211_v34  ;;  %v2199_v14 = vadd.f32 %v2197_v21, %v2164_v24  ;;  %v2200_v38 = vadd.f32 %v2198_v26, %v2165_v58 }
 0x296   :  { %v2216_v37 = vadd.f32 %v2214_v31, %v2181_v4  ;;  %v2222_v53 = vadd.f32 %v2220_v47, %v2187_v63  ;;  %v2217_v49 = vadd.f32 %v2215_v60, %v2182_v39  ;;  %v2228_v23 = vadd.f32 %v2226_v59, %v2193_v45 }
 0x297   :  { %v2223_v62 = vadd.f32 %v2221_v30, %v2188_v57  ;;  %v7143_v50 = vmov %v7141_v32  ;;  %v2229_v13 = vadd.f32 %v2227_v56, %v2194_v40  ;;  %v2234_v51 = vadd.f32 %v2232_v22, %v2199_v14  ;;  %v2342_v22 = vpop.permute.xlu0 %2341  ;;  %v2344_v14 = vpop.permute.xlu1 %2343 }
 0x298   :  { %v2233_v27 = vmul.f32 %v7143_v50, %v2211_v34  ;;  %v2244_v10 = vsel %vm7144_vm4, %v2239_v17, %v2237_v42  ;;  %v2245_v16 = vsel %vm3730_vm1, %v2240_v3, 0.0  ;;  %v7146_v6 = vstv %s5174_s1  ;;  %s7167_s1 = sld [smem:[#allocation107_spill]] }
 0x299   :  { %v2246_v24 = vsel %vm4442_vm14, %v2244_v10, 0.0  ;;  %v2249_v36 = vmul.f32 %v7146_v6, %v2245_v16  ;;  %v7147_v19 = vstv %s5176_s23  ;;  %v7148_v54 = vstv %s7142_s12  ;;  %s5942_s23 = sld [smem:[#allocation6 + $0x7f]] }
 0x29a   :  { %v2255_v48 = vmul.f32 %v7147_v19, %v2245_v16  ;;  %v2261_v28 = vmul.f32 %v7148_v54, %v2245_v16  ;;  %v7149_v52 = vmov %v7146_v6  ;;  %v7150_v25 = vmov %v7147_v19  ;;  %s6018_s12 = sld [smem:[#allocation6 + $0x8f]] }
 0x29b   :  { %v2250_v29 = vmul.f32 %v7149_v52, %v2246_v24  ;;  %v2256_v7 = vmul.f32 %v7150_v25, %v2246_v24  ;;  %v7151_v42 = vmov %v7148_v54  ;;  %v2275_v58 = vsel %vm7153_vm5, %v2272_v44, %v2274_v11 }
 0x29c   :  { %v2262_v17 = vmul.f32 %v7151_v42, %v2246_v24  ;;  %v2235_v4 = vadd.f32 %v2233_v27, %v2200_v38  ;;  %v2251_v63 = vadd.f32 %v2249_v36, %v2216_v37  ;;  %v2257_v46 = vadd.f32 %v2255_v48, %v2222_v53 }
 0x29d   :  { %v7155_v21 = vstv %s7145_s5  ;;  %v2252_v57 = vadd.f32 %v2250_v29, %v2217_v49  ;;  %v2258_v45 = vadd.f32 %v2256_v7, %v2223_v62  ;;  %v2263_v9 = vadd.f32 %v2261_v28, %v2228_v23  ;;  %s6020_s5 = sld [smem:[#allocation7]] }
 0x29e   :  { %v2267_v39 = vmul.f32 %v7155_v21, %v2245_v16  ;;  %v7157_v26 = vmov %v7155_v21  ;;  %v2264_v41 = vadd.f32 %v2262_v17, %v2229_v13  ;;  %v2279_v12 = vsel %vm7158_vm6, %v2274_v11, %v2272_v44  ;;  %v2377_v21 = vpop.permute.xlu0 %2376 }
 0x29f   :  { %v2268_v40 = vmul.f32 %v7157_v26, %v2246_v24  ;;  %v2280_v3 = vsel %vm3730_vm1, %v2275_v58, 0.0  ;;  %v2310_v34 = vsel %vm7159_vm8, %v2307_v1, %v2309_v33  ;;  %v2281_v0 = vsel %vm4442_vm14, %v2279_v12, 0.0 }
 0x2a0   :  { %v7160_v31 = vstv %s7152_s16  ;;  %v7161_v47 = vstv %s5204_s17  ;;  %v7162_v59 = vstv %s7154_s25  ;;  %v7166_v56 = vstv %s7156_s7  ;;  %s7177_s17 = sld [smem:[#allocation94_spill]]  ;;  %s6022_s16 = sld [smem:[#allocation7 + $0x1]] }
 0x2a1   :  { %v2284_v18 = vmul.f32 %v7160_v31, %v2280_v3  ;;  %v2290_v55 = vmul.f32 %v7161_v47, %v2280_v3  ;;  %v2296_v43 = vmul.f32 %v7162_v59, %v2280_v3  ;;  %v7163_v60 = vmov %v7160_v31  ;;  %s6028_s25 = sld [smem:[#allocation7 + $0x2]]  ;;  %s6030_s7 = sld [smem:[#allocation7 + $0x3]] }
 0x2a2   :  { %v2285_v2 = vmul.f32 %v7163_v60, %v2281_v0  ;;  %v7164_v30 = vmov %v7161_v47  ;;  %v7165_v44 = vmov %v7162_v59  ;;  %v2302_v32 = vmul.f32 %v7166_v56, %v2280_v3 }
 0x2a3   :  { %v2291_v35 = vmul.f32 %v7164_v30, %v2281_v0  ;;  %v2297_v11 = vmul.f32 %v7165_v44, %v2281_v0  ;;  %v2269_v38 = vadd.f32 %v2267_v39, %v2234_v51  ;;  %v2270_v37 = vadd.f32 %v2268_v40, %v2235_v4  ;;  %v2379_v39 = vpop.permute.xlu1 %2378 }
 0x2a4   :  { %v2286_v53 = vadd.f32 %v2284_v18, %v2251_v63  ;;  %v2292_v49 = vadd.f32 %v2290_v55, %v2257_v46  ;;  %v2287_v62 = vadd.f32 %v2285_v2, %v2252_v57  ;;  %v2298_v50 = vadd.f32 %v2296_v43, %v2263_v9 }
 0x2a5   :  { %v2293_v23 = vadd.f32 %v2291_v35, %v2258_v45  ;;  %v7170_v27 = vmov %v7166_v56  ;;  %v2299_v10 = vadd.f32 %v2297_v11, %v2264_v41  ;;  %v2304_v16 = vadd.f32 %v2302_v32, %v2269_v38 }
 0x2a6   :  { %v2303_v13 = vmul.f32 %v7170_v27, %v2281_v0  ;;  %v2314_v24 = vsel %vm7171_vm9, %v2309_v33, %v2307_v1  ;;  %v2315_v51 = vsel %vm3730_vm1, %v2310_v34, 0.0  ;;  %v7172_v36 = vstv %s7167_s1 }
 0x2a7   :  { %v2316_v6 = vsel %vm4442_vm14, %v2314_v24, 0.0  ;;  %v2319_v19 = vmul.f32 %v7172_v36, %v2315_v51  ;;  %v7173_v48 = vstv %s7168_s14  ;;  %v7174_v28 = vstv %s5238_s13  ;;  %s5911_s13 = sld [smem:[#allocation6 + $0x7b]] }
 0x2a8   :  { %v2325_v54 = vmul.f32 %v7173_v48, %v2315_v51  ;;  %v2331_v52 = vmul.f32 %v7174_v28, %v2315_v51  ;;  %v7175_v29 = vmov %v7172_v36  ;;  %v7176_v7 = vmov %v7173_v48 }
 0x2a9   :  { %v2320_v25 = vmul.f32 %v7175_v29, %v2316_v6  ;;  %v2326_v42 = vmul.f32 %v7176_v7, %v2316_v6  ;;  %v7178_v17 = vstv %s7169_s22  ;;  %vm7180_vm11 = vcmask 916480   ;;  %v2412_v29 = vpop.permute.xlu0 %2411  ;;  %s7208_s22 = sld [smem:[#allocation113_spill]] }
 0x2aa   :  { %v2337_v1 = vmul.f32 %v7178_v17, %v2315_v51  ;;  %v2345_v61 = vsel %vm7180_vm11, %v2342_v22, %v2344_v14  ;;  %v2305_v33 = vadd.f32 %v2303_v13, %v2270_v37  ;;  %v2321_v15 = vadd.f32 %v2319_v19, %v2286_v53  ;;  %vm7183_vm1 = vmmov %vm7180_vm11 }
 0x2ab   :  { %v7181_v58 = vmov %v7174_v28  ;;  %v7182_v63 = vmov %v7178_v17  ;;  %v2322_v57 = vadd.f32 %v2320_v25, %v2287_v62  ;;  %v2327_v45 = vadd.f32 %v2325_v54, %v2292_v49  ;;  %vm7189_vm14 = vmmov %vm7183_vm1  ;;  %v2414_v25 = vpop.permute.xlu1 %2413 }
 0x2ac   :  { %v2332_v4 = vmul.f32 %v7181_v58, %v2316_v6  ;;  %v2338_v46 = vmul.f32 %v7182_v63, %v2316_v6  ;;  %v2328_v9 = vadd.f32 %v2326_v42, %v2293_v23  ;;  %v2333_v26 = vadd.f32 %v2331_v52, %v2298_v50  ;;  %vm7194_vm0 = vmmov %vm7183_vm1 }
 0x2ad   :  { %v2339_v40 = vadd.f32 %v2337_v1, %v2304_v16  ;;  %v2349_v41 = vsel %vm7183_vm1, %v2344_v14, %v2342_v22  ;;  %v7184_v12 = vstv %s7177_s17  ;;  %v7185_v34 = vstv %s7179_s10  ;;  %vm7203_vm2 = vmmov %vm7194_vm0 }
 0x2ae   :  { %v2354_v3 = vmul.f32 %v7184_v12, %v2345_v61  ;;  %v2360_v0 = vmul.f32 %v7185_v34, %v2345_v61  ;;  %v2351_v18 = vsel %vm945_vm13, %v2349_v41, 0.0  ;;  %v7187_v47 = vstv %s5254_s15  ;;  %s5940_s15 = sld [smem:[#allocation6 + $0x7e]]  ;;  %vm7204_vm3 = vmmov %vm7194_vm0 }
 0x2af   :  { %v2366_v55 = vmul.f32 %v7187_v47, %v2345_v61  ;;  %v7188_v59 = vstv %s5256_s6  ;;  %v2380_v60 = vsel %vm7189_vm14, %v2377_v21, %v2379_v39  ;;  %v2334_v2 = vadd.f32 %v2332_v4, %v2299_v10  ;;  %s5926_s6 = sld [smem:[#allocation6 + $0x7d]]  ;;  %vm7205_vm4 = vmmov %vm7194_vm0 }
 0x2b0   :  { %v2372_v43 = vmul.f32 %v7188_v59, %v2345_v61  ;;  %v2340_v30 = vadd.f32 %v2338_v46, %v2305_v33  ;;  %v7190_v35 = vmov %v7184_v12  ;;  %v7191_v11 = vmov %v7185_v34  ;;  %vm7206_vm5 = vmmov %vm7194_vm0 }
 0x2b1   :  { %v2355_v44 = vmul.f32 %v7190_v35, %v2351_v18  ;;  %v2361_v56 = vmul.f32 %v7191_v11, %v2351_v18  ;;  %v2356_v32 = vadd.f32 %v2354_v3, %v2321_v15  ;;  %v2362_v22 = vadd.f32 %v2360_v0, %v2327_v45 }
 0x2b2   :  { %v7192_v14 = vmov %v7187_v47  ;;  %v7193_v37 = vmov %v7188_v59  ;;  %v2368_v49 = vadd.f32 %v2366_v55, %v2333_v26  ;;  %v2374_v62 = vadd.f32 %v2372_v43, %v2339_v40  ;;  %v2447_v59 = vpop.permute.xlu0 %2446 }
 0x2b3   :  { %v2367_v38 = vmul.f32 %v7192_v14, %v2351_v18  ;;  %v2373_v53 = vmul.f32 %v7193_v37, %v2351_v18  ;;  %v2384_v23 = vsel %vm7194_vm0, %v2379_v39, %v2377_v21  ;;  %v7195_v50 = vstv %s5290_s28  ;;  %s5950_s28 = sld [smem:[#allocation6 + $0x81]] }
 0x2b4   :  { %v2389_v27 = vmul.f32 %v7195_v50, %v2380_v60  ;;  %v2357_v13 = vadd.f32 %v2355_v44, %v2322_v57  ;;  %v2363_v10 = vadd.f32 %v2361_v56, %v2328_v9  ;;  %v2386_v16 = vsel %vm945_vm13, %v2384_v23, 0.0 }
 0x2b5   :  { %v7196_v24 = vstv %s5292_s2  ;;  %v2369_v6 = vadd.f32 %v2367_v38, %v2334_v2  ;;  %v7197_v36 = vmov %v7195_v50  ;;  %v7199_v28 = vstv %s5316_s30  ;;  %s5964_s30 = sld [smem:[#allocation6 + $0x82]]  ;;  %s5974_s2 = sld [smem:[#allocation6 + $0x84]] }
 0x2b6   :  { %v2395_v51 = vmul.f32 %v7196_v24, %v2380_v60  ;;  %v2390_v19 = vmul.f32 %v7197_v36, %v2386_v16  ;;  %v7198_v48 = vmov %v7196_v24  ;;  %v2401_v52 = vmul.f32 %v7199_v28, %v2380_v60  ;;  %v2482_v24 = vpop.permute.xlu0 %2481 }
 0x2b7   :  { %v2396_v54 = vmul.f32 %v7198_v48, %v2386_v16  ;;  %v2375_v7 = vadd.f32 %v2373_v53, %v2340_v30  ;;  %v7200_v42 = vmov %v7199_v28  ;;  %v7201_v1 = vstv %s5318_s9  ;;  %s5948_s9 = sld [smem:[#allocation6 + $0x80]] }
 0x2b8   :  { %v2402_v17 = vmul.f32 %v7200_v42, %v2386_v16  ;;  %v2407_v61 = vmul.f32 %v7201_v1, %v2380_v60  ;;  %v7202_v33 = vmov %v7201_v1  ;;  %v2391_v58 = vadd.f32 %v2389_v27, %v2356_v32  ;;  %v2449_v60 = vpop.permute.xlu1 %2448 }
 0x2b9   :  { %v2408_v15 = vmul.f32 %v7202_v33, %v2386_v16  ;;  %v2392_v4 = vadd.f32 %v2390_v19, %v2357_v13  ;;  %v2397_v63 = vadd.f32 %v2395_v51, %v2362_v22  ;;  %v2435_v46 = vstv %s5898_s21 }
 0x2ba   :  { %v2398_v21 = vadd.f32 %v2396_v54, %v2363_v10  ;;  %v2403_v39 = vadd.f32 %v2401_v52, %v2368_v49  ;;  %v2404_v57 = vadd.f32 %v2402_v17, %v2369_v6  ;;  %v2409_v45 = vadd.f32 %v2407_v61, %v2374_v62 }
 0x2bb   :  { %v2410_v9 = vadd.f32 %v2408_v15, %v2375_v7  ;;  %v2441_v26 = vstv %s5911_s13  ;;  %v2415_v40 = vsel %vm7203_vm2, %v2412_v29, %v2414_v25  ;;  %v2419_v41 = vsel %vm7204_vm3, %v2414_v25, %v2412_v29 }
 0x2bc   :  { %v2421_v12 = vsel %vm945_vm13, %v2419_v41, 0.0  ;;  %v2424_v3 = vmul.f32 %v2423_v5, %v2415_v40  ;;  %v2430_v34 = vmul.f32 %v2429_v8, %v2415_v40  ;;  %v2436_v0 = vmul.f32 %v2435_v46, %v2415_v40  ;;  %v2484_v36 = vpop.permute.xlu1 %2483 }
 0x2bd   :  { %v2425_v18 = vmul.f32 %v2423_v5, %v2421_v12  ;;  %v2431_v47 = vmul.f32 %v2429_v8, %v2421_v12  ;;  %v2437_v55 = vmul.f32 %v2435_v46, %v2421_v12  ;;  %v2458_v43 = vstv %s5920_s18 }
 0x2be   :  { %v2426_v2 = vadd.f32 %v2424_v3, %v2391_v58  ;;  %v2442_v30 = vmul.f32 %v2441_v26, %v2415_v40  ;;  %v2443_v35 = vmul.f32 %v2441_v26, %v2421_v12  ;;  %v2464_v44 = vstv %s5926_s6  ;;  %v2517_v40 = vpop.permute.xlu0 %2516 }
 0x2bf   :  { %v2427_v11 = vadd.f32 %v2425_v18, %v2392_v4  ;;  %v2432_v56 = vadd.f32 %v2430_v34, %v2397_v63  ;;  %v2433_v32 = vadd.f32 %v2431_v47, %v2398_v21  ;;  %v2438_v5 = vadd.f32 %v2436_v0, %v2403_v39 }
 0x2c0   :  { %v2439_v22 = vadd.f32 %v2437_v55, %v2404_v57  ;;  %v2470_v8 = vstv %s5940_s15  ;;  %v2476_v14 = vstv %s5942_s23  ;;  %v2450_v38 = vsel %vm7205_vm4, %v2447_v59, %v2449_v60  ;;  %v2519_v41 = vpop.permute.xlu1 %2518 }
 0x2c1   :  { %v2454_v37 = vsel %vm7206_vm5, %v2449_v60, %v2447_v59  ;;  %v2459_v53 = vmul.f32 %v2458_v43, %v2450_v38  ;;  %v2465_v49 = vmul.f32 %v2464_v44, %v2450_v38  ;;  %v2471_v62 = vmul.f32 %v2470_v8, %v2450_v38 }
 0x2c2   :  { %v2444_v23 = vadd.f32 %v2442_v30, %v2409_v45  ;;  %v2445_v50 = vadd.f32 %v2443_v35, %v2410_v9  ;;  %v2456_v27 = vsel %vm945_vm13, %v2454_v37, 0.0  ;;  %v2477_v13 = vmul.f32 %v2476_v14, %v2450_v38 }
 0x2c3   :  { %v2460_v10 = vmul.f32 %v2458_v43, %v2456_v27  ;;  %v2466_v16 = vmul.f32 %v2464_v44, %v2456_v27  ;;  %v2493_v51 = vstv %s5948_s9  ;;  %v2499_v6 = vstv %s5950_s28  ;;  %s7209_s9 = sld [smem:[#allocation114_spill]] }
 0x2c4   :  { %v2461_v19 = vadd.f32 %v2459_v53, %v2426_v2  ;;  %v2467_v48 = vadd.f32 %v2465_v49, %v2432_v56  ;;  %v2472_v54 = vmul.f32 %v2470_v8, %v2456_v27  ;;  %v2478_v28 = vmul.f32 %v2476_v14, %v2456_v27  ;;  %v2552_v49 = vpop.permute.xlu0 %2551 }
 0x2c5   :  { %v2462_v31 = vadd.f32 %v2460_v10, %v2427_v11  ;;  %v2468_v52 = vadd.f32 %v2466_v16, %v2433_v32  ;;  %v2473_v29 = vadd.f32 %v2471_v62, %v2438_v5  ;;  %v2479_v25 = vadd.f32 %v2477_v13, %v2444_v23  ;;  %v2554_v62 = vpop.permute.xlu1 %2553 }
 0x2c6   :  { %v2505_v7 = vstv %s5964_s30  ;;  %v2511_v42 = vstv %s5966_s24  ;;  %v2485_v17 = vsel %vm1236_vm12, %v2482_v24, %v2484_v36  ;;  %v2489_v1 = vsel %vm1236_vm12, %v2484_v36, %v2482_v24  ;;  %s7210_s24 = sld [smem:[#allocation116_spill]] }
 0x2c7   :  { %v2474_v61 = vadd.f32 %v2472_v54, %v2439_v22  ;;  %v2480_v33 = vadd.f32 %v2478_v28, %v2445_v50  ;;  %v2490_v15 = vsel %vm4006_vm7, %v2485_v17, 0.0  ;;  %v2491_v4 = vsel %vm4623_vm15, %v2489_v1, 0.0 }
 0x2c8   :  { %v2494_v63 = vmul.f32 %v2493_v51, %v2490_v15  ;;  %v2495_v46 = vmul.f32 %v2493_v51, %v2491_v4  ;;  %v2500_v21 = vmul.f32 %v2499_v6, %v2490_v15  ;;  %v2501_v39 = vmul.f32 %v2499_v6, %v2491_v4 }
 0x2c9   :  { %v2506_v57 = vmul.f32 %v2505_v7, %v2490_v15  ;;  %v2507_v45 = vmul.f32 %v2505_v7, %v2491_v4  ;;  %v2512_v9 = vmul.f32 %v2511_v42, %v2490_v15  ;;  %v2513_v26 = vmul.f32 %v2511_v42, %v2491_v4 }
 0x2ca   :  { %v2496_v12 = vadd.f32 %v2494_v63, %v2461_v19  ;;  %v2497_v3 = vadd.f32 %v2495_v46, %v2462_v31  ;;  %v2528_v34 = vstv %s5974_s2  ;;  %v2534_v0 = vstv %s5976_s27  ;;  %v2587_v63 = vpop.permute.xlu0 %2586 }
 0x2cb   :  { %v2502_v18 = vadd.f32 %v2500_v21, %v2467_v48  ;;  %v2503_v47 = vadd.f32 %v2501_v39, %v2468_v52  ;;  %v2508_v55 = vadd.f32 %v2506_v57, %v2473_v29  ;;  %v2509_v59 = vadd.f32 %v2507_v45, %v2474_v61  ;;  %v2589_v39 = vpop.permute.xlu1 %2588 }
 0x2cc   :  { %v2540_v43 = vstv %s5980_s20  ;;  %v2546_v60 = vstv %s5982_s11  ;;  %v2520_v2 = vsel %vm1236_vm12, %v2517_v40, %v2519_v41  ;;  %v2524_v30 = vsel %vm1236_vm12, %v2519_v41, %v2517_v40 }
 0x2cd   :  { %v2514_v35 = vadd.f32 %v2512_v9, %v2479_v25  ;;  %v2515_v44 = vadd.f32 %v2513_v26, %v2480_v33  ;;  %v2525_v11 = vsel %vm4006_vm7, %v2520_v2, 0.0  ;;  %v2526_v56 = vsel %vm4623_vm15, %v2524_v30, 0.0 }
 0x2ce   :  { %v2529_v32 = vmul.f32 %v2528_v34, %v2525_v11  ;;  %v2530_v5 = vmul.f32 %v2528_v34, %v2526_v56  ;;  %v2535_v22 = vmul.f32 %v2534_v0, %v2525_v11  ;;  %v2536_v8 = vmul.f32 %v2534_v0, %v2526_v56 }
 0x2cf   :  { %v2541_v14 = vmul.f32 %v2540_v43, %v2525_v11  ;;  %v2542_v38 = vmul.f32 %v2540_v43, %v2526_v56  ;;  %v2547_v37 = vmul.f32 %v2546_v60, %v2525_v11  ;;  %v2548_v53 = vmul.f32 %v2546_v60, %v2526_v56 }
 0x2d0   :  { %v2531_v23 = vadd.f32 %v2529_v32, %v2496_v12  ;;  %v2532_v50 = vadd.f32 %v2530_v5, %v2497_v3  ;;  %v2563_v27 = vstv %s5992_s19  ;;  %v2569_v13 = vstv %s5994_s29 }
 0x2d1   :  { %v2537_v10 = vadd.f32 %v2535_v22, %v2502_v18  ;;  %v2538_v16 = vadd.f32 %v2536_v8, %v2503_v47  ;;  %v2543_v24 = vadd.f32 %v2541_v14, %v2508_v55  ;;  %v2544_v51 = vadd.f32 %v2542_v38, %v2509_v59 }
 0x2d2   :  { %v2575_v6 = vstv %s5998_s8  ;;  %v2581_v36 = vstv %s6000_s26  ;;  %v2555_v19 = vsel %vm1236_vm12, %v2552_v49, %v2554_v62  ;;  %v2559_v48 = vsel %vm1236_vm12, %v2554_v62, %v2552_v49 }
 0x2d3   :  { %v2549_v54 = vadd.f32 %v2547_v37, %v2514_v35  ;;  %v2550_v28 = vadd.f32 %v2548_v53, %v2515_v44  ;;  %v2560_v31 = vsel %vm4006_vm7, %v2555_v19, 0.0  ;;  %v2561_v52 = vsel %vm4623_vm15, %v2559_v48, 0.0  ;;  %v3167_v19 = vld [vmem:[%s7208_s22 + $0x8] sm:$0xff] }
 0x2d4   :  { %v2564_v29 = vmul.f32 %v2563_v27, %v2560_v31  ;;  %v2565_v25 = vmul.f32 %v2563_v27, %v2561_v52  ;;  %v2570_v7 = vmul.f32 %v2569_v13, %v2560_v31  ;;  %v2571_v42 = vmul.f32 %v2569_v13, %v2561_v52 }
 0x2d5   :  { %v2576_v17 = vmul.f32 %v2575_v6, %v2560_v31  ;;  %v2577_v1 = vmul.f32 %v2575_v6, %v2561_v52  ;;  %v2582_v61 = vmul.f32 %v2581_v36, %v2560_v31  ;;  %v2583_v33 = vmul.f32 %v2581_v36, %v2561_v52  ;;  %v3169_v31 = vld [vmem:[%s7208_s22 + $0x10] sm:$0xff] }
 0x2d6   :  { %v2566_v15 = vadd.f32 %v2564_v29, %v2531_v23  ;;  %v2567_v4 = vadd.f32 %v2565_v25, %v2532_v50  ;;  %v2598_v46 = vstv %s6010_s4  ;;  %v2604_v21 = vstv %s6012_s3  ;;  %s7211_s4 = sld [smem:[#allocation115_spill]] }
 0x2d7   :  { %v2572_v57 = vadd.f32 %v2570_v7, %v2537_v10  ;;  %v2573_v45 = vadd.f32 %v2571_v42, %v2538_v16  ;;  %v2578_v9 = vadd.f32 %v2576_v17, %v2543_v24  ;;  %v2579_v26 = vadd.f32 %v2577_v1, %v2544_v51  ;;  %v3170_v7 = vld [vmem:[%s7208_s22 + $0x18] sm:$0xff] }
 0x2d8   :  { %v2584_v40 = vadd.f32 %v2582_v61, %v2549_v54  ;;  %v2585_v41 = vadd.f32 %v2583_v33, %v2550_v28  ;;  %v2610_v12 = vstv %s6016_s0  ;;  %v2616_v3 = vstv %s6018_s12  ;;  %v3168_v54 = vld [vmem:[%s7208_s22] sm:$0xff]  ;;  %s7212_s12 = sld [smem:[#allocation117_spill]] }
 0x2d9   :  { %v2622_v34 = vstv %s6020_s5  ;;  %v2626_v0 = vstv %s6022_s16  ;;  %v2590_v18 = vsel %vm1236_vm12, %v2587_v63, %v2589_v39  ;;  %v2594_v47 = vsel %vm1236_vm12, %v2589_v39, %v2587_v63  ;;  %s3239_s5 = smov 4  }
 0x2da   :  { %v2630_v55 = vstv %s6028_s25  ;;  %v2634_v59 = vstv %s6030_s7  ;;  %v2595_v43 = vsel %vm4006_vm7, %v2590_v18, 0.0  ;;  %v2596_v60 = vsel %vm4623_vm15, %v2594_v47, 0.0  ;;  %s7213_s7 = sld [smem:[#allocation118_spill]] }
 0x2db   :  { %v2599_v2 = vmul.f32 %v2598_v46, %v2595_v43  ;;  %v2600_v30 = vmul.f32 %v2598_v46, %v2596_v60  ;;  %v2605_v35 = vmul.f32 %v2604_v21, %v2595_v43  ;;  %v2606_v44 = vmul.f32 %v2604_v21, %v2596_v60 }
 0x2dc   :  { %v2611_v11 = vmul.f32 %v2610_v12, %v2595_v43  ;;  %v2612_v56 = vmul.f32 %v2610_v12, %v2596_v60  ;;  %v2617_v32 = vmul.f32 %v2616_v3, %v2595_v43  ;;  %v2618_v5 = vmul.f32 %v2616_v3, %v2596_v60 }
 0x2dd   :  { %v2601_v22 = vadd.f32 %v2599_v2, %v2566_v15  ;;  %v2602_v8 = vadd.f32 %v2600_v30, %v2567_v4  ;;  %v2607_v14 = vadd.f32 %v2605_v35, %v2572_v57  ;;  %v2608_v38 = vadd.f32 %v2606_v44, %v2573_v45  ;;  %v2758_v30 = vld [vmem:[%s7210_s24] sm:$0xff]  ;;  %v2759_v35 = vld [vmem:[%s7210_s24 + $0x8] sm:$0xff] }
 0x2de   :  { %v2613_v37 = vadd.f32 %v2611_v11, %v2578_v9  ;;  %v2614_v53 = vadd.f32 %v2612_v56, %v2579_v26  ;;  %v2619_v49 = vadd.f32 %v2617_v32, %v2584_v40  ;;  %v2620_v20 = vadd.f32 %v2618_v5, %v2585_v41  ;;  %v2697_v40 = vld [vmem:[%s7209_s9] sm:$0xf]  ;;  %v2760_v11 = vld [vmem:[%s7210_s24 + $0x10] sm:$0xff]  ;;  %v2761_v56 = vld [vmem:[%s7210_s24 + $0x18] sm:$0xff] }
 0x2df   :  { %v2623_v62 = vadd.f32 %v2622_v34, %v2601_v22  ;;  %v2624_v23 = vadd.f32 %v2622_v34, %v2602_v8  ;;  %v2627_v58 = vadd.f32 %v2626_v0, %v2607_v14  ;;  %v2628_v50 = vadd.f32 %v2626_v0, %v2608_v38  ;;  %v3125_v5 = vld [vmem:[%s7211_s4] ss:$0 sm:$0xff] }
 0x2e0   :  { %v2631_v27 = vadd.f32 %v2630_v55, %v2613_v37  ;;  %v2632_v13 = vadd.f32 %v2630_v55, %v2614_v53  ;;  %v2635_v10 = vadd.f32 %v2634_v59, %v2619_v49  ;;  %v2636_v16 = vadd.f32 %v2634_v59, %v2620_v20 }
 0x2e1   :  { %v2644_v24 = vcombine.low %v2627_v58, %v2628_v50  ;;  %v2639_v51 = vcombine.low %v2623_v62, %v2624_v23  ;;  %vm2660_vm7 = vcmask 1043456   ;;  %v2698_v41 = vpack.c.bf16 %v2697_v40, %v2697_v40  ;;  %v3127_v62 = vld [vmem:[%s7212_s12] ss:$0 sm:$0xff] }
 0x2e2   :  { %v2649_v6 = vcombine.low %v2631_v27, %v2632_v13  ;;  %v2654_v36 = vcombine.low %v2635_v10, %v2636_v16  ;;  %vm2710_vm12 = vcmask 1041408   ;;  %v3237_v12 = vmov 0.0  }
 0x2e3   :  { %v2646_v48 = vadd.f32 %v3167_v19, %v2644_v24  ;;  %v2641_v28 = vadd.f32 %v3168_v54, %v2639_v51  ;;  %3134 = vmatprep.subr.bf16.mxu0 %v3237_v12  ;;  %v2712_v3 = vsel %vm2710_vm12, %v2698_v41, 0  ;;  %3140 = vmatprep.subr.bf16.mxu1 %v3237_v12  ;;  %vm3238_vm13 = vmmov 0  }
 0x2e4   :  { %v2651_v52 = vadd.f32 %v3169_v31, %v2649_v6  ;;  %v2656_v42 = vadd.f32 %v3170_v7, %v2654_v36  ;;  %3135 = vmatpush3.bf16.msra.mxu0 %v2712_v3  ;;  %3136 = vmatprep.mubr.msk.bf16.mxu0 %vm3238_vm13, %v3237_v12  ;;  %vm2691_vm15 = vcmask 15360   ;;  %vm2693_vm6 = vcmask 23552  }
 0x2e5   :  { %v2667_v29 = vcombine.high %v2646_v48, %v2646_v48  ;;  %v2658_v25 = vcombine.high %v2641_v28, %v2641_v28  ;;  %v2669_v1 = vsel %vm2660_vm7, %v2646_v48, 0.0  ;;  %v2661_v33 = vsel %vm2660_vm7, %v2641_v28, 0.0  ;;  %3144 = vmatprep.mubr.msk.bf16.mxu1 %vm3238_vm13, %v3237_v12 }
 0x2e6   :  { %v2675_v17 = vcombine.high %v2651_v52, %v2651_v52  ;;  %v2683_v21 = vcombine.high %v2656_v42, %v2656_v42  ;;  %v2677_v39 = vsel %vm2660_vm7, %v2651_v52, 0.0  ;;  %v2685_v9 = vsel %vm2660_vm7, %v2656_v42, 0.0 }
 0x2e7   :  { %v2670_v61 = vsel %vm2660_vm7, %v2667_v29, 0.0  ;;  %v2662_v15 = vsel %vm2660_vm7, %v2658_v25, 0.0  ;;  %vm2706_vm8 = vcmask 31744   ;;  %v2762_v44 = vpack.c.bf16 %v2759_v35, %v2758_v30 }
 0x2e8   :  { %v2671_v4 = vadd.f32 %v2670_v61, %v2669_v1  ;;  %v2663_v63 = vadd.f32 %v2662_v15, %v2661_v33  ;;  %v2678_v46 = vsel %vm2660_vm7, %v2675_v17, 0.0  ;;  %v2686_v45 = vsel %vm2660_vm7, %v2683_v21, 0.0 }
 0x2e9   :  { %v2679_v57 = vadd.f32 %v2678_v46, %v2677_v39  ;;  %v2687_v26 = vadd.f32 %v2686_v45, %v2685_v9  ;;  %3141 = vmatpush3.bf16.msra.mxu1 %v2762_v44  ;;  %v2763_v32 = vpack.c.bf16 %v2761_v56, %v2760_v11  ;;  %vm2771_vm9 = vcmask 261120  }
 0x2ea   :  { %2672 = vadd.xlane.f32.xlu1 %v2671_v4  ;;  %2664 = vadd.xlane.f32.xlu0 %v2663_v63  ;;  %vm2820_vm11 = vcmask 293888  }
 0x2eb   :  { %3142 = vmatprep.subr.bf16.mxu1 %v3237_v12 }
 0x2ed   :  { %3143 = vmatpush3.bf16.msra.mxu1 %v2763_v32 }
 0x2ee   :  { %2680 = vadd.xlane.f32.xlu0 %v2679_v57 }
 0x2f2   :  { %2688 = vadd.xlane.f32.xlu0 %v2687_v26 }
 0x377   :  { %v2665_v34 = vpop.xlane.xlu0 %2664  ;;  %v2673_v0 = vpop.xlane.xlu1 %2672 }
 0x378   :  { %v2690_v47 = vsel %vm539_vm10, %v2665_v34, %v2673_v0 }
 0x37b   :  { %v2681_v18 = vpop.xlane.xlu0 %2680 }
 0x37c   :  { %v2692_v55 = vsel %vm2691_vm15, %v2690_v47, %v2681_v18 }
 0x37f   :  { %v2689_v59 = vpop.xlane.xlu0 %2688 }
 0x380   :  { %v2694_v43 = vsel %vm2693_vm6, %v2692_v55, %v2689_v59 }
 0x381   :  { %v2695_v60 = vmul.f32 0.00390625, %v2694_v43 }
 0x383   :  { %v2696_v2 = vpack.c.bf16 %v2695_v60, %v2695_v60 }
 0x385   :  { %3137 = vmatmul.mubr.msk.bf16.vlgmr.msra.gmra.mrb[0].mxu0 %vm2706_vm8, %v2696_v2 }
 0x458   :  { %v2748_v22 = vpop.f32.mrb[0].mxu0 }
 0x459   :  { %v2749_v8 = vadd.f32 %v3125_v5, %v2748_v22  ;;  %v3138_v14 = vpop.f32.mrb[1].mxu0 }
 0x45a   :  { %v2751_v38 = vpop.f32.mrb[2].mxu0 }
 0x45b   :  { %vm2754_vm10 = vcmp.ge.f32.partialorder %v2749_v8, 0.0  ;;  %v2755_v37 = vmul.f32 0.01, %v2749_v8  ;;  %v3139_v53 = vpop.f32.mrb[3].mxu0 }
 0x45d   :  { %v2756_v49 = vsel %vm2754_vm10, %v2749_v8, %v2755_v37 }
 0x45e   :  { %v2757_v20 = vpack.c.bf16 %v2756_v49, %v2756_v49 }
 0x460   :  { %3145 = vmatmul.mubr.msk.bf16.vlgmr.msra.gmra.mrb[0].mxu1 %vm2771_vm9, %v2757_v20 }
 0x533   :  { %v2809_v23 = vpop.f32.mrb[0].mxu1 }
 0x534   :  { %v2810_v58 = vadd.f32 %v3127_v62, %v2809_v23  ;;  %v3146_v50 = vpop.f32.mrb[1].mxu1 }
 0x535   :  { %v2812_v27 = vpop.f32.mrb[2].mxu1 }
 0x536   :  { %2816 = vrot.lane.b32.xlu1 %v2810_v58, %s3239_s5  ;;  %v3147_v13 = vpop.f32.mrb[3].mxu1 }
 0x5a8   :  { %v2817_v10 = vpop.permute.xlu1 %2816 }
 0x5a9   :  { %v2819_v16 = vsel %vm2706_vm8, %v2695_v60, %v2817_v10 }
 0x5aa   :  { %v2821_v24 = vsel %vm2820_vm11, %v2819_v16, 0.0 }
 0x5ab   :  { %2822 = vst [vmem:[%s7213_s7] sm:$0xf] %v2821_v24 }
 0x5ac   :  { %2827 = vsyncpa [#allocation3], 1 }
 0x5ad   :  { %2828 = vsyncpa [#allocation5], 1 }
 0x5ae   :  { %2829 = vsyncpa [#allocation8], 1 }

</bundles_post_ra>
